<compile_context>
chip_gen: v5e
topology: v5e:2x2
jax: 0.10.0
libtpu: 0.0.40
codegen_flags: <defaults>
</compile_context>

<pallas_src>
import jax
import jax.numpy as jnp
from jax.experimental import pallas as pl
from jax.experimental.pallas import tpu as pltpu

_LANE = 128
_SUBLANE = 8


def _round_up(x, m):
    return (x + m - 1) // m * m


def _cdiv(a, b):
    return -(-a // b)


def _vmem_capacity_bytes():
    try:
        return int(pltpu.get_tpu_info().vmem_capacity_bytes)
    except Exception:
        return 64 << 20  # conservative default (v7x per-core VMEM)


def _make_mlp_kernel(hidden_real, n_features, streaming):
    """hidden_real: true hidden width (LN3 stats use it). n_features: true input size."""
    inv_n = 1.0 / float(n_features)
    inv_nm1 = 1.0 / float(n_features - 1)  # torch.std(dim=1) is UNBIASED (correction=1)

    def _layernorm(h, g, b, n_valid):
        if n_valid == h.shape[-1]:
            mu = jnp.mean(h, axis=-1, keepdims=True)
            c = h - mu
            var = jnp.mean(c * c, axis=-1, keepdims=True)
        else:
            # Padded columns of h are exact zeros (zero-padded W/b); restrict the
            # statistics to the n_valid real columns with a lane mask.
            mask = jax.lax.broadcasted_iota(jnp.int32, h.shape, 1) < n_valid
            mu = jnp.sum(h, axis=-1, keepdims=True) / n_valid
            c = jnp.where(mask, h - mu, 0.0)
            var = jnp.sum(c * c, axis=-1, keepdims=True) / n_valid
        # Padded gamma/beta are zeros -> padded columns stay exactly zero.
        return c * jax.lax.rsqrt(var + 1e-5) * g + b

    def _mm(h, w_ref, b_ref):
        # bf16 operands on the MXU, f32 accumulation; bias add in f32.
        return jnp.dot(h.astype(jnp.bfloat16), w_ref[...],
                       preferred_element_type=jnp.float32) + b_ref[...]

    def _tail(h1, g1_ref, be1_ref, w2_ref, b2_ref, g2_ref, be2_ref,
              w3_ref, b3_ref, g3_ref, be3_ref, w4_ref, b4_ref, o_ref):
        # h1: layer-1 pre-LN activation, f32 (TB, 512).
        h = jnp.maximum(_layernorm(h1, g1_ref[...], be1_ref[...], 512), 0.0)
        h = jnp.maximum(_layernorm(_mm(h, w2_ref, b2_ref), g2_ref[...], be2_ref[...], 256), 0.0)
        h = jnp.maximum(_layernorm(_mm(h, w3_ref, b3_ref), g3_ref[...], be3_ref[...],
                                   hidden_real), 0.0)
        o_ref[...] = jax.nn.sigmoid(_mm(h, w4_ref, b4_ref)).astype(o_ref.dtype)

    if not streaming:
        # w1 fully resident in VMEM: single fused pass per batch tile.
        def kernel(x_ref, w1_ref, w1cs_ref, b1_ref, g1_ref, be1_ref,
                   w2_ref, b2_ref, g2_ref, be2_ref,
                   w3_ref, b3_ref, g3_ref, be3_ref,
                   w4_ref, b4_ref, o_ref):
            del w1cs_ref  # only needed by the streaming path
            x = x_ref[...].astype(jnp.float32)
            # Per-sample standardization: (x - mean) / (std + 1e-8), unbiased std.
            mean = jnp.mean(x, axis=1, keepdims=True)
            c = x - mean
            var = jnp.sum(c * c, axis=1, keepdims=True) * inv_nm1
            inv_std = 1.0 / (jnp.sqrt(var) + 1e-8)      # exact; only a (TB, 1) vector
            x_std = (c * inv_std).astype(jnp.bfloat16)  # cast once for the MXU
            h1 = jnp.dot(x_std, w1_ref[...], preferred_element_type=jnp.float32) + b1_ref[...]
            _tail(h1, g1_ref, be1_ref, w2_ref, b2_ref, g2_ref, be2_ref,
                  w3_ref, b3_ref, g3_ref, be3_ref, w4_ref, b4_ref, o_ref)
        return kernel

    # Streaming path: the K-reduction grid axis (last, "arbitrary") streams w1 in
    # (TK, 512) blocks; layer-1 accumulates in f32 scratch and the per-sample
    # standardization is folded in afterwards:
    #   ((x - mean) * s) @ w1 == s * (x @ w1 - mean * colsum(w1))
    # Numerics caveat (accepted per review): x enters the MXU un-centered in bf16.
    def kernel(x_ref, w1_ref, w1cs_ref, b1_ref, g1_ref, be1_ref,
               w2_ref, b2_ref, g2_ref, be2_ref,
               w3_ref, b3_ref, g3_ref, be3_ref,
               w4_ref, b4_ref, o_ref,
               acc1_ref, s1_ref, s2_ref):
        k = pl.program_id(1)

        @pl.when(k == 0)
        def _():
            acc1_ref[...] = jnp.zeros_like(acc1_ref)
            s1_ref[...] = jnp.zeros_like(s1_ref)
            s2_ref[...] = jnp.zeros_like(s2_ref)

        xb = x_ref[...].astype(jnp.float32)
        s1_ref[...] += jnp.sum(xb, axis=1, keepdims=True)
        s2_ref[...] += jnp.sum(xb * xb, axis=1, keepdims=True)
        acc1_ref[...] += jnp.dot(xb.astype(jnp.bfloat16), w1_ref[...],
                                 preferred_element_type=jnp.float32)

        @pl.when(k == pl.num_programs(1) - 1)
        def _():
            s1 = s1_ref[...]
            mean = s1 * inv_n
            var = jnp.maximum((s2_ref[...] - mean * s1) * inv_nm1, 0.0)
            inv_std = 1.0 / (jnp.sqrt(var) + 1e-8)
            h1 = (acc1_ref[...] - mean * w1cs_ref[...]) * inv_std + b1_ref[...]
            _tail(h1, g1_ref, be1_ref, w2_ref, b2_ref, g2_ref, be2_ref,
                  w3_ref, b3_ref, g3_ref, be3_ref, w4_ref, b4_ref, o_ref)

    return kernel


def prepare_params(params):
    """Pad / cast / pre-reduce the weights ONCE; reuse the result across forward calls."""
    input_size = params["w1"].shape[0]
    assert input_size > 1, "per-sample std needs at least 2 features"
    hidden_real = params["w3"].shape[1]
    out_real = params["w4"].shape[1]
    hidden_pad = _round_up(hidden_real, _LANE)
    out_pad = _round_up(out_real, _LANE)

    vmem_cap = _vmem_capacity_bytes()
    budget = vmem_cap - (16 << 20)  # ~48 MiB usable on v7x, ~112 MiB on v5e/v6e

    # Small layers: bf16 MXU operands, narrow dims zero-padded to 128 lanes.
    w2 = params["w2"].astype(jnp.bfloat16)
    w3 = jnp.pad(params["w3"], ((0, 0), (0, hidden_pad - hidden_real))).astype(jnp.bfloat16)
    w4 = jnp.pad(params["w4"], ((0, hidden_pad - hidden_real),
                                (0, out_pad - out_real))).astype(jnp.bfloat16)
    b3 = jnp.pad(params["b3"], ((0, 0), (0, hidden_pad - hidden_real)))
    g3 = jnp.pad(params["g3"], ((0, 0), (0, hidden_pad - hidden_real)))
    be3 = jnp.pad(params["be3"], ((0, 0), (0, hidden_pad - hidden_real)))
    b4 = jnp.pad(params["b4"], ((0, 0), (0, out_pad - out_real)))

    small = (params["b1"], params["g1"], params["be1"],
             w2, params["b2"], params["g2"], params["be2"],
             w3, b3, g3, be3, w4, b4)
    # Conservative: count 2 buffers for small params in case single-buffering is unavailable.
    small_bytes = 2 * sum(int(t.size) * t.dtype.itemsize for t in small)

    # Layer-1 weight: fully resident (single K block) if it fits, else streamed along K.
    w1_full_bytes = input_size * 512 * 2  # bf16
    if small_bytes + w1_full_bytes <= budget // 2:
        tk, n_k, k_pad = input_size, 1, input_size
        w1_resident = w1_full_bytes                    # single buffer when resident
    else:
        tk = 4096
        while tk > 256 and 2 * tk * 512 * 2 > max(budget // 8, 4 << 20):
            tk //= 2
        k_pad = _round_up(input_size, tk)
        n_k = k_pad // tk
        w1_resident = 2 * tk * 512 * 2                 # double-buffered streamed block

    w1 = params["w1"].astype(jnp.bfloat16)
    if k_pad != input_size:
        w1 = jnp.pad(w1, ((0, k_pad - input_size), (0, 0)))
    # Column sums of the bf16-rounded w1 (streaming path folds the per-sample mean with it).
    w1cs = jnp.sum(w1.astype(jnp.float32), axis=0, keepdims=True)

    tensors = tuple(jnp.asarray(t) for t in (w1, w1cs) + small)
    resident_bytes = int(small_bytes + w1_resident + 2 * int(w1cs.size) * 4)

    return dict(
        tensors=tensors,
        input_size=input_size, hidden_real=hidden_real, out_real=out_real,
        hidden_pad=hidden_pad, out_pad=out_pad,
        tk=int(tk), n_k=int(n_k), k_pad=int(k_pad),
        vmem_cap=int(vmem_cap), budget=int(budget), resident_bytes=resident_bytes,
    )


def simple_mlp_forward(x_nchw, prepared):
    cfg = prepared
    input_size = cfg["input_size"]
    tk, n_k, k_pad = cfg["tk"], cfg["n_k"], cfg["k_pad"]
    hidden_pad, out_pad = cfg["hidden_pad"], cfg["out_pad"]
    streaming = n_k > 1

    B = x_nchw.shape[0]
    x_flat = x_nchw.reshape(B, -1)  # nn.Flatten on NCHW (row-major)
    assert x_flat.shape[1] == input_size

    if k_pad != input_size:
        # TODO(synk): fold this zero-pad into a masked last-K block to avoid one extra
        # HBM pass over x at image-scale inputs.
        x_flat = jnp.pad(x_flat, ((0, 0), (0, k_pad - input_size)))

    # Batch tiling: fill the per-generation VMEM budget, keep >=2 (even) grid steps for
    # the v7x megacore, and minimize batch padding.
    per_row = (2 * tk * x_flat.dtype.itemsize            # double-buffered x tile
               + 2 * out_pad * 4                         # double-buffered out tile
               + (512 + 2) * 4                           # acc1 / s1 / s2 scratch
               + tk * 6                                  # f32 + bf16 x temporaries
               + 2 * (512 + 256 + hidden_pad + out_pad) * 4)  # activation temporaries
    tb_max = (cfg["budget"] - cfg["resident_bytes"] - (4 << 20)) // per_row
    tb_max = max(_SUBLANE, min(tb_max // _SUBLANE * _SUBLANE, 1024))

    n_b = max(_cdiv(B, tb_max), 2 if B >= 16 else 1)
    if B >= 16 and n_b % 2:
        n_b += 1                                         # balanced split across 2 TCs
    TB = _round_up(_cdiv(B, n_b), _SUBLANE)
    B_pad = n_b * TB
    if B_pad != B:
        x_flat = jnp.pad(x_flat, ((0, B_pad - B), (0, 0)))

    est = cfg["resident_bytes"] + TB * per_row + (8 << 20)
    vmem_limit = int(min(cfg["vmem_cap"] - (2 << 20), max(est, 48 << 20)))

    kernel = _make_mlp_kernel(cfg["hidden_real"], input_size, streaming)
    tensors = cfg["tensors"]

    def call(single_buffer):
        const_pm = pl.Buffered(1) if single_buffer else None
        x_spec = pl.BlockSpec((TB, tk), lambda i, k: (i, k))
        if streaming:
            w1_spec = pl.BlockSpec((tk, 512), lambda i, k: (k, 0))
        else:
            w1_spec = pl.BlockSpec((tk, 512), lambda i, k: (0, 0), pipeline_mode=const_pm)
        # Constant index_map -> resident in VMEM across grid steps (single buffer).
        param_specs = [pl.BlockSpec(t.shape, lambda i, k: (0, 0), pipeline_mode=const_pm)
                       for t in tensors[1:]]
        scratch = ([pltpu.VMEM((TB, 512), jnp.float32),
                    pltpu.VMEM((TB, 1), jnp.float32),
                    pltpu.VMEM((TB, 1), jnp.float32)] if streaming else [])
        return pl.pallas_call(
            kernel,
            out_shape=jax.ShapeDtypeStruct((B_pad, out_pad), jnp.float32),
            grid=(n_b, n_k),
            in_specs=[x_spec, w1_spec] + param_specs,
            out_specs=pl.BlockSpec((TB, out_pad), lambda i, k: (i, 0)),
            scratch_shapes=scratch,
            compiler_params=pltpu.CompilerParams(
                dimension_semantics=("parallel", "arbitrary"),
                vmem_limit_bytes=vmem_limit,
            ),
        )(x_flat, *tensors)

    try:
        out_full = call(single_buffer=True)   # resident params held in a single buffer
    except Exception:
        out_full = call(single_buffer=False)  # builds without pl.Buffered(1) support

    return out_full[:B, :cfg["out_real"]]


def init_params(key, input_size, hidden_size, output_size):
    """Deterministic synthetic init. Weights stored as (in_features, out_features)."""
    ks = jax.random.split(key, 8)

    def lin(kw, kb, fan_in, fan_out):
        bound = 1.0 / jnp.sqrt(fan_in)
        w = jax.random.uniform(kw, (fan_in, fan_out), jnp.float32, -bound, bound)
        b = jax.random.uniform(kb, (1, fan_out), jnp.float32, -bound, bound)
        return w, b

    w1, b1 = lin(ks[0], ks[1], input_size, 512)
    w2, b2 = lin(ks[2], ks[3], 512, 256)
    w3, b3 = lin(ks[4], ks[5], 256, hidden_size)
    w4, b4 = lin(ks[6], ks[7], hidden_size, output_size)

    return {
        "w1": w1, "b1": b1,
        "g1": jnp.ones((1, 512), jnp.float32), "be1": jnp.zeros((1, 512), jnp.float32),
        "w2": w2, "b2": b2,
        "g2": jnp.ones((1, 256), jnp.float32), "be2": jnp.zeros((1, 256), jnp.float32),
        "w3": w3, "b3": b3,
        "g3": jnp.ones((1, hidden_size), jnp.float32),
        "be3": jnp.zeros((1, hidden_size), jnp.float32),
        "w4": w4, "b4": b4,
    }


if __name__ == "__main__":
    B, C, H, W = 2, 4, 16, 16
    input_size = C * H * W      # 1024
    hidden_size = 32
    output_size = 8

    key = jax.random.PRNGKey(0)
    k_x, k_p = jax.random.split(key)
    x = jax.random.normal(k_x, (B, C, H, W), jnp.float32)
    params = init_params(k_p, input_size, hidden_size, output_size)

    prepared = prepare_params(params)   # pad / cast / pre-reduce weights once
    out = simple_mlp_forward(x, prepared)
    out = jax.block_until_ready(out)

    assert out.shape == (B, output_size), out.shape
    assert bool(jnp.all(jnp.isfinite(out)))
    assert bool(jnp.all((out >= 0.0) & (out <= 1.0)))  # sigmoid range
    print("KERNEL_OK")
</pallas_src>

<mosaic_0001>
module attributes {stable_mosaic.version = 11 : i64} {
  func.func @kernel(%arg0: i32, %arg1: i32, %arg2: memref<8x1024xf32, #tpu.memory_space<vmem>>, %arg3: memref<1024x512xbf16, #tpu.memory_space<vmem>>, %arg4: memref<1x512xf32, #tpu.memory_space<vmem>>, %arg5: memref<1x512xf32, #tpu.memory_space<vmem>>, %arg6: memref<1x512xf32, #tpu.memory_space<vmem>>, %arg7: memref<1x512xf32, #tpu.memory_space<vmem>>, %arg8: memref<512x256xbf16, #tpu.memory_space<vmem>>, %arg9: memref<1x256xf32, #tpu.memory_space<vmem>>, %arg10: memref<1x256xf32, #tpu.memory_space<vmem>>, %arg11: memref<1x256xf32, #tpu.memory_space<vmem>>, %arg12: memref<256x128xbf16, #tpu.memory_space<vmem>>, %arg13: memref<1x128xf32, #tpu.memory_space<vmem>>, %arg14: memref<1x128xf32, #tpu.memory_space<vmem>>, %arg15: memref<1x128xf32, #tpu.memory_space<vmem>>, %arg16: memref<128x128xbf16, #tpu.memory_space<vmem>>, %arg17: memref<1x128xf32, #tpu.memory_space<vmem>>, %arg18: memref<8x128xf32, #tpu.memory_space<vmem>>) attributes {dimension_semantics = [#tpu.dimension_semantics<parallel>, #tpu.dimension_semantics<arbitrary>], iteration_bounds = array<i64: 1, 1>, scalar_prefetch = 0 : i64, scratch_operands = 0 : i64, tpu.core_type = #tpu.core_type<tc>, window_params = [{transform_indices = @transform_0, window_bounds = array<i64: 8, 1024>}, {pipeline_mode = #tpu.pipeline_mode<synchronous>, transform_indices = @transform_1, window_bounds = array<i64: 1024, 512>}, {pipeline_mode = #tpu.pipeline_mode<synchronous>, transform_indices = @transform_2, window_bounds = array<i64: 1, 512>}, {pipeline_mode = #tpu.pipeline_mode<synchronous>, transform_indices = @transform_3, window_bounds = array<i64: 1, 512>}, {pipeline_mode = #tpu.pipeline_mode<synchronous>, transform_indices = @transform_4, window_bounds = array<i64: 1, 512>}, {pipeline_mode = #tpu.pipeline_mode<synchronous>, transform_indices = @transform_5, window_bounds = array<i64: 1, 512>}, {pipeline_mode = #tpu.pipeline_mode<synchronous>, transform_indices = @transform_6, window_bounds = array<i64: 512, 256>}, {pipeline_mode = #tpu.pipeline_mode<synchronous>, transform_indices = @transform_7, window_bounds = array<i64: 1, 256>}, {pipeline_mode = #tpu.pipeline_mode<synchronous>, transform_indices = @transform_8, window_bounds = array<i64: 1, 256>}, {pipeline_mode = #tpu.pipeline_mode<synchronous>, transform_indices = @transform_9, window_bounds = array<i64: 1, 256>}, {pipeline_mode = #tpu.pipeline_mode<synchronous>, transform_indices = @transform_10, window_bounds = array<i64: 256, 128>}, {pipeline_mode = #tpu.pipeline_mode<synchronous>, transform_indices = @transform_11, window_bounds = array<i64: 1, 128>}, {pipeline_mode = #tpu.pipeline_mode<synchronous>, transform_indices = @transform_12, window_bounds = array<i64: 1, 128>}, {pipeline_mode = #tpu.pipeline_mode<synchronous>, transform_indices = @transform_13, window_bounds = array<i64: 1, 128>}, {pipeline_mode = #tpu.pipeline_mode<synchronous>, transform_indices = @transform_14, window_bounds = array<i64: 128, 128>}, {pipeline_mode = #tpu.pipeline_mode<synchronous>, transform_indices = @transform_15, window_bounds = array<i64: 1, 128>}, {transform_indices = @transform_16, window_bounds = array<i64: 8, 128>}]} {
    %c0 = arith.constant 0 : index
    %c0_0 = arith.constant 0 : index
    %0 = vector.load %arg2[%c0, %c0_0] : memref<8x1024xf32, #tpu.memory_space<vmem>>, vector<8x1024xf32>
    %cst = arith.constant dense<0.000000e+00> : vector<8xf32>
    %1 = vector.multi_reduction <add>, %0, %cst [1] : vector<8x1024xf32> to vector<8xf32>
    %2 = vector.shape_cast %1 : vector<8xf32> to vector<8x1xf32>
    %cst_1 = arith.constant 1.024000e+03 : f32
    %3 = vector.broadcast %cst_1 : f32 to vector<8x1xf32>
    %4 = arith.divf %2, %3 : vector<8x1xf32>
    %5 = vector.broadcast %4 : vector<8x1xf32> to vector<8x1024xf32>
    %6 = arith.subf %0, %5 : vector<8x1024xf32>
    %7 = arith.mulf %6, %6 : vector<8x1024xf32>
    %cst_2 = arith.constant dense<0.000000e+00> : vector<8xf32>
    %8 = vector.multi_reduction <add>, %7, %cst_2 [1] : vector<8x1024xf32> to vector<8xf32>
    %9 = vector.shape_cast %8 : vector<8xf32> to vector<8x1xf32>
    %cst_3 = arith.constant 9.77517105E-4 : f32
    %10 = vector.broadcast %cst_3 : f32 to vector<8x1xf32>
    %11 = arith.mulf %9, %10 : vector<8x1xf32>
    %12 = math.sqrt %11 : vector<8x1xf32>
    %cst_4 = arith.constant 9.99999993E-9 : f32
    %13 = vector.broadcast %cst_4 : f32 to vector<8x1xf32>
    %14 = arith.addf %12, %13 : vector<8x1xf32>
    %cst_5 = arith.constant 1.000000e+00 : f32
    %15 = vector.broadcast %cst_5 : f32 to vector<8x1xf32>
    %16 = arith.divf %15, %14 : vector<8x1xf32>
    %17 = vector.broadcast %16 : vector<8x1xf32> to vector<8x1024xf32>
    %18 = arith.mulf %6, %17 : vector<8x1024xf32>
    %19 = arith.truncf %18 : vector<8x1024xf32> to vector<8x1024xbf16>
    %c0_6 = arith.constant 0 : index
    %c0_7 = arith.constant 0 : index
    %20 = vector.load %arg3[%c0_6, %c0_7] : memref<1024x512xbf16, #tpu.memory_space<vmem>>, vector<1024x512xbf16>
    %cst_8 = arith.constant dense<0.000000e+00> : vector<8x512xf32>
    %21 = tpu.matmul %19, %20, %cst_8 {dimension_numbers = #tpu.dot_dimension_numbers<[1], [0], [0], [1], [0, 0, 1, 1], [], []>} : vector<8x1024xbf16>, vector<1024x512xbf16>, vector<8x512xf32> -> vector<8x512xf32>
    %c0_9 = arith.constant 0 : index
    %c0_10 = arith.constant 0 : index
    %22 = vector.load %arg5[%c0_9, %c0_10] : memref<1x512xf32, #tpu.memory_space<vmem>>, vector<1x512xf32>
    %23 = vector.broadcast %22 : vector<1x512xf32> to vector<8x512xf32>
    %24 = arith.addf %21, %23 : vector<8x512xf32>
    %c0_11 = arith.constant 0 : index
    %c0_12 = arith.constant 0 : index
    %25 = vector.load %arg6[%c0_11, %c0_12] : memref<1x512xf32, #tpu.memory_space<vmem>>, vector<1x512xf32>
    %c0_13 = arith.constant 0 : index
    %c0_14 = arith.constant 0 : index
    %26 = vector.load %arg7[%c0_13, %c0_14] : memref<1x512xf32, #tpu.memory_space<vmem>>, vector<1x512xf32>
    %cst_15 = arith.constant dense<0.000000e+00> : vector<8xf32>
    %27 = vector.multi_reduction <add>, %24, %cst_15 [1] : vector<8x512xf32> to vector<8xf32>
    %28 = vector.shape_cast %27 : vector<8xf32> to vector<8x1xf32>
    %cst_16 = arith.constant 5.120000e+02 : f32
    %29 = vector.broadcast %cst_16 : f32 to vector<8x1xf32>
    %30 = arith.divf %28, %29 : vector<8x1xf32>
    %31 = vector.broadcast %30 : vector<8x1xf32> to vector<8x512xf32>
    %32 = arith.subf %24, %31 : vector<8x512xf32>
    %33 = arith.mulf %32, %32 : vector<8x512xf32>
    %cst_17 = arith.constant dense<0.000000e+00> : vector<8xf32>
    %34 = vector.multi_reduction <add>, %33, %cst_17 [1] : vector<8x512xf32> to vector<8xf32>
    %35 = vector.shape_cast %34 : vector<8xf32> to vector<8x1xf32>
    %cst_18 = arith.constant 5.120000e+02 : f32
    %36 = vector.broadcast %cst_18 : f32 to vector<8x1xf32>
    %37 = arith.divf %35, %36 : vector<8x1xf32>
    %cst_19 = arith.constant 9.99999974E-6 : f32
    %38 = vector.broadcast %cst_19 : f32 to vector<8x1xf32>
    %39 = arith.addf %37, %38 : vector<8x1xf32>
    %40 = math.rsqrt %39 : vector<8x1xf32>
    %41 = vector.broadcast %40 : vector<8x1xf32> to vector<8x512xf32>
    %42 = arith.mulf %32, %41 : vector<8x512xf32>
    %43 = vector.broadcast %25 : vector<1x512xf32> to vector<8x512xf32>
    %44 = arith.mulf %42, %43 : vector<8x512xf32>
    %45 = vector.broadcast %26 : vector<1x512xf32> to vector<8x512xf32>
    %46 = arith.addf %44, %45 : vector<8x512xf32>
    %cst_20 = arith.constant 0.000000e+00 : f32
    %47 = vector.broadcast %cst_20 : f32 to vector<8x512xf32>
    %48 = arith.maximumf %46, %47 : vector<8x512xf32>
    %49 = arith.truncf %48 : vector<8x512xf32> to vector<8x512xbf16>
    %c0_21 = arith.constant 0 : index
    %c0_22 = arith.constant 0 : index
    %50 = vector.load %arg8[%c0_21, %c0_22] : memref<512x256xbf16, #tpu.memory_space<vmem>>, vector<512x256xbf16>
    %cst_23 = arith.constant dense<0.000000e+00> : vector<8x256xf32>
    %51 = tpu.matmul %49, %50, %cst_23 {dimension_numbers = #tpu.dot_dimension_numbers<[1], [0], [0], [1], [0, 0, 1, 1], [], []>} : vector<8x512xbf16>, vector<512x256xbf16>, vector<8x256xf32> -> vector<8x256xf32>
    %c0_24 = arith.constant 0 : index
    %c0_25 = arith.constant 0 : index
    %52 = vector.load %arg9[%c0_24, %c0_25] : memref<1x256xf32, #tpu.memory_space<vmem>>, vector<1x256xf32>
    %53 = vector.broadcast %52 : vector<1x256xf32> to vector<8x256xf32>
    %54 = arith.addf %51, %53 : vector<8x256xf32>
    %c0_26 = arith.constant 0 : index
    %c0_27 = arith.constant 0 : index
    %55 = vector.load %arg10[%c0_26, %c0_27] : memref<1x256xf32, #tpu.memory_space<vmem>>, vector<1x256xf32>
    %c0_28 = arith.constant 0 : index
    %c0_29 = arith.constant 0 : index
    %56 = vector.load %arg11[%c0_28, %c0_29] : memref<1x256xf32, #tpu.memory_space<vmem>>, vector<1x256xf32>
    %cst_30 = arith.constant dense<0.000000e+00> : vector<8xf32>
    %57 = vector.multi_reduction <add>, %54, %cst_30 [1] : vector<8x256xf32> to vector<8xf32>
    %58 = vector.shape_cast %57 : vector<8xf32> to vector<8x1xf32>
    %cst_31 = arith.constant 2.560000e+02 : f32
    %59 = vector.broadcast %cst_31 : f32 to vector<8x1xf32>
    %60 = arith.divf %58, %59 : vector<8x1xf32>
    %61 = vector.broadcast %60 : vector<8x1xf32> to vector<8x256xf32>
    %62 = arith.subf %54, %61 : vector<8x256xf32>
    %63 = arith.mulf %62, %62 : vector<8x256xf32>
    %cst_32 = arith.constant dense<0.000000e+00> : vector<8xf32>
    %64 = vector.multi_reduction <add>, %63, %cst_32 [1] : vector<8x256xf32> to vector<8xf32>
    %65 = vector.shape_cast %64 : vector<8xf32> to vector<8x1xf32>
    %cst_33 = arith.constant 2.560000e+02 : f32
    %66 = vector.broadcast %cst_33 : f32 to vector<8x1xf32>
    %67 = arith.divf %65, %66 : vector<8x1xf32>
    %cst_34 = arith.constant 9.99999974E-6 : f32
    %68 = vector.broadcast %cst_34 : f32 to vector<8x1xf32>
    %69 = arith.addf %67, %68 : vector<8x1xf32>
    %70 = math.rsqrt %69 : vector<8x1xf32>
    %71 = vector.broadcast %70 : vector<8x1xf32> to vector<8x256xf32>
    %72 = arith.mulf %62, %71 : vector<8x256xf32>
    %73 = vector.broadcast %55 : vector<1x256xf32> to vector<8x256xf32>
    %74 = arith.mulf %72, %73 : vector<8x256xf32>
    %75 = vector.broadcast %56 : vector<1x256xf32> to vector<8x256xf32>
    %76 = arith.addf %74, %75 : vector<8x256xf32>
    %cst_35 = arith.constant 0.000000e+00 : f32
    %77 = vector.broadcast %cst_35 : f32 to vector<8x256xf32>
    %78 = arith.maximumf %76, %77 : vector<8x256xf32>
    %79 = arith.truncf %78 : vector<8x256xf32> to vector<8x256xbf16>
    %c0_36 = arith.constant 0 : index
    %c0_37 = arith.constant 0 : index
    %80 = vector.load %arg12[%c0_36, %c0_37] : memref<256x128xbf16, #tpu.memory_space<vmem>>, vector<256x128xbf16>
    %cst_38 = arith.constant dense<0.000000e+00> : vector<8x128xf32>
    %81 = tpu.matmul %79, %80, %cst_38 {dimension_numbers = #tpu.dot_dimension_numbers<[1], [0], [0], [1], [0, 0, 1, 1], [], []>} : vector<8x256xbf16>, vector<256x128xbf16>, vector<8x128xf32> -> vector<8x128xf32>
    %c0_39 = arith.constant 0 : index
    %c0_40 = arith.constant 0 : index
    %82 = vector.load %arg13[%c0_39, %c0_40] : memref<1x128xf32, #tpu.memory_space<vmem>>, vector<1x128xf32>
    %83 = vector.broadcast %82 : vector<1x128xf32> to vector<8x128xf32>
    %84 = arith.addf %81, %83 : vector<8x128xf32>
    %c0_41 = arith.constant 0 : index
    %c0_42 = arith.constant 0 : index
    %85 = vector.load %arg14[%c0_41, %c0_42] : memref<1x128xf32, #tpu.memory_space<vmem>>, vector<1x128xf32>
    %c0_43 = arith.constant 0 : index
    %c0_44 = arith.constant 0 : index
    %86 = vector.load %arg15[%c0_43, %c0_44] : memref<1x128xf32, #tpu.memory_space<vmem>>, vector<1x128xf32>
    %87 = tpu.iota {dimensions = array<i32: 1>} : vector<8x128xi32>
    %c32_i32 = arith.constant 32 : i32
    %88 = vector.broadcast %c32_i32 : i32 to vector<8x128xi32>
    %89 = arith.cmpi slt, %87, %88 : vector<8x128xi32>
    %cst_45 = arith.constant dense<0.000000e+00> : vector<8xf32>
    %90 = vector.multi_reduction <add>, %84, %cst_45 [1] : vector<8x128xf32> to vector<8xf32>
    %91 = vector.shape_cast %90 : vector<8xf32> to vector<8x1xf32>
    %cst_46 = arith.constant 3.200000e+01 : f32
    %92 = vector.broadcast %cst_46 : f32 to vector<8x1xf32>
    %93 = arith.divf %91, %92 : vector<8x1xf32>
    %94 = vector.broadcast %93 : vector<8x1xf32> to vector<8x128xf32>
    %95 = arith.subf %84, %94 : vector<8x128xf32>
    %cst_47 = arith.constant 0.000000e+00 : f32
    %96 = vector.broadcast %cst_47 : f32 to vector<8x128xf32>
    %97 = arith.select %89, %95, %96 : vector<8x128xi1>, vector<8x128xf32>
    %98 = arith.mulf %97, %97 : vector<8x128xf32>
    %cst_48 = arith.constant dense<0.000000e+00> : vector<8xf32>
    %99 = vector.multi_reduction <add>, %98, %cst_48 [1] : vector<8x128xf32> to vector<8xf32>
    %100 = vector.shape_cast %99 : vector<8xf32> to vector<8x1xf32>
    %cst_49 = arith.constant 3.200000e+01 : f32
    %101 = vector.broadcast %cst_49 : f32 to vector<8x1xf32>
    %102 = arith.divf %100, %101 : vector<8x1xf32>
    %cst_50 = arith.constant 9.99999974E-6 : f32
    %103 = vector.broadcast %cst_50 : f32 to vector<8x1xf32>
    %104 = arith.addf %102, %103 : vector<8x1xf32>
    %105 = math.rsqrt %104 : vector<8x1xf32>
    %106 = vector.broadcast %105 : vector<8x1xf32> to vector<8x128xf32>
    %107 = arith.mulf %97, %106 : vector<8x128xf32>
    %108 = vector.broadcast %85 : vector<1x128xf32> to vector<8x128xf32>
    %109 = arith.mulf %107, %108 : vector<8x128xf32>
    %110 = vector.broadcast %86 : vector<1x128xf32> to vector<8x128xf32>
    %111 = arith.addf %109, %110 : vector<8x128xf32>
    %cst_51 = arith.constant 0.000000e+00 : f32
    %112 = vector.broadcast %cst_51 : f32 to vector<8x128xf32>
    %113 = arith.maximumf %111, %112 : vector<8x128xf32>
    %114 = arith.truncf %113 : vector<8x128xf32> to vector<8x128xbf16>
    %c0_52 = arith.constant 0 : index
    %c0_53 = arith.constant 0 : index
    %115 = vector.load %arg16[%c0_52, %c0_53] : memref<128x128xbf16, #tpu.memory_space<vmem>>, vector<128x128xbf16>
    %cst_54 = arith.constant dense<0.000000e+00> : vector<8x128xf32>
    %116 = tpu.matmul %114, %115, %cst_54 {dimension_numbers = #tpu.dot_dimension_numbers<[1], [0], [0], [1], [0, 0, 1, 1], [], []>} : vector<8x128xbf16>, vector<128x128xbf16>, vector<8x128xf32> -> vector<8x128xf32>
    %c0_55 = arith.constant 0 : index
    %c0_56 = arith.constant 0 : index
    %117 = vector.load %arg17[%c0_55, %c0_56] : memref<1x128xf32, #tpu.memory_space<vmem>>, vector<1x128xf32>
    %118 = vector.broadcast %117 : vector<1x128xf32> to vector<8x128xf32>
    %119 = arith.addf %116, %118 : vector<8x128xf32>
    %120 = arith.negf %119 : vector<8x128xf32>
    %121 = math.exp %120 : vector<8x128xf32>
    %cst_57 = arith.constant 1.000000e+00 : f32
    %122 = vector.broadcast %cst_57 : f32 to vector<8x128xf32>
    %123 = arith.addf %122, %121 : vector<8x128xf32>
    %124 = arith.divf %122, %123 : vector<8x128xf32>
    %c0_58 = arith.constant 0 : index
    %c0_59 = arith.constant 0 : index
    %125 = vector.load %arg18[%c0_58, %c0_59] : memref<8x128xf32, #tpu.memory_space<vmem>>, vector<8x128xf32>
    tpu.vector_store %arg18[%c0_58, %c0_59], %124 {strides = array<i32>} : memref<8x128xf32, #tpu.memory_space<vmem>>, vector<8x128xf32>,
    return
  }
  func.func @transform_0(%arg0: i32, %arg1: i32) -> (i32, i32) {
    %c0_i32 = arith.constant 0 : i32
    return %arg0, %arg1 : i32, i32
  }
  func.func @transform_1(%arg0: i32, %arg1: i32) -> (i32, i32) {
    %c0_i32 = arith.constant 0 : i32
    %c0_i32_0 = arith.constant 0 : i32
    %c0_i32_1 = arith.constant 0 : i32
    return %c0_i32, %c0_i32_0 : i32, i32
  }
  func.func @transform_2(%arg0: i32, %arg1: i32) -> (i32, i32) {
    %c0_i32 = arith.constant 0 : i32
    %c0_i32_0 = arith.constant 0 : i32
    %c0_i32_1 = arith.constant 0 : i32
    return %c0_i32, %c0_i32_0 : i32, i32
  }
  func.func @transform_3(%arg0: i32, %arg1: i32) -> (i32, i32) {
    %c0_i32 = arith.constant 0 : i32
    %c0_i32_0 = arith.constant 0 : i32
    %c0_i32_1 = arith.constant 0 : i32
    return %c0_i32, %c0_i32_0 : i32, i32
  }
  func.func @transform_4(%arg0: i32, %arg1: i32) -> (i32, i32) {
    %c0_i32 = arith.constant 0 : i32
    %c0_i32_0 = arith.constant 0 : i32
    %c0_i32_1 = arith.constant 0 : i32
    return %c0_i32, %c0_i32_0 : i32, i32
  }
  func.func @transform_5(%arg0: i32, %arg1: i32) -> (i32, i32) {
    %c0_i32 = arith.constant 0 : i32
    %c0_i32_0 = arith.constant 0 : i32
    %c0_i32_1 = arith.constant 0 : i32
    return %c0_i32, %c0_i32_0 : i32, i32
  }
  func.func @transform_6(%arg0: i32, %arg1: i32) -> (i32, i32) {
    %c0_i32 = arith.constant 0 : i32
    %c0_i32_0 = arith.constant 0 : i32
    %c0_i32_1 = arith.constant 0 : i32
    return %c0_i32, %c0_i32_0 : i32, i32
  }
  func.func @transform_7(%arg0: i32, %arg1: i32) -> (i32, i32) {
    %c0_i32 = arith.constant 0 : i32
    %c0_i32_0 = arith.constant 0 : i32
    %c0_i32_1 = arith.constant 0 : i32
    return %c0_i32, %c0_i32_0 : i32, i32
  }
  func.func @transform_8(%arg0: i32, %arg1: i32) -> (i32, i32) {
    %c0_i32 = arith.constant 0 : i32
    %c0_i32_0 = arith.constant 0 : i32
    %c0_i32_1 = arith.constant 0 : i32
    return %c0_i32, %c0_i32_0 : i32, i32
  }
  func.func @transform_9(%arg0: i32, %arg1: i32) -> (i32, i32) {
    %c0_i32 = arith.constant 0 : i32
    %c0_i32_0 = arith.constant 0 : i32
    %c0_i32_1 = arith.constant 0 : i32
    return %c0_i32, %c0_i32_0 : i32, i32
  }
  func.func @transform_10(%arg0: i32, %arg1: i32) -> (i32, i32) {
    %c0_i32 = arith.constant 0 : i32
    %c0_i32_0 = arith.constant 0 : i32
    %c0_i32_1 = arith.constant 0 : i32
    return %c0_i32, %c0_i32_0 : i32, i32
  }
  func.func @transform_11(%arg0: i32, %arg1: i32) -> (i32, i32) {
    %c0_i32 = arith.constant 0 : i32
    %c0_i32_0 = arith.constant 0 : i32
    %c0_i32_1 = arith.constant 0 : i32
    return %c0_i32, %c0_i32_0 : i32, i32
  }
  func.func @transform_12(%arg0: i32, %arg1: i32) -> (i32, i32) {
    %c0_i32 = arith.constant 0 : i32
    %c0_i32_0 = arith.constant 0 : i32
    %c0_i32_1 = arith.constant 0 : i32
    return %c0_i32, %c0_i32_0 : i32, i32
  }
  func.func @transform_13(%arg0: i32, %arg1: i32) -> (i32, i32) {
    %c0_i32 = arith.constant 0 : i32
    %c0_i32_0 = arith.constant 0 : i32
    %c0_i32_1 = arith.constant 0 : i32
    return %c0_i32, %c0_i32_0 : i32, i32
  }
  func.func @transform_14(%arg0: i32, %arg1: i32) -> (i32, i32) {
    %c0_i32 = arith.constant 0 : i32
    %c0_i32_0 = arith.constant 0 : i32
    %c0_i32_1 = arith.constant 0 : i32
    return %c0_i32, %c0_i32_0 : i32, i32
  }
  func.func @transform_15(%arg0: i32, %arg1: i32) -> (i32, i32) {
    %c0_i32 = arith.constant 0 : i32
    %c0_i32_0 = arith.constant 0 : i32
    %c0_i32_1 = arith.constant 0 : i32
    return %c0_i32, %c0_i32_0 : i32, i32
  }
  func.func @transform_16(%arg0: i32, %arg1: i32) -> (i32, i32) {
    %c0_i32 = arith.constant 0 : i32
    %c0_i32_0 = arith.constant 0 : i32
    return %arg0, %c0_i32 : i32, i32
  }
}

module attributes {stable_mosaic.version = 11 : i64} {
  func.func @kernel(%arg0: i32, %arg1: i32, %arg2: memref<8x1024xf32, #tpu.memory_space<vmem>>, %arg3: memref<1024x512xbf16, #tpu.memory_space<vmem>>, %arg4: memref<1x512xf32, #tpu.memory_space<vmem>>, %arg5: memref<1x512xf32, #tpu.memory_space<vmem>>, %arg6: memref<1x512xf32, #tpu.memory_space<vmem>>, %arg7: memref<1x512xf32, #tpu.memory_space<vmem>>, %arg8: memref<512x256xbf16, #tpu.memory_space<vmem>>, %arg9: memref<1x256xf32, #tpu.memory_space<vmem>>, %arg10: memref<1x256xf32, #tpu.memory_space<vmem>>, %arg11: memref<1x256xf32, #tpu.memory_space<vmem>>, %arg12: memref<256x128xbf16, #tpu.memory_space<vmem>>, %arg13: memref<1x128xf32, #tpu.memory_space<vmem>>, %arg14: memref<1x128xf32, #tpu.memory_space<vmem>>, %arg15: memref<1x128xf32, #tpu.memory_space<vmem>>, %arg16: memref<128x128xbf16, #tpu.memory_space<vmem>>, %arg17: memref<1x128xf32, #tpu.memory_space<vmem>>, %arg18: memref<8x128xf32, #tpu.memory_space<vmem>>) attributes {dimension_semantics = [#tpu.dimension_semantics<parallel>, #tpu.dimension_semantics<arbitrary>], iteration_bounds = array<i64: 1, 1>, scalar_prefetch = 0 : i64, scratch_operands = 0 : i64, tpu.core_type = #tpu.core_type<tc>, window_params = [{transform_indices = @transform_0, window_bounds = array<i64: 8, 1024>}, {pipeline_mode = #tpu.pipeline_mode<synchronous>, transform_indices = @transform_1, window_bounds = array<i64: 1024, 512>}, {pipeline_mode = #tpu.pipeline_mode<synchronous>, transform_indices = @transform_2, window_bounds = array<i64: 1, 512>}, {pipeline_mode = #tpu.pipeline_mode<synchronous>, transform_indices = @transform_3, window_bounds = array<i64: 1, 512>}, {pipeline_mode = #tpu.pipeline_mode<synchronous>, transform_indices = @transform_4, window_bounds = array<i64: 1, 512>}, {pipeline_mode = #tpu.pipeline_mode<synchronous>, transform_indices = @transform_5, window_bounds = array<i64: 1, 512>}, {pipeline_mode = #tpu.pipeline_mode<synchronous>, transform_indices = @transform_6, window_bounds = array<i64: 512, 256>}, {pipeline_mode = #tpu.pipeline_mode<synchronous>, transform_indices = @transform_7, window_bounds = array<i64: 1, 256>}, {pipeline_mode = #tpu.pipeline_mode<synchronous>, transform_indices = @transform_8, window_bounds = array<i64: 1, 256>}, {pipeline_mode = #tpu.pipeline_mode<synchronous>, transform_indices = @transform_9, window_bounds = array<i64: 1, 256>}, {pipeline_mode = #tpu.pipeline_mode<synchronous>, transform_indices = @transform_10, window_bounds = array<i64: 256, 128>}, {pipeline_mode = #tpu.pipeline_mode<synchronous>, transform_indices = @transform_11, window_bounds = array<i64: 1, 128>}, {pipeline_mode = #tpu.pipeline_mode<synchronous>, transform_indices = @transform_12, window_bounds = array<i64: 1, 128>}, {pipeline_mode = #tpu.pipeline_mode<synchronous>, transform_indices = @transform_13, window_bounds = array<i64: 1, 128>}, {pipeline_mode = #tpu.pipeline_mode<synchronous>, transform_indices = @transform_14, window_bounds = array<i64: 128, 128>}, {pipeline_mode = #tpu.pipeline_mode<synchronous>, transform_indices = @transform_15, window_bounds = array<i64: 1, 128>}, {transform_indices = @transform_16, window_bounds = array<i64: 8, 128>}]} {
    %c0 = arith.constant 0 : index
    %c0_0 = arith.constant 0 : index
    %0 = vector.load %arg2[%c0, %c0_0] : memref<8x1024xf32, #tpu.memory_space<vmem>>, vector<8x1024xf32>
    %cst = arith.constant dense<0.000000e+00> : vector<8xf32>
    %1 = vector.multi_reduction <add>, %0, %cst [1] : vector<8x1024xf32> to vector<8xf32>
    %2 = vector.shape_cast %1 : vector<8xf32> to vector<8x1xf32>
    %cst_1 = arith.constant 1.024000e+03 : f32
    %3 = vector.broadcast %cst_1 : f32 to vector<8x1xf32>
    %4 = arith.divf %2, %3 : vector<8x1xf32>
    %5 = vector.broadcast %4 : vector<8x1xf32> to vector<8x1024xf32>
    %6 = arith.subf %0, %5 : vector<8x1024xf32>
    %7 = arith.mulf %6, %6 : vector<8x1024xf32>
    %cst_2 = arith.constant dense<0.000000e+00> : vector<8xf32>
    %8 = vector.multi_reduction <add>, %7, %cst_2 [1] : vector<8x1024xf32> to vector<8xf32>
    %9 = vector.shape_cast %8 : vector<8xf32> to vector<8x1xf32>
    %cst_3 = arith.constant 9.77517105E-4 : f32
    %10 = vector.broadcast %cst_3 : f32 to vector<8x1xf32>
    %11 = arith.mulf %9, %10 : vector<8x1xf32>
    %12 = math.sqrt %11 : vector<8x1xf32>
    %cst_4 = arith.constant 9.99999993E-9 : f32
    %13 = vector.broadcast %cst_4 : f32 to vector<8x1xf32>
    %14 = arith.addf %12, %13 : vector<8x1xf32>
    %cst_5 = arith.constant 1.000000e+00 : f32
    %15 = vector.broadcast %cst_5 : f32 to vector<8x1xf32>
    %16 = arith.divf %15, %14 : vector<8x1xf32>
    %17 = vector.broadcast %16 : vector<8x1xf32> to vector<8x1024xf32>
    %18 = arith.mulf %6, %17 : vector<8x1024xf32>
    %19 = arith.truncf %18 : vector<8x1024xf32> to vector<8x1024xbf16>
    %c0_6 = arith.constant 0 : index
    %c0_7 = arith.constant 0 : index
    %20 = vector.load %arg3[%c0_6, %c0_7] : memref<1024x512xbf16, #tpu.memory_space<vmem>>, vector<1024x512xbf16>
    %cst_8 = arith.constant dense<0.000000e+00> : vector<8x512xf32>
    %21 = tpu.matmul %19, %20, %cst_8 {dimension_numbers = #tpu.dot_dimension_numbers<[1], [0], [0], [1], [0, 0, 1, 1], [], []>} : vector<8x1024xbf16>, vector<1024x512xbf16>, vector<8x512xf32> -> vector<8x512xf32>
    %c0_9 = arith.constant 0 : index
    %c0_10 = arith.constant 0 : index
    %22 = vector.load %arg5[%c0_9, %c0_10] : memref<1x512xf32, #tpu.memory_space<vmem>>, vector<1x512xf32>
    %23 = vector.broadcast %22 : vector<1x512xf32> to vector<8x512xf32>
    %24 = arith.addf %21, %23 : vector<8x512xf32>
    %c0_11 = arith.constant 0 : index
    %c0_12 = arith.constant 0 : index
    %25 = vector.load %arg6[%c0_11, %c0_12] : memref<1x512xf32, #tpu.memory_space<vmem>>, vector<1x512xf32>
    %c0_13 = arith.constant 0 : index
    %c0_14 = arith.constant 0 : index
    %26 = vector.load %arg7[%c0_13, %c0_14] : memref<1x512xf32, #tpu.memory_space<vmem>>, vector<1x512xf32>
    %cst_15 = arith.constant dense<0.000000e+00> : vector<8xf32>
    %27 = vector.multi_reduction <add>, %24, %cst_15 [1] : vector<8x512xf32> to vector<8xf32>
    %28 = vector.shape_cast %27 : vector<8xf32> to vector<8x1xf32>
    %cst_16 = arith.constant 5.120000e+02 : f32
    %29 = vector.broadcast %cst_16 : f32 to vector<8x1xf32>
    %30 = arith.divf %28, %29 : vector<8x1xf32>
    %31 = vector.broadcast %30 : vector<8x1xf32> to vector<8x512xf32>
    %32 = arith.subf %24, %31 : vector<8x512xf32>
    %33 = arith.mulf %32, %32 : vector<8x512xf32>
    %cst_17 = arith.constant dense<0.000000e+00> : vector<8xf32>
    %34 = vector.multi_reduction <add>, %33, %cst_17 [1] : vector<8x512xf32> to vector<8xf32>
    %35 = vector.shape_cast %34 : vector<8xf32> to vector<8x1xf32>
    %cst_18 = arith.constant 5.120000e+02 : f32
    %36 = vector.broadcast %cst_18 : f32 to vector<8x1xf32>
    %37 = arith.divf %35, %36 : vector<8x1xf32>
    %cst_19 = arith.constant 9.99999974E-6 : f32
    %38 = vector.broadcast %cst_19 : f32 to vector<8x1xf32>
    %39 = arith.addf %37, %38 : vector<8x1xf32>
    %40 = math.rsqrt %39 : vector<8x1xf32>
    %41 = vector.broadcast %40 : vector<8x1xf32> to vector<8x512xf32>
    %42 = arith.mulf %32, %41 : vector<8x512xf32>
    %43 = vector.broadcast %25 : vector<1x512xf32> to vector<8x512xf32>
    %44 = arith.mulf %42, %43 : vector<8x512xf32>
    %45 = vector.broadcast %26 : vector<1x512xf32> to vector<8x512xf32>
    %46 = arith.addf %44, %45 : vector<8x512xf32>
    %cst_20 = arith.constant 0.000000e+00 : f32
    %47 = vector.broadcast %cst_20 : f32 to vector<8x512xf32>
    %48 = arith.maximumf %46, %47 : vector<8x512xf32>
    %49 = arith.truncf %48 : vector<8x512xf32> to vector<8x512xbf16>
    %c0_21 = arith.constant 0 : index
    %c0_22 = arith.constant 0 : index
    %50 = vector.load %arg8[%c0_21, %c0_22] : memref<512x256xbf16, #tpu.memory_space<vmem>>, vector<512x256xbf16>
    %cst_23 = arith.constant dense<0.000000e+00> : vector<8x256xf32>
    %51 = tpu.matmul %49, %50, %cst_23 {dimension_numbers = #tpu.dot_dimension_numbers<[1], [0], [0], [1], [0, 0, 1, 1], [], []>} : vector<8x512xbf16>, vector<512x256xbf16>, vector<8x256xf32> -> vector<8x256xf32>
    %c0_24 = arith.constant 0 : index
    %c0_25 = arith.constant 0 : index
    %52 = vector.load %arg9[%c0_24, %c0_25] : memref<1x256xf32, #tpu.memory_space<vmem>>, vector<1x256xf32>
    %53 = vector.broadcast %52 : vector<1x256xf32> to vector<8x256xf32>
    %54 = arith.addf %51, %53 : vector<8x256xf32>
    %c0_26 = arith.constant 0 : index
    %c0_27 = arith.constant 0 : index
    %55 = vector.load %arg10[%c0_26, %c0_27] : memref<1x256xf32, #tpu.memory_space<vmem>>, vector<1x256xf32>
    %c0_28 = arith.constant 0 : index
    %c0_29 = arith.constant 0 : index
    %56 = vector.load %arg11[%c0_28, %c0_29] : memref<1x256xf32, #tpu.memory_space<vmem>>, vector<1x256xf32>
    %cst_30 = arith.constant dense<0.000000e+00> : vector<8xf32>
    %57 = vector.multi_reduction <add>, %54, %cst_30 [1] : vector<8x256xf32> to vector<8xf32>
    %58 = vector.shape_cast %57 : vector<8xf32> to vector<8x1xf32>
    %cst_31 = arith.constant 2.560000e+02 : f32
    %59 = vector.broadcast %cst_31 : f32 to vector<8x1xf32>
    %60 = arith.divf %58, %59 : vector<8x1xf32>
    %61 = vector.broadcast %60 : vector<8x1xf32> to vector<8x256xf32>
    %62 = arith.subf %54, %61 : vector<8x256xf32>
    %63 = arith.mulf %62, %62 : vector<8x256xf32>
    %cst_32 = arith.constant dense<0.000000e+00> : vector<8xf32>
    %64 = vector.multi_reduction <add>, %63, %cst_32 [1] : vector<8x256xf32> to vector<8xf32>
    %65 = vector.shape_cast %64 : vector<8xf32> to vector<8x1xf32>
    %cst_33 = arith.constant 2.560000e+02 : f32
    %66 = vector.broadcast %cst_33 : f32 to vector<8x1xf32>
    %67 = arith.divf %65, %66 : vector<8x1xf32>
    %cst_34 = arith.constant 9.99999974E-6 : f32
    %68 = vector.broadcast %cst_34 : f32 to vector<8x1xf32>
    %69 = arith.addf %67, %68 : vector<8x1xf32>
    %70 = math.rsqrt %69 : vector<8x1xf32>
    %71 = vector.broadcast %70 : vector<8x1xf32> to vector<8x256xf32>
    %72 = arith.mulf %62, %71 : vector<8x256xf32>
    %73 = vector.broadcast %55 : vector<1x256xf32> to vector<8x256xf32>
    %74 = arith.mulf %72, %73 : vector<8x256xf32>
    %75 = vector.broadcast %56 : vector<1x256xf32> to vector<8x256xf32>
    %76 = arith.addf %74, %75 : vector<8x256xf32>
    %cst_35 = arith.constant 0.000000e+00 : f32
    %77 = vector.broadcast %cst_35 : f32 to vector<8x256xf32>
    %78 = arith.maximumf %76, %77 : vector<8x256xf32>
    %79 = arith.truncf %78 : vector<8x256xf32> to vector<8x256xbf16>
    %c0_36 = arith.constant 0 : index
    %c0_37 = arith.constant 0 : index
    %80 = vector.load %arg12[%c0_36, %c0_37] : memref<256x128xbf16, #tpu.memory_space<vmem>>, vector<256x128xbf16>
    %cst_38 = arith.constant dense<0.000000e+00> : vector<8x128xf32>
    %81 = tpu.matmul %79, %80, %cst_38 {dimension_numbers = #tpu.dot_dimension_numbers<[1], [0], [0], [1], [0, 0, 1, 1], [], []>} : vector<8x256xbf16>, vector<256x128xbf16>, vector<8x128xf32> -> vector<8x128xf32>
    %c0_39 = arith.constant 0 : index
    %c0_40 = arith.constant 0 : index
    %82 = vector.load %arg13[%c0_39, %c0_40] : memref<1x128xf32, #tpu.memory_space<vmem>>, vector<1x128xf32>
    %83 = vector.broadcast %82 : vector<1x128xf32> to vector<8x128xf32>
    %84 = arith.addf %81, %83 : vector<8x128xf32>
    %c0_41 = arith.constant 0 : index
    %c0_42 = arith.constant 0 : index
    %85 = vector.load %arg14[%c0_41, %c0_42] : memref<1x128xf32, #tpu.memory_space<vmem>>, vector<1x128xf32>
    %c0_43 = arith.constant 0 : index
    %c0_44 = arith.constant 0 : index
    %86 = vector.load %arg15[%c0_43, %c0_44] : memref<1x128xf32, #tpu.memory_space<vmem>>, vector<1x128xf32>
    %87 = tpu.iota {dimensions = array<i32: 1>} : vector<8x128xi32>
    %c32_i32 = arith.constant 32 : i32
    %88 = vector.broadcast %c32_i32 : i32 to vector<8x128xi32>
    %89 = arith.cmpi slt, %87, %88 : vector<8x128xi32>
    %cst_45 = arith.constant dense<0.000000e+00> : vector<8xf32>
    %90 = vector.multi_reduction <add>, %84, %cst_45 [1] : vector<8x128xf32> to vector<8xf32>
    %91 = vector.shape_cast %90 : vector<8xf32> to vector<8x1xf32>
    %cst_46 = arith.constant 3.200000e+01 : f32
    %92 = vector.broadcast %cst_46 : f32 to vector<8x1xf32>
    %93 = arith.divf %91, %92 : vector<8x1xf32>
    %94 = vector.broadcast %93 : vector<8x1xf32> to vector<8x128xf32>
    %95 = arith.subf %84, %94 : vector<8x128xf32>
    %cst_47 = arith.constant 0.000000e+00 : f32
    %96 = vector.broadcast %cst_47 : f32 to vector<8x128xf32>
    %97 = arith.select %89, %95, %96 : vector<8x128xi1>, vector<8x128xf32>
    %98 = arith.mulf %97, %97 : vector<8x128xf32>
    %cst_48 = arith.constant dense<0.000000e+00> : vector<8xf32>
    %99 = vector.multi_reduction <add>, %98, %cst_48 [1] : vector<8x128xf32> to vector<8xf32>
    %100 = vector.shape_cast %99 : vector<8xf32> to vector<8x1xf32>
    %cst_49 = arith.constant 3.200000e+01 : f32
    %101 = vector.broadcast %cst_49 : f32 to vector<8x1xf32>
    %102 = arith.divf %100, %101 : vector<8x1xf32>
    %cst_50 = arith.constant 9.99999974E-6 : f32
    %103 = vector.broadcast %cst_50 : f32 to vector<8x1xf32>
    %104 = arith.addf %102, %103 : vector<8x1xf32>
    %105 = math.rsqrt %104 : vector<8x1xf32>
    %106 = vector.broadcast %105 : vector<8x1xf32> to vector<8x128xf32>
    %107 = arith.mulf %97, %106 : vector<8x128xf32>
    %108 = vector.broadcast %85 : vector<1x128xf32> to vector<8x128xf32>
    %109 = arith.mulf %107, %108 : vector<8x128xf32>
    %110 = vector.broadcast %86 : vector<1x128xf32> to vector<8x128xf32>
    %111 = arith.addf %109, %110 : vector<8x128xf32>
    %cst_51 = arith.constant 0.000000e+00 : f32
    %112 = vector.broadcast %cst_51 : f32 to vector<8x128xf32>
    %113 = arith.maximumf %111, %112 : vector<8x128xf32>
    %114 = arith.truncf %113 : vector<8x128xf32> to vector<8x128xbf16>
    %c0_52 = arith.constant 0 : index
    %c0_53 = arith.constant 0 : index
    %115 = vector.load %arg16[%c0_52, %c0_53] : memref<128x128xbf16, #tpu.memory_space<vmem>>, vector<128x128xbf16>
    %cst_54 = arith.constant dense<0.000000e+00> : vector<8x128xf32>
    %116 = tpu.matmul %114, %115, %cst_54 {dimension_numbers = #tpu.dot_dimension_numbers<[1], [0], [0], [1], [0, 0, 1, 1], [], []>} : vector<8x128xbf16>, vector<128x128xbf16>, vector<8x128xf32> -> vector<8x128xf32>
    %c0_55 = arith.constant 0 : index
    %c0_56 = arith.constant 0 : index
    %117 = vector.load %arg17[%c0_55, %c0_56] : memref<1x128xf32, #tpu.memory_space<vmem>>, vector<1x128xf32>
    %118 = vector.broadcast %117 : vector<1x128xf32> to vector<8x128xf32>
    %119 = arith.addf %116, %118 : vector<8x128xf32>
    %120 = arith.negf %119 : vector<8x128xf32>
    %121 = math.exp %120 : vector<8x128xf32>
    %cst_57 = arith.constant 1.000000e+00 : f32
    %122 = vector.broadcast %cst_57 : f32 to vector<8x128xf32>
    %123 = arith.addf %122, %121 : vector<8x128xf32>
    %124 = arith.divf %122, %123 : vector<8x128xf32>
    %c0_58 = arith.constant 0 : index
    %c0_59 = arith.constant 0 : index
    %125 = vector.load %arg18[%c0_58, %c0_59] : memref<8x128xf32, #tpu.memory_space<vmem>>, vector<8x128xf32>
    tpu.vector_store %arg18[%c0_58, %c0_59], %124 {strides = array<i32>} : memref<8x128xf32, #tpu.memory_space<vmem>>, vector<8x128xf32>,
    return
  }
  func.func @transform_0(%arg0: i32, %arg1: i32) -> (i32, i32) {
    %c0_i32 = arith.constant 0 : i32
    return %arg0, %arg1 : i32, i32
  }
  func.func @transform_1(%arg0: i32, %arg1: i32) -> (i32, i32) {
    %c0_i32 = arith.constant 0 : i32
    %c0_i32_0 = arith.constant 0 : i32
    %c0_i32_1 = arith.constant 0 : i32
    return %c0_i32, %c0_i32_0 : i32, i32
  }
  func.func @transform_2(%arg0: i32, %arg1: i32) -> (i32, i32) {
    %c0_i32 = arith.constant 0 : i32
    %c0_i32_0 = arith.constant 0 : i32
    %c0_i32_1 = arith.constant 0 : i32
    return %c0_i32, %c0_i32_0 : i32, i32
  }
  func.func @transform_3(%arg0: i32, %arg1: i32) -> (i32, i32) {
    %c0_i32 = arith.constant 0 : i32
    %c0_i32_0 = arith.constant 0 : i32
    %c0_i32_1 = arith.constant 0 : i32
    return %c0_i32, %c0_i32_0 : i32, i32
  }
  func.func @transform_4(%arg0: i32, %arg1: i32) -> (i32, i32) {
    %c0_i32 = arith.constant 0 : i32
    %c0_i32_0 = arith.constant 0 : i32
    %c0_i32_1 = arith.constant 0 : i32
    return %c0_i32, %c0_i32_0 : i32, i32
  }
  func.func @transform_5(%arg0: i32, %arg1: i32) -> (i32, i32) {
    %c0_i32 = arith.constant 0 : i32
    %c0_i32_0 = arith.constant 0 : i32
    %c0_i32_1 = arith.constant 0 : i32
    return %c0_i32, %c0_i32_0 : i32, i32
  }
  func.func @transform_6(%arg0: i32, %arg1: i32) -> (i32, i32) {
    %c0_i32 = arith.constant 0 : i32
    %c0_i32_0 = arith.constant 0 : i32
    %c0_i32_1 = arith.constant 0 : i32
    return %c0_i32, %c0_i32_0 : i32, i32
  }
  func.func @transform_7(%arg0: i32, %arg1: i32) -> (i32, i32) {
    %c0_i32 = arith.constant 0 : i32
    %c0_i32_0 = arith.constant 0 : i32
    %c0_i32_1 = arith.constant 0 : i32
    return %c0_i32, %c0_i32_0 : i32, i32
  }
  func.func @transform_8(%arg0: i32, %arg1: i32) -> (i32, i32) {
    %c0_i32 = arith.constant 0 : i32
    %c0_i32_0 = arith.constant 0 : i32
    %c0_i32_1 = arith.constant 0 : i32
    return %c0_i32, %c0_i32_0 : i32, i32
  }
  func.func @transform_9(%arg0: i32, %arg1: i32) -> (i32, i32) {
    %c0_i32 = arith.constant 0 : i32
    %c0_i32_0 = arith.constant 0 : i32
    %c0_i32_1 = arith.constant 0 : i32
    return %c0_i32, %c0_i32_0 : i32, i32
  }
  func.func @transform_10(%arg0: i32, %arg1: i32) -> (i32, i32) {
    %c0_i32 = arith.constant 0 : i32
    %c0_i32_0 = arith.constant 0 : i32
    %c0_i32_1 = arith.constant 0 : i32
    return %c0_i32, %c0_i32_0 : i32, i32
  }
  func.func @transform_11(%arg0: i32, %arg1: i32) -> (i32, i32) {
    %c0_i32 = arith.constant 0 : i32
    %c0_i32_0 = arith.constant 0 : i32
    %c0_i32_1 = arith.constant 0 : i32
    return %c0_i32, %c0_i32_0 : i32, i32
  }
  func.func @transform_12(%arg0: i32, %arg1: i32) -> (i32, i32) {
    %c0_i32 = arith.constant 0 : i32
    %c0_i32_0 = arith.constant 0 : i32
    %c0_i32_1 = arith.constant 0 : i32
    return %c0_i32, %c0_i32_0 : i32, i32
  }
  func.func @transform_13(%arg0: i32, %arg1: i32) -> (i32, i32) {
    %c0_i32 = arith.constant 0 : i32
    %c0_i32_0 = arith.constant 0 : i32
    %c0_i32_1 = arith.constant 0 : i32
    return %c0_i32, %c0_i32_0 : i32, i32
  }
  func.func @transform_14(%arg0: i32, %arg1: i32) -> (i32, i32) {
    %c0_i32 = arith.constant 0 : i32
    %c0_i32_0 = arith.constant 0 : i32
    %c0_i32_1 = arith.constant 0 : i32
    return %c0_i32, %c0_i32_0 : i32, i32
  }
  func.func @transform_15(%arg0: i32, %arg1: i32) -> (i32, i32) {
    %c0_i32 = arith.constant 0 : i32
    %c0_i32_0 = arith.constant 0 : i32
    %c0_i32_1 = arith.constant 0 : i32
    return %c0_i32, %c0_i32_0 : i32, i32
  }
  func.func @transform_16(%arg0: i32, %arg1: i32) -> (i32, i32) {
    %c0_i32 = arith.constant 0 : i32
    %c0_i32_0 = arith.constant 0 : i32
    return %arg0, %c0_i32 : i32, i32
  }
}

</mosaic_0001>

<bundles_post_ra>
// kernel: tpu_custom_call.1
= control target key start
LH: loop header
LB: loop body
LE: loop exit
PB: predicated region body
PF: predicated region fallthrough
CT: control target
= control target key end

     0   :  { %s5559_s0 = inlined_call_operand.hbm [shape: f32[8,1024], index: 0, kind: input, shape index: {}]   ;;  %s5560_s1 = inlined_call_operand.hbm [shape: bf16[1024,512], index: 1, kind: input, shape index: {}]   ;;  %s5561_s2 = inlined_call_operand.hbm [shape: f32[1,512], index: 2, kind: input, shape index: {}]   ;;  %s5562_s3 = inlined_call_operand.hbm [shape: f32[1,512], index: 3, kind: input, shape index: {}]   ;;  %s5563_s4 = inlined_call_operand.hbm [shape: f32[1,512], index: 4, kind: input, shape index: {}]   ;;  %s5564_s5 = inlined_call_operand.vmem [shape: f32[1,512], index: 5, kind: input, shape index: {}]   ;;  %s5565_s6 = inlined_call_operand.hbm [shape: bf16[512,256], index: 6, kind: input, shape index: {}]   ;;  %s5566_s7 = inlined_call_operand.vmem [shape: f32[1,256], index: 7, kind: input, shape index: {}]   ;;  %s5567_s8 = inlined_call_operand.hbm [shape: f32[1,256], index: 8, kind: input, shape index: {}]   ;;  %s5568_s9 = inlined_call_operand.vmem [shape: f32[1,256], index: 9, kind: input, shape index: {}]   ;;  %s5569_s10 = inlined_call_operand.hbm [shape: bf16[256,128], index: 10, kind: input, shape index: {}]   ;;  %s5570_s11 = inlined_call_operand.vmem [shape: f32[1,128], index: 11, kind: input, shape index: {}]   ;;  %s5571_s12 = inlined_call_operand.vmem [shape: f32[1,128], index: 12, kind: input, shape index: {}]   ;;  %s5572_s13 = inlined_call_operand.vmem [shape: f32[1,128], index: 13, kind: input, shape index: {}]   ;;  %s5573_s14 = inlined_call_operand.hbm [shape: bf16[128,128], index: 14, kind: input, shape index: {}]   ;;  %s5574_s15 = inlined_call_operand.vmem [shape: f32[1,128], index: 15, kind: input, shape index: {}]   ;;  %s5575_s16 = inlined_call_operand.hbm [shape: f32[8,128], index: 16, kind: output, shape index: {}]  }
   0x1   :  { %5576 = sst [smem:[#allocation24_spill]] %s5559_s0 }
   0x2   :  { %21 = vsyncpa [#allocation3], 0 }
   0x3   :  { %22 = vsyncpa [#allocation6], 0 }
   0x4   :  { %23 = vsyncpa [#allocation9], 0 }
   0x5   :  { %24 = vsyncpa [#allocation12], 0 }
   0x6   :  { %25 = vsyncpa [#allocation15], 0  ;;  %s42_s23 = sshll.u32 %s5560_s1, 4  ;;  %s43_s23 = int_to_ptr.hbm [resolvable:$true] %s42_s23 }
   0x7   :  { %26 = vsyncpa [#allocation4], 0  ;;  %s5207_s24 = smov [#allocation5]   ;;  %s67_s28 = sshll.u32 %s5562_s3, 4  ;;  %s68_s28 = int_to_ptr.hbm [resolvable:$true] %s67_s28 }
   0x8   :  { %s44_s25 = sshll.u32 %s5207_s24, 4  ;;  %s5208_s29 = smov 256   ;;  %s45_s25 = int_to_ptr.vmem [resolvable:$true] %s44_s25 }
   0x9   :  { %s5209_s30 = smov 16   ;;  %s5210_s0 = smov [#allocation8]  }
   0xa   :  { %50 = dma.hbm_to_vmem [thread:$0]  %s43_s23, 32768, %s45_s25, [#allocation6], %s5208_s29, %s5208_s29, %s5209_s30  }
   0xb   :  { %s69_s17 = sshll.u32 %s5210_s0, 4  ;;  %s90_s20 = sshll.u32 %s5565_s6, 4  ;;  %s70_s17 = int_to_ptr.vmem [resolvable:$true] %s69_s17  ;;  %s91_s20 = int_to_ptr.hbm [resolvable:$true] %s90_s20 }
   0xc   :  { %72 = dma.hbm_to_vmem [thread:$0]  %s68_s28, 64, %s70_s17, [#allocation9]  }
   0xd   :  { %s5211_s1 = smov [#allocation11]   ;;  %s118_s3 = sshll.u32 %s5569_s10, 4  ;;  %s119_s3 = int_to_ptr.hbm [resolvable:$true] %s118_s3 }
   0xe   :  { %s92_s21 = sshll.u32 %s5211_s1, 4  ;;  %s5212_s26 = smov 128   ;;  %s93_s21 = int_to_ptr.vmem [resolvable:$true] %s92_s21 }
   0xf   :  { %s5213_s27 = smov 8   ;;  %s5214_s23 = smov [#allocation14]  }
  0x10   :  { %98 = dma.hbm_to_vmem [thread:$0]  %s91_s20, 8192, %s93_s21, [#allocation12], %s5212_s26, %s5212_s26, %s5213_s27  }
  0x11   :  { %s120_s25 = sshll.u32 %s5214_s23, 4  ;;  %s5215_s29 = smov 64   ;;  %s121_s25 = int_to_ptr.vmem [resolvable:$true] %s120_s25 }
  0x12   :  { %s5216_s30 = smov 4   ;;  %s5577_s0 = sld [smem:[#allocation24_spill]] }
  0x13   :  { %126 = dma.hbm_to_vmem [thread:$0]  %s119_s3, 2048, %s121_s25, [#allocation15], %s5215_s29, %s5215_s29, %s5216_s30  }
  0x14   :  { %s5217_s18 = smov [#allocation2]   ;;  %s56_s1 = sshll.u32 %s5561_s2, 4  ;;  %s57_s1 = int_to_ptr.hbm [resolvable:$true] %s56_s1 }
  0x15   :  { %s34_s10 = sshll.u32 %s5217_s18, 4  ;;  %s5218_s21 = smov [#allocation7]   ;;  %s35_s10 = int_to_ptr.vmem [resolvable:$true] %s34_s10 }
  0x16   :  { %s58_s22 = sshll.u32 %s5218_s21, 4  ;;  %s78_s3 = sshll.u32 %s5563_s4, 4  ;;  %s59_s22 = int_to_ptr.vmem [resolvable:$true] %s58_s22  ;;  %s79_s3 = int_to_ptr.hbm [resolvable:$true] %s78_s3 }
  0x17   :  { %61 = dma.hbm_to_vmem [thread:$0]  %s57_s1, 64, %s59_s22, [#allocation6]  }
  0x18   :  { %s32_s17 = sshll.u32 %s5577_s0, 4  ;;  %s106_s25 = sshll.u32 %s5567_s8, 4  ;;  %s33_s17 = int_to_ptr.hbm [resolvable:$true] %s32_s17  ;;  %s107_s25 = int_to_ptr.hbm [resolvable:$true] %s106_s25 }
  0x19   :  { %37 = dma.hbm_to_vmem [thread:$0]  %s33_s17, 1024, %s35_s10, [#allocation3]  }
  0x1a   :  { %s5219_s6 = smov [#allocation10]   ;;  %s5220_s2 = smov [#allocation13]  }
  0x1b   :  { %s80_s28 = sshll.u32 %s5219_s6, 4  ;;  %s108_s0 = sshll.u32 %s5220_s2, 4  ;;  %s81_s28 = int_to_ptr.vmem [resolvable:$true] %s80_s28  ;;  %s109_s0 = int_to_ptr.vmem [resolvable:$true] %s108_s0 }
  0x1c   :  { %83 = dma.hbm_to_vmem [thread:$0]  %s79_s3, 64, %s81_s28, [#allocation9]  }
  0x1d   :  { %s137_s10 = sshll.u32 %s5573_s14, 4  ;;  %s5221_s4 = smov [#allocation16]   ;;  %s138_s10 = int_to_ptr.hbm [resolvable:$true] %s137_s10 }
  0x1e   :  { %111 = dma.hbm_to_vmem [thread:$0]  %s107_s25, 32, %s109_s0, [#allocation12]  }
  0x1f   :  { %s139_s19 = sshll.u32 %s5221_s4, 4  ;;  %s140_s19 = int_to_ptr.vmem [resolvable:$true] %s139_s19 }
  0x20   :  { %145 = dma.hbm_to_vmem [thread:$0]  %s138_s10, 1024, %s140_s19, [#allocation15], %s5215_s29, %s5215_s29, %s5216_s30  }
  0x21   :  { %5195 = dma.done.wait [#allocation3], 1024  }
  0x22   :  { %5196 = vsyncadd [#allocation3], 4294966272 }
  0x23   :  { %5197 = dma.done.wait [#allocation6], 32832  }
  0x24   :  { %5198 = vsyncadd [#allocation6], 4294934464 }
  0x25   :  { %5199 = dma.done.wait [#allocation9], 128  }
  0x26   :  { %5200 = vsyncadd [#allocation9], 4294967168 }
  0x27   :  { %5201 = dma.done.wait [#allocation12], 8224  }
  0x28   :  { %5202 = vsyncadd [#allocation12], 4294959072 }
  0x29   :  { %5203 = dma.done.wait [#allocation15], 3072  }
  0x2a   :  { %5204 = vsyncadd [#allocation15], 4294964224  ;;  %v5345_v0 = vld [vmem:[#allocation2] sm:$0xff]  ;;  %v5347_v1 = vld [vmem:[#allocation2 + $0x8] sm:$0xff]  ;;  %v5222_v15 = vmov 1024.0  }
  0x2b   :  { %v5349_v2 = vld [vmem:[#allocation2 + $0x10] sm:$0xff]  ;;  %v192_v3 = vadd.f32 %v5347_v1, %v5345_v0  ;;  %v5353_v4 = vld [vmem:[#allocation2 + $0x18] sm:$0xff]  ;;  %v5356_v6 = vld [vmem:[#allocation2 + $0x20] sm:$0xff]  ;;  %4933 = vrcp.f32 %v5222_v15 }
  0x2c   :  { %v5359_v8 = vld [vmem:[#allocation2 + $0x28] sm:$0xff]  ;;  %v5362_v10 = vld [vmem:[#allocation2 + $0x30] sm:$0xff]  ;;  %v5365_v12 = vld [vmem:[#allocation2 + $0x38] sm:$0xff] }
  0x2d   :  { %v193_v5 = vadd.f32 %v192_v3, %v5349_v2  ;;  %v3302_v19 = vld [vmem:[#allocation5 + $0xe0] sm:$0xf]  ;;  %v4595_v20 = vld [vmem:[#allocation5 + $0xec] sm:$0xf0] }
  0x2e   :  { %v3430_v21 = vld [vmem:[#allocation5 + $0x1e0] sm:$0xf]  ;;  %v3303_v23 = vor.u32 %v4595_v20, %v3302_v19  ;;  %v4627_v24 = vld [vmem:[#allocation5 + $0x1ec] sm:$0xf0] }
  0x2f   :  { %v194_v7 = vadd.f32 %v193_v5, %v5353_v4  ;;  %v3558_v25 = vld [vmem:[#allocation5 + $0x2e0] sm:$0xf]  ;;  %v4659_v26 = vld [vmem:[#allocation5 + $0x2ec] sm:$0xf0]  ;;  %v3431_v27 = vor.u32 %v4627_v24, %v3430_v21 }
  0x30   :  { %v3559_v28 = vor.u32 %v4659_v26, %v3558_v25  ;;  %v3686_v29 = vld [vmem:[#allocation5 + $0x3e0] sm:$0xf]  ;;  %v4691_v30 = vld [vmem:[#allocation5 + $0x3ec] sm:$0xf0]  ;;  %1825 = vmatpush.bf16.msra.mxu0 %v3303_v23 }
  0x31   :  { %v195_v9 = vadd.f32 %v194_v7, %v5356_v6  ;;  %v4934_v16 = vpop.eup %4933  ;;  %v3286_v31 = vld [vmem:[#allocation5 + $0xc0] sm:$0xf]  ;;  %v3687_v32 = vor.u32 %v4691_v30, %v3686_v29  ;;  %v4591_v33 = vld [vmem:[#allocation5 + $0xcc] sm:$0xf0]  ;;  %1838 = vmatpush.bf16.msra.mxu1 %v3431_v27 }
  0x32   :  { %v202_v17 = vmul.f32 1024.0, %v4934_v16  ;;  %v3414_v34 = vld [vmem:[#allocation5 + $0x1c0] sm:$0xf]  ;;  %v4623_v35 = vld [vmem:[#allocation5 + $0x1cc] sm:$0xf0]  ;;  %1851 = vmatpush.bf16.msra.mxu2 %v3559_v28  ;;  %v3287_v36 = vor.u32 %v4591_v33, %v3286_v31  ;;  %vm206_vm0 = vweird.f32 %v4934_v16 }
  0x33   :  { %v196_v11 = vadd.f32 %v195_v9, %v5359_v8  ;;  %v3415_v37 = vor.u32 %v4623_v35, %v3414_v34  ;;  %v3542_v38 = vld [vmem:[#allocation5 + $0x2c0] sm:$0xf]  ;;  %v4655_v39 = vld [vmem:[#allocation5 + $0x2cc] sm:$0xf0]  ;;  %1864 = vmatpush.bf16.msra.mxu3 %v3687_v32 }
  0x34   :  { %v203_v18 = vsub.f32 1.0, %v202_v17  ;;  %v3670_v40 = vld [vmem:[#allocation5 + $0x3c0] sm:$0xf]  ;;  %v3543_v42 = vor.u32 %v4655_v39, %v3542_v38  ;;  %v4687_v43 = vld [vmem:[#allocation5 + $0x3cc] sm:$0xf0]  ;;  %1826 = vmatpush.bf16.msra.mxu0 %v3287_v36 }
  0x35   :  { %v197_v13 = vadd.f32 %v196_v11, %v5362_v10  ;;  %v3270_v44 = vld [vmem:[#allocation5 + $0xa0] sm:$0xf]  ;;  %v4587_v45 = vld [vmem:[#allocation5 + $0xac] sm:$0xf0]  ;;  %v3671_v46 = vor.u32 %v4687_v43, %v3670_v40  ;;  %1839 = vmatpush.bf16.msra.mxu1 %v3415_v37 }
  0x36   :  { %v204_v22 = vmul.f32 %v4934_v16, %v203_v18  ;;  %v3398_v47 = vld [vmem:[#allocation5 + $0x1a0] sm:$0xf]  ;;  %v4619_v48 = vld [vmem:[#allocation5 + $0x1ac] sm:$0xf0]  ;;  %v3271_v50 = vor.u32 %v4587_v45, %v3270_v44  ;;  %1852 = vmatpush.bf16.msra.mxu2 %v3543_v42 }
  0x37   :  { %v198_v14 = vadd.f32 %v197_v13, %v5365_v12  ;;  %v3526_v49 = vld [vmem:[#allocation5 + $0x2a0] sm:$0xf]  ;;  %v4651_v51 = vld [vmem:[#allocation5 + $0x2ac] sm:$0xf0]  ;;  %v3399_v54 = vor.u32 %v4619_v48, %v3398_v47  ;;  %1865 = vmatpush.bf16.msra.mxu3 %v3671_v46 }
  0x38   :  { %v205_v41 = vadd.f32 %v4934_v16, %v204_v22  ;;  %v3654_v52 = vld [vmem:[#allocation5 + $0x3a0] sm:$0xf]  ;;  %v4683_v53 = vld [vmem:[#allocation5 + $0x3ac] sm:$0xf0]  ;;  %v3527_v55 = vor.u32 %v4651_v51, %v3526_v49  ;;  %1827 = vmatpush.bf16.msra.mxu0 %v3271_v50 }
  0x39   :  { %199 = vadd.xlane.f32.xlu0 %v198_v14  ;;  %v3655_v57 = vor.u32 %v4683_v53, %v3654_v52  ;;  %1840 = vmatpush.bf16.msra.mxu1 %v3399_v54  ;;  %v3254_v20 = vld [vmem:[#allocation5 + $0x80] sm:$0xf]  ;;  %v4583_v21 = vld [vmem:[#allocation5 + $0x8c] sm:$0xf0] }
  0x3a   :  { %v207_v56 = vsel %vm206_vm0, %v4934_v16, %v205_v41  ;;  %1853 = vmatpush.bf16.msra.mxu2 %v3527_v55  ;;  %v3382_v22 = vld [vmem:[#allocation5 + $0x180] sm:$0xf]  ;;  %v3255_v23 = vor.u32 %v4583_v21, %v3254_v20  ;;  %v4647_v25 = vld [vmem:[#allocation5 + $0x28c] sm:$0xf0] }
  0x3b   :  { %1866 = vmatpush.bf16.msra.mxu3 %v3655_v57  ;;  %v3510_v24 = vld [vmem:[#allocation5 + $0x280] sm:$0xf]  ;;  %v4679_v29 = vld [vmem:[#allocation5 + $0x38c] sm:$0xf0] }
  0x3c   :  { %v3511_v27 = vor.u32 %v4647_v25, %v3510_v24  ;;  %v3638_v28 = vld [vmem:[#allocation5 + $0x380] sm:$0xf]  ;;  %1828 = vmatpush.bf16.msra.mxu0 %v3255_v23  ;;  %v4579_v32 = vld [vmem:[#allocation5 + $0x6c] sm:$0xf0] }
  0x3d   :  { %v3639_v30 = vor.u32 %v4679_v29, %v3638_v28  ;;  %v3238_v31 = vld [vmem:[#allocation5 + $0x60] sm:$0xf]  ;;  %v4611_v35 = vld [vmem:[#allocation5 + $0x16c] sm:$0xf0] }
  0x3e   :  { %1854 = vmatpush.bf16.msra.mxu2 %v3511_v27  ;;  %v3366_v33 = vld [vmem:[#allocation5 + $0x160] sm:$0xf]  ;;  %v3239_v34 = vor.u32 %v4579_v32, %v3238_v31  ;;  %v4643_v37 = vld [vmem:[#allocation5 + $0x26c] sm:$0xf0] }
  0x3f   :  { %1867 = vmatpush.bf16.msra.mxu3 %v3639_v30  ;;  %v3494_v36 = vld [vmem:[#allocation5 + $0x260] sm:$0xf]  ;;  %v3367_v38 = vor.u32 %v4611_v35, %v3366_v33  ;;  %v4675_v41 = vld [vmem:[#allocation5 + $0x36c] sm:$0xf0] }
  0x40   :  { %v3495_v39 = vor.u32 %v4643_v37, %v3494_v36  ;;  %v3622_v40 = vld [vmem:[#allocation5 + $0x360] sm:$0xf]  ;;  %1829 = vmatpush.bf16.msra.mxu0 %v3239_v34  ;;  %v4575_v44 = vld [vmem:[#allocation5 + $0x4c] sm:$0xf0] }
  0x41   :  { %v3623_v42 = vor.u32 %v4675_v41, %v3622_v40  ;;  %v3222_v43 = vld [vmem:[#allocation5 + $0x40] sm:$0xf]  ;;  %v4607_v47 = vld [vmem:[#allocation5 + $0x14c] sm:$0xf0] }
  0x42   :  { %1855 = vmatpush.bf16.msra.mxu2 %v3495_v39  ;;  %v3350_v45 = vld [vmem:[#allocation5 + $0x140] sm:$0xf]  ;;  %v3223_v46 = vor.u32 %v4575_v44, %v3222_v43  ;;  %v4639_v49 = vld [vmem:[#allocation5 + $0x24c] sm:$0xf0] }
  0x43   :  { %1868 = vmatpush.bf16.msra.mxu3 %v3623_v42  ;;  %v3478_v48 = vld [vmem:[#allocation5 + $0x240] sm:$0xf]  ;;  %v3351_v50 = vor.u32 %v4607_v47, %v3350_v45  ;;  %v4671_v53 = vld [vmem:[#allocation5 + $0x34c] sm:$0xf0] }
  0x44   :  { %v3479_v51 = vor.u32 %v4639_v49, %v3478_v48  ;;  %v3606_v52 = vld [vmem:[#allocation5 + $0x340] sm:$0xf]  ;;  %1830 = vmatpush.bf16.msra.mxu0 %v3223_v46  ;;  %v4723_v24 = vld [vmem:[#allocation5 + $0x4ec] sm:$0xf0] }
  0x45   :  { %v3607_v54 = vor.u32 %v4671_v53, %v3606_v52  ;;  %v3206_v55 = vld [vmem:[#allocation5 + $0x20] sm:$0xf]  ;;  %v4787_v30 = vld [vmem:[#allocation5 + $0x6ec] sm:$0xf0] }
  0x46   :  { %1856 = vmatpush.bf16.msra.mxu2 %v3479_v51  ;;  %v3334_v57 = vld [vmem:[#allocation5 + $0x120] sm:$0xf]  ;;  %v4819_v33 = vld [vmem:[#allocation5 + $0x7ec] sm:$0xf0] }
  0x47   :  { %1869 = vmatpush.bf16.msra.mxu3 %v3607_v54  ;;  %v3574_v21 = vld [vmem:[#allocation5 + $0x300] sm:$0xf]  ;;  %v4719_v35 = vld [vmem:[#allocation5 + $0x4cc] sm:$0xf0] }
  0x48   :  { %v3814_v23 = vld [vmem:[#allocation5 + $0x4e0] sm:$0xf]  ;;  %v4751_v39 = vld [vmem:[#allocation5 + $0x5cc] sm:$0xf0] }
  0x49   :  { %v3942_v25 = vld [vmem:[#allocation5 + $0x5e0] sm:$0xf]  ;;  %v3815_v27 = vor.u32 %v4723_v24, %v3814_v23  ;;  %v4783_v42 = vld [vmem:[#allocation5 + $0x6cc] sm:$0xf0] }
  0x4a   :  { %v4070_v29 = vld [vmem:[#allocation5 + $0x6e0] sm:$0xf]  ;;  %v4815_v44 = vld [vmem:[#allocation5 + $0x7cc] sm:$0xf0] }
  0x4b   :  { %v4198_v31 = vld [vmem:[#allocation5 + $0x7e0] sm:$0xf]  ;;  %v4071_v32 = vor.u32 %v4787_v30, %v4070_v29  ;;  %v4715_v48 = vld [vmem:[#allocation5 + $0x4ac] sm:$0xf0] }
  0x4c   :  { %v3798_v34 = vld [vmem:[#allocation5 + $0x4c0] sm:$0xf]  ;;  %v4199_v36 = vor.u32 %v4819_v33, %v4198_v31  ;;  %v4747_v51 = vld [vmem:[#allocation5 + $0x5ac] sm:$0xf0] }
  0x4d   :  { %v3799_v37 = vor.u32 %v4719_v35, %v3798_v34  ;;  %v4054_v40 = vld [vmem:[#allocation5 + $0x6c0] sm:$0xf]  ;;  %v4779_v53 = vld [vmem:[#allocation5 + $0x6ac] sm:$0xf0] }
  0x4e   :  { %v4182_v43 = vld [vmem:[#allocation5 + $0x7c0] sm:$0xf]  ;;  %v4055_v45 = vor.u32 %v4783_v42, %v4054_v40  ;;  %v4703_v29 = vld [vmem:[#allocation5 + $0x44c] sm:$0xf0] }
  0x4f   :  { %v4183_v46 = vor.u32 %v4815_v44, %v4182_v43  ;;  %v3782_v47 = vld [vmem:[#allocation5 + $0x4a0] sm:$0xf]  ;;  %v4735_v31 = vld [vmem:[#allocation5 + $0x54c] sm:$0xf0] }
  0x50   :  { %v3910_v49 = vld [vmem:[#allocation5 + $0x5a0] sm:$0xf]  ;;  %v4767_v34 = vld [vmem:[#allocation5 + $0x64c] sm:$0xf0] }
  0x51   :  { %v4038_v52 = vld [vmem:[#allocation5 + $0x6a0] sm:$0xf]  ;;  %v3911_v54 = vor.u32 %v4747_v51, %v3910_v49  ;;  %v4731_v43 = vld [vmem:[#allocation5 + $0x52c] sm:$0xf0] }
  0x52   :  { %v4134_v23 = vld [vmem:[#allocation5 + $0x760] sm:$0xf] }
  0x53   :  { %v3862_v30 = vld [vmem:[#allocation5 + $0x540] sm:$0xf] }
  0x54   :  { %v3990_v33 = vld [vmem:[#allocation5 + $0x640] sm:$0xf] }
  0x55   :  { %v4118_v35 = vld [vmem:[#allocation5 + $0x740] sm:$0xf]  ;;  %v3991_v40 = vor.u32 %v4767_v34, %v3990_v33  ;;  %v4657_v34 = vld [vmem:[#allocation5 + $0x2e4] sm:$0xf] }
  0x56   :  { %v3846_v42 = vld [vmem:[#allocation5 + $0x520] sm:$0xf] }
  0x57   :  { %v3847_v51 = vor.u32 %v4731_v43, %v3846_v42 }
  0xac   :  { %v200_v58 = vpop.xlane.xlu0 %199 }
  0xad   :  { %v208_v59 = vmul.f32 %v207_v56, %v200_v58  ;;  %v4571_v56 = vld [vmem:[#allocation5 + $0x2c] sm:$0xf0] }
  0xae   :  { %v3207_v58 = vor.u32 %v4571_v56, %v3206_v55  ;;  %v4039_v55 = vor.u32 %v4779_v53, %v4038_v52  ;;  %v4166_v56 = vld [vmem:[#allocation5 + $0x7a0] sm:$0xf] }
  0xaf   :  { %v5370_v60 = vsub.f32 %v5345_v0, %v208_v59  ;;  %v5373_v61 = vsub.f32 %v5347_v1, %v208_v59  ;;  %v5376_v62 = vsub.f32 %v5349_v2, %v208_v59  ;;  %v5379_v63 = vsub.f32 %v5353_v4, %v208_v59  ;;  %v3702_v52 = vld [vmem:[#allocation5 + $0x400] sm:$0xf] }
  0xb0   :  { %v5386_v7 = vsub.f32 %v5356_v6, %v208_v59  ;;  %v5391_v9 = vsub.f32 %v5359_v8, %v208_v59  ;;  %v5396_v11 = vsub.f32 %v5362_v10, %v208_v59  ;;  %v5401_v6 = vsub.f32 %v5365_v12, %v208_v59  ;;  %v4615_v12 = vld [vmem:[#allocation5 + $0x18c] sm:$0xf0]  ;;  %1831 = vmatpush.bf16.msra.mxu0 %v3207_v58  ;;  %v3766_v58 = vld [vmem:[#allocation5 + $0x480] sm:$0xf] }
  0xb1   :  { %v217_v3 = vmul.f32 %v5370_v60, %v5370_v60  ;;  %v218_v5 = vmul.f32 %v5373_v61, %v5373_v61  ;;  %v219_v0 = vmul.f32 %v5376_v62, %v5376_v62  ;;  %v220_v2 = vmul.f32 %v5379_v63, %v5379_v63  ;;  %v4603_v59 = vld [vmem:[#allocation5 + $0x12c] sm:$0xf0] }
  0xb2   :  { %v221_v13 = vmul.f32 %v5386_v7, %v5386_v7  ;;  %v222_v15 = vmul.f32 %v5391_v9, %v5391_v9  ;;  %v223_v8 = vmul.f32 %v5396_v11, %v5396_v11  ;;  %v224_v18 = vmul.f32 %v5401_v6, %v5401_v6 }
  0xb3   :  { %v225_v1 = vadd.f32 %v218_v5, %v217_v3  ;;  %v3383_v26 = vor.u32 %v4615_v12, %v3382_v22  ;;  %v3462_v3 = vld [vmem:[#allocation5 + $0x220] sm:$0xf]  ;;  %v4635_v5 = vld [vmem:[#allocation5 + $0x22c] sm:$0xf0] }
  0xb4   :  { %v4663_v22 = vld [vmem:[#allocation5 + $0x30c] sm:$0xf0] }
  0xb5   :  { %v226_v4 = vadd.f32 %v225_v1, %v219_v0  ;;  %1841 = vmatpush.bf16.msra.mxu1 %v3383_v26  ;;  %v3335_v0 = vor.u32 %v4603_v59, %v3334_v57  ;;  %v3463_v1 = vor.u32 %v4635_v5, %v3462_v3  ;;  %v3575_v12 = vor.u32 %v4663_v22, %v3574_v21  ;;  %v4755_v26 = vld [vmem:[#allocation5 + $0x5ec] sm:$0xf0]  ;;  %v3894_v5 = vld [vmem:[#allocation5 + $0x580] sm:$0xf] }
  0xb6   :  { %v3943_v28 = vor.u32 %v4755_v26, %v3942_v25  ;;  %v4811_v57 = vld [vmem:[#allocation5 + $0x7ac] sm:$0xf0] }
  0xb7   :  { %v227_v14 = vadd.f32 %v226_v4, %v220_v2  ;;  %v3590_v2 = vld [vmem:[#allocation5 + $0x320] sm:$0xf]  ;;  %v4667_v4 = vld [vmem:[#allocation5 + $0x32c] sm:$0xf0]  ;;  %1857 = vmatpush.bf16.msra.mxu2 %v3463_v1  ;;  %v4167_v59 = vor.u32 %v4811_v57, %v4166_v56 }
  0xb8   :  { %v4711_v3 = vld [vmem:[#allocation5 + $0x48c] sm:$0xf0]  ;;  %v4022_v1 = vld [vmem:[#allocation5 + $0x680] sm:$0xf] }
  0xb9   :  { %v228_v16 = vadd.f32 %v227_v14, %v221_v13  ;;  %1842 = vmatpush.bf16.msra.mxu1 %v3367_v38  ;;  %v3591_v13 = vor.u32 %v4667_v4, %v3590_v2  ;;  %v3190_v14 = vld [vmem:[#allocation5] sm:$0xf]  ;;  %v4775_v2 = vld [vmem:[#allocation5 + $0x68c] sm:$0xf0] }
  0xba   :  { %v3926_v38 = vld [vmem:[#allocation5 + $0x5c0] sm:$0xf]  ;;  %v4771_v21 = vld [vmem:[#allocation5 + $0x66c] sm:$0xf0] }
  0xbb   :  { %v229_v17 = vadd.f32 %v228_v16, %v222_v15  ;;  %v4567_v15 = vld [vmem:[#allocation5 + $0xc] sm:$0xf0]  ;;  %v3318_v16 = vld [vmem:[#allocation5 + $0x100] sm:$0xf]  ;;  %1870 = vmatpush.bf16.msra.mxu3 %v3591_v13  ;;  %v3927_v41 = vor.u32 %v4751_v39, %v3926_v38  ;;  %v3767_v13 = vor.u32 %v4711_v3, %v3766_v58  ;;  %v3863_v38 = vor.u32 %v4735_v31, %v3862_v30  ;;  %v3304_v30 = vld [vmem:[#allocation5 + $0xf0] sm:$0xf0] }
  0xbc   :  { %v4150_v4 = vld [vmem:[#allocation5 + $0x780] sm:$0xf]  ;;  %v4727_v57 = vld [vmem:[#allocation5 + $0x50c] sm:$0xf0] }
  0xbd   :  { %v230_v10 = vadd.f32 %v229_v17, %v223_v8  ;;  %1843 = vmatpush.bf16.msra.mxu1 %v3351_v50  ;;  %v3191_v8 = vor.u32 %v4567_v15, %v3190_v14  ;;  %v4599_v17 = vld [vmem:[#allocation5 + $0x10c] sm:$0xf0]  ;;  %v3783_v50 = vor.u32 %v4715_v48, %v3782_v47  ;;  %v3718_v39 = vld [vmem:[#allocation5 + $0x420] sm:$0xf] }
  0xbe   :  { %v4807_v15 = vld [vmem:[#allocation5 + $0x78c] sm:$0xf0]  ;;  %v4102_v47 = vld [vmem:[#allocation5 + $0x720] sm:$0xf] }
  0xbf   :  { %v231_v19 = vadd.f32 %v230_v10, %v224_v18  ;;  %v3446_v18 = vld [vmem:[#allocation5 + $0x200] sm:$0xf]  ;;  %v4631_v10 = vld [vmem:[#allocation5 + $0x20c] sm:$0xf0]  ;;  %1832 = vmatpush.bf16.msra.mxu0 %v3191_v8  ;;  %1871 = vmatpush.bf16.msra.mxu3 %v3575_v12  ;;  %v4023_v8 = vor.u32 %v4775_v2, %v4022_v1 }
  0xc0   :  { %v3447_v20 = vor.u32 %v4631_v10, %v3446_v18  ;;  %v3878_v18 = vld [vmem:[#allocation5 + $0x560] sm:$0xf]  ;;  %v4739_v10 = vld [vmem:[#allocation5 + $0x56c] sm:$0xf0] }
  0xc1   :  { %232 = vadd.xlane.f32.xlu0 %v231_v19  ;;  %1844 = vmatpush.bf16.msra.mxu1 %v3335_v0  ;;  %v3319_v19 = vor.u32 %v4599_v17, %v3318_v16  ;;  %v4743_v0 = vld [vmem:[#allocation5 + $0x58c] sm:$0xf0]  ;;  %v3750_v16 = vld [vmem:[#allocation5 + $0x460] sm:$0xf]  ;;  %v3879_v26 = vor.u32 %v4739_v10, %v3878_v18 }
  0xc2   :  { %1858 = vmatpush.bf16.msra.mxu2 %v3447_v20  ;;  %v3895_v14 = vor.u32 %v4743_v0, %v3894_v5  ;;  %v4707_v17 = vld [vmem:[#allocation5 + $0x46c] sm:$0xf0]  ;;  %v4006_v20 = vld [vmem:[#allocation5 + $0x660] sm:$0xf] }
  0xc3   :  { %1877 = vmatpush.bf16.msrb.mxu0 %v3815_v27  ;;  %1916 = vmatpush.bf16.msrb.mxu3 %v4199_v36  ;;  %v4803_v12 = vld [vmem:[#allocation5 + $0x76c] sm:$0xf0]  ;;  %v3751_v25 = vor.u32 %v4707_v17, %v3750_v16  ;;  %v3734_v27 = vld [vmem:[#allocation5 + $0x440] sm:$0xf] }
  0xc4   :  { %v4799_v36 = vld [vmem:[#allocation5 + $0x74c] sm:$0xf0]  ;;  %v3830_v56 = vld [vmem:[#allocation5 + $0x500] sm:$0xf] }
  0xc5   :  { %1845 = vmatpush.bf16.msra.mxu1 %v3319_v19  ;;  %v4151_v19 = vor.u32 %v4807_v15, %v4150_v4  ;;  %v4119_v44 = vor.u32 %v4799_v36, %v4118_v35  ;;  %v4795_v48 = vld [vmem:[#allocation5 + $0x72c] sm:$0xf0]  ;;  %v4086_v0 = vld [vmem:[#allocation5 + $0x700] sm:$0xf]  ;;  %v3831_v4 = vor.u32 %v4727_v57, %v3830_v56  ;;  %v4585_v56 = vld [vmem:[#allocation5 + $0xa4] sm:$0xf] }
  0xc6   :  { %1903 = vmatpush.bf16.msrb.mxu2 %v4071_v32  ;;  %v4135_v32 = vor.u32 %v4803_v12, %v4134_v23  ;;  %v4103_v58 = vor.u32 %v4795_v48, %v4102_v47  ;;  %v4759_v3 = vld [vmem:[#allocation5 + $0x60c] sm:$0xf0]  ;;  %v3288_v47 = vld [vmem:[#allocation5 + $0xd0] sm:$0xf0] }
  0xc7   :  { %1878 = vmatpush.bf16.msrb.mxu0 %v3799_v37  ;;  %1917 = vmatpush.bf16.msrb.mxu3 %v4183_v46  ;;  %v3735_v37 = vor.u32 %v4703_v29, %v3734_v27  ;;  %v4763_v46 = vld [vmem:[#allocation5 + $0x62c] sm:$0xf0]  ;;  %v4593_v29 = vld [vmem:[#allocation5 + $0xe4] sm:$0xf]  ;;  %v3272_v57 = vld [vmem:[#allocation5 + $0xb0] sm:$0xf0] }
  0xc8   :  { %v4791_v1 = vld [vmem:[#allocation5 + $0x70c] sm:$0xf0]  ;;  %v3307_v42 = vor.u32 %v4593_v29, %v3304_v30  ;;  %v3240_v29 = vld [vmem:[#allocation5 + $0x70] sm:$0xf0]  ;;  %v4609_v30 = vld [vmem:[#allocation5 + $0x164] sm:$0xf] }
  0xc9   :  { %1890 = vmatpush.bf16.msrb.mxu1 %v3943_v28  ;;  %v4007_v28 = vor.u32 %v4771_v21, %v4006_v20  ;;  %v4087_v15 = vor.u32 %v4791_v1, %v4086_v0  ;;  %v4649_v0 = vld [vmem:[#allocation5 + $0x2a4] sm:$0xf]  ;;  %v3528_v1 = vld [vmem:[#allocation5 + $0x2b0] sm:$0xf0] }
  0xca   :  { %1904 = vmatpush.bf16.msrb.mxu2 %v4055_v45  ;;  %v3974_v45 = vld [vmem:[#allocation5 + $0x620] sm:$0xf] }
  0xcb   :  { %1879 = vmatpush.bf16.msrb.mxu0 %v3783_v50  ;;  %1918 = vmatpush.bf16.msrb.mxu3 %v4167_v59  ;;  %v3958_v59 = vld [vmem:[#allocation5 + $0x600] sm:$0xf] }
  0xcd   :  { %1891 = vmatpush.bf16.msrb.mxu1 %v3927_v41  ;;  %v4699_v41 = vld [vmem:[#allocation5 + $0x42c] sm:$0xf0] }
  0xce   :  { %1905 = vmatpush.bf16.msrb.mxu2 %v4039_v55  ;;  %v3719_v50 = vor.u32 %v4699_v41, %v3718_v39  ;;  %v4695_v55 = vld [vmem:[#allocation5 + $0x40c] sm:$0xf0]  ;;  %v3560_v39 = vld [vmem:[#allocation5 + $0x2f0] sm:$0xf0] }
  0xcf   :  { %1880 = vmatpush.bf16.msrb.mxu0 %v3767_v13  ;;  %1919 = vmatpush.bf16.msrb.mxu3 %v4151_v19  ;;  %v3703_v2 = vor.u32 %v4695_v55, %v3702_v52  ;;  %v3688_v41 = vld [vmem:[#allocation5 + $0x3f0] sm:$0xf0]  ;;  %v3563_v48 = vor.u32 %v4657_v34, %v3560_v39  ;;  %v4685_v52 = vld [vmem:[#allocation5 + $0x3c4] sm:$0xf] }
  0xd1   :  { %1892 = vmatpush.bf16.msrb.mxu1 %v3911_v54  ;;  %v3975_v54 = vor.u32 %v4763_v46, %v3974_v45 }
  0xd2   :  { %1906 = vmatpush.bf16.msrb.mxu2 %v4023_v8 }
  0xd3   :  { %1881 = vmatpush.bf16.msrb.mxu0 %v3751_v25  ;;  %1920 = vmatpush.bf16.msrb.mxu3 %v4135_v32  ;;  %v4625_v32 = vld [vmem:[#allocation5 + $0x1e4] sm:$0xf] }
  0xd5   :  { %1893 = vmatpush.bf16.msrb.mxu1 %v3895_v14  ;;  %v3959_v14 = vor.u32 %v4759_v3, %v3958_v59  ;;  %v4617_v3 = vld [vmem:[#allocation5 + $0x1a4] sm:$0xf] }
  0xd6   :  { %1907 = vmatpush.bf16.msrb.mxu2 %v4007_v28 }
  0xd7   :  { %1882 = vmatpush.bf16.msrb.mxu0 %v3735_v37  ;;  %1921 = vmatpush.bf16.msrb.mxu3 %v4119_v44 }
  0xd9   :  { %1894 = vmatpush.bf16.msrb.mxu1 %v3879_v26 }
  0xda   :  { %1908 = vmatpush.bf16.msrb.mxu2 %v3991_v40  ;;  %v4689_v40 = vld [vmem:[#allocation5 + $0x3e4] sm:$0xf] }
  0xdb   :  { %1883 = vmatpush.bf16.msrb.mxu0 %v3719_v50  ;;  %1922 = vmatpush.bf16.msrb.mxu3 %v4103_v58  ;;  %v3416_v50 = vld [vmem:[#allocation5 + $0x1d0] sm:$0xf0] }
  0xdd   :  { %1895 = vmatpush.bf16.msrb.mxu1 %v3863_v38 }
  0xde   :  { %1909 = vmatpush.bf16.msrb.mxu2 %v3975_v54 }
  0xdf   :  { %1884 = vmatpush.bf16.msrb.mxu0 %v3703_v2  ;;  %1923 = vmatpush.bf16.msrb.mxu3 %v4087_v15  ;;  %v4681_v2 = vld [vmem:[#allocation5 + $0x3a4] sm:$0xf] }
  0xe1   :  { %1896 = vmatpush.bf16.msrb.mxu1 %v3847_v51  ;;  %v3544_v51 = vld [vmem:[#allocation5 + $0x2d0] sm:$0xf0] }
  0xe2   :  { %1910 = vmatpush.bf16.msrb.mxu2 %v3959_v14  ;;  %v3275_v14 = vor.u32 %v4585_v56, %v3272_v57  ;;  %v4601_v56 = vld [vmem:[#allocation5 + $0x124] sm:$0xf]  ;;  %v3336_v57 = vld [vmem:[#allocation5 + $0x130] sm:$0xf0] }
  0xe5   :  { %1897 = vmatpush.bf16.msrb.mxu1 %v3831_v4  ;;  %v3656_v4 = vld [vmem:[#allocation5 + $0x3b0] sm:$0xf0] }
 0x134   :  { %v233_v22 = vpop.xlane.xlu0 %232 }
 0x135   :  { %v5409_v24 = vmul.f32 0.0009775171, %v233_v22 }
 0x137   :  { %4935 = vrsqrt.f32 %v5409_v24  ;;  %vm242_vm1 = vcmp.eq.f32.partialorder %v5409_v24, inf  ;;  %v245_v18 = vand.u32 2147483648, %v5409_v24  ;;  %vm244_vm2 = vcmp.eq.f32.partialorder %v5409_v24, 0.0 }
 0x13d   :  { %v4936_v49 = vpop.eup %4935 }
 0x13e   :  { %v236_v53 = vmul.f32 %v4936_v49, %v5409_v24 }
 0x140   :  { %v237_v5 = vmul.f32 %v4936_v49, %v236_v53  ;;  %v3672_v53 = vld [vmem:[#allocation5 + $0x3d0] sm:$0xf0] }
 0x141   :  { %v3675_v59 = vor.u32 %v4685_v52, %v3672_v53  ;;  %v4569_v52 = vld [vmem:[#allocation5 + $0x24] sm:$0xf]  ;;  %v3208_v53 = vld [vmem:[#allocation5 + $0x30] sm:$0xf0] }
 0x142   :  { %v238_v13 = vmul.f32 0.5, %v237_v5  ;;  %v3400_v5 = vld [vmem:[#allocation5 + $0x1b0] sm:$0xf0] }
 0x143   :  { %v3403_v15 = vor.u32 %v4617_v3, %v3400_v5  ;;  %v4665_v3 = vld [vmem:[#allocation5 + $0x324] sm:$0xf]  ;;  %v3592_v5 = vld [vmem:[#allocation5 + $0x330] sm:$0xf0] }
 0x144   :  { %v239_v16 = vsub.f32 1.5, %v238_v13  ;;  %v4581_v13 = vld [vmem:[#allocation5 + $0x84] sm:$0xf] }
 0x146   :  { %v240_v8 = vmul.f32 %v4936_v49, %v239_v16  ;;  %v4621_v49 = vld [vmem:[#allocation5 + $0x1c4] sm:$0xf]  ;;  %v3256_v16 = vld [vmem:[#allocation5 + $0x90] sm:$0xf0] }
 0x147   :  { %v3419_v55 = vor.u32 %v4621_v49, %v3416_v50  ;;  %v4669_v49 = vld [vmem:[#allocation5 + $0x344] sm:$0xf]  ;;  %v3608_v50 = vld [vmem:[#allocation5 + $0x350] sm:$0xf0] }
 0x148   :  { %v241_v17 = vmul.f32 %v240_v8, %v5409_v24  ;;  %v4613_v8 = vld [vmem:[#allocation5 + $0x184] sm:$0xf] }
 0x14a   :  { %v243_v10 = vsel %vm242_vm1, %v5409_v24, %v241_v17  ;;  %v3432_v24 = vld [vmem:[#allocation5 + $0x1f0] sm:$0xf0] }
 0x14b   :  { %v246_v19 = vsel %vm244_vm2, %v245_v18, %v243_v10  ;;  %v3435_v43 = vor.u32 %v4625_v32, %v3432_v24  ;;  %v3384_v17 = vld [vmem:[#allocation5 + $0x190] sm:$0xf0]  ;;  %v3531_v18 = vor.u32 %v4649_v0, %v3528_v1  ;;  %v3659_v10 = vor.u32 %v4681_v2, %v3656_v4  ;;  %v4565_v0 = vld [vmem:[#allocation5 + $0x4] sm:$0xf] }
 0x14c   :  { %v247_v20 = vadd.f32 1e-08, %v246_v19  ;;  %v4645_v19 = vld [vmem:[#allocation5 + $0x284] sm:$0xf]  ;;  %v3211_v1 = vor.u32 %v4569_v52, %v3208_v53  ;;  %v3339_v2 = vor.u32 %v4601_v56, %v3336_v57  ;;  %v3192_v4 = vld [vmem:[#allocation5 + $0x10] sm:$0xf0] }
 0x14d   :  { %v4809_v52 = vld [vmem:[#allocation5 + $0x7a4] sm:$0xf]  ;;  %v4168_v53 = vld [vmem:[#allocation5 + $0x7b0] sm:$0xf0] }
 0x14e   :  { %4937 = vrcp.f32 %v247_v20  ;;  %v259_v12 = vand.u32 2147483648, %v247_v20  ;;  %v257_v26 = vand.u32 2147483647, %v247_v20  ;;  %vm253_vm4 = vweird.f32 %v247_v20  ;;  %v4709_v56 = vld [vmem:[#allocation5 + $0x484] sm:$0xf] }
 0x14f   :  { %v3768_v57 = vld [vmem:[#allocation5 + $0x490] sm:$0xf0] }
 0x150   :  { %v260_v28 = vor.u32 1.1754944e-38, %v259_v12  ;;  %vm258_vm6 = vcmp.eq.f32.partialorder %v257_v26, 8.507059e+37  ;;  %v3387_v12 = vor.u32 %v4613_v8, %v3384_v17  ;;  %v4629_v8 = vld [vmem:[#allocation5 + $0x204] sm:$0xf]  ;;  %v3448_v17 = vld [vmem:[#allocation5 + $0x210] sm:$0xf0] }
 0x154   :  { %v4938_v21 = vpop.eup %4937 }
 0x155   :  { %v249_v22 = vmul.f32 %v4938_v21, %v247_v20  ;;  %vm254_vm3 = vweird.f32 %v4938_v21  ;;  %v3512_v20 = vld [vmem:[#allocation5 + $0x290] sm:$0xf0] }
 0x156   :  { %vm255_vm5 = vmor %vm253_vm4, %vm254_vm3  ;;  %v3515_v26 = vor.u32 %v4645_v19, %v3512_v20  ;;  %v4721_v19 = vld [vmem:[#allocation5 + $0x4e4] sm:$0xf]  ;;  %v3816_v20 = vld [vmem:[#allocation5 + $0x4f0] sm:$0xf0] }
 0x157   :  { %v250_v23 = vsub.f32 1.0, %v249_v22  ;;  %v3640_v22 = vld [vmem:[#allocation5 + $0x390] sm:$0xf0] }
 0x159   :  { %v251_v25 = vmul.f32 %v4938_v21, %v250_v23  ;;  %v3259_v23 = vor.u32 %v4581_v13, %v3256_v16  ;;  %v4597_v13 = vld [vmem:[#allocation5 + $0x104] sm:$0xf]  ;;  %v3595_v16 = vor.u32 %v4665_v3, %v3592_v5  ;;  %v3896_v5 = vld [vmem:[#allocation5 + $0x590] sm:$0xf0] }
 0x15a   :  { %v4741_v3 = vld [vmem:[#allocation5 + $0x584] sm:$0xf] }
 0x15b   :  { %v252_v27 = vadd.f32 %v4938_v21, %v251_v25  ;;  %v4577_v25 = vld [vmem:[#allocation5 + $0x64] sm:$0xf] }
 0x15d   :  { %v256_v31 = vsel %vm255_vm5, %v4938_v21, %v252_v27  ;;  %v4677_v21 = vld [vmem:[#allocation5 + $0x384] sm:$0xf] }
 0x15e   :  { %v5418_v33 = vsel %vm258_vm6, %v260_v28, %v256_v31  ;;  %v3368_v31 = vld [vmem:[#allocation5 + $0x170] sm:$0xf0]  ;;  %v3643_v32 = vor.u32 %v4677_v21, %v3640_v22  ;;  %v4753_v21 = vld [vmem:[#allocation5 + $0x5e4] sm:$0xf] }
 0x15f   :  { %v263_v35 = vmul.f32 %v5418_v33, %v5370_v60  ;;  %v264_v36 = vmul.f32 %v5418_v33, %v5373_v61  ;;  %v265_v37 = vmul.f32 %v5418_v33, %v5376_v62  ;;  %v266_v38 = vmul.f32 %v5418_v33, %v5379_v63  ;;  %v4589_v61 = vld [vmem:[#allocation5 + $0xc4] sm:$0xf]  ;;  %v3944_v22 = vld [vmem:[#allocation5 + $0x5f0] sm:$0xf0] }
 0x160   :  { %v3691_v62 = vor.u32 %v4689_v40, %v3688_v41  ;;  %v4653_v63 = vld [vmem:[#allocation5 + $0x2c4] sm:$0xf]  ;;  %v3291_v54 = vor.u32 %v4589_v61, %v3288_v47  ;;  %v267_v27 = vmul.f32 %v5418_v33, %v5386_v7  ;;  %v268_v28 = vmul.f32 %v5418_v33, %v5391_v9  ;;  %v3352_v47 = vld [vmem:[#allocation5 + $0x150] sm:$0xf0] }
 0x161   :  { %v5428_v44 = vpack.c.bf16 %v263_v35, %v263_v35  ;;  %v5430_v45 = vpack.c.bf16 %v264_v36, %v264_v36  ;;  %v5432_v46 = vpack.c.bf16 %v265_v37, %v265_v37  ;;  %v5434_v60 = vpack.c.bf16 %v266_v38, %v266_v38  ;;  %v4641_v35 = vld [vmem:[#allocation5 + $0x264] sm:$0xf]  ;;  %v3496_v36 = vld [vmem:[#allocation5 + $0x270] sm:$0xf0] }
 0x162   :  { %v3547_v58 = vor.u32 %v4653_v63, %v3544_v51  ;;  %v269_v24 = vmul.f32 %v5418_v33, %v5396_v11  ;;  %v270_v34 = vmul.f32 %v5418_v33, %v5401_v6  ;;  %v4673_v37 = vld [vmem:[#allocation5 + $0x364] sm:$0xf]  ;;  %v3624_v38 = vld [vmem:[#allocation5 + $0x370] sm:$0xf0]  ;;  %v3243_v7 = vor.u32 %v4577_v25, %v3240_v29 }
 0x163   :  { %1833 = vmatmul.bf16.vlgmr.msra.gmra.mxu0 %v5428_v44  ;;  %1846 = vmatmul.bf16.vlgmr.msra.gmra.mxu1 %v5430_v45  ;;  %v3371_v39 = vor.u32 %v4609_v30, %v3368_v31  ;;  %v5448_v9 = vpack.c.bf16 %v267_v27, %v267_v27  ;;  %v5450_v40 = vpack.c.bf16 %v268_v28, %v268_v28  ;;  %v4605_v61 = vld [vmem:[#allocation5 + $0x144] sm:$0xf]  ;;  %v4200_v28 = vld [vmem:[#allocation5 + $0x7f0] sm:$0xf0] }
 0x164   :  { %1859 = vmatmul.bf16.vlgmr.msra.gmra.mxu2 %v5432_v46  ;;  %1872 = vmatmul.bf16.vlgmr.msra.gmra.mxu3 %v5434_v60  ;;  %v3499_v41 = vor.u32 %v4641_v35, %v3496_v36  ;;  %v5452_v11 = vpack.c.bf16 %v269_v24, %v269_v24  ;;  %v5454_v6 = vpack.c.bf16 %v270_v34, %v270_v34  ;;  %v4817_v27 = vld [vmem:[#allocation5 + $0x7e4] sm:$0xf]  ;;  %v3800_v34 = vld [vmem:[#allocation5 + $0x4d0] sm:$0xf0] }
 0x165   :  { %1929 = vmatpush.bf16.msra.mxu0 %v3307_v42  ;;  %1942 = vmatpush.bf16.msra.mxu1 %v3435_v43  ;;  %v4573_v42 = vld [vmem:[#allocation5 + $0x44] sm:$0xf]  ;;  %v3224_v43 = vld [vmem:[#allocation5 + $0x50] sm:$0xf0]  ;;  %v3627_v33 = vor.u32 %v4673_v37, %v3624_v38  ;;  %v3355_v51 = vor.u32 %v4605_v61, %v3352_v47  ;;  %v3451_v29 = vor.u32 %v4629_v8, %v3448_v17 }
 0x166   :  { %1955 = vmatpush.bf16.msra.mxu2 %v3563_v48  ;;  %1968 = vmatpush.bf16.msra.mxu3 %v3691_v62  ;;  %v4637_v48 = vld [vmem:[#allocation5 + $0x244] sm:$0xf]  ;;  %v3480_v62 = vld [vmem:[#allocation5 + $0x250] sm:$0xf0]  ;;  %v3227_v63 = vor.u32 %v4573_v42, %v3224_v43  ;;  %v3819_v31 = vor.u32 %v4721_v19, %v3816_v20  ;;  %v4203_v36 = vor.u32 %v4817_v27, %v4200_v28 }
 0x167   :  { %v4717_v24 = vld [vmem:[#allocation5 + $0x4c4] sm:$0xf]  ;;  %v3928_v38 = vld [vmem:[#allocation5 + $0x5d0] sm:$0xf0] }
 0x168   :  { %v4749_v37 = vld [vmem:[#allocation5 + $0x5c4] sm:$0xf]  ;;  %v4184_v42 = vld [vmem:[#allocation5 + $0x7d0] sm:$0xf0]  ;;  %v3803_v43 = vor.u32 %v4717_v24, %v3800_v34 }
 0x169   :  { %1930 = vmatpush.bf16.msra.mxu0 %v3291_v54  ;;  %1943 = vmatpush.bf16.msra.mxu1 %v3419_v55  ;;  %v3483_v54 = vor.u32 %v4637_v48, %v3480_v62  ;;  %v3611_v55 = vor.u32 %v4669_v49, %v3608_v50  ;;  %v4713_v61 = vld [vmem:[#allocation5 + $0x4a4] sm:$0xf]  ;;  %v3784_v47 = vld [vmem:[#allocation5 + $0x4b0] sm:$0xf0] }
 0x16a   :  { %1956 = vmatpush.bf16.msra.mxu2 %v3547_v58  ;;  %1969 = vmatpush.bf16.msra.mxu3 %v3675_v59  ;;  %v4633_v58 = vld [vmem:[#allocation5 + $0x224] sm:$0xf]  ;;  %v3464_v59 = vld [vmem:[#allocation5 + $0x230] sm:$0xf0] }
 0x16b   :  { %v4745_v49 = vld [vmem:[#allocation5 + $0x5a4] sm:$0xf]  ;;  %v3912_v50 = vld [vmem:[#allocation5 + $0x5b0] sm:$0xf0] }
 0x16c   :  { %v4769_v19 = vld [vmem:[#allocation5 + $0x664] sm:$0xf]  ;;  %v4008_v20 = vld [vmem:[#allocation5 + $0x670] sm:$0xf0] }
 0x16d   :  { %1931 = vmatpush.bf16.msra.mxu0 %v3275_v14  ;;  %1944 = vmatpush.bf16.msra.mxu1 %v3403_v15  ;;  %v3320_v14 = vld [vmem:[#allocation5 + $0x110] sm:$0xf0]  ;;  %v3467_v15 = vor.u32 %v4633_v58, %v3464_v59  ;;  %v4171_v59 = vor.u32 %v4809_v52, %v4168_v53  ;;  %v4011_v27 = vor.u32 %v4769_v19, %v4008_v20  ;;  %v4797_v24 = vld [vmem:[#allocation5 + $0x744] sm:$0xf] }
 0x16e   :  { %1957 = vmatpush.bf16.msra.mxu2 %v3531_v18  ;;  %1970 = vmatpush.bf16.msra.mxu3 %v3659_v10  ;;  %v4661_v18 = vld [vmem:[#allocation5 + $0x304] sm:$0xf]  ;;  %v3576_v10 = vld [vmem:[#allocation5 + $0x310] sm:$0xf0]  ;;  %v3323_v25 = vor.u32 %v4597_v13, %v3320_v14  ;;  %v3771_v13 = vor.u32 %v4709_v56, %v3768_v57  ;;  %v3899_v14 = vor.u32 %v4741_v3, %v3896_v5  ;;  %v3438_v3 = vld [vmem:[#allocation5 + $0x1e8] sm:$0xf] }
 0x16f   :  { %v3579_v30 = vor.u32 %v4661_v18, %v3576_v10  ;;  %v4737_v18 = vld [vmem:[#allocation5 + $0x564] sm:$0xf]  ;;  %v3880_v10 = vld [vmem:[#allocation5 + $0x570] sm:$0xf0]  ;;  %v4628_v5 = vld [vmem:[#allocation5 + $0x1f4] sm:$0xf0] }
 0x170   :  { %v4120_v34 = vld [vmem:[#allocation5 + $0x750] sm:$0xf0]  ;;  %v4789_v56 = vld [vmem:[#allocation5 + $0x704] sm:$0xf] }
 0x171   :  { %1932 = vmatpush.bf16.msra.mxu0 %v3259_v23  ;;  %1945 = vmatpush.bf16.msra.mxu1 %v3387_v12  ;;  %v4785_v23 = vld [vmem:[#allocation5 + $0x6e4] sm:$0xf]  ;;  %v3195_v12 = vor.u32 %v4565_v0, %v3192_v4  ;;  %v4152_v4 = vld [vmem:[#allocation5 + $0x790] sm:$0xf0] }
 0x172   :  { %1958 = vmatpush.bf16.msra.mxu2 %v3515_v26  ;;  %1971 = vmatpush.bf16.msra.mxu3 %v3643_v32  ;;  %v4072_v26 = vld [vmem:[#allocation5 + $0x6f0] sm:$0xf0]  ;;  %v3947_v32 = vor.u32 %v4753_v21, %v3944_v22  ;;  %v4773_v0 = vld [vmem:[#allocation5 + $0x684] sm:$0xf] }
 0x173   :  { %1885 = vmatmul.bf16.vlgmr.msrb.gmra.mxu0 %v5448_v9  ;;  %1898 = vmatmul.bf16.vlgmr.msrb.gmra.mxu1 %v5450_v40  ;;  %v4075_v35 = vor.u32 %v4785_v23, %v4072_v26  ;;  %v4801_v21 = vld [vmem:[#allocation5 + $0x764] sm:$0xf]  ;;  %v4136_v22 = vld [vmem:[#allocation5 + $0x770] sm:$0xf0] }
 0x174   :  { %1911 = vmatmul.bf16.vlgmr.msrb.gmra.mxu2 %v5452_v11  ;;  %1924 = vmatmul.bf16.vlgmr.msrb.gmra.mxu3 %v5454_v6  ;;  %v3736_v26 = vld [vmem:[#allocation5 + $0x450] sm:$0xf0]  ;;  %v4139_v28 = vor.u32 %v4801_v21, %v4136_v22  ;;  %v3422_v21 = vld [vmem:[#allocation5 + $0x1c8] sm:$0xf]  ;;  %v4624_v22 = vld [vmem:[#allocation5 + $0x1d4] sm:$0xf0] }
 0x175   :  { %1933 = vmatpush.bf16.msra.mxu0 %v3243_v7  ;;  %1946 = vmatpush.bf16.msra.mxu1 %v3371_v39  ;;  %v4781_v7 = vld [vmem:[#allocation5 + $0x6c4] sm:$0xf]  ;;  %v4056_v39 = vld [vmem:[#allocation5 + $0x6d0] sm:$0xf0] }
 0x176   :  { %1959 = vmatpush.bf16.msra.mxu2 %v3499_v41  ;;  %1972 = vmatpush.bf16.msra.mxu3 %v3627_v33  ;;  %v4813_v41 = vld [vmem:[#allocation5 + $0x7c4] sm:$0xf]  ;;  %v3931_v33 = vor.u32 %v4749_v37, %v3928_v38  ;;  %v4059_v48 = vor.u32 %v4781_v7, %v4056_v39  ;;  %v3720_v38 = vld [vmem:[#allocation5 + $0x430] sm:$0xf0]  ;;  %v4123_v39 = vor.u32 %v4797_v24, %v4120_v34  ;;  %v3406_v24 = vld [vmem:[#allocation5 + $0x1a8] sm:$0xf] }
 0x177   :  { %v4187_v62 = vor.u32 %v4813_v41, %v4184_v42  ;;  %v4697_v37 = vld [vmem:[#allocation5 + $0x424] sm:$0xf]  ;;  %v3848_v42 = vld [vmem:[#allocation5 + $0x530] sm:$0xf0]  ;;  %v4620_v34 = vld [vmem:[#allocation5 + $0x1b4] sm:$0xf0] }
 0x178   :  { %v4729_v41 = vld [vmem:[#allocation5 + $0x524] sm:$0xf]  ;;  %v4088_v57 = vld [vmem:[#allocation5 + $0x710] sm:$0xf0] }
 0x179   :  { %1934 = vmatpush.bf16.msra.mxu0 %v3227_v63  ;;  %1947 = vmatpush.bf16.msra.mxu1 %v3355_v51  ;;  %v4777_v63 = vld [vmem:[#allocation5 + $0x6a4] sm:$0xf]  ;;  %v4040_v51 = vld [vmem:[#allocation5 + $0x6b0] sm:$0xf0] }
 0x17a   :  { %1960 = vmatpush.bf16.msra.mxu2 %v3483_v54  ;;  %1973 = vmatpush.bf16.msra.mxu3 %v3611_v55  ;;  %v3787_v54 = vor.u32 %v4713_v61, %v3784_v47  ;;  %v3915_v55 = vor.u32 %v4745_v49, %v3912_v50  ;;  %v4043_v58 = vor.u32 %v4777_v63, %v4040_v51  ;;  %v4793_v61 = vld [vmem:[#allocation5 + $0x724] sm:$0xf]  ;;  %v4104_v47 = vld [vmem:[#allocation5 + $0x730] sm:$0xf0] }
 0x17b   :  { %v3851_v49 = vor.u32 %v4729_v41, %v3848_v42  ;;  %v3704_v50 = vld [vmem:[#allocation5 + $0x410] sm:$0xf0]  ;;  %v4725_v63 = vld [vmem:[#allocation5 + $0x504] sm:$0xf]  ;;  %v4107_v53 = vor.u32 %v4793_v61, %v4104_v47  ;;  %v3262_v41 = vld [vmem:[#allocation5 + $0x88] sm:$0xf] }
 0x17c   :  { %v3832_v51 = vld [vmem:[#allocation5 + $0x510] sm:$0xf0]  ;;  %v4584_v42 = vld [vmem:[#allocation5 + $0x94] sm:$0xf0]  ;;  %v3390_v61 = vld [vmem:[#allocation5 + $0x188] sm:$0xf] }
 0x17d   :  { %1935 = vmatpush.bf16.msra.mxu0 %v3211_v1  ;;  %1948 = vmatpush.bf16.msra.mxu1 %v3339_v2  ;;  %v4024_v1 = vld [vmem:[#allocation5 + $0x690] sm:$0xf0]  ;;  %v4805_v2 = vld [vmem:[#allocation5 + $0x784] sm:$0xf]  ;;  %v4616_v47 = vld [vmem:[#allocation5 + $0x194] sm:$0xf0] }
 0x17e   :  { %1961 = vmatpush.bf16.msra.mxu2 %v3467_v15  ;;  %1974 = vmatpush.bf16.msra.mxu3 %v3595_v16  ;;  %v4705_v15 = vld [vmem:[#allocation5 + $0x464] sm:$0xf]  ;;  %v3752_v16 = vld [vmem:[#allocation5 + $0x470] sm:$0xf0]  ;;  %v4027_v8 = vor.u32 %v4773_v0, %v4024_v1  ;;  %v4155_v17 = vor.u32 %v4805_v2, %v4152_v4  ;;  %v3566_v0 = vld [vmem:[#allocation5 + $0x2e8] sm:$0xf]  ;;  %v3835_v2 = vor.u32 %v4725_v63, %v3832_v51 }
 0x17f   :  { %v3755_v23 = vor.u32 %v4705_v15, %v3752_v16  ;;  %v4660_v4 = vld [vmem:[#allocation5 + $0x2f4] sm:$0xf0]  ;;  %v4091_v16 = vor.u32 %v4789_v56, %v4088_v57  ;;  %v3263_v63 = vor.u32 %v4584_v42, %v3262_v41  ;;  %v3391_v51 = vor.u32 %v4616_v47, %v3390_v61  ;;  %v3374_v56 = vld [vmem:[#allocation5 + $0x168] sm:$0xf] }
 0x180   :  { %v3567_v19 = vor.u32 %v4660_v4, %v3566_v0  ;;  %v4612_v57 = vld [vmem:[#allocation5 + $0x174] sm:$0xf0]  ;;  %v3582_v41 = vld [vmem:[#allocation5 + $0x308] sm:$0xf] }
 0x181   :  { %1936 = vmatpush.bf16.msra.mxu0 %v3195_v12  ;;  %1949 = vmatpush.bf16.msra.mxu1 %v3323_v25  ;;  %v3883_v12 = vor.u32 %v4737_v18, %v3880_v10  ;;  %v4701_v25 = vld [vmem:[#allocation5 + $0x444] sm:$0xf]  ;;  %v3294_v18 = vld [vmem:[#allocation5 + $0xc8] sm:$0xf]  ;;  %v4592_v10 = vld [vmem:[#allocation5 + $0xd4] sm:$0xf0] }
 0x182   :  { %1962 = vmatpush.bf16.msra.mxu2 %v3451_v29  ;;  %1975 = vmatpush.bf16.msra.mxu3 %v3579_v30  ;;  %v4733_v29 = vld [vmem:[#allocation5 + $0x544] sm:$0xf]  ;;  %v3864_v30 = vld [vmem:[#allocation5 + $0x550] sm:$0xf0]  ;;  %v4576_v4 = vld [vmem:[#allocation5 + $0x54] sm:$0xf0] }
 0x183   :  { %v4664_v42 = vld [vmem:[#allocation5 + $0x314] sm:$0xf0]  ;;  %v3950_v61 = vld [vmem:[#allocation5 + $0x5e8] sm:$0xf] }
 0x184   :  { %1937 = vmatmul.bf16.vlgmr.msra.gmra.mxu0 %v5428_v44  ;;  %1950 = vmatmul.bf16.vlgmr.msra.gmra.mxu1 %v5430_v45  ;;  %v4756_v47 = vld [vmem:[#allocation5 + $0x5f4] sm:$0xf0] }
 0x185   :  { %1981 = vmatpush.bf16.msrb.mxu0 %v3819_v31  ;;  %1994 = vmatpush.bf16.msrb.mxu1 %v3947_v32  ;;  %v4765_v31 = vld [vmem:[#allocation5 + $0x644] sm:$0xf]  ;;  %v3992_v32 = vld [vmem:[#allocation5 + $0x650] sm:$0xf0] }
 0x186   :  { %2007 = vmatpush.bf16.msrb.mxu2 %v4075_v35  ;;  %2020 = vmatpush.bf16.msrb.mxu3 %v4203_v36  ;;  %v3739_v35 = vor.u32 %v4701_v25, %v3736_v26  ;;  %v3867_v36 = vor.u32 %v4733_v29, %v3864_v30  ;;  %v3995_v7 = vor.u32 %v4765_v31, %v3992_v32  ;;  %v3678_v25 = vld [vmem:[#allocation5 + $0x3c8] sm:$0xf]  ;;  %v4688_v26 = vld [vmem:[#allocation5 + $0x3d4] sm:$0xf0] }
 0x187   :  { %1963 = vmatmul.bf16.vlgmr.msra.gmra.mxu2 %v5432_v46  ;;  %1976 = vmatmul.bf16.vlgmr.msra.gmra.mxu3 %v5434_v60  ;;  %v3278_v29 = vld [vmem:[#allocation5 + $0xa8] sm:$0xf]  ;;  %v4588_v30 = vld [vmem:[#allocation5 + $0xb4] sm:$0xf0]  ;;  %v3679_v32 = vor.u32 %v4688_v26, %v3678_v25 }
 0x188   :  { %v3342_v25 = vld [vmem:[#allocation5 + $0x128] sm:$0xf]  ;;  %v4604_v26 = vld [vmem:[#allocation5 + $0x134] sm:$0xf0] }
 0x189   :  { %1982 = vmatpush.bf16.msrb.mxu0 %v3803_v43  ;;  %1995 = vmatpush.bf16.msrb.mxu1 %v3931_v33  ;;  %v4761_v43 = vld [vmem:[#allocation5 + $0x624] sm:$0xf]  ;;  %v3976_v33 = vld [vmem:[#allocation5 + $0x630] sm:$0xf0] }
 0x18a   :  { %2008 = vmatpush.bf16.msrb.mxu2 %v4059_v48  ;;  %2021 = vmatpush.bf16.msrb.mxu3 %v4187_v62  ;;  %v4693_v48 = vld [vmem:[#allocation5 + $0x404] sm:$0xf]  ;;  %v3723_v62 = vor.u32 %v4697_v37, %v3720_v38  ;;  %v3979_v52 = vor.u32 %v4761_v43, %v3976_v33  ;;  %v3662_v37 = vld [vmem:[#allocation5 + $0x3a8] sm:$0xf]  ;;  %v4684_v38 = vld [vmem:[#allocation5 + $0x3b4] sm:$0xf0] }
 0x18b   :  { %v3707_v1 = vor.u32 %v4693_v48, %v3704_v50  ;;  %v3663_v33 = vor.u32 %v4684_v38, %v3662_v37  ;;  %v3518_v48 = vld [vmem:[#allocation5 + $0x288] sm:$0xf]  ;;  %v4680_v50 = vld [vmem:[#allocation5 + $0x394] sm:$0xf0] }
 0x18d   :  { %1983 = vmatpush.bf16.msrb.mxu0 %v3787_v54  ;;  %1996 = vmatpush.bf16.msrb.mxu1 %v3915_v55  ;;  %v4757_v54 = vld [vmem:[#allocation5 + $0x604] sm:$0xf]  ;;  %v3960_v55 = vld [vmem:[#allocation5 + $0x610] sm:$0xf0] }
 0x18e   :  { %2009 = vmatpush.bf16.msrb.mxu2 %v4043_v58  ;;  %2022 = vmatpush.bf16.msrb.mxu3 %v4171_v59  ;;  %v3310_v58 = vld [vmem:[#allocation5 + $0xe8] sm:$0xf]  ;;  %v4596_v59 = vld [vmem:[#allocation5 + $0xf4] sm:$0xf0]  ;;  %v3963_v15 = vor.u32 %v4757_v54, %v3960_v55 }
 0x191   :  { %1984 = vmatpush.bf16.msrb.mxu0 %v3771_v13  ;;  %1997 = vmatpush.bf16.msrb.mxu1 %v3899_v14  ;;  %v3694_v13 = vld [vmem:[#allocation5 + $0x3e8] sm:$0xf]  ;;  %v4692_v14 = vld [vmem:[#allocation5 + $0x3f4] sm:$0xf0] }
 0x192   :  { %2010 = vmatpush.bf16.msrb.mxu2 %v4027_v8  ;;  %2023 = vmatpush.bf16.msrb.mxu3 %v4155_v17  ;;  %v3311_v8 = vor.u32 %v4596_v59, %v3310_v58  ;;  %v3439_v17 = vor.u32 %v4628_v5, %v3438_v3  ;;  %v3695_v20 = vor.u32 %v4692_v14, %v3694_v13  ;;  %v3502_v58 = vld [vmem:[#allocation5 + $0x268] sm:$0xf]  ;;  %v4644_v59 = vld [vmem:[#allocation5 + $0x274] sm:$0xf0] }
 0x193   :  { %v3630_v3 = vld [vmem:[#allocation5 + $0x368] sm:$0xf]  ;;  %v4676_v5 = vld [vmem:[#allocation5 + $0x374] sm:$0xf0]  ;;  %v3503_v13 = vor.u32 %v4644_v59, %v3502_v58 }
 0x194   :  { %v3631_v14 = vor.u32 %v4676_v5, %v3630_v3  ;;  %v3934_v3 = vld [vmem:[#allocation5 + $0x5c8] sm:$0xf]  ;;  %v4752_v5 = vld [vmem:[#allocation5 + $0x5d4] sm:$0xf0] }
 0x195   :  { %1985 = vmatpush.bf16.msrb.mxu0 %v3755_v23  ;;  %1998 = vmatpush.bf16.msrb.mxu1 %v3883_v12  ;;  %v3550_v23 = vld [vmem:[#allocation5 + $0x2c8] sm:$0xf]  ;;  %v4656_v12 = vld [vmem:[#allocation5 + $0x2d4] sm:$0xf0] }
 0x196   :  { %2011 = vmatpush.bf16.msrb.mxu2 %v4011_v27  ;;  %2024 = vmatpush.bf16.msrb.mxu3 %v4139_v28  ;;  %v3295_v27 = vor.u32 %v4592_v10, %v3294_v18  ;;  %v3423_v28 = vor.u32 %v4624_v22, %v3422_v21  ;;  %v3551_v31 = vor.u32 %v4656_v12, %v3550_v23  ;;  %v3614_v18 = vld [vmem:[#allocation5 + $0x348] sm:$0xf]  ;;  %v4672_v10 = vld [vmem:[#allocation5 + $0x354] sm:$0xf0] }
 0x197   :  { %v3214_v21 = vld [vmem:[#allocation5 + $0x28] sm:$0xf]  ;;  %v4572_v22 = vld [vmem:[#allocation5 + $0x34] sm:$0xf0]  ;;  %v3615_v12 = vor.u32 %v4672_v10, %v3614_v18 }
 0x198   :  { %v3918_v18 = vld [vmem:[#allocation5 + $0x5a8] sm:$0xf]  ;;  %v4748_v10 = vld [vmem:[#allocation5 + $0x5b4] sm:$0xf0] }
 0x199   :  { %1986 = vmatpush.bf16.msrb.mxu0 %v3739_v35  ;;  %1999 = vmatpush.bf16.msrb.mxu1 %v3867_v36  ;;  %v3534_v35 = vld [vmem:[#allocation5 + $0x2a8] sm:$0xf]  ;;  %v4652_v36 = vld [vmem:[#allocation5 + $0x2b4] sm:$0xf0] }
 0x19a   :  { %2012 = vmatpush.bf16.msrb.mxu2 %v3995_v7  ;;  %2025 = vmatpush.bf16.msrb.mxu3 %v4123_v39  ;;  %v3279_v7 = vor.u32 %v4588_v30, %v3278_v29  ;;  %v3407_v39 = vor.u32 %v4620_v34, %v3406_v24  ;;  %v3535_v43 = vor.u32 %v4652_v36, %v3534_v35  ;;  %v3598_v29 = vld [vmem:[#allocation5 + $0x328] sm:$0xf]  ;;  %v4668_v30 = vld [vmem:[#allocation5 + $0x334] sm:$0xf0] }
 0x19b   :  { %v3343_v24 = vor.u32 %v4604_v26, %v3342_v25  ;;  %v4568_v34 = vld [vmem:[#allocation5 + $0x14] sm:$0xf0]  ;;  %v3326_v35 = vld [vmem:[#allocation5 + $0x108] sm:$0xf]  ;;  %v3599_v38 = vor.u32 %v4668_v30, %v3598_v29 }
 0x19c   :  { %v4600_v36 = vld [vmem:[#allocation5 + $0x114] sm:$0xf0]  ;;  %v3774_v25 = vld [vmem:[#allocation5 + $0x488] sm:$0xf] }
 0x19d   :  { %1987 = vmatpush.bf16.msrb.mxu0 %v3723_v62  ;;  %2000 = vmatpush.bf16.msrb.mxu1 %v3851_v49  ;;  %v4648_v62 = vld [vmem:[#allocation5 + $0x294] sm:$0xf0]  ;;  %v3646_v49 = vld [vmem:[#allocation5 + $0x388] sm:$0xf] }
 0x19e   :  { %2013 = vmatpush.bf16.msrb.mxu2 %v3979_v52  ;;  %2026 = vmatpush.bf16.msrb.mxu3 %v4107_v53  ;;  %v3246_v52 = vld [vmem:[#allocation5 + $0x68] sm:$0xf]  ;;  %v4580_v53 = vld [vmem:[#allocation5 + $0x74] sm:$0xf0]  ;;  %v3519_v54 = vor.u32 %v4648_v62, %v3518_v48  ;;  %v3647_v55 = vor.u32 %v4680_v50, %v3646_v49  ;;  %v3327_v49 = vor.u32 %v4600_v36, %v3326_v35 }
 0x19f   :  { %v3247_v0 = vor.u32 %v4580_v53, %v3246_v52  ;;  %v4078_v48 = vld [vmem:[#allocation5 + $0x6e8] sm:$0xf]  ;;  %v4788_v50 = vld [vmem:[#allocation5 + $0x6f4] sm:$0xf0]  ;;  %v3583_v53 = vor.u32 %v4664_v42, %v3582_v41 }
 0x1a0   :  { %v4079_v58 = vor.u32 %v4788_v50, %v4078_v48  ;;  %v4712_v26 = vld [vmem:[#allocation5 + $0x494] sm:$0xf0]  ;;  %v3902_v29 = vld [vmem:[#allocation5 + $0x588] sm:$0xf] }
 0x1a1   :  { %1988 = vmatpush.bf16.msrb.mxu0 %v3707_v1  ;;  %2001 = vmatpush.bf16.msrb.mxu1 %v3835_v2  ;;  %v3375_v1 = vor.u32 %v4612_v57, %v3374_v56  ;;  %v3230_v2 = vld [vmem:[#allocation5 + $0x48] sm:$0xf]  ;;  %v4720_v57 = vld [vmem:[#allocation5 + $0x4d4] sm:$0xf0]  ;;  %v3775_v35 = vor.u32 %v4712_v26, %v3774_v25 }
 0x1a2   :  { %2014 = vmatpush.bf16.msrb.mxu2 %v3963_v15  ;;  %2027 = vmatpush.bf16.msrb.mxu3 %v4091_v16  ;;  %v3358_v15 = vld [vmem:[#allocation5 + $0x148] sm:$0xf]  ;;  %v4608_v16 = vld [vmem:[#allocation5 + $0x154] sm:$0xf0] }
 0x1a3   :  { %v3806_v56 = vld [vmem:[#allocation5 + $0x4c8] sm:$0xf]  ;;  %v4744_v30 = vld [vmem:[#allocation5 + $0x594] sm:$0xf0] }
 0x1a4   :  { %1989 = vmatmul.bf16.vlgmr.msrb.gmra.mxu0 %v5448_v9  ;;  %2002 = vmatmul.bf16.vlgmr.msrb.gmra.mxu1 %v5450_v40  ;;  %v3903_v36 = vor.u32 %v4744_v30, %v3902_v29  ;;  %v3886_v41 = vld [vmem:[#allocation5 + $0x568] sm:$0xf]  ;;  %v4740_v42 = vld [vmem:[#allocation5 + $0x574] sm:$0xf0]  ;;  %v4626_v29 = vld [vmem:[#allocation5 + $0x1ec] sm:$0xf] }
 0x1a5   :  { %2033 = vmatpush.bf16.msra.mxu0 %v3311_v8  ;;  %2046 = vmatpush.bf16.msra.mxu1 %v3439_v17  ;;  %v3486_v8 = vld [vmem:[#allocation5 + $0x248] sm:$0xf]  ;;  %v4640_v17 = vld [vmem:[#allocation5 + $0x254] sm:$0xf0]  ;;  %v3440_v30 = vld [vmem:[#allocation5 + $0x1f8] sm:$0xf0] }
 0x1a6   :  { %2059 = vmatpush.bf16.msra.mxu2 %v3567_v19  ;;  %2072 = vmatpush.bf16.msra.mxu3 %v3695_v20  ;;  %v3231_v19 = vor.u32 %v4576_v4, %v3230_v2  ;;  %v3359_v20 = vor.u32 %v4608_v16, %v3358_v15  ;;  %v3487_v23 = vor.u32 %v4640_v17, %v3486_v8  ;;  %v4190_v2 = vld [vmem:[#allocation5 + $0x7c8] sm:$0xf]  ;;  %v4816_v4 = vld [vmem:[#allocation5 + $0x7d4] sm:$0xf0] }
 0x1a7   :  { %2015 = vmatmul.bf16.vlgmr.msrb.gmra.mxu2 %v5452_v11  ;;  %2028 = vmatmul.bf16.vlgmr.msrb.gmra.mxu3 %v5454_v6  ;;  %v3790_v15 = vld [vmem:[#allocation5 + $0x4a8] sm:$0xf]  ;;  %v4716_v16 = vld [vmem:[#allocation5 + $0x4b4] sm:$0xf0]  ;;  %v4191_v17 = vor.u32 %v4816_v4, %v4190_v2 }
 0x1a8   :  { %v4704_v50 = vld [vmem:[#allocation5 + $0x454] sm:$0xf0]  ;;  %v3854_v2 = vld [vmem:[#allocation5 + $0x528] sm:$0xf] }
 0x1a9   :  { %2034 = vmatpush.bf16.msra.mxu0 %v3295_v27  ;;  %2047 = vmatpush.bf16.msra.mxu1 %v3423_v28  ;;  %v3470_v27 = vld [vmem:[#allocation5 + $0x228] sm:$0xf]  ;;  %v4636_v28 = vld [vmem:[#allocation5 + $0x234] sm:$0xf0] }
 0x1aa   :  { %2060 = vmatpush.bf16.msra.mxu2 %v3551_v31  ;;  %2073 = vmatpush.bf16.msra.mxu3 %v3679_v32  ;;  %v3198_v31 = vld [vmem:[#allocation5 + $0x8] sm:$0xf]  ;;  %v3215_v32 = vor.u32 %v4572_v22, %v3214_v21  ;;  %v3471_v37 = vor.u32 %v4636_v28, %v3470_v27  ;;  %v4812_v22 = vld [vmem:[#allocation5 + $0x7b4] sm:$0xf0] }
 0x1ab   :  { %v3199_v62 = vor.u32 %v4568_v34, %v3198_v31  ;;  %v4174_v21 = vld [vmem:[#allocation5 + $0x7a8] sm:$0xf]  ;;  %v4808_v34 = vld [vmem:[#allocation5 + $0x794] sm:$0xf0] }
 0x1ac   :  { %v4175_v28 = vor.u32 %v4812_v22, %v4174_v21  ;;  %v4030_v31 = vld [vmem:[#allocation5 + $0x688] sm:$0xf]  ;;  %v4732_v4 = vld [vmem:[#allocation5 + $0x534] sm:$0xf0] }
 0x1ad   :  { %2035 = vmatpush.bf16.msra.mxu0 %v3279_v7  ;;  %2048 = vmatpush.bf16.msra.mxu1 %v3407_v39  ;;  %v3454_v7 = vld [vmem:[#allocation5 + $0x208] sm:$0xf]  ;;  %v4632_v39 = vld [vmem:[#allocation5 + $0x214] sm:$0xf0] }
 0x1ae   :  { %2061 = vmatpush.bf16.msra.mxu2 %v3535_v43  ;;  %2074 = vmatpush.bf16.msra.mxu3 %v3663_v33  ;;  %v3822_v43 = vld [vmem:[#allocation5 + $0x4e8] sm:$0xf]  ;;  %v4724_v33 = vld [vmem:[#allocation5 + $0x4f4] sm:$0xf0]  ;;  %v3455_v52 = vor.u32 %v4632_v39, %v3454_v7 }
 0x1af   :  { %v4094_v25 = vld [vmem:[#allocation5 + $0x708] sm:$0xf]  ;;  %v4792_v26 = vld [vmem:[#allocation5 + $0x714] sm:$0xf0] }
 0x1b1   :  { %2036 = vmatpush.bf16.msra.mxu0 %v3263_v63  ;;  %2049 = vmatpush.bf16.msra.mxu1 %v3391_v51  ;;  %v4206_v63 = vld [vmem:[#allocation5 + $0x7e8] sm:$0xf]  ;;  %v4820_v51 = vld [vmem:[#allocation5 + $0x7f4] sm:$0xf0] }
 0x1b2   :  { %2062 = vmatpush.bf16.msra.mxu2 %v3519_v54  ;;  %2075 = vmatpush.bf16.msra.mxu3 %v3647_v55  ;;  %v3823_v54 = vor.u32 %v4724_v33, %v3822_v43  ;;  %v3951_v55 = vor.u32 %v4756_v47, %v3950_v61  ;;  %v4207_v59 = vor.u32 %v4820_v51, %v4206_v63  ;;  %v4014_v43 = vld [vmem:[#allocation5 + $0x668] sm:$0xf]  ;;  %v4772_v33 = vld [vmem:[#allocation5 + $0x674] sm:$0xf0] }
 0x1b3   :  { %v4142_v61 = vld [vmem:[#allocation5 + $0x768] sm:$0xf]  ;;  %v4804_v47 = vld [vmem:[#allocation5 + $0x774] sm:$0xf0]  ;;  %v4015_v63 = vor.u32 %v4772_v33, %v4014_v43  ;;  %v4622_v43 = vld [vmem:[#allocation5 + $0x1cc] sm:$0xf] }
 0x1b4   :  { %v4143_v51 = vor.u32 %v4804_v47, %v4142_v61  ;;  %v3424_v47 = vld [vmem:[#allocation5 + $0x1d8] sm:$0xf0] }
 0x1b5   :  { %2037 = vmatpush.bf16.msra.mxu0 %v3247_v0  ;;  %2050 = vmatpush.bf16.msra.mxu1 %v3375_v1  ;;  %v4062_v0 = vld [vmem:[#allocation5 + $0x6c8] sm:$0xf]  ;;  %v4784_v1 = vld [vmem:[#allocation5 + $0x6d4] sm:$0xf0] }
 0x1b6   :  { %2063 = vmatpush.bf16.msra.mxu2 %v3503_v13  ;;  %2076 = vmatpush.bf16.msra.mxu3 %v3631_v14  ;;  %v3807_v13 = vor.u32 %v4720_v57, %v3806_v56  ;;  %v3935_v14 = vor.u32 %v4752_v5, %v3934_v3  ;;  %v4063_v8 = vor.u32 %v4784_v1, %v4062_v0  ;;  %v4126_v56 = vld [vmem:[#allocation5 + $0x748] sm:$0xf]  ;;  %v4800_v57 = vld [vmem:[#allocation5 + $0x754] sm:$0xf0] }
 0x1b7   :  { %v3726_v3 = vld [vmem:[#allocation5 + $0x428] sm:$0xf]  ;;  %v4700_v5 = vld [vmem:[#allocation5 + $0x434] sm:$0xf0]  ;;  %v4127_v1 = vor.u32 %v4800_v57, %v4126_v56 }
 0x1b9   :  { %2038 = vmatpush.bf16.msra.mxu0 %v3231_v19  ;;  %2051 = vmatpush.bf16.msra.mxu1 %v3359_v20  ;;  %v4046_v19 = vld [vmem:[#allocation5 + $0x6a8] sm:$0xf]  ;;  %v4780_v20 = vld [vmem:[#allocation5 + $0x6b4] sm:$0xf0] }
 0x1ba   :  { %2064 = vmatpush.bf16.msra.mxu2 %v3487_v23  ;;  %2077 = vmatpush.bf16.msra.mxu3 %v3615_v12  ;;  %v3791_v23 = vor.u32 %v4716_v16, %v3790_v15  ;;  %v3919_v12 = vor.u32 %v4748_v10, %v3918_v18  ;;  %v4047_v27 = vor.u32 %v4780_v20, %v4046_v19  ;;  %v4110_v15 = vld [vmem:[#allocation5 + $0x728] sm:$0xf]  ;;  %v4796_v16 = vld [vmem:[#allocation5 + $0x734] sm:$0xf0] }
 0x1bb   :  { %v3855_v18 = vor.u32 %v4732_v4, %v3854_v2  ;;  %v4696_v10 = vld [vmem:[#allocation5 + $0x414] sm:$0xf0]  ;;  %v3838_v19 = vld [vmem:[#allocation5 + $0x508] sm:$0xf]  ;;  %v4111_v22 = vor.u32 %v4796_v16, %v4110_v15  ;;  %v4582_v16 = vld [vmem:[#allocation5 + $0x8c] sm:$0xf] }
 0x1bc   :  { %v4728_v20 = vld [vmem:[#allocation5 + $0x514] sm:$0xf0] }
 0x1bd   :  { %2039 = vmatpush.bf16.msra.mxu0 %v3215_v32  ;;  %2052 = vmatpush.bf16.msra.mxu1 %v3343_v24  ;;  %v4776_v32 = vld [vmem:[#allocation5 + $0x694] sm:$0xf0]  ;;  %v4158_v24 = vld [vmem:[#allocation5 + $0x788] sm:$0xf] }
 0x1be   :  { %2065 = vmatpush.bf16.msra.mxu2 %v3471_v37  ;;  %2078 = vmatpush.bf16.msra.mxu3 %v3599_v38  ;;  %v3758_v37 = vld [vmem:[#allocation5 + $0x468] sm:$0xf]  ;;  %v4708_v38 = vld [vmem:[#allocation5 + $0x474] sm:$0xf0]  ;;  %v4031_v7 = vor.u32 %v4776_v32, %v4030_v31  ;;  %v4159_v39 = vor.u32 %v4808_v34, %v4158_v24  ;;  %v4658_v31 = vld [vmem:[#allocation5 + $0x2ec] sm:$0xf]  ;;  %v3839_v24 = vor.u32 %v4728_v20, %v3838_v19 }
 0x1bf   :  { %v3759_v48 = vor.u32 %v4708_v38, %v3758_v37  ;;  %v3568_v34 = vld [vmem:[#allocation5 + $0x2f8] sm:$0xf0]  ;;  %v4095_v38 = vor.u32 %v4792_v26, %v4094_v25  ;;  %v4646_v20 = vld [vmem:[#allocation5 + $0x28c] sm:$0xf] }
 0x1c0   :  { %v3571_v33 = vor.u32 %v4658_v31, %v3568_v34  ;;  %v3392_v19 = vld [vmem:[#allocation5 + $0x198] sm:$0xf0]  ;;  %v4610_v31 = vld [vmem:[#allocation5 + $0x16c] sm:$0xf] }
 0x1c1   :  { %2040 = vmatpush.bf16.msra.mxu0 %v3199_v62  ;;  %2053 = vmatpush.bf16.msra.mxu1 %v3327_v49  ;;  %v3887_v62 = vor.u32 %v4740_v42, %v3886_v41  ;;  %v3742_v49 = vld [vmem:[#allocation5 + $0x448] sm:$0xf]  ;;  %v4590_v41 = vld [vmem:[#allocation5 + $0xcc] sm:$0xf]  ;;  %v3296_v42 = vld [vmem:[#allocation5 + $0xd8] sm:$0xf0] }
 0x1c2   :  { %2066 = vmatpush.bf16.msra.mxu2 %v3455_v52  ;;  %2079 = vmatpush.bf16.msra.mxu3 %v3583_v53  ;;  %v3870_v52 = vld [vmem:[#allocation5 + $0x548] sm:$0xf]  ;;  %v4736_v53 = vld [vmem:[#allocation5 + $0x554] sm:$0xf0] }
 0x1c4   :  { %2041 = vmatmul.bf16.vlgmr.msra.gmra.mxu0 %v5428_v44  ;;  %2054 = vmatmul.bf16.vlgmr.msra.gmra.mxu1 %v5430_v45 }
 0x1c5   :  { %2085 = vmatpush.bf16.msrb.mxu0 %v3823_v54  ;;  %2098 = vmatpush.bf16.msrb.mxu1 %v3951_v55  ;;  %v3998_v54 = vld [vmem:[#allocation5 + $0x648] sm:$0xf]  ;;  %v4768_v55 = vld [vmem:[#allocation5 + $0x654] sm:$0xf0] }
 0x1c6   :  { %2111 = vmatpush.bf16.msrb.mxu2 %v4079_v58  ;;  %2124 = vmatpush.bf16.msrb.mxu3 %v4207_v59  ;;  %v3743_v58 = vor.u32 %v4704_v50, %v3742_v49  ;;  %v3871_v59 = vor.u32 %v4736_v53, %v3870_v52  ;;  %v3999_v0 = vor.u32 %v4768_v55, %v3998_v54  ;;  %v3552_v49 = vld [vmem:[#allocation5 + $0x2d8] sm:$0xf0]  ;;  %v4686_v50 = vld [vmem:[#allocation5 + $0x3cc] sm:$0xf] }
 0x1c7   :  { %2067 = vmatmul.bf16.vlgmr.msra.gmra.mxu2 %v5432_v46  ;;  %2080 = vmatmul.bf16.vlgmr.msra.gmra.mxu3 %v5434_v60  ;;  %v3427_v52 = vor.u32 %v4622_v43, %v3424_v47  ;;  %v4586_v53 = vld [vmem:[#allocation5 + $0xac] sm:$0xf]  ;;  %v3280_v54 = vld [vmem:[#allocation5 + $0xb8] sm:$0xf0] }
 0x1c9   :  { %2086 = vmatpush.bf16.msrb.mxu0 %v3807_v13  ;;  %2099 = vmatpush.bf16.msrb.mxu1 %v3935_v14  ;;  %v3982_v13 = vld [vmem:[#allocation5 + $0x628] sm:$0xf]  ;;  %v4764_v14 = vld [vmem:[#allocation5 + $0x634] sm:$0xf0] }
 0x1ca   :  { %2112 = vmatpush.bf16.msrb.mxu2 %v4063_v8  ;;  %2125 = vmatpush.bf16.msrb.mxu3 %v4191_v17  ;;  %v3710_v8 = vld [vmem:[#allocation5 + $0x408] sm:$0xf]  ;;  %v3727_v17 = vor.u32 %v4700_v5, %v3726_v3  ;;  %v3983_v21 = vor.u32 %v4764_v14, %v3982_v13  ;;  %v4650_v3 = vld [vmem:[#allocation5 + $0x2ac] sm:$0xf]  ;;  %v3536_v5 = vld [vmem:[#allocation5 + $0x2b8] sm:$0xf0]  ;;  %v3283_v13 = vor.u32 %v4586_v53, %v3280_v54 }
 0x1cb   :  { %v3711_v32 = vor.u32 %v4696_v10, %v3710_v8  ;;  %v3264_v8 = vld [vmem:[#allocation5 + $0x98] sm:$0xf0]  ;;  %v4614_v10 = vld [vmem:[#allocation5 + $0x18c] sm:$0xf] }
 0x1cc   :  { %v3267_v25 = vor.u32 %v4582_v16, %v3264_v8  ;;  %v3395_v26 = vor.u32 %v4614_v10, %v3392_v19  ;;  %v4670_v53 = vld [vmem:[#allocation5 + $0x34c] sm:$0xf]  ;;  %v3616_v54 = vld [vmem:[#allocation5 + $0x358] sm:$0xf0] }
 0x1cd   :  { %2087 = vmatpush.bf16.msrb.mxu0 %v3791_v23  ;;  %2100 = vmatpush.bf16.msrb.mxu1 %v3919_v12  ;;  %v3966_v23 = vld [vmem:[#allocation5 + $0x608] sm:$0xf]  ;;  %v4760_v12 = vld [vmem:[#allocation5 + $0x614] sm:$0xf0] }
 0x1ce   :  { %2113 = vmatpush.bf16.msrb.mxu2 %v4047_v27  ;;  %2126 = vmatpush.bf16.msrb.mxu3 %v4175_v28  ;;  %v4594_v27 = vld [vmem:[#allocation5 + $0xec] sm:$0xf]  ;;  %v3312_v28 = vld [vmem:[#allocation5 + $0xf8] sm:$0xf0]  ;;  %v3967_v37 = vor.u32 %v4760_v12, %v3966_v23 }
 0x1cf   :  { %v4678_v23 = vld [vmem:[#allocation5 + $0x38c] sm:$0xf]  ;;  %v3648_v12 = vld [vmem:[#allocation5 + $0x398] sm:$0xf0] }
 0x1d1   :  { %2088 = vmatpush.bf16.msrb.mxu0 %v3775_v35  ;;  %2101 = vmatpush.bf16.msrb.mxu1 %v3903_v36  ;;  %v4690_v35 = vld [vmem:[#allocation5 + $0x3ec] sm:$0xf]  ;;  %v3696_v36 = vld [vmem:[#allocation5 + $0x3f8] sm:$0xf0] }
 0x1d2   :  { %2114 = vmatpush.bf16.msrb.mxu2 %v4031_v7  ;;  %2127 = vmatpush.bf16.msrb.mxu3 %v4159_v39  ;;  %v3315_v7 = vor.u32 %v4594_v27, %v3312_v28  ;;  %v3443_v39 = vor.u32 %v4626_v29, %v3440_v30  ;;  %v3699_v61 = vor.u32 %v4690_v35, %v3696_v36  ;;  %v4578_v27 = vld [vmem:[#allocation5 + $0x6c] sm:$0xf]  ;;  %v3248_v28 = vld [vmem:[#allocation5 + $0x78] sm:$0xf0] }
 0x1d3   :  { %v3651_v30 = vor.u32 %v4678_v23, %v3648_v12  ;;  %v3504_v36 = vld [vmem:[#allocation5 + $0x278] sm:$0xf0] }
 0x1d5   :  { %2089 = vmatpush.bf16.msrb.mxu0 %v3759_v48  ;;  %2102 = vmatpush.bf16.msrb.mxu1 %v3887_v62  ;;  %v4654_v48 = vld [vmem:[#allocation5 + $0x2cc] sm:$0xf]  ;;  %v5472_v62 = vld [vmem:[#allocation8] sm:$0xf] }
 0x1d6   :  { %2115 = vmatpush.bf16.msrb.mxu2 %v4015_v63  ;;  %2128 = vmatpush.bf16.msrb.mxu3 %v4143_v51  ;;  %v3680_v63 = vld [vmem:[#allocation5 + $0x3d8] sm:$0xf0]  ;;  %v3299_v51 = vor.u32 %v4590_v41, %v3296_v42  ;;  %v537_v55 = vperm.slane %v5472_v62, 0  ;;  %v3555_v56 = vor.u32 %v4654_v48, %v3552_v49  ;;  %v3251_v42 = vor.u32 %v4578_v27, %v3248_v28  ;;  %v4662_v27 = vld [vmem:[#allocation5 + $0x30c] sm:$0xf] }
 0x1d7   :  { %v3683_v57 = vor.u32 %v4686_v50, %v3680_v63  ;;  %v4606_v50 = vld [vmem:[#allocation5 + $0x14c] sm:$0xf]  ;;  %v3360_v63 = vld [vmem:[#allocation5 + $0x158] sm:$0xf0] }
 0x1d9   :  { %2090 = vmatpush.bf16.msrb.mxu0 %v3743_v58  ;;  %2103 = vmatpush.bf16.msrb.mxu1 %v3871_v59  ;;  %v4618_v58 = vld [vmem:[#allocation5 + $0x1ac] sm:$0xf]  ;;  %v3408_v59 = vld [vmem:[#allocation5 + $0x1b8] sm:$0xf0] }
 0x1da   :  { %2116 = vmatpush.bf16.msrb.mxu2 %v3999_v0  ;;  %2129 = vmatpush.bf16.msrb.mxu3 %v4127_v1  ;;  %v4682_v0 = vld [vmem:[#allocation5 + $0x3ac] sm:$0xf]  ;;  %v3664_v1 = vld [vmem:[#allocation5 + $0x3b8] sm:$0xf0]  ;;  %v3411_v14 = vor.u32 %v4618_v58, %v3408_v59 }
 0x1db   :  { %v3216_v58 = vld [vmem:[#allocation5 + $0x38] sm:$0xf0] }
 0x1dd   :  { %2091 = vmatpush.bf16.msrb.mxu0 %v3727_v17  ;;  %2104 = vmatpush.bf16.msrb.mxu1 %v3855_v18  ;;  %v3539_v17 = vor.u32 %v4650_v3, %v3536_v5  ;;  %v3667_v18 = vor.u32 %v4682_v0, %v3664_v1  ;;  %v3619_v3 = vor.u32 %v4670_v53, %v3616_v54  ;;  %v4602_v5 = vld [vmem:[#allocation5 + $0x12c] sm:$0xf]  ;;  %v3344_v0 = vld [vmem:[#allocation5 + $0x138] sm:$0xf0] }
 0x1de   :  { %2117 = vmatpush.bf16.msrb.mxu2 %v3983_v21  ;;  %2130 = vmatpush.bf16.msrb.mxu3 %v4111_v22  ;;  %v3520_v22 = vld [vmem:[#allocation5 + $0x298] sm:$0xf0]  ;;  %v4634_v1 = vld [vmem:[#allocation5 + $0x22c] sm:$0xf]  ;;  %v3347_v10 = vor.u32 %v4602_v5, %v3344_v0 }
 0x1df   :  { %v3523_v29 = vor.u32 %v4646_v20, %v3520_v22  ;;  %v3200_v20 = vld [vmem:[#allocation5 + $0x18] sm:$0xf0]  ;;  %v4750_v53 = vld [vmem:[#allocation5 + $0x5cc] sm:$0xf] }
 0x1e0   :  { %v1834_v2 = vpop.f32.mrf.mxu0  ;;  %v1847_v4 = vpop.f32.mrf.mxu1  ;;  %v3328_v22 = vld [vmem:[#allocation5 + $0x118] sm:$0xf0]  ;;  %v4714_v0 = vld [vmem:[#allocation5 + $0x4ac] sm:$0xf] }
 0x1e1   :  { %2092 = vmatpush.bf16.msrb.mxu0 %v3711_v32  ;;  %2105 = vmatpush.bf16.msrb.mxu1 %v3839_v24  ;;  %v1835_v15 = vadd.f32 %v1834_v2, %v537_v55  ;;  %v3376_v32 = vld [vmem:[#allocation5 + $0x178] sm:$0xf0]  ;;  %v4642_v24 = vld [vmem:[#allocation5 + $0x26c] sm:$0xf] }
 0x1e2   :  { %2118 = vmatpush.bf16.msrb.mxu2 %v3967_v37  ;;  %2131 = vmatpush.bf16.msrb.mxu3 %v4095_v38  ;;  %v4674_v37 = vld [vmem:[#allocation5 + $0x36c] sm:$0xf]  ;;  %v3632_v38 = vld [vmem:[#allocation5 + $0x378] sm:$0xf0]  ;;  %v3379_v43 = vor.u32 %v4610_v31, %v3376_v32  ;;  %v3507_v48 = vor.u32 %v4642_v24, %v3504_v36 }
 0x1e3   :  { %v1848_v21 = vadd.f32 %v1847_v4, %v1835_v15  ;;  %v3635_v49 = vor.u32 %v4674_v37, %v3632_v38  ;;  %v3600_v15 = vld [vmem:[#allocation5 + $0x338] sm:$0xf0]  ;;  %v4754_v32 = vld [vmem:[#allocation5 + $0x5ec] sm:$0xf] }
 0x1e4   :  { %2093 = vmatmul.bf16.vlgmr.msrb.gmra.mxu0 %v5448_v9  ;;  %2106 = vmatmul.bf16.vlgmr.msrb.gmra.mxu1 %v5450_v40  ;;  %v3824_v31 = vld [vmem:[#allocation5 + $0x4f8] sm:$0xf0]  ;;  %v4818_v38 = vld [vmem:[#allocation5 + $0x7ec] sm:$0xf] }
 0x1e5   :  { %2137 = vmatpush.bf16.msra.mxu0 %v3315_v7  ;;  %2150 = vmatpush.bf16.msra.mxu1 %v3443_v39  ;;  %v3952_v24 = vld [vmem:[#allocation5 + $0x5f8] sm:$0xf0] }
 0x1e6   :  { %2163 = vmatpush.bf16.msra.mxu2 %v3571_v33  ;;  %2176 = vmatpush.bf16.msra.mxu3 %v3699_v61  ;;  %v4574_v33 = vld [vmem:[#allocation5 + $0x4c] sm:$0xf]  ;;  %v3232_v61 = vld [vmem:[#allocation5 + $0x58] sm:$0xf0] }
 0x1e7   :  { %2119 = vmatmul.bf16.vlgmr.msrb.gmra.mxu2 %v5452_v11  ;;  %2132 = vmatmul.bf16.vlgmr.msrb.gmra.mxu3 %v5454_v6  ;;  %v1860_v34 = vpop.f32.mrf.mxu2  ;;  %v1873_v35 = vpop.f32.mrf.mxu3  ;;  %v3235_v55 = vor.u32 %v4574_v33, %v3232_v61  ;;  %v4080_v37 = vld [vmem:[#allocation5 + $0x6f8] sm:$0xf0] }
 0x1e8   :  { %v1861_v7 = vadd.f32 %v1860_v34, %v1848_v21  ;;  %v1836_v39 = vpop.f32.mrf.mxu0  ;;  %v1849_v41 = vpop.f32.mrf.mxu1  ;;  %v4598_v21 = vld [vmem:[#allocation5 + $0x10c] sm:$0xf]  ;;  %v3936_v54 = vld [vmem:[#allocation5 + $0x5d8] sm:$0xf0] }
 0x1e9   :  { %2138 = vmatpush.bf16.msra.mxu0 %v3299_v51  ;;  %2151 = vmatpush.bf16.msra.mxu1 %v3427_v52  ;;  %v4638_v51 = vld [vmem:[#allocation5 + $0x24c] sm:$0xf]  ;;  %v3488_v52 = vld [vmem:[#allocation5 + $0x258] sm:$0xf0]  ;;  %v3331_v36 = vor.u32 %v4598_v21, %v3328_v22  ;;  %v3939_v5 = vor.u32 %v4750_v53, %v3936_v54  ;;  %v538_v21 = vperm.slane %v5472_v62, 1 }
 0x1ea   :  { %2164 = vmatpush.bf16.msra.mxu2 %v3555_v56  ;;  %2177 = vmatpush.bf16.msra.mxu3 %v3683_v57  ;;  %v1874_v47 = vadd.f32 %v1873_v35, %v1861_v7  ;;  %v3363_v56 = vor.u32 %v4606_v50, %v3360_v63  ;;  %v4570_v57 = vld [vmem:[#allocation5 + $0x2c] sm:$0xf]  ;;  %v3491_v59 = vor.u32 %v4638_v51, %v3488_v52  ;;  %v4208_v7 = vld [vmem:[#allocation5 + $0x7f8] sm:$0xf0] }
 0x1eb   :  { %v4786_v34 = vld [vmem:[#allocation5 + $0x6ec] sm:$0xf]  ;;  %v4211_v50 = vor.u32 %v4818_v38, %v4208_v7  ;;  %v3888_v38 = vld [vmem:[#allocation5 + $0x578] sm:$0xf0] }
 0x1ec   :  { %v4710_v22 = vld [vmem:[#allocation5 + $0x48c] sm:$0xf] }
 0x1ed   :  { %2139 = vmatpush.bf16.msra.mxu0 %v3283_v13  ;;  %2152 = vmatpush.bf16.msra.mxu1 %v3411_v14  ;;  %v3472_v13 = vld [vmem:[#allocation5 + $0x238] sm:$0xf0]  ;;  %v4666_v14 = vld [vmem:[#allocation5 + $0x32c] sm:$0xf] }
 0x1ee   :  { %2165 = vmatpush.bf16.msra.mxu2 %v3539_v17  ;;  %2178 = vmatpush.bf16.msra.mxu3 %v3667_v18  ;;  %v4566_v17 = vld [vmem:[#allocation5 + $0xc] sm:$0xf]  ;;  %v3219_v18 = vor.u32 %v4570_v57, %v3216_v58  ;;  %v3475_v23 = vor.u32 %v4634_v1, %v3472_v13  ;;  %v3603_v12 = vor.u32 %v4666_v14, %v3600_v15  ;;  %v4192_v58 = vld [vmem:[#allocation5 + $0x7d8] sm:$0xf0] }
 0x1ef   :  { %v1862_v2 = vpop.f32.mrf.mxu2  ;;  %v1875_v4 = vpop.f32.mrf.mxu3  ;;  %v3203_v35 = vor.u32 %v4566_v17, %v3200_v20  ;;  %v4814_v57 = vld [vmem:[#allocation5 + $0x7cc] sm:$0xf]  ;;  %v3792_v1 = vld [vmem:[#allocation5 + $0x4b8] sm:$0xf0] }
 0x1f0   :  { %v1886_v16 = vpop.f32.mrf.mxu0  ;;  %v1899_v8 = vpop.f32.mrf.mxu1  ;;  %v4195_v4 = vor.u32 %v4814_v57, %v4192_v58  ;;  %v4746_v13 = vld [vmem:[#allocation5 + $0x5ac] sm:$0xf]  ;;  %v3920_v14 = vld [vmem:[#allocation5 + $0x5b8] sm:$0xf0] }
 0x1f1   :  { %2140 = vmatpush.bf16.msra.mxu0 %v3267_v25  ;;  %2153 = vmatpush.bf16.msra.mxu1 %v3395_v26  ;;  %v1887_v19 = vadd.f32 %v1886_v16, %v1874_v47  ;;  %v4630_v25 = vld [vmem:[#allocation5 + $0x20c] sm:$0xf]  ;;  %v3456_v26 = vld [vmem:[#allocation5 + $0x218] sm:$0xf0] }
 0x1f2   :  { %2166 = vmatpush.bf16.msra.mxu2 %v3523_v29  ;;  %2179 = vmatpush.bf16.msra.mxu3 %v3651_v30  ;;  %v3584_v29 = vld [vmem:[#allocation5 + $0x318] sm:$0xf0]  ;;  %v4722_v30 = vld [vmem:[#allocation5 + $0x4ec] sm:$0xf]  ;;  %v3459_v39 = vor.u32 %v4630_v25, %v3456_v26 }
 0x1f3   :  { %v1900_v28 = vadd.f32 %v1899_v8, %v1887_v19  ;;  %v3587_v41 = vor.u32 %v4662_v27, %v3584_v29  ;;  %v4718_v47 = vld [vmem:[#allocation5 + $0x4cc] sm:$0xf]  ;;  %v4048_v16 = vld [vmem:[#allocation5 + $0x6b8] sm:$0xf0] }
 0x1f4   :  { %v4778_v15 = vld [vmem:[#allocation5 + $0x6ac] sm:$0xf]  ;;  %v4176_v17 = vld [vmem:[#allocation5 + $0x7b8] sm:$0xf0] }
 0x1f5   :  { %2141 = vmatpush.bf16.msra.mxu0 %v3251_v42  ;;  %2154 = vmatpush.bf16.msra.mxu1 %v3379_v43  ;;  %v3827_v42 = vor.u32 %v4722_v30, %v3824_v31  ;;  %v3955_v43 = vor.u32 %v4754_v32, %v3952_v24  ;;  %v4810_v8 = vld [vmem:[#allocation5 + $0x7ac] sm:$0xf]  ;;  %v3904_v25 = vld [vmem:[#allocation5 + $0x598] sm:$0xf0] }
 0x1f6   :  { %2167 = vmatpush.bf16.msra.mxu2 %v3507_v48  ;;  %2180 = vmatpush.bf16.msra.mxu3 %v3635_v49  ;;  %v3808_v48 = vld [vmem:[#allocation5 + $0x4d8] sm:$0xf0]  ;;  %v4083_v49 = vor.u32 %v4786_v34, %v4080_v37  ;;  %v4774_v26 = vld [vmem:[#allocation5 + $0x68c] sm:$0xf] }
 0x1f7   :  { %v1912_v33 = vpop.f32.mrf.mxu2  ;;  %v1925_v61 = vpop.f32.mrf.mxu3  ;;  %v4806_v27 = vld [vmem:[#allocation5 + $0x78c] sm:$0xf]  ;;  %v3760_v34 = vld [vmem:[#allocation5 + $0x478] sm:$0xf0] }
 0x1f8   :  { %v1913_v63 = vadd.f32 %v1912_v33, %v1900_v28  ;;  %v1888_v51 = vpop.f32.mrf.mxu0  ;;  %v1901_v52 = vpop.f32.mrf.mxu1  ;;  %v4706_v24 = vld [vmem:[#allocation5 + $0x46c] sm:$0xf]  ;;  %v4128_v57 = vld [vmem:[#allocation5 + $0x758] sm:$0xf0] }
 0x1f9   :  { %2142 = vmatpush.bf16.msra.mxu0 %v3235_v55  ;;  %2155 = vmatpush.bf16.msra.mxu1 %v3363_v56  ;;  %v4782_v55 = vld [vmem:[#allocation5 + $0x6cc] sm:$0xf]  ;;  %v4064_v56 = vld [vmem:[#allocation5 + $0x6d8] sm:$0xf0]  ;;  %v3763_v33 = vor.u32 %v4706_v24, %v3760_v34 }
 0x1fa   :  { %2168 = vmatpush.bf16.msra.mxu2 %v3491_v59  ;;  %2181 = vmatpush.bf16.msra.mxu3 %v3619_v3  ;;  %v5479_v59 = vadd.f32 %v1925_v61, %v1913_v63  ;;  %v3811_v3 = vor.u32 %v4718_v47, %v3808_v48  ;;  %v4067_v2 = vor.u32 %v4782_v55, %v4064_v56  ;;  %v4738_v37 = vld [vmem:[#allocation5 + $0x56c] sm:$0xf]  ;;  %v3744_v48 = vld [vmem:[#allocation5 + $0x458] sm:$0xf0] }
 0x1fb   :  { %v4770_v7 = vld [vmem:[#allocation5 + $0x66c] sm:$0xf]  ;;  %v3891_v61 = vor.u32 %v4738_v37, %v3888_v38  ;;  %v3872_v51 = vld [vmem:[#allocation5 + $0x558] sm:$0xf0] }
 0x1fc   :  { %v4702_v47 = vld [vmem:[#allocation5 + $0x44c] sm:$0xf]  ;;  %v4000_v55 = vld [vmem:[#allocation5 + $0x658] sm:$0xf0] }
 0x1fd   :  { %2143 = vmatpush.bf16.msra.mxu0 %v3219_v18  ;;  %2156 = vmatpush.bf16.msra.mxu1 %v3347_v10  ;;  %v3795_v18 = vor.u32 %v4714_v0, %v3792_v1  ;;  %v3923_v10 = vor.u32 %v4746_v13, %v3920_v14  ;;  %v4734_v63 = vld [vmem:[#allocation5 + $0x54c] sm:$0xf]  ;;  %v3747_v0 = vor.u32 %v4702_v47, %v3744_v48 }
 0x1fe   :  { %2169 = vmatpush.bf16.msra.mxu2 %v3475_v23  ;;  %2182 = vmatpush.bf16.msra.mxu3 %v3603_v12  ;;  %v3776_v23 = vld [vmem:[#allocation5 + $0x498] sm:$0xf0]  ;;  %v4742_v12 = vld [vmem:[#allocation5 + $0x58c] sm:$0xf]  ;;  %v3875_v1 = vor.u32 %v4734_v63, %v3872_v51 }
 0x1ff   :  { %v1914_v19 = vpop.f32.mrf.mxu2  ;;  %v1927_v20 = vpop.f32.mrf.mxu3  ;;  %v3779_v31 = vor.u32 %v4710_v22, %v3776_v23  ;;  %v3907_v32 = vor.u32 %v4742_v12, %v3904_v25  ;;  %v4766_v52 = vld [vmem:[#allocation5 + $0x64c] sm:$0xf]  ;;  %v3712_v23 = vld [vmem:[#allocation5 + $0x418] sm:$0xf0] }
 0x200   :  { %v4798_v56 = vld [vmem:[#allocation5 + $0x74c] sm:$0xf]  ;;  %v4003_v14 = vor.u32 %v4766_v52, %v4000_v55  ;;  %v4112_v19 = vld [vmem:[#allocation5 + $0x738] sm:$0xf0] }
 0x201   :  { %2144 = vmatpush.bf16.msra.mxu0 %v3203_v35  ;;  %2157 = vmatpush.bf16.msra.mxu1 %v3331_v36  ;;  %v1938_v28 = vpop.f32.mrf.mxu0  ;;  %v1951_v29 = vpop.f32.mrf.mxu1  ;;  %v4694_v22 = vld [vmem:[#allocation5 + $0x40c] sm:$0xf]  ;;  %v3840_v25 = vld [vmem:[#allocation5 + $0x518] sm:$0xf0] }
 0x202   :  { %2170 = vmatpush.bf16.msra.mxu2 %v3459_v39  ;;  %2183 = vmatpush.bf16.msra.mxu3 %v3587_v41  ;;  %v1939_v30 = vadd.f32 %v1938_v28, %v538_v21  ;;  %v4016_v41 = vld [vmem:[#allocation5 + $0x678] sm:$0xf0]  ;;  %v4726_v12 = vld [vmem:[#allocation5 + $0x50c] sm:$0xf] }
 0x203   :  { %v4790_v28 = vld [vmem:[#allocation5 + $0x70c] sm:$0xf] }
 0x204   :  { %2145 = vmatmul.bf16.vlgmr.msra.gmra.mxu0 %v5428_v44  ;;  %2158 = vmatmul.bf16.vlgmr.msra.gmra.mxu1 %v5430_v45  ;;  %v4051_v44 = vor.u32 %v4778_v15, %v4048_v16  ;;  %v4179_v45 = vor.u32 %v4810_v8, %v4176_v17  ;;  %v1952_v39 = vadd.f32 %v1951_v29, %v1939_v30  ;;  %v4730_v16 = vld [vmem:[#allocation5 + $0x52c] sm:$0xf]  ;;  %v3856_v8 = vld [vmem:[#allocation5 + $0x538] sm:$0xf0] }
 0x205   :  { %2189 = vmatpush.bf16.msrb.mxu0 %v3827_v42  ;;  %2202 = vmatpush.bf16.msrb.mxu1 %v3955_v43  ;;  %v4802_v42 = vld [vmem:[#allocation5 + $0x76c] sm:$0xf]  ;;  %v4144_v43 = vld [vmem:[#allocation5 + $0x778] sm:$0xf0]  ;;  %v4131_v15 = vor.u32 %v4798_v56, %v4128_v57  ;;  %v3859_v21 = vor.u32 %v4730_v16, %v3856_v8  ;;  %v3715_v30 = vor.u32 %v4694_v22, %v3712_v23  ;;  %v540_v8 = vperm.slane %v5472_v62, 3 }
 0x206   :  { %2215 = vmatpush.bf16.msrb.mxu2 %v4083_v49  ;;  %2228 = vmatpush.bf16.msrb.mxu3 %v4211_v50  ;;  %v4019_v49 = vor.u32 %v4770_v7, %v4016_v41  ;;  %v4147_v50 = vor.u32 %v4802_v42, %v4144_v43  ;;  %v4762_v17 = vld [vmem:[#allocation5 + $0x62c] sm:$0xf]  ;;  %v4096_v29 = vld [vmem:[#allocation5 + $0x718] sm:$0xf0] }
 0x207   :  { %2171 = vmatmul.bf16.vlgmr.msra.gmra.mxu2 %v5432_v46  ;;  %2184 = vmatmul.bf16.vlgmr.msra.gmra.mxu3 %v5434_v60  ;;  %v4032_v46 = vld [vmem:[#allocation5 + $0x698] sm:$0xf0]  ;;  %v4099_v24 = vor.u32 %v4790_v28, %v4096_v29 }
 0x208   :  { %v4160_v60 = vld [vmem:[#allocation5 + $0x798] sm:$0xf0]  ;;  %v4035_v35 = vor.u32 %v4774_v26, %v4032_v46  ;;  %v4758_v26 = vld [vmem:[#allocation5 + $0x60c] sm:$0xf] }
 0x209   :  { %2190 = vmatpush.bf16.msrb.mxu0 %v3811_v3  ;;  %2203 = vmatpush.bf16.msrb.mxu1 %v3939_v5  ;;  %v4163_v36 = vor.u32 %v4806_v27, %v4160_v60  ;;  %v1940_v3 = vpop.f32.mrf.mxu0  ;;  %v1953_v5 = vpop.f32.mrf.mxu1  ;;  %v3968_v60 = vld [vmem:[#allocation5 + $0x618] sm:$0xf0] }
 0x20a   :  { %2216 = vmatpush.bf16.msrb.mxu2 %v4067_v2  ;;  %2229 = vmatpush.bf16.msrb.mxu3 %v4195_v4  ;;  %v1964_v53 = vpop.f32.mrf.mxu2  ;;  %v1977_v54 = vpop.f32.mrf.mxu3  ;;  %v4698_v2 = vld [vmem:[#allocation5 + $0x42c] sm:$0xf]  ;;  %v3728_v4 = vld [vmem:[#allocation5 + $0x438] sm:$0xf0] }
 0x20b   :  { %v1965_v58 = vadd.f32 %v1964_v53, %v1952_v39  ;;  %v3731_v20 = vor.u32 %v4698_v2, %v3728_v4 }
 0x20d   :  { %2191 = vmatpush.bf16.msrb.mxu0 %v3795_v18  ;;  %2204 = vmatpush.bf16.msrb.mxu1 %v3923_v10  ;;  %v1978_v13 = vadd.f32 %v1977_v54, %v1965_v58  ;;  %v3984_v18 = vld [vmem:[#allocation5 + $0x638] sm:$0xf0]  ;;  %v4794_v10 = vld [vmem:[#allocation5 + $0x72c] sm:$0xf] }
 0x20e   :  { %2217 = vmatpush.bf16.msrb.mxu2 %v4051_v44  ;;  %2230 = vmatpush.bf16.msrb.mxu3 %v4179_v45  ;;  %v3987_v44 = vor.u32 %v4762_v17, %v3984_v18  ;;  %v4115_v45 = vor.u32 %v4794_v10, %v4112_v19 }
 0x211   :  { %2192 = vmatpush.bf16.msrb.mxu0 %v3779_v31  ;;  %2205 = vmatpush.bf16.msrb.mxu1 %v3907_v32  ;;  %v3843_v31 = vor.u32 %v4726_v12, %v3840_v25  ;;  %v3971_v32 = vor.u32 %v4758_v26, %v3968_v60 }
 0x212   :  { %2218 = vmatpush.bf16.msrb.mxu2 %v4035_v35  ;;  %2231 = vmatpush.bf16.msrb.mxu3 %v4163_v36  ;;  %v1966_v46 = vpop.f32.mrf.mxu2  ;;  %v1979_v27 = vpop.f32.mrf.mxu3 }
 0x215   :  { %2193 = vmatpush.bf16.msrb.mxu0 %v3763_v33  ;;  %2206 = vmatpush.bf16.msrb.mxu1 %v3891_v61 }
 0x216   :  { %2219 = vmatpush.bf16.msrb.mxu2 %v4019_v49  ;;  %2232 = vmatpush.bf16.msrb.mxu3 %v4147_v50 }
 0x219   :  { %2194 = vmatpush.bf16.msrb.mxu0 %v3747_v0  ;;  %2207 = vmatpush.bf16.msrb.mxu1 %v3875_v1 }
 0x21a   :  { %2220 = vmatpush.bf16.msrb.mxu2 %v4003_v14  ;;  %2233 = vmatpush.bf16.msrb.mxu3 %v4131_v15 }
 0x21d   :  { %2195 = vmatpush.bf16.msrb.mxu0 %v3731_v20  ;;  %2208 = vmatpush.bf16.msrb.mxu1 %v3859_v21 }
 0x21e   :  { %2221 = vmatpush.bf16.msrb.mxu2 %v3987_v44  ;;  %2234 = vmatpush.bf16.msrb.mxu3 %v4115_v45 }
 0x221   :  { %2196 = vmatpush.bf16.msrb.mxu0 %v3715_v30  ;;  %2209 = vmatpush.bf16.msrb.mxu1 %v3843_v31  ;;  %v1990_v34 = vpop.f32.mrf.mxu0  ;;  %v2003_v35 = vpop.f32.mrf.mxu1 }
 0x222   :  { %2222 = vmatpush.bf16.msrb.mxu2 %v3971_v32  ;;  %2235 = vmatpush.bf16.msrb.mxu3 %v4099_v24  ;;  %v1991_v36 = vadd.f32 %v1990_v34, %v1978_v13 }
 0x224   :  { %2197 = vmatmul.bf16.vlgmr.msrb.gmra.mxu0 %v5448_v9  ;;  %2210 = vmatmul.bf16.vlgmr.msrb.gmra.mxu1 %v5450_v40  ;;  %v2004_v37 = vadd.f32 %v2003_v35, %v1991_v36  ;;  %v539_v9 = vperm.slane %v5472_v62, 2  ;;  %v5223_v36 = vmov 512.0  }
 0x225   :  { %2223 = vmatmul.bf16.vlgmr.msrb.gmra.mxu2 %v5452_v11  ;;  %2236 = vmatmul.bf16.vlgmr.msrb.gmra.mxu3 %v5454_v6  ;;  %4939 = vrcp.f32 %v5223_v36 }
 0x229   :  { %v1992_v41 = vpop.f32.mrf.mxu0  ;;  %v2005_v42 = vpop.f32.mrf.mxu1 }
 0x22a   :  { %v2016_v38 = vpop.f32.mrf.mxu2  ;;  %v2029_v7 = vpop.f32.mrf.mxu3  ;;  %v4836_v41 = vld [vmem:[#allocation11 + $0x74] sm:$0xf0]  ;;  %v4334_v42 = vld [vmem:[#allocation11 + $0xf0] sm:$0xf] }
 0x22b   :  { %v2017_v39 = vadd.f32 %v2016_v38, %v2004_v37  ;;  %v4940_v37 = vpop.eup %4939 }
 0x22c   :  { %v2249_v38 = vmul.f32 512.0, %v4940_v37  ;;  %vm2253_vm7 = vweird.f32 %v4940_v37 }
 0x22d   :  { %v5490_v43 = vadd.f32 %v2029_v7, %v2017_v39  ;;  %v4270_v39 = vld [vmem:[#allocation11 + $0x70] sm:$0xf] }
 0x22e   :  { %v2250_v7 = vsub.f32 1.0, %v2249_v38  ;;  %v4878_v38 = vld [vmem:[#allocation11 + $0x1c4] sm:$0xf0] }
 0x22f   :  { %v2243_v62 = vadd.f32 %v5490_v43, %v5479_v59 }
 0x232   :  { %v2018_v33 = vpop.f32.mrf.mxu2  ;;  %v2031_v61 = vpop.f32.mrf.mxu3 }
 0x233   :  { %v4271_v33 = vor.u32 %v4836_v41, %v4270_v39  ;;  %v4852_v61 = vld [vmem:[#allocation11 + $0xf4] sm:$0xf0]  ;;  %v4238_v39 = vld [vmem:[#allocation11 + $0x30] sm:$0xf] }
 0x234   :  { %v4828_v41 = vld [vmem:[#allocation11 + $0x34] sm:$0xf0] }
 0x235   :  { %2709 = vmatpush.bf16.msra.mxu0 %v4271_v33  ;;  %v4239_v33 = vor.u32 %v4828_v41, %v4238_v39  ;;  %v4833_v39 = vld [vmem:[#allocation11 + $0x64] sm:$0xf]  ;;  %v4264_v41 = vld [vmem:[#allocation11 + $0x68] sm:$0xf0] }
 0x241   :  { %v2042_v40 = vpop.f32.mrf.mxu0  ;;  %v2055_v47 = vpop.f32.mrf.mxu1 }
 0x242   :  { %v2043_v11 = vadd.f32 %v2042_v40, %v539_v9  ;;  %v4398_v9 = vld [vmem:[#allocation11 + $0x170] sm:$0xf]  ;;  %v4868_v40 = vld [vmem:[#allocation11 + $0x174] sm:$0xf0] }
 0x244   :  { %v2056_v48 = vadd.f32 %v2055_v47, %v2043_v11  ;;  %v4335_v47 = vor.u32 %v4852_v61, %v4334_v42  ;;  %v4399_v11 = vor.u32 %v4868_v40, %v4398_v9  ;;  %v4302_v42 = vld [vmem:[#allocation11 + $0xb0] sm:$0xf]  ;;  %v4844_v61 = vld [vmem:[#allocation11 + $0xb4] sm:$0xf0] }
 0x245   :  { %v4366_v9 = vld [vmem:[#allocation11 + $0x130] sm:$0xf]  ;;  %v4860_v40 = vld [vmem:[#allocation11 + $0x134] sm:$0xf0] }
 0x246   :  { %2722 = vmatpush.bf16.msra.mxu1 %v4335_v47  ;;  %2735 = vmatpush.bf16.msra.mxu2 %v4399_v11  ;;  %v4303_v47 = vor.u32 %v4844_v61, %v4302_v42  ;;  %v4367_v11 = vor.u32 %v4860_v40, %v4366_v9  ;;  %v4849_v61 = vld [vmem:[#allocation11 + $0xe4] sm:$0xf]  ;;  %v4328_v9 = vld [vmem:[#allocation11 + $0xe8] sm:$0xf0] }
 0x247   :  { %v4865_v40 = vld [vmem:[#allocation11 + $0x164] sm:$0xf] }
 0x249   :  { %v2044_v63 = vpop.f32.mrf.mxu0  ;;  %v2057_v51 = vpop.f32.mrf.mxu1 }
 0x24a   :  { %v2068_v6 = vpop.f32.mrf.mxu2  ;;  %v2081_v49 = vpop.f32.mrf.mxu3  ;;  %v4834_v63 = vld [vmem:[#allocation11 + $0x64] sm:$0xf0]  ;;  %v4326_v51 = vld [vmem:[#allocation11 + $0xe0] sm:$0xf] }
 0x24b   :  { %v2069_v50 = vadd.f32 %v2068_v6, %v2056_v48  ;;  %v4462_v48 = vld [vmem:[#allocation11 + $0x1f0] sm:$0xf]  ;;  %v4884_v6 = vld [vmem:[#allocation11 + $0x1f4] sm:$0xf0] }
 0x24d   :  { %v2082_v52 = vadd.f32 %v2081_v49, %v2069_v50  ;;  %v4262_v49 = vld [vmem:[#allocation11 + $0x60] sm:$0xf]  ;;  %v4463_v50 = vor.u32 %v4884_v6, %v4462_v48  ;;  %v4430_v48 = vld [vmem:[#allocation11 + $0x1b0] sm:$0xf]  ;;  %v4876_v6 = vld [vmem:[#allocation11 + $0x1b4] sm:$0xf0] }
 0x24f   :  { %2748 = vmatpush.bf16.msra.mxu3 %v4463_v50  ;;  %v4230_v50 = vld [vmem:[#allocation11 + $0x20] sm:$0xf] }
 0x252   :  { %v2070_v53 = vpop.f32.mrf.mxu2  ;;  %v2083_v54 = vpop.f32.mrf.mxu3 }
 0x253   :  { %v4263_v53 = vor.u32 %v4834_v63, %v4262_v49  ;;  %v4431_v49 = vor.u32 %v4876_v6, %v4430_v48  ;;  %v4826_v63 = vld [vmem:[#allocation11 + $0x24] sm:$0xf0]  ;;  %v4881_v48 = vld [vmem:[#allocation11 + $0x1e4] sm:$0xf]  ;;  %v4456_v6 = vld [vmem:[#allocation11 + $0x1e8] sm:$0xf0] }
 0x255   :  { %2710 = vmatpush.bf16.msra.mxu0 %v4263_v53  ;;  %v4842_v53 = vld [vmem:[#allocation11 + $0xa4] sm:$0xf0] }
 0x261   :  { %v2094_v55 = vpop.f32.mrf.mxu0  ;;  %v2107_v56 = vpop.f32.mrf.mxu1 }
 0x262   :  { %v2095_v20 = vadd.f32 %v2094_v55, %v2082_v52  ;;  %v4850_v52 = vld [vmem:[#allocation11 + $0xe4] sm:$0xf0]  ;;  %v4390_v55 = vld [vmem:[#allocation11 + $0x160] sm:$0xf] }
 0x263   :  { %v4327_v54 = vor.u32 %v4850_v52, %v4326_v51  ;;  %v4294_v51 = vld [vmem:[#allocation11 + $0xa0] sm:$0xf]  ;;  %v4231_v52 = vor.u32 %v4826_v63, %v4230_v50  ;;  %v4459_v50 = vor.u32 %v4881_v48, %v4456_v6  ;;  %v4831_v63 = vld [vmem:[#allocation11 + $0x54] sm:$0xf]  ;;  %v4352_v48 = vld [vmem:[#allocation11 + $0x118] sm:$0xf0] }
 0x264   :  { %v2108_v22 = vadd.f32 %v2107_v56, %v2095_v20  ;;  %v4866_v56 = vld [vmem:[#allocation11 + $0x164] sm:$0xf0]  ;;  %v4871_v6 = vld [vmem:[#allocation11 + $0x194] sm:$0xf] }
 0x265   :  { %2723 = vmatpush.bf16.msra.mxu1 %v4327_v54  ;;  %v4358_v54 = vld [vmem:[#allocation11 + $0x120] sm:$0xf] }
 0x269   :  { %v2096_v3 = vpop.f32.mrf.mxu0  ;;  %v2109_v5 = vpop.f32.mrf.mxu1 }
 0x26a   :  { %v2120_v57 = vpop.f32.mrf.mxu2  ;;  %v2133_v58 = vpop.f32.mrf.mxu3  ;;  %v4882_v3 = vld [vmem:[#allocation11 + $0x1e4] sm:$0xf0]  ;;  %v4254_v5 = vld [vmem:[#allocation11 + $0x50] sm:$0xf] }
 0x26b   :  { %v2121_v12 = vadd.f32 %v2120_v57, %v2108_v22  ;;  %v4454_v57 = vld [vmem:[#allocation11 + $0x1e0] sm:$0xf] }
 0x26d   :  { %v5494_v26 = vadd.f32 %v2133_v58, %v2121_v12  ;;  %v4391_v58 = vor.u32 %v4866_v56, %v4390_v55  ;;  %v4858_v55 = vld [vmem:[#allocation11 + $0x124] sm:$0xf0]  ;;  %v4295_v56 = vor.u32 %v4842_v53, %v4294_v51  ;;  %v4256_v51 = vld [vmem:[#allocation11 + $0x58] sm:$0xf0] }
 0x26e   :  { %v4320_v53 = vld [vmem:[#allocation11 + $0xd8] sm:$0xf0] }
 0x26f   :  { %v2244_v32 = vadd.f32 %v2243_v62, %v5494_v26  ;;  %2736 = vmatpush.bf16.msra.mxu2 %v4391_v58  ;;  %v4422_v58 = vld [vmem:[#allocation11 + $0x1a0] sm:$0xf] }
 0x272   :  { %v2122_v0 = vpop.f32.mrf.mxu2  ;;  %v2135_v1 = vpop.f32.mrf.mxu3 }
 0x273   :  { %v4832_v0 = vld [vmem:[#allocation11 + $0x54] sm:$0xf0]  ;;  %v4455_v1 = vor.u32 %v4882_v3, %v4454_v57  ;;  %v4359_v57 = vor.u32 %v4858_v55, %v4358_v54  ;;  %v4874_v3 = vld [vmem:[#allocation11 + $0x1a4] sm:$0xf0]  ;;  %v4863_v54 = vld [vmem:[#allocation11 + $0x154] sm:$0xf] }
 0x274   :  { %v4384_v55 = vld [vmem:[#allocation11 + $0x158] sm:$0xf0] }
 0x275   :  { %2749 = vmatpush.bf16.msra.mxu3 %v4455_v1  ;;  %v4824_v1 = vld [vmem:[#allocation11 + $0x14] sm:$0xf0] }
 0x281   :  { %v2146_v2 = vpop.f32.mrf.mxu0  ;;  %v2159_v4 = vpop.f32.mrf.mxu1 }
 0x282   :  { %v2147_v10 = vadd.f32 %v2146_v2, %v540_v8  ;;  %v4318_v2 = vld [vmem:[#allocation11 + $0xd0] sm:$0xf]  ;;  %v4880_v8 = vld [vmem:[#allocation11 + $0x1d4] sm:$0xf0] }
 0x284   :  { %v2160_v19 = vadd.f32 %v2159_v4, %v2147_v10  ;;  %v4848_v4 = vld [vmem:[#allocation11 + $0xd4] sm:$0xf0]  ;;  %v2251_v10 = vmul.f32 %v4940_v37, %v2250_v7 }
 0x286   :  { %v2252_v20 = vadd.f32 %v4940_v37, %v2251_v10 }
 0x289   :  { %v2148_v15 = vpop.f32.mrf.mxu0  ;;  %v2161_v16 = vpop.f32.mrf.mxu1 }
 0x28a   :  { %v2172_v13 = vpop.f32.mrf.mxu2  ;;  %v2185_v14 = vpop.f32.mrf.mxu3  ;;  %v4864_v15 = vld [vmem:[#allocation11 + $0x154] sm:$0xf0]  ;;  %v4446_v16 = vld [vmem:[#allocation11 + $0x1d0] sm:$0xf] }
 0x28b   :  { %v2173_v21 = vadd.f32 %v2172_v13, %v2160_v19  ;;  %v4382_v13 = vld [vmem:[#allocation11 + $0x150] sm:$0xf]  ;;  %v4447_v19 = vor.u32 %v4880_v8, %v4446_v16 }
 0x28d   :  { %v2186_v23 = vadd.f32 %v2185_v14, %v2173_v21  ;;  %v4255_v14 = vor.u32 %v4832_v0, %v4254_v5  ;;  %2750 = vmatpush.bf16.msra.mxu3 %v4447_v19  ;;  %v5502_v21 = vsel %vm2253_vm7, %v4940_v37, %v2252_v20  ;;  %v4438_v37 = vld [vmem:[#allocation11 + $0x1c0] sm:$0xf]  ;;  %v4423_v5 = vor.u32 %v4874_v3, %v4422_v58  ;;  %v4222_v0 = vld [vmem:[#allocation11 + $0x10] sm:$0xf]  ;;  %v4822_v20 = vld [vmem:[#allocation11 + $0x4] sm:$0xf0] }
 0x28e   :  { %v4439_v7 = vor.u32 %v4878_v38, %v4438_v37  ;;  %v4214_v19 = vld [vmem:[#allocation11] sm:$0xf]  ;;  %v4883_v37 = vld [vmem:[#allocation11 + $0x1f4] sm:$0xf]  ;;  %v4448_v3 = vld [vmem:[#allocation11 + $0x1d8] sm:$0xf0] }
 0x28f   :  { %2711 = vmatpush.bf16.msra.mxu0 %v4255_v14  ;;  %v4350_v14 = vld [vmem:[#allocation11 + $0x110] sm:$0xf]  ;;  %v4879_v58 = vld [vmem:[#allocation11 + $0x1d4] sm:$0xf] }
 0x291   :  { %2751 = vmatpush.bf16.msra.mxu3 %v4439_v7  ;;  %v4464_v7 = vld [vmem:[#allocation11 + $0x1f8] sm:$0xf0] }
 0x292   :  { %v2174_v17 = vpop.f32.mrf.mxu2  ;;  %v2187_v18 = vpop.f32.mrf.mxu3  ;;  %v4467_v42 = vor.u32 %v4883_v37, %v4464_v7  ;;  %v4857_v37 = vld [vmem:[#allocation11 + $0x124] sm:$0xf] }
 0x293   :  { %v4319_v17 = vor.u32 %v4848_v4, %v4318_v2  ;;  %v4383_v18 = vor.u32 %v4864_v15, %v4382_v13  ;;  %v4286_v2 = vld [vmem:[#allocation11 + $0x90] sm:$0xf]  ;;  %v4223_v4 = vor.u32 %v4824_v1, %v4222_v0  ;;  %v4840_v13 = vld [vmem:[#allocation11 + $0x94] sm:$0xf0]  ;;  %v4387_v0 = vor.u32 %v4863_v54, %v4384_v55  ;;  %v4248_v1 = vld [vmem:[#allocation11 + $0x48] sm:$0xf0] }
 0x294   :  { %v4856_v15 = vld [vmem:[#allocation11 + $0x114] sm:$0xf0]  ;;  %v4287_v16 = vor.u32 %v4840_v13, %v4286_v2  ;;  %v4845_v2 = vld [vmem:[#allocation11 + $0xc4] sm:$0xf]  ;;  %v4451_v13 = vor.u32 %v4879_v58, %v4448_v3  ;;  %v4280_v55 = vld [vmem:[#allocation11 + $0x88] sm:$0xf0] }
 0x295   :  { %2724 = vmatpush.bf16.msra.mxu1 %v4319_v17  ;;  %2737 = vmatpush.bf16.msra.mxu2 %v4383_v18  ;;  %v4351_v8 = vor.u32 %v4856_v15, %v4350_v14  ;;  %v4414_v17 = vld [vmem:[#allocation11 + $0x190] sm:$0xf]  ;;  %v4872_v18 = vld [vmem:[#allocation11 + $0x194] sm:$0xf0]  ;;  %v4861_v14 = vld [vmem:[#allocation11 + $0x144] sm:$0xf] }
 0x296   :  { %2752 = vmatpush.bf16.msra.mxu3 %v4431_v49  ;;  %v4415_v10 = vor.u32 %v4872_v18, %v4414_v17  ;;  %v4376_v15 = vld [vmem:[#allocation11 + $0x148] sm:$0xf0]  ;;  %v4837_v54 = vld [vmem:[#allocation11 + $0x84] sm:$0xf] }
 0x297   :  { %v4344_v58 = vld [vmem:[#allocation11 + $0x108] sm:$0xf0] }
 0x29a   :  { %2753 = vmatpush.bf16.msra.mxu3 %v4423_v5  ;;  %v4829_v5 = vld [vmem:[#allocation11 + $0x44] sm:$0xf] }
 0x29b   :  { %v4251_v17 = vor.u32 %v4829_v5, %v4248_v1  ;;  %v4869_v5 = vld [vmem:[#allocation11 + $0x184] sm:$0xf] }
 0x29e   :  { %2754 = vmatpush.bf16.msra.mxu3 %v4415_v10  ;;  %v4379_v10 = vor.u32 %v4861_v14, %v4376_v15 }
 0x2a1   :  { %v2198_v44 = vpop.f32.mrf.mxu0  ;;  %v2211_v45 = vpop.f32.mrf.mxu1 }
 0x2a2   :  { %v2199_v25 = vadd.f32 %v2198_v44, %v2186_v23 }
 0x2a4   :  { %v2212_v46 = vadd.f32 %v2211_v45, %v2199_v25 }
 0x2a8   :  { %v2224_v27 = vpop.f32.mrf.mxu2  ;;  %v2237_v60 = vpop.f32.mrf.mxu3 }
 0x2a9   :  { %v2225_v28 = vadd.f32 %v2224_v27, %v2212_v46  ;;  %v2200_v29 = vpop.f32.mrf.mxu0  ;;  %v2213_v30 = vpop.f32.mrf.mxu1 }
 0x2aa   :  { %v4830_v29 = vld [vmem:[#allocation11 + $0x44] sm:$0xf0]  ;;  %v4310_v30 = vld [vmem:[#allocation11 + $0xc0] sm:$0xf] }
 0x2ab   :  { %v5498_v31 = vadd.f32 %v2237_v60, %v2225_v28 }
 0x2ad   :  { %v2245_v24 = vadd.f32 %v2244_v32, %v5498_v31  ;;  %v4846_v32 = vld [vmem:[#allocation11 + $0xc4] sm:$0xf0] }
 0x2af   :  { %2246 = vadd.xlane.f32.xlu1 %v2245_v24  ;;  %v4374_v24 = vld [vmem:[#allocation11 + $0x140] sm:$0xf] }
 0x2b0   :  { %v2226_v34 = vpop.f32.mrf.mxu2  ;;  %v2239_v35 = vpop.f32.mrf.mxu3 }
 0x2b1   :  { %v4862_v34 = vld [vmem:[#allocation11 + $0x144] sm:$0xf0]  ;;  %v4311_v35 = vor.u32 %v4846_v32, %v4310_v30  ;;  %v4272_v30 = vld [vmem:[#allocation11 + $0x78] sm:$0xf0] }
 0x2b2   :  { %v4375_v36 = vor.u32 %v4862_v34, %v4374_v24  ;;  %v4336_v32 = vld [vmem:[#allocation11 + $0xf8] sm:$0xf0] }
 0x2b3   :  { %2725 = vmatpush.bf16.msra.mxu1 %v4311_v35  ;;  %v4867_v35 = vld [vmem:[#allocation11 + $0x174] sm:$0xf] }
 0x2b4   :  { %2738 = vmatpush.bf16.msra.mxu2 %v4375_v36  ;;  %v4400_v36 = vld [vmem:[#allocation11 + $0x178] sm:$0xf0] }
 0x2b5   :  { %v4403_v38 = vor.u32 %v4867_v35, %v4400_v36  ;;  %v4841_v35 = vld [vmem:[#allocation11 + $0xa4] sm:$0xf] }
 0x2b7   :  { %2726 = vmatpush.bf16.msra.mxu1 %v4303_v47  ;;  %v4331_v47 = vor.u32 %v4849_v61, %v4328_v9  ;;  %v4224_v9 = vld [vmem:[#allocation11 + $0x18] sm:$0xf0] }
 0x2b8   :  { %2739 = vmatpush.bf16.msra.mxu2 %v4367_v11  ;;  %v4392_v11 = vld [vmem:[#allocation11 + $0x168] sm:$0xf0] }
 0x2b9   :  { %v4395_v49 = vor.u32 %v4865_v40, %v4392_v11  ;;  %v4839_v40 = vld [vmem:[#allocation11 + $0x94] sm:$0xf] }
 0x2ba   :  { %v4855_v11 = vld [vmem:[#allocation11 + $0x114] sm:$0xf] }
 0x2bb   :  { %2727 = vmatpush.bf16.msra.mxu1 %v4295_v56  ;;  %v4259_v56 = vor.u32 %v4831_v63, %v4256_v51  ;;  %v4416_v63 = vld [vmem:[#allocation11 + $0x198] sm:$0xf0]  ;;  %v4821_v51 = vld [vmem:[#allocation11 + $0x4] sm:$0xf] }
 0x2bc   :  { %2740 = vmatpush.bf16.msra.mxu2 %v4359_v57 }
 0x2bf   :  { %2728 = vmatpush.bf16.msra.mxu1 %v4287_v16  ;;  %v4877_v16 = vld [vmem:[#allocation11 + $0x1c4] sm:$0xf] }
 0x2c0   :  { %2741 = vmatpush.bf16.msra.mxu2 %v4351_v8  ;;  %v4440_v8 = vld [vmem:[#allocation11 + $0x1c8] sm:$0xf0] }
 0x322   :  { %v2247_v22 = vpop.xlane.xlu1 %2246 }
 0x323   :  { %v2255_v23 = vmul.f32 %v5502_v21, %v2247_v22  ;;  %v4278_v22 = vld [vmem:[#allocation11 + $0x80] sm:$0xf] }
 0x325   :  { %v5506_v44 = vsub.f32 %v5479_v59, %v2255_v23  ;;  %v5509_v45 = vsub.f32 %v5490_v43, %v2255_v23  ;;  %v5512_v12 = vsub.f32 %v5494_v26, %v2255_v23  ;;  %v5515_v25 = vsub.f32 %v5498_v31, %v2255_v23  ;;  %v4246_v26 = vld [vmem:[#allocation11 + $0x40] sm:$0xf] }
 0x326   :  { %v4247_v31 = vor.u32 %v4830_v29, %v4246_v26  ;;  %v4215_v23 = vor.u32 %v4822_v20, %v4214_v19  ;;  %v4835_v26 = vld [vmem:[#allocation11 + $0x74] sm:$0xf]  ;;  %v4443_v19 = vor.u32 %v4877_v16, %v4440_v8  ;;  %v2241_v8 = vld [vmem:[#allocation10] sm:$0xf] }
 0x327   :  { %v2260_v46 = vmul.f32 %v5506_v44, %v5506_v44  ;;  %v2261_v27 = vmul.f32 %v5509_v45, %v5509_v45  ;;  %v2262_v60 = vmul.f32 %v5512_v12, %v5512_v12  ;;  %v2263_v43 = vmul.f32 %v5515_v25, %v5515_v25 }
 0x328   :  { %2712 = vmatpush.bf16.msra.mxu0 %v4247_v31  ;;  %v4851_v31 = vld [vmem:[#allocation11 + $0xf4] sm:$0xf]  ;;  %v4275_v24 = vor.u32 %v4835_v26, %v4272_v30  ;;  %v4432_v30 = vld [vmem:[#allocation11 + $0x1b8] sm:$0xf0] }
 0x329   :  { %v2264_v59 = vadd.f32 %v2261_v27, %v2260_v46  ;;  %v4838_v46 = vld [vmem:[#allocation11 + $0x84] sm:$0xf0]  ;;  %v4342_v27 = vld [vmem:[#allocation11 + $0x100] sm:$0xf]  ;;  %v4339_v34 = vor.u32 %v4851_v31, %v4336_v32  ;;  %v4825_v31 = vld [vmem:[#allocation11 + $0x24] sm:$0xf] }
 0x32b   :  { %v2265_v62 = vadd.f32 %v2264_v59, %v2262_v60  ;;  %v4854_v60 = vld [vmem:[#allocation11 + $0x104] sm:$0xf0]  ;;  %v4279_v59 = vor.u32 %v4838_v46, %v4278_v22  ;;  %v4827_v22 = vld [vmem:[#allocation11 + $0x34] sm:$0xf] }
 0x32c   :  { %2713 = vmatpush.bf16.msra.mxu0 %v4239_v33  ;;  %v4267_v33 = vor.u32 %v4833_v39, %v4264_v41  ;;  %v4843_v46 = vld [vmem:[#allocation11 + $0xb4] sm:$0xf]  ;;  %v4873_v41 = vld [vmem:[#allocation11 + $0x1a4] sm:$0xf] }
 0x32d   :  { %v2266_v28 = vadd.f32 %v2265_v62, %v2263_v43  ;;  %v4343_v43 = vor.u32 %v4854_v60, %v4342_v27  ;;  %v4406_v62 = vld [vmem:[#allocation11 + $0x180] sm:$0xf]  ;;  %2729 = vmatpush.bf16.msra.mxu1 %v4279_v59  ;;  %v4304_v59 = vld [vmem:[#allocation11 + $0xb8] sm:$0xf0] }
 0x32f   :  { %2267 = vadd.xlane.f32.xlu1 %v2266_v28  ;;  %v4870_v28 = vld [vmem:[#allocation11 + $0x184] sm:$0xf0]  ;;  %2742 = vmatpush.bf16.msra.mxu2 %v4343_v43  ;;  %v4859_v43 = vld [vmem:[#allocation11 + $0x134] sm:$0xf] }
 0x330   :  { %2714 = vmatpush.bf16.msra.mxu0 %v4231_v52  ;;  %v4407_v29 = vor.u32 %v4870_v28, %v4406_v62  ;;  %v4847_v52 = vld [vmem:[#allocation11 + $0xd4] sm:$0xf]  ;;  %v4368_v62 = vld [vmem:[#allocation11 + $0x138] sm:$0xf0]  ;;  %v4307_v28 = vor.u32 %v4843_v46, %v4304_v59  ;;  %v2289_v46 = vperm.slane %v2241_v8, 3 }
 0x331   :  { %2774 = vmatpush.bf16.msrb.mxu1 %v4339_v34  ;;  %v4323_v57 = vor.u32 %v4847_v52, %v4320_v53  ;;  %v4371_v26 = vor.u32 %v4859_v43, %v4368_v62  ;;  %v4232_v34 = vld [vmem:[#allocation11 + $0x28] sm:$0xf0]  ;;  %v4355_v52 = vor.u32 %v4855_v11, %v4352_v48 }
 0x332   :  { %2755 = vmatpush.bf16.msra.mxu3 %v4407_v29  ;;  %v4875_v29 = vld [vmem:[#allocation11 + $0x1b4] sm:$0xf]  ;;  %v4235_v36 = vor.u32 %v4825_v31, %v4232_v34  ;;  %v4216_v53 = vld [vmem:[#allocation11 + $0x8] sm:$0xf0] }
 0x333   :  { %2787 = vmatpush.bf16.msrb.mxu2 %v4403_v38  ;;  %v4360_v38 = vld [vmem:[#allocation11 + $0x128] sm:$0xf0] }
 0x334   :  { %2715 = vmatpush.bf16.msra.mxu0 %v4223_v4  ;;  %v4312_v4 = vld [vmem:[#allocation11 + $0xc8] sm:$0xf0]  ;;  %v4363_v39 = vor.u32 %v4857_v37, %v4360_v38 }
 0x335   :  { %2775 = vmatpush.bf16.msrb.mxu1 %v4331_v47  ;;  %v4315_v18 = vor.u32 %v4845_v2, %v4312_v4  ;;  %v4288_v47 = vld [vmem:[#allocation11 + $0x98] sm:$0xf0]  ;;  %v4219_v2 = vor.u32 %v4821_v51, %v4216_v53  ;;  %v4283_v4 = vor.u32 %v4837_v54, %v4280_v55 }
 0x336   :  { %2800 = vmatpush.bf16.msrb.mxu3 %v4467_v42  ;;  %v4424_v42 = vld [vmem:[#allocation11 + $0x1a8] sm:$0xf0] }
 0x337   :  { %2788 = vmatpush.bf16.msrb.mxu2 %v4395_v49  ;;  %v4427_v61 = vor.u32 %v4873_v41, %v4424_v42 }
 0x338   :  { %2716 = vmatpush.bf16.msra.mxu0 %v4215_v23  ;;  %v4240_v23 = vld [vmem:[#allocation11 + $0x38] sm:$0xf0] }
 0x339   :  { %2776 = vmatpush.bf16.msrb.mxu1 %v4323_v57  ;;  %v4243_v60 = vor.u32 %v4827_v22, %v4240_v23  ;;  %v4853_v57 = vld [vmem:[#allocation11 + $0x104] sm:$0xf]  ;;  %v2287_v22 = vperm.slane %v2241_v8, 1  ;;  %v2288_v23 = vperm.slane %v2241_v8, 2 }
 0x33a   :  { %2801 = vmatpush.bf16.msrb.mxu3 %v4459_v50  ;;  %v4291_v50 = vor.u32 %v4839_v40, %v4288_v47  ;;  %v2383_v47 = vld [vmem:[%s5566_s7] sm:$0x3] }
 0x33b   :  { %2789 = vmatpush.bf16.msrb.mxu2 %v4387_v0  ;;  %v4408_v0 = vld [vmem:[#allocation11 + $0x188] sm:$0xf0]  ;;  %v2385_v11 = vperm.slane %v2383_v47, 0  ;;  %v2386_v48 = vperm.slane %v2383_v47, 1 }
 0x33c   :  { %2761 = vmatpush.bf16.msrb.mxu0 %v4275_v24  ;;  %v4435_v24 = vor.u32 %v4875_v29, %v4432_v30  ;;  %v4411_v15 = vor.u32 %v4869_v5, %v4408_v0 }
 0x33d   :  { %2777 = vmatpush.bf16.msrb.mxu1 %v4315_v18  ;;  %v2242_v18 = vld [vmem:[%s5564_s5] sm:$0xf] }
 0x33e   :  { %2802 = vmatpush.bf16.msrb.mxu3 %v4451_v13  ;;  %v4347_v13 = vor.u32 %v4853_v57, %v4344_v58  ;;  %v2301_v59 = vperm.slane %v2242_v18, 2  ;;  %v2302_v43 = vperm.slane %v2242_v18, 3 }
 0x33f   :  { %2790 = vmatpush.bf16.msrb.mxu2 %v4379_v10 }
 0x340   :  { %2762 = vmatpush.bf16.msrb.mxu0 %v4267_v33  ;;  %v4823_v33 = vld [vmem:[#allocation11 + $0x14] sm:$0xf] }
 0x341   :  { %2778 = vmatpush.bf16.msrb.mxu1 %v4307_v28  ;;  %v4227_v49 = vor.u32 %v4823_v33, %v4224_v9 }
 0x342   :  { %2803 = vmatpush.bf16.msrb.mxu3 %v4443_v19  ;;  %v2286_v19 = vperm.slane %v2241_v8, 0 }
 0x343   :  { %2791 = vmatpush.bf16.msrb.mxu2 %v4371_v26 }
 0x344   :  { %2763 = vmatpush.bf16.msrb.mxu0 %v4259_v56  ;;  %v4419_v56 = vor.u32 %v4871_v6, %v4416_v63 }
 0x346   :  { %2804 = vmatpush.bf16.msrb.mxu3 %v4435_v24 }
 0x347   :  { %2792 = vmatpush.bf16.msrb.mxu2 %v4363_v39 }
 0x348   :  { %2764 = vmatpush.bf16.msrb.mxu0 %v4251_v17 }
 0x34a   :  { %2805 = vmatpush.bf16.msrb.mxu3 %v4427_v61 }
 0x34b   :  { %2793 = vmatpush.bf16.msrb.mxu2 %v4355_v52 }
 0x34c   :  { %2765 = vmatpush.bf16.msrb.mxu0 %v4243_v60  ;;  %v2300_v60 = vperm.slane %v2242_v18, 1 }
 0x34e   :  { %2806 = vmatpush.bf16.msrb.mxu3 %v4419_v56 }
 0x34f   :  { %2794 = vmatpush.bf16.msrb.mxu2 %v4347_v13 }
 0x350   :  { %2766 = vmatpush.bf16.msrb.mxu0 %v4235_v36 }
 0x352   :  { %2807 = vmatpush.bf16.msrb.mxu3 %v4411_v15 }
 0x354   :  { %2767 = vmatpush.bf16.msrb.mxu0 %v4227_v49 }
 0x358   :  { %2768 = vmatpush.bf16.msrb.mxu0 %v4219_v2 }
 0x3a2   :  { %v2268_v20 = vpop.xlane.xlu1 %2267 }
 0x3a3   :  { %v2269_v27 = vmul.f32 %v2268_v20, %v5502_v21  ;;  %v4296_v21 = vld [vmem:[#allocation11 + $0xa8] sm:$0xf0]  ;;  %v2299_v20 = vperm.slane %v2242_v18, 0 }
 0x3a4   :  { %v4299_v7 = vor.u32 %v4841_v35, %v4296_v21 }
 0x3a5   :  { %v5526_v32 = vadd.f32 1e-05, %v2269_v27 }
 0x3a6   :  { %2779 = vmatpush.bf16.msrb.mxu1 %v4299_v7 }
 0x3a7   :  { %4941 = vrsqrt.f32 %v5526_v32  ;;  %vm2277_vm9 = vweird.f32 %v5526_v32 }
 0x3aa   :  { %2780 = vmatpush.bf16.msrb.mxu1 %v4291_v50 }
 0x3ad   :  { %v4942_v3 = vpop.eup %4941 }
 0x3ae   :  { %v2272_v1 = vmul.f32 %v4942_v3, %v5526_v32  ;;  %2781 = vmatpush.bf16.msrb.mxu1 %v4283_v4  ;;  %vm2278_vm8 = vweird.f32 %v4942_v3 }
 0x3af   :  { %vm2279_vm10 = vmor %vm2277_vm9, %vm2278_vm8 }
 0x3b0   :  { %v2273_v14 = vmul.f32 %v4942_v3, %v2272_v1 }
 0x3b2   :  { %v2274_v16 = vmul.f32 0.5, %v2273_v14  ;;  %v5224_v14 = vmov 256.0  }
 0x3b3   :  { %4943 = vrcp.f32 %v5224_v14 }
 0x3b4   :  { %v2275_v17 = vsub.f32 1.5, %v2274_v16 }
 0x3b6   :  { %v2276_v10 = vmul.f32 %v4942_v3, %v2275_v17 }
 0x3b8   :  { %v2280_v27 = vsel %vm2279_vm10, %v4942_v3, %v2276_v10 }
 0x3b9   :  { %v2281_v62 = vmul.f32 %v2280_v27, %v5506_v44  ;;  %v2282_v28 = vmul.f32 %v2280_v27, %v5509_v45  ;;  %v2283_v26 = vmul.f32 %v2280_v27, %v5512_v12  ;;  %v2284_v29 = vmul.f32 %v2280_v27, %v5515_v25  ;;  %v4944_v15 = vpop.eup %4943 }
 0x3ba   :  { %v2819_v16 = vmul.f32 256.0, %v4944_v15  ;;  %vm2823_vm11 = vweird.f32 %v4944_v15 }
 0x3bb   :  { %v2294_v30 = vmul.f32 %v2286_v19, %v2281_v62  ;;  %v2295_v31 = vmul.f32 %v2287_v22, %v2282_v28  ;;  %v2296_v32 = vmul.f32 %v2288_v23, %v2283_v26  ;;  %v2297_v24 = vmul.f32 %v2289_v46, %v2284_v29  ;;  %v4891_v62 = vld [vmem:[#allocation14 + $0x30] sm:$0xff]  ;;  %v4890_v26 = vld [vmem:[#allocation14 + $0x28] sm:$0xff] }
 0x3bc   :  { %v2820_v8 = vsub.f32 1.0, %v2819_v16  ;;  %v4899_v28 = vld [vmem:[#allocation14 + $0x70] sm:$0xff]  ;;  %v4898_v29 = vld [vmem:[#allocation14 + $0x68] sm:$0xff] }
 0x3bd   :  { %v2307_v34 = vadd.f32 %v2299_v20, %v2294_v30  ;;  %v2308_v35 = vadd.f32 %v2300_v60, %v2295_v31  ;;  %v2309_v36 = vadd.f32 %v2301_v59, %v2296_v32  ;;  %v2310_v21 = vadd.f32 %v2302_v43, %v2297_v24  ;;  %v4892_v59 = vld [vmem:[#allocation14 + $0x38] sm:$0xff]  ;;  %v4889_v30 = vld [vmem:[#allocation14 + $0x20] sm:$0xff] }
 0x3be   :  { %v2821_v17 = vmul.f32 %v4944_v15, %v2820_v8  ;;  %v4900_v43 = vld [vmem:[#allocation14 + $0x78] sm:$0xff]  ;;  %v4897_v31 = vld [vmem:[#allocation14 + $0x60] sm:$0xff] }
 0x3bf   :  { %v2311_v37 = vmax.f32 %v2307_v34, 0.0  ;;  %v2312_v38 = vmax.f32 %v2308_v35, 0.0  ;;  %v2313_v7 = vmax.f32 %v2309_v36, 0.0  ;;  %v2314_v39 = vmax.f32 %v2310_v21, 0.0  ;;  %v4888_v32 = vld [vmem:[#allocation14 + $0x18] sm:$0xff]  ;;  %v4887_v34 = vld [vmem:[#allocation14 + $0x10] sm:$0xff] }
 0x3c0   :  { %v2822_v18 = vadd.f32 %v4944_v15, %v2821_v17  ;;  %v4896_v24 = vld [vmem:[#allocation14 + $0x58] sm:$0xff]  ;;  %v4895_v35 = vld [vmem:[#allocation14 + $0x50] sm:$0xff]  ;;  %v4886_v36 = vld [vmem:[#allocation14 + $0x8] sm:$0xff] }
 0x3c1   :  { %v2315_v41 = vpack.c.bf16 %v2311_v37, %v2311_v37  ;;  %v2316_v44 = vpack.c.bf16 %v2312_v38, %v2312_v38  ;;  %v2317_v42 = vpack.c.bf16 %v2313_v7, %v2313_v7  ;;  %v2318_v45 = vpack.c.bf16 %v2314_v39, %v2314_v39  ;;  %v4894_v21 = vld [vmem:[#allocation14 + $0x48] sm:$0xff]  ;;  %v4885_v37 = vld [vmem:[#allocation14] sm:$0xff] }
 0x3c2   :  { %v2824_v10 = vsel %vm2823_vm11, %v4944_v15, %v2822_v18  ;;  %v4893_v38 = vld [vmem:[#allocation14 + $0x40] sm:$0xff]  ;;  %v3025_v18 = vlaneseq }
 0x3c3   :  { %2717 = vmatmul.bf16.vlgmr.msra.gmra.mxu0 %v2315_v41  ;;  %2730 = vmatmul.bf16.vlgmr.msra.gmra.mxu1 %v2316_v44 }
 0x3c4   :  { %2743 = vmatmul.bf16.vlgmr.msra.gmra.mxu2 %v2317_v42  ;;  %2756 = vmatmul.bf16.vlgmr.msra.gmra.mxu3 %v2318_v45 }
 0x3c5   :  { %2997 = vmatpush.bf16.msra.mxu0 %v4892_v59  ;;  %3010 = vmatpush.bf16.msra.mxu1 %v4900_v43  ;;  %v4907_v59 = vld [vmem:[#allocation16 + $0x30] sm:$0xff]  ;;  %v4906_v43 = vld [vmem:[#allocation16 + $0x28] sm:$0xff] }
 0x3c9   :  { %2998 = vmatpush.bf16.msra.mxu0 %v4891_v62  ;;  %3011 = vmatpush.bf16.msra.mxu1 %v4899_v28  ;;  %v4905_v62 = vld [vmem:[#allocation16 + $0x20] sm:$0xff]  ;;  %v4904_v28 = vld [vmem:[#allocation16 + $0x18] sm:$0xff] }
 0x3cd   :  { %2999 = vmatpush.bf16.msra.mxu0 %v4890_v26  ;;  %3012 = vmatpush.bf16.msra.mxu1 %v4898_v29  ;;  %v4903_v26 = vld [vmem:[#allocation16 + $0x10] sm:$0xff]  ;;  %v4902_v29 = vld [vmem:[#allocation16 + $0x8] sm:$0xff] }
 0x3d1   :  { %3000 = vmatpush.bf16.msra.mxu0 %v4889_v30  ;;  %3013 = vmatpush.bf16.msra.mxu1 %v4897_v31  ;;  %v4901_v30 = vld [vmem:[#allocation16] sm:$0xff] }
 0x3d3   :  { %2769 = vmatmul.bf16.vlgmr.msrb.gmra.mxu0 %v2315_v41  ;;  %2782 = vmatmul.bf16.vlgmr.msrb.gmra.mxu1 %v2316_v44 }
 0x3d4   :  { %2795 = vmatmul.bf16.vlgmr.msrb.gmra.mxu2 %v2317_v42  ;;  %2808 = vmatmul.bf16.vlgmr.msrb.gmra.mxu3 %v2318_v45 }
 0x3d5   :  { %3001 = vmatpush.bf16.msra.mxu0 %v4888_v32  ;;  %3014 = vmatpush.bf16.msra.mxu1 %v4896_v24 }
 0x3d9   :  { %3002 = vmatpush.bf16.msra.mxu0 %v4887_v34  ;;  %3015 = vmatpush.bf16.msra.mxu1 %v4895_v35 }
 0x3dd   :  { %3003 = vmatpush.bf16.msra.mxu0 %v4886_v36  ;;  %3016 = vmatpush.bf16.msra.mxu1 %v4894_v21 }
 0x3e1   :  { %3004 = vmatpush.bf16.msra.mxu0 %v4885_v37  ;;  %3017 = vmatpush.bf16.msra.mxu1 %v4893_v38 }
 0x440   :  { %v2718_v12 = vpop.f32.mrf.mxu0  ;;  %v2731_v25 = vpop.f32.mrf.mxu1 }
 0x441   :  { %v2719_v50 = vadd.f32 %v2718_v12, %v2385_v11 }
 0x443   :  { %v2732_v53 = vadd.f32 %v2731_v25, %v2719_v50 }
 0x447   :  { %v2744_v33 = vpop.f32.mrf.mxu2  ;;  %v2757_v61 = vpop.f32.mrf.mxu3 }
 0x448   :  { %v2720_v9 = vpop.f32.mrf.mxu0  ;;  %v2733_v40 = vpop.f32.mrf.mxu1  ;;  %v2745_v54 = vadd.f32 %v2744_v33, %v2732_v53  ;;  %v2813_v33 = vld [vmem:[#allocation13] sm:$0x3] }
 0x449   :  { %v2814_v9 = vld [vmem:[%s5568_s9] sm:$0x3]  ;;  %v2848_v40 = vperm.slane %v2813_v33, 0  ;;  %v2849_v47 = vperm.slane %v2813_v33, 1 }
 0x44a   :  { %v2758_v0 = vadd.f32 %v2757_v61, %v2745_v54  ;;  %v2856_v50 = vperm.slane %v2814_v9, 1  ;;  %v4932_v33 = vld [vmem:[%s5574_s15] ss:$0 sm:$0xff]  ;;  %s3174_s15 = sshll.u32 %s5575_s16, 4  ;;  %s3175_s15 = int_to_ptr.hbm [resolvable:$true] %s3174_s15 }
 0x44f   :  { %v2746_v6 = vpop.f32.mrf.mxu2  ;;  %v2759_v49 = vpop.f32.mrf.mxu3 }
 0x450   :  { %v2770_v63 = vpop.f32.mrf.mxu0  ;;  %v2783_v51 = vpop.f32.mrf.mxu1  ;;  %v2855_v49 = vperm.slane %v2814_v9, 0 }
 0x451   :  { %v2771_v52 = vadd.f32 %v2770_v63, %v2386_v48 }
 0x453   :  { %v2784_v55 = vadd.f32 %v2783_v51, %v2771_v52 }
 0x457   :  { %v2796_v56 = vpop.f32.mrf.mxu2  ;;  %v2809_v57 = vpop.f32.mrf.mxu3 }
 0x458   :  { %v2797_v58 = vadd.f32 %v2796_v56, %v2784_v55  ;;  %v2772_v3 = vpop.f32.mrf.mxu0  ;;  %v2785_v5 = vpop.f32.mrf.mxu1 }
 0x45a   :  { %v2810_v1 = vadd.f32 %v2809_v57, %v2797_v58  ;;  %v4929_v58 = vld [vmem:[%s5570_s11] ss:$0 sm:$0xff] }
 0x45c   :  { %v2815_v2 = vadd.f32 %v2810_v1, %v2758_v0 }
 0x45e   :  { %2816 = vadd.xlane.f32.xlu2 %v2815_v2 }
 0x45f   :  { %v2798_v4 = vpop.f32.mrf.mxu2  ;;  %v2811_v13 = vpop.f32.mrf.mxu3 }
 0x460   :  { %v5225_v13 = vmov 32.0  }
 0x4d1   :  { %v2817_v19 = vpop.xlane.xlu2 %2816 }
 0x4d2   :  { %v2825_v20 = vmul.f32 %v2824_v10, %v2817_v19  ;;  %v3026_v19 = vand.u32 127, %v3025_v18 }
 0x4d4   :  { %v2826_v22 = vsub.f32 %v2758_v0, %v2825_v20  ;;  %v2827_v23 = vsub.f32 %v2810_v1, %v2825_v20  ;;  %vm3027_vm0 = vcmp.lt.s32.totalorder %v3026_v19, 32 }
 0x4d6   :  { %v2828_v46 = vmul.f32 %v2826_v22, %v2826_v22  ;;  %v2829_v27 = vmul.f32 %v2827_v23, %v2827_v23 }
 0x4d8   :  { %v2830_v60 = vadd.f32 %v2829_v27, %v2828_v46 }
 0x4da   :  { %2831 = vadd.xlane.f32.xlu2 %v2830_v60  ;;  %v4908_v60 = vld [vmem:[#allocation16 + $0x38] sm:$0xff] }
 0x4db   :  { %3134 = vmatpush.bf16.msra.mxu2 %v4908_v60 }
 0x4df   :  { %3135 = vmatpush.bf16.msra.mxu2 %v4907_v59 }
 0x4e3   :  { %3136 = vmatpush.bf16.msra.mxu2 %v4906_v43 }
 0x4e7   :  { %3137 = vmatpush.bf16.msra.mxu2 %v4905_v62 }
 0x4eb   :  { %3138 = vmatpush.bf16.msra.mxu2 %v4904_v28 }
 0x4ef   :  { %3139 = vmatpush.bf16.msra.mxu2 %v4903_v26 }
 0x4f3   :  { %3140 = vmatpush.bf16.msra.mxu2 %v4902_v29 }
 0x4f7   :  { %3141 = vmatpush.bf16.msra.mxu2 %v4901_v30 }
 0x54d   :  { %v2832_v7 = vpop.xlane.xlu2 %2831 }
 0x54e   :  { %v2833_v39 = vmul.f32 %v2832_v7, %v2824_v10  ;;  %v4930_v7 = vld [vmem:[%s5571_s12] ss:$0 sm:$0xff]  ;;  %s5226_s12 = smov [#allocation17]  }
 0x550   :  { %v2834_v41 = vadd.f32 1e-05, %v2833_v39 }
 0x552   :  { %4945 = vrsqrt.f32 %v2834_v41  ;;  %vm2841_vm13 = vweird.f32 %v2834_v41 }
 0x553   :  { %4947 = vrcp.f32 %v5225_v13 }
 0x558   :  { %v4946_v44 = vpop.eup %4945 }
 0x559   :  { %v2836_v42 = vmul.f32 %v4946_v44, %v2834_v41  ;;  %vm2842_vm12 = vweird.f32 %v4946_v44  ;;  %v4948_v14 = vpop.eup %4947 }
 0x55a   :  { %vm2843_vm14 = vmor %vm2841_vm13, %vm2842_vm12  ;;  %v3031_v15 = vmul.f32 32.0, %v4948_v14  ;;  %vm3035_vm15 = vweird.f32 %v4948_v14 }
 0x55b   :  { %v2837_v45 = vmul.f32 %v4946_v44, %v2836_v42 }
 0x55c   :  { %v3032_v16 = vsub.f32 1.0, %v3031_v15 }
 0x55d   :  { %v2838_v12 = vmul.f32 0.5, %v2837_v45 }
 0x55e   :  { %v3033_v8 = vmul.f32 %v4948_v14, %v3032_v16 }
 0x55f   :  { %v2839_v25 = vsub.f32 1.5, %v2838_v12 }
 0x560   :  { %v3034_v17 = vadd.f32 %v4948_v14, %v3033_v8 }
 0x561   :  { %v2840_v61 = vmul.f32 %v4946_v44, %v2839_v25 }
 0x562   :  { %v3036_v10 = vsel %vm3035_vm15, %v4948_v14, %v3034_v17 }
 0x563   :  { %v2844_v11 = vsel %vm2843_vm14, %v4946_v44, %v2840_v61  ;;  %v4931_v44 = vld [vmem:[%s5572_s13] ss:$0 sm:$0xff]  ;;  %s3172_s13 = sshll.u32 %s5226_s12, 4  ;;  %s3173_s13 = int_to_ptr.vmem [resolvable:$true] %s3172_s13 }
 0x564   :  { %v2845_v48 = vmul.f32 %v2844_v11, %v2826_v22  ;;  %v2846_v6 = vmul.f32 %v2844_v11, %v2827_v23 }
 0x566   :  { %v2852_v63 = vmul.f32 %v2848_v40, %v2845_v48  ;;  %v2853_v51 = vmul.f32 %v2849_v47, %v2846_v6 }
 0x568   :  { %v2859_v52 = vadd.f32 %v2855_v49, %v2852_v63  ;;  %v2860_v53 = vadd.f32 %v2856_v50, %v2853_v51 }
 0x56a   :  { %v2861_v54 = vmax.f32 %v2859_v52, 0.0  ;;  %v2862_v55 = vmax.f32 %v2860_v53, 0.0 }
 0x56c   :  { %v2863_v56 = vpack.c.bf16 %v2861_v54, %v2861_v54  ;;  %v2864_v57 = vpack.c.bf16 %v2862_v55, %v2862_v55 }
 0x56e   :  { %3005 = vmatmul.bf16.vlgmr.msra.gmra.mxu0 %v2863_v56  ;;  %3018 = vmatmul.bf16.vlgmr.msra.gmra.mxu1 %v2864_v57 }
 0x5eb   :  { %v3006_v3 = vpop.f32.mrf.mxu0  ;;  %v3019_v5 = vpop.f32.mrf.mxu1 }
 0x5ec   :  { %v3007_v0 = vadd.f32 %v4929_v58, %v3006_v3 }
 0x5ee   :  { %v3020_v1 = vadd.f32 %v3019_v5, %v3007_v0 }
 0x5f0   :  { %3028 = vadd.xlane.f32.xlu0 %v3020_v1 }
 0x5f3   :  { %v3008_v2 = vpop.f32.mrf.mxu0  ;;  %v3021_v4 = vpop.f32.mrf.mxu1 }
 0x663   :  { %v3029_v20 = vpop.xlane.xlu0 %3028 }
 0x664   :  { %v3037_v22 = vmul.f32 %v3036_v10, %v3029_v20 }
 0x666   :  { %v3038_v23 = vsub.f32 %v3020_v1, %v3037_v22 }
 0x668   :  { %v3039_v46 = vsel %vm3027_vm0, %v3038_v23, 0.0 }
 0x669   :  { %v3040_v27 = vmul.f32 %v3039_v46, %v3039_v46 }
 0x66b   :  { %3041 = vadd.xlane.f32.xlu1 %v3040_v27 }
 0x6de   :  { %v3042_v31 = vpop.xlane.xlu1 %3041 }
 0x6df   :  { %v3043_v32 = vmul.f32 %v3042_v31, %v3036_v10 }
 0x6e1   :  { %v3044_v24 = vadd.f32 1e-05, %v3043_v32 }
 0x6e3   :  { %4949 = vrsqrt.f32 %v3044_v24  ;;  %vm3051_vm2 = vweird.f32 %v3044_v24 }
 0x6e9   :  { %v4950_v34 = vpop.eup %4949 }
 0x6ea   :  { %v3046_v35 = vmul.f32 %v4950_v34, %v3044_v24  ;;  %vm3052_vm1 = vweird.f32 %v4950_v34 }
 0x6eb   :  { %vm3053_vm3 = vmor %vm3051_vm2, %vm3052_vm1 }
 0x6ec   :  { %v3047_v36 = vmul.f32 %v4950_v34, %v3046_v35 }
 0x6ee   :  { %v3048_v21 = vmul.f32 0.5, %v3047_v36 }
 0x6f0   :  { %v3049_v37 = vsub.f32 1.5, %v3048_v21 }
 0x6f2   :  { %v3050_v38 = vmul.f32 %v4950_v34, %v3049_v37 }
 0x6f4   :  { %v3054_v39 = vsel %vm3053_vm3, %v4950_v34, %v3050_v38 }
 0x6f5   :  { %v3055_v41 = vmul.f32 %v3054_v39, %v3039_v46 }
 0x6f7   :  { %v3059_v42 = vmul.f32 %v4930_v7, %v3055_v41 }
 0x6f9   :  { %v3063_v45 = vadd.f32 %v4931_v44, %v3059_v42 }
 0x6fb   :  { %v3064_v12 = vmax.f32 %v3063_v45, 0.0 }
 0x6fd   :  { %v3065_v25 = vpack.c.bf16 %v3064_v12, %v3064_v12 }
 0x6ff   :  { %3142 = vmatmul.bf16.vlgmr.msra.gmra.mxu2 %v3065_v25 }
 0x782   :  { %v3143_v61 = vpop.f32.mrf.mxu2 }
 0x783   :  { %v3144_v9 = vadd.f32 %v4932_v33, %v3143_v61 }
 0x785   :  { %v4564_v40 = vmul.f32 -1.442695, %v3144_v9 }
 0x787   :  { %4951 = vpow2.f32 %v4564_v40 }
 0x78a   :  { %v3145_v47 = vpop.f32.mrf.mxu2 }
 0x78d   :  { %v4952_v11 = vpop.eup %4951 }
 0x78e   :  { %v3150_v48 = vadd.f32 1.0, %v4952_v11 }
 0x790   :  { %4953 = vrcp.f32 %v3150_v48  ;;  %v3162_v63 = vand.u32 2147483648, %v3150_v48  ;;  %v3160_v52 = vand.u32 2147483647, %v3150_v48  ;;  %vm3156_vm5 = vweird.f32 %v3150_v48 }
 0x792   :  { %v3163_v54 = vor.u32 1.1754944e-38, %v3162_v63  ;;  %vm3161_vm7 = vcmp.eq.f32.partialorder %v3160_v52, 8.507059e+37 }
 0x796   :  { %v4954_v6 = vpop.eup %4953 }
 0x797   :  { %v3152_v49 = vmul.f32 %v4954_v6, %v3150_v48  ;;  %vm3157_vm4 = vweird.f32 %v4954_v6 }
 0x798   :  { %vm3158_vm6 = vmor %vm3156_vm5, %vm3157_vm4 }
 0x799   :  { %v3153_v50 = vsub.f32 1.0, %v3152_v49 }
 0x79b   :  { %v3154_v51 = vmul.f32 %v4954_v6, %v3153_v50 }
 0x79d   :  { %v3155_v53 = vadd.f32 %v4954_v6, %v3154_v51 }
 0x79f   :  { %v3159_v55 = vsel %vm3158_vm6, %v4954_v6, %v3155_v53 }
 0x7a0   :  { %v3164_v56 = vsel %vm3161_vm7, %v3163_v54, %v3159_v55 }
 0x7a1   :  { %3166 = vst [vmem:[#allocation17] sm:$0xff] %v3164_v56 }
 0x7a2   :  { %3177 = dma.vmem_to_hbm [thread:$0]  %s3173_s13, 128, %s3175_s15, [#allocation4]  }
 0x7a3   :  { %5205 = dma.done.wait [#allocation4], 128  }
 0x7a4   :  { %5206 = vsyncadd [#allocation4], 4294967168 }
 0x7a5   :  { %3182 = vsyncpa [#allocation3], 1 }
 0x7a6   :  { %3183 = vsyncpa [#allocation6], 1 }
 0x7a7   :  { %3184 = vsyncpa [#allocation9], 1 }
 0x7a8   :  { %3185 = vsyncpa [#allocation12], 1 }
 0x7a9   :  { %3186 = vsyncpa [#allocation15], 1 }
 0x7aa   :  { %3187 = vsyncpa [#allocation4], 1 }

// kernel: tpu_custom_call.1
= control target key start
LH: loop header
LB: loop body
LE: loop exit
PB: predicated region body
PF: predicated region fallthrough
CT: control target
= control target key end

     0   :  { %s5559_s0 = inlined_call_operand.hbm [shape: f32[8,1024], index: 0, kind: input, shape index: {}]   ;;  %s5560_s1 = inlined_call_operand.hbm [shape: bf16[1024,512], index: 1, kind: input, shape index: {}]   ;;  %s5561_s2 = inlined_call_operand.hbm [shape: f32[1,512], index: 2, kind: input, shape index: {}]   ;;  %s5562_s3 = inlined_call_operand.hbm [shape: f32[1,512], index: 3, kind: input, shape index: {}]   ;;  %s5563_s4 = inlined_call_operand.hbm [shape: f32[1,512], index: 4, kind: input, shape index: {}]   ;;  %s5564_s5 = inlined_call_operand.vmem [shape: f32[1,512], index: 5, kind: input, shape index: {}]   ;;  %s5565_s6 = inlined_call_operand.hbm [shape: bf16[512,256], index: 6, kind: input, shape index: {}]   ;;  %s5566_s7 = inlined_call_operand.vmem [shape: f32[1,256], index: 7, kind: input, shape index: {}]   ;;  %s5567_s8 = inlined_call_operand.hbm [shape: f32[1,256], index: 8, kind: input, shape index: {}]   ;;  %s5568_s9 = inlined_call_operand.vmem [shape: f32[1,256], index: 9, kind: input, shape index: {}]   ;;  %s5569_s10 = inlined_call_operand.hbm [shape: bf16[256,128], index: 10, kind: input, shape index: {}]   ;;  %s5570_s11 = inlined_call_operand.vmem [shape: f32[1,128], index: 11, kind: input, shape index: {}]   ;;  %s5571_s12 = inlined_call_operand.vmem [shape: f32[1,128], index: 12, kind: input, shape index: {}]   ;;  %s5572_s13 = inlined_call_operand.vmem [shape: f32[1,128], index: 13, kind: input, shape index: {}]   ;;  %s5573_s14 = inlined_call_operand.hbm [shape: bf16[128,128], index: 14, kind: input, shape index: {}]   ;;  %s5574_s15 = inlined_call_operand.vmem [shape: f32[1,128], index: 15, kind: input, shape index: {}]   ;;  %s5575_s16 = inlined_call_operand.hbm [shape: f32[8,128], index: 16, kind: output, shape index: {}]  }
   0x1   :  { %5576 = sst [smem:[#allocation24_spill]] %s5559_s0 }
   0x2   :  { %21 = vsyncpa [#allocation3], 0 }
   0x3   :  { %22 = vsyncpa [#allocation6], 0 }
   0x4   :  { %23 = vsyncpa [#allocation9], 0 }
   0x5   :  { %24 = vsyncpa [#allocation12], 0 }
   0x6   :  { %25 = vsyncpa [#allocation15], 0  ;;  %s42_s23 = sshll.u32 %s5560_s1, 4  ;;  %s43_s23 = int_to_ptr.hbm [resolvable:$true] %s42_s23 }
   0x7   :  { %26 = vsyncpa [#allocation4], 0  ;;  %s5207_s24 = smov [#allocation5]   ;;  %s67_s28 = sshll.u32 %s5562_s3, 4  ;;  %s68_s28 = int_to_ptr.hbm [resolvable:$true] %s67_s28 }
   0x8   :  { %s44_s25 = sshll.u32 %s5207_s24, 4  ;;  %s5208_s29 = smov 256   ;;  %s45_s25 = int_to_ptr.vmem [resolvable:$true] %s44_s25 }
   0x9   :  { %s5209_s30 = smov 16   ;;  %s5210_s0 = smov [#allocation8]  }
   0xa   :  { %50 = dma.hbm_to_vmem [thread:$0]  %s43_s23, 32768, %s45_s25, [#allocation6], %s5208_s29, %s5208_s29, %s5209_s30  }
   0xb   :  { %s69_s17 = sshll.u32 %s5210_s0, 4  ;;  %s90_s20 = sshll.u32 %s5565_s6, 4  ;;  %s70_s17 = int_to_ptr.vmem [resolvable:$true] %s69_s17  ;;  %s91_s20 = int_to_ptr.hbm [resolvable:$true] %s90_s20 }
   0xc   :  { %72 = dma.hbm_to_vmem [thread:$0]  %s68_s28, 64, %s70_s17, [#allocation9]  }
   0xd   :  { %s5211_s1 = smov [#allocation11]   ;;  %s118_s3 = sshll.u32 %s5569_s10, 4  ;;  %s119_s3 = int_to_ptr.hbm [resolvable:$true] %s118_s3 }
   0xe   :  { %s92_s21 = sshll.u32 %s5211_s1, 4  ;;  %s5212_s26 = smov 128   ;;  %s93_s21 = int_to_ptr.vmem [resolvable:$true] %s92_s21 }
   0xf   :  { %s5213_s27 = smov 8   ;;  %s5214_s23 = smov [#allocation14]  }
  0x10   :  { %98 = dma.hbm_to_vmem [thread:$0]  %s91_s20, 8192, %s93_s21, [#allocation12], %s5212_s26, %s5212_s26, %s5213_s27  }
  0x11   :  { %s120_s25 = sshll.u32 %s5214_s23, 4  ;;  %s5215_s29 = smov 64   ;;  %s121_s25 = int_to_ptr.vmem [resolvable:$true] %s120_s25 }
  0x12   :  { %s5216_s30 = smov 4   ;;  %s5577_s0 = sld [smem:[#allocation24_spill]] }
  0x13   :  { %126 = dma.hbm_to_vmem [thread:$0]  %s119_s3, 2048, %s121_s25, [#allocation15], %s5215_s29, %s5215_s29, %s5216_s30  }
  0x14   :  { %s5217_s18 = smov [#allocation2]   ;;  %s56_s1 = sshll.u32 %s5561_s2, 4  ;;  %s57_s1 = int_to_ptr.hbm [resolvable:$true] %s56_s1 }
  0x15   :  { %s34_s10 = sshll.u32 %s5217_s18, 4  ;;  %s5218_s21 = smov [#allocation7]   ;;  %s35_s10 = int_to_ptr.vmem [resolvable:$true] %s34_s10 }
  0x16   :  { %s58_s22 = sshll.u32 %s5218_s21, 4  ;;  %s78_s3 = sshll.u32 %s5563_s4, 4  ;;  %s59_s22 = int_to_ptr.vmem [resolvable:$true] %s58_s22  ;;  %s79_s3 = int_to_ptr.hbm [resolvable:$true] %s78_s3 }
  0x17   :  { %61 = dma.hbm_to_vmem [thread:$0]  %s57_s1, 64, %s59_s22, [#allocation6]  }
  0x18   :  { %s32_s17 = sshll.u32 %s5577_s0, 4  ;;  %s106_s25 = sshll.u32 %s5567_s8, 4  ;;  %s33_s17 = int_to_ptr.hbm [resolvable:$true] %s32_s17  ;;  %s107_s25 = int_to_ptr.hbm [resolvable:$true] %s106_s25 }
  0x19   :  { %37 = dma.hbm_to_vmem [thread:$0]  %s33_s17, 1024, %s35_s10, [#allocation3]  }
  0x1a   :  { %s5219_s6 = smov [#allocation10]   ;;  %s5220_s2 = smov [#allocation13]  }
  0x1b   :  { %s80_s28 = sshll.u32 %s5219_s6, 4  ;;  %s108_s0 = sshll.u32 %s5220_s2, 4  ;;  %s81_s28 = int_to_ptr.vmem [resolvable:$true] %s80_s28  ;;  %s109_s0 = int_to_ptr.vmem [resolvable:$true] %s108_s0 }
  0x1c   :  { %83 = dma.hbm_to_vmem [thread:$0]  %s79_s3, 64, %s81_s28, [#allocation9]  }
  0x1d   :  { %s137_s10 = sshll.u32 %s5573_s14, 4  ;;  %s5221_s4 = smov [#allocation16]   ;;  %s138_s10 = int_to_ptr.hbm [resolvable:$true] %s137_s10 }
  0x1e   :  { %111 = dma.hbm_to_vmem [thread:$0]  %s107_s25, 32, %s109_s0, [#allocation12]  }
  0x1f   :  { %s139_s19 = sshll.u32 %s5221_s4, 4  ;;  %s140_s19 = int_to_ptr.vmem [resolvable:$true] %s139_s19 }
  0x20   :  { %145 = dma.hbm_to_vmem [thread:$0]  %s138_s10, 1024, %s140_s19, [#allocation15], %s5215_s29, %s5215_s29, %s5216_s30  }
  0x21   :  { %5195 = dma.done.wait [#allocation3], 1024  }
  0x22   :  { %5196 = vsyncadd [#allocation3], 4294966272 }
  0x23   :  { %5197 = dma.done.wait [#allocation6], 32832  }
  0x24   :  { %5198 = vsyncadd [#allocation6], 4294934464 }
  0x25   :  { %5199 = dma.done.wait [#allocation9], 128  }
  0x26   :  { %5200 = vsyncadd [#allocation9], 4294967168 }
  0x27   :  { %5201 = dma.done.wait [#allocation12], 8224  }
  0x28   :  { %5202 = vsyncadd [#allocation12], 4294959072 }
  0x29   :  { %5203 = dma.done.wait [#allocation15], 3072  }
  0x2a   :  { %5204 = vsyncadd [#allocation15], 4294964224  ;;  %v5345_v0 = vld [vmem:[#allocation2] sm:$0xff]  ;;  %v5347_v1 = vld [vmem:[#allocation2 + $0x8] sm:$0xff]  ;;  %v5222_v15 = vmov 1024.0  }
  0x2b   :  { %v5349_v2 = vld [vmem:[#allocation2 + $0x10] sm:$0xff]  ;;  %v192_v3 = vadd.f32 %v5347_v1, %v5345_v0  ;;  %v5353_v4 = vld [vmem:[#allocation2 + $0x18] sm:$0xff]  ;;  %v5356_v6 = vld [vmem:[#allocation2 + $0x20] sm:$0xff]  ;;  %4933 = vrcp.f32 %v5222_v15 }
  0x2c   :  { %v5359_v8 = vld [vmem:[#allocation2 + $0x28] sm:$0xff]  ;;  %v5362_v10 = vld [vmem:[#allocation2 + $0x30] sm:$0xff]  ;;  %v5365_v12 = vld [vmem:[#allocation2 + $0x38] sm:$0xff] }
  0x2d   :  { %v193_v5 = vadd.f32 %v192_v3, %v5349_v2  ;;  %v3302_v19 = vld [vmem:[#allocation5 + $0xe0] sm:$0xf]  ;;  %v4595_v20 = vld [vmem:[#allocation5 + $0xec] sm:$0xf0] }
  0x2e   :  { %v3430_v21 = vld [vmem:[#allocation5 + $0x1e0] sm:$0xf]  ;;  %v3303_v23 = vor.u32 %v4595_v20, %v3302_v19  ;;  %v4627_v24 = vld [vmem:[#allocation5 + $0x1ec] sm:$0xf0] }
  0x2f   :  { %v194_v7 = vadd.f32 %v193_v5, %v5353_v4  ;;  %v3558_v25 = vld [vmem:[#allocation5 + $0x2e0] sm:$0xf]  ;;  %v4659_v26 = vld [vmem:[#allocation5 + $0x2ec] sm:$0xf0]  ;;  %v3431_v27 = vor.u32 %v4627_v24, %v3430_v21 }
  0x30   :  { %v3559_v28 = vor.u32 %v4659_v26, %v3558_v25  ;;  %v3686_v29 = vld [vmem:[#allocation5 + $0x3e0] sm:$0xf]  ;;  %v4691_v30 = vld [vmem:[#allocation5 + $0x3ec] sm:$0xf0]  ;;  %1825 = vmatpush.bf16.msra.mxu0 %v3303_v23 }
  0x31   :  { %v195_v9 = vadd.f32 %v194_v7, %v5356_v6  ;;  %v4934_v16 = vpop.eup %4933  ;;  %v3286_v31 = vld [vmem:[#allocation5 + $0xc0] sm:$0xf]  ;;  %v3687_v32 = vor.u32 %v4691_v30, %v3686_v29  ;;  %v4591_v33 = vld [vmem:[#allocation5 + $0xcc] sm:$0xf0]  ;;  %1838 = vmatpush.bf16.msra.mxu1 %v3431_v27 }
  0x32   :  { %v202_v17 = vmul.f32 1024.0, %v4934_v16  ;;  %v3414_v34 = vld [vmem:[#allocation5 + $0x1c0] sm:$0xf]  ;;  %v4623_v35 = vld [vmem:[#allocation5 + $0x1cc] sm:$0xf0]  ;;  %1851 = vmatpush.bf16.msra.mxu2 %v3559_v28  ;;  %v3287_v36 = vor.u32 %v4591_v33, %v3286_v31  ;;  %vm206_vm0 = vweird.f32 %v4934_v16 }
  0x33   :  { %v196_v11 = vadd.f32 %v195_v9, %v5359_v8  ;;  %v3415_v37 = vor.u32 %v4623_v35, %v3414_v34  ;;  %v3542_v38 = vld [vmem:[#allocation5 + $0x2c0] sm:$0xf]  ;;  %v4655_v39 = vld [vmem:[#allocation5 + $0x2cc] sm:$0xf0]  ;;  %1864 = vmatpush.bf16.msra.mxu3 %v3687_v32 }
  0x34   :  { %v203_v18 = vsub.f32 1.0, %v202_v17  ;;  %v3670_v40 = vld [vmem:[#allocation5 + $0x3c0] sm:$0xf]  ;;  %v3543_v42 = vor.u32 %v4655_v39, %v3542_v38  ;;  %v4687_v43 = vld [vmem:[#allocation5 + $0x3cc] sm:$0xf0]  ;;  %1826 = vmatpush.bf16.msra.mxu0 %v3287_v36 }
  0x35   :  { %v197_v13 = vadd.f32 %v196_v11, %v5362_v10  ;;  %v3270_v44 = vld [vmem:[#allocation5 + $0xa0] sm:$0xf]  ;;  %v4587_v45 = vld [vmem:[#allocation5 + $0xac] sm:$0xf0]  ;;  %v3671_v46 = vor.u32 %v4687_v43, %v3670_v40  ;;  %1839 = vmatpush.bf16.msra.mxu1 %v3415_v37 }
  0x36   :  { %v204_v22 = vmul.f32 %v4934_v16, %v203_v18  ;;  %v3398_v47 = vld [vmem:[#allocation5 + $0x1a0] sm:$0xf]  ;;  %v4619_v48 = vld [vmem:[#allocation5 + $0x1ac] sm:$0xf0]  ;;  %v3271_v50 = vor.u32 %v4587_v45, %v3270_v44  ;;  %1852 = vmatpush.bf16.msra.mxu2 %v3543_v42 }
  0x37   :  { %v198_v14 = vadd.f32 %v197_v13, %v5365_v12  ;;  %v3526_v49 = vld [vmem:[#allocation5 + $0x2a0] sm:$0xf]  ;;  %v4651_v51 = vld [vmem:[#allocation5 + $0x2ac] sm:$0xf0]  ;;  %v3399_v54 = vor.u32 %v4619_v48, %v3398_v47  ;;  %1865 = vmatpush.bf16.msra.mxu3 %v3671_v46 }
  0x38   :  { %v205_v41 = vadd.f32 %v4934_v16, %v204_v22  ;;  %v3654_v52 = vld [vmem:[#allocation5 + $0x3a0] sm:$0xf]  ;;  %v4683_v53 = vld [vmem:[#allocation5 + $0x3ac] sm:$0xf0]  ;;  %v3527_v55 = vor.u32 %v4651_v51, %v3526_v49  ;;  %1827 = vmatpush.bf16.msra.mxu0 %v3271_v50 }
  0x39   :  { %199 = vadd.xlane.f32.xlu0 %v198_v14  ;;  %v3655_v57 = vor.u32 %v4683_v53, %v3654_v52  ;;  %1840 = vmatpush.bf16.msra.mxu1 %v3399_v54  ;;  %v3254_v20 = vld [vmem:[#allocation5 + $0x80] sm:$0xf]  ;;  %v4583_v21 = vld [vmem:[#allocation5 + $0x8c] sm:$0xf0] }
  0x3a   :  { %v207_v56 = vsel %vm206_vm0, %v4934_v16, %v205_v41  ;;  %1853 = vmatpush.bf16.msra.mxu2 %v3527_v55  ;;  %v3382_v22 = vld [vmem:[#allocation5 + $0x180] sm:$0xf]  ;;  %v3255_v23 = vor.u32 %v4583_v21, %v3254_v20  ;;  %v4647_v25 = vld [vmem:[#allocation5 + $0x28c] sm:$0xf0] }
  0x3b   :  { %1866 = vmatpush.bf16.msra.mxu3 %v3655_v57  ;;  %v3510_v24 = vld [vmem:[#allocation5 + $0x280] sm:$0xf]  ;;  %v4679_v29 = vld [vmem:[#allocation5 + $0x38c] sm:$0xf0] }
  0x3c   :  { %v3511_v27 = vor.u32 %v4647_v25, %v3510_v24  ;;  %v3638_v28 = vld [vmem:[#allocation5 + $0x380] sm:$0xf]  ;;  %1828 = vmatpush.bf16.msra.mxu0 %v3255_v23  ;;  %v4579_v32 = vld [vmem:[#allocation5 + $0x6c] sm:$0xf0] }
  0x3d   :  { %v3639_v30 = vor.u32 %v4679_v29, %v3638_v28  ;;  %v3238_v31 = vld [vmem:[#allocation5 + $0x60] sm:$0xf]  ;;  %v4611_v35 = vld [vmem:[#allocation5 + $0x16c] sm:$0xf0] }
  0x3e   :  { %1854 = vmatpush.bf16.msra.mxu2 %v3511_v27  ;;  %v3366_v33 = vld [vmem:[#allocation5 + $0x160] sm:$0xf]  ;;  %v3239_v34 = vor.u32 %v4579_v32, %v3238_v31  ;;  %v4643_v37 = vld [vmem:[#allocation5 + $0x26c] sm:$0xf0] }
  0x3f   :  { %1867 = vmatpush.bf16.msra.mxu3 %v3639_v30  ;;  %v3494_v36 = vld [vmem:[#allocation5 + $0x260] sm:$0xf]  ;;  %v3367_v38 = vor.u32 %v4611_v35, %v3366_v33  ;;  %v4675_v41 = vld [vmem:[#allocation5 + $0x36c] sm:$0xf0] }
  0x40   :  { %v3495_v39 = vor.u32 %v4643_v37, %v3494_v36  ;;  %v3622_v40 = vld [vmem:[#allocation5 + $0x360] sm:$0xf]  ;;  %1829 = vmatpush.bf16.msra.mxu0 %v3239_v34  ;;  %v4575_v44 = vld [vmem:[#allocation5 + $0x4c] sm:$0xf0] }
  0x41   :  { %v3623_v42 = vor.u32 %v4675_v41, %v3622_v40  ;;  %v3222_v43 = vld [vmem:[#allocation5 + $0x40] sm:$0xf]  ;;  %v4607_v47 = vld [vmem:[#allocation5 + $0x14c] sm:$0xf0] }
  0x42   :  { %1855 = vmatpush.bf16.msra.mxu2 %v3495_v39  ;;  %v3350_v45 = vld [vmem:[#allocation5 + $0x140] sm:$0xf]  ;;  %v3223_v46 = vor.u32 %v4575_v44, %v3222_v43  ;;  %v4639_v49 = vld [vmem:[#allocation5 + $0x24c] sm:$0xf0] }
  0x43   :  { %1868 = vmatpush.bf16.msra.mxu3 %v3623_v42  ;;  %v3478_v48 = vld [vmem:[#allocation5 + $0x240] sm:$0xf]  ;;  %v3351_v50 = vor.u32 %v4607_v47, %v3350_v45  ;;  %v4671_v53 = vld [vmem:[#allocation5 + $0x34c] sm:$0xf0] }
  0x44   :  { %v3479_v51 = vor.u32 %v4639_v49, %v3478_v48  ;;  %v3606_v52 = vld [vmem:[#allocation5 + $0x340] sm:$0xf]  ;;  %1830 = vmatpush.bf16.msra.mxu0 %v3223_v46  ;;  %v4723_v24 = vld [vmem:[#allocation5 + $0x4ec] sm:$0xf0] }
  0x45   :  { %v3607_v54 = vor.u32 %v4671_v53, %v3606_v52  ;;  %v3206_v55 = vld [vmem:[#allocation5 + $0x20] sm:$0xf]  ;;  %v4787_v30 = vld [vmem:[#allocation5 + $0x6ec] sm:$0xf0] }
  0x46   :  { %1856 = vmatpush.bf16.msra.mxu2 %v3479_v51  ;;  %v3334_v57 = vld [vmem:[#allocation5 + $0x120] sm:$0xf]  ;;  %v4819_v33 = vld [vmem:[#allocation5 + $0x7ec] sm:$0xf0] }
  0x47   :  { %1869 = vmatpush.bf16.msra.mxu3 %v3607_v54  ;;  %v3574_v21 = vld [vmem:[#allocation5 + $0x300] sm:$0xf]  ;;  %v4719_v35 = vld [vmem:[#allocation5 + $0x4cc] sm:$0xf0] }
  0x48   :  { %v3814_v23 = vld [vmem:[#allocation5 + $0x4e0] sm:$0xf]  ;;  %v4751_v39 = vld [vmem:[#allocation5 + $0x5cc] sm:$0xf0] }
  0x49   :  { %v3942_v25 = vld [vmem:[#allocation5 + $0x5e0] sm:$0xf]  ;;  %v3815_v27 = vor.u32 %v4723_v24, %v3814_v23  ;;  %v4783_v42 = vld [vmem:[#allocation5 + $0x6cc] sm:$0xf0] }
  0x4a   :  { %v4070_v29 = vld [vmem:[#allocation5 + $0x6e0] sm:$0xf]  ;;  %v4815_v44 = vld [vmem:[#allocation5 + $0x7cc] sm:$0xf0] }
  0x4b   :  { %v4198_v31 = vld [vmem:[#allocation5 + $0x7e0] sm:$0xf]  ;;  %v4071_v32 = vor.u32 %v4787_v30, %v4070_v29  ;;  %v4715_v48 = vld [vmem:[#allocation5 + $0x4ac] sm:$0xf0] }
  0x4c   :  { %v3798_v34 = vld [vmem:[#allocation5 + $0x4c0] sm:$0xf]  ;;  %v4199_v36 = vor.u32 %v4819_v33, %v4198_v31  ;;  %v4747_v51 = vld [vmem:[#allocation5 + $0x5ac] sm:$0xf0] }
  0x4d   :  { %v3799_v37 = vor.u32 %v4719_v35, %v3798_v34  ;;  %v4054_v40 = vld [vmem:[#allocation5 + $0x6c0] sm:$0xf]  ;;  %v4779_v53 = vld [vmem:[#allocation5 + $0x6ac] sm:$0xf0] }
  0x4e   :  { %v4182_v43 = vld [vmem:[#allocation5 + $0x7c0] sm:$0xf]  ;;  %v4055_v45 = vor.u32 %v4783_v42, %v4054_v40  ;;  %v4703_v29 = vld [vmem:[#allocation5 + $0x44c] sm:$0xf0] }
  0x4f   :  { %v4183_v46 = vor.u32 %v4815_v44, %v4182_v43  ;;  %v3782_v47 = vld [vmem:[#allocation5 + $0x4a0] sm:$0xf]  ;;  %v4735_v31 = vld [vmem:[#allocation5 + $0x54c] sm:$0xf0] }
  0x50   :  { %v3910_v49 = vld [vmem:[#allocation5 + $0x5a0] sm:$0xf]  ;;  %v4767_v34 = vld [vmem:[#allocation5 + $0x64c] sm:$0xf0] }
  0x51   :  { %v4038_v52 = vld [vmem:[#allocation5 + $0x6a0] sm:$0xf]  ;;  %v3911_v54 = vor.u32 %v4747_v51, %v3910_v49  ;;  %v4731_v43 = vld [vmem:[#allocation5 + $0x52c] sm:$0xf0] }
  0x52   :  { %v4134_v23 = vld [vmem:[#allocation5 + $0x760] sm:$0xf] }
  0x53   :  { %v3862_v30 = vld [vmem:[#allocation5 + $0x540] sm:$0xf] }
  0x54   :  { %v3990_v33 = vld [vmem:[#allocation5 + $0x640] sm:$0xf] }
  0x55   :  { %v4118_v35 = vld [vmem:[#allocation5 + $0x740] sm:$0xf]  ;;  %v3991_v40 = vor.u32 %v4767_v34, %v3990_v33  ;;  %v4657_v34 = vld [vmem:[#allocation5 + $0x2e4] sm:$0xf] }
  0x56   :  { %v3846_v42 = vld [vmem:[#allocation5 + $0x520] sm:$0xf] }
  0x57   :  { %v3847_v51 = vor.u32 %v4731_v43, %v3846_v42 }
  0xac   :  { %v200_v58 = vpop.xlane.xlu0 %199 }
  0xad   :  { %v208_v59 = vmul.f32 %v207_v56, %v200_v58  ;;  %v4571_v56 = vld [vmem:[#allocation5 + $0x2c] sm:$0xf0] }
  0xae   :  { %v3207_v58 = vor.u32 %v4571_v56, %v3206_v55  ;;  %v4039_v55 = vor.u32 %v4779_v53, %v4038_v52  ;;  %v4166_v56 = vld [vmem:[#allocation5 + $0x7a0] sm:$0xf] }
  0xaf   :  { %v5370_v60 = vsub.f32 %v5345_v0, %v208_v59  ;;  %v5373_v61 = vsub.f32 %v5347_v1, %v208_v59  ;;  %v5376_v62 = vsub.f32 %v5349_v2, %v208_v59  ;;  %v5379_v63 = vsub.f32 %v5353_v4, %v208_v59  ;;  %v3702_v52 = vld [vmem:[#allocation5 + $0x400] sm:$0xf] }
  0xb0   :  { %v5386_v7 = vsub.f32 %v5356_v6, %v208_v59  ;;  %v5391_v9 = vsub.f32 %v5359_v8, %v208_v59  ;;  %v5396_v11 = vsub.f32 %v5362_v10, %v208_v59  ;;  %v5401_v6 = vsub.f32 %v5365_v12, %v208_v59  ;;  %v4615_v12 = vld [vmem:[#allocation5 + $0x18c] sm:$0xf0]  ;;  %1831 = vmatpush.bf16.msra.mxu0 %v3207_v58  ;;  %v3766_v58 = vld [vmem:[#allocation5 + $0x480] sm:$0xf] }
  0xb1   :  { %v217_v3 = vmul.f32 %v5370_v60, %v5370_v60  ;;  %v218_v5 = vmul.f32 %v5373_v61, %v5373_v61  ;;  %v219_v0 = vmul.f32 %v5376_v62, %v5376_v62  ;;  %v220_v2 = vmul.f32 %v5379_v63, %v5379_v63  ;;  %v4603_v59 = vld [vmem:[#allocation5 + $0x12c] sm:$0xf0] }
  0xb2   :  { %v221_v13 = vmul.f32 %v5386_v7, %v5386_v7  ;;  %v222_v15 = vmul.f32 %v5391_v9, %v5391_v9  ;;  %v223_v8 = vmul.f32 %v5396_v11, %v5396_v11  ;;  %v224_v18 = vmul.f32 %v5401_v6, %v5401_v6 }
  0xb3   :  { %v225_v1 = vadd.f32 %v218_v5, %v217_v3  ;;  %v3383_v26 = vor.u32 %v4615_v12, %v3382_v22  ;;  %v3462_v3 = vld [vmem:[#allocation5 + $0x220] sm:$0xf]  ;;  %v4635_v5 = vld [vmem:[#allocation5 + $0x22c] sm:$0xf0] }
  0xb4   :  { %v4663_v22 = vld [vmem:[#allocation5 + $0x30c] sm:$0xf0] }
  0xb5   :  { %v226_v4 = vadd.f32 %v225_v1, %v219_v0  ;;  %1841 = vmatpush.bf16.msra.mxu1 %v3383_v26  ;;  %v3335_v0 = vor.u32 %v4603_v59, %v3334_v57  ;;  %v3463_v1 = vor.u32 %v4635_v5, %v3462_v3  ;;  %v3575_v12 = vor.u32 %v4663_v22, %v3574_v21  ;;  %v4755_v26 = vld [vmem:[#allocation5 + $0x5ec] sm:$0xf0]  ;;  %v3894_v5 = vld [vmem:[#allocation5 + $0x580] sm:$0xf] }
  0xb6   :  { %v3943_v28 = vor.u32 %v4755_v26, %v3942_v25  ;;  %v4811_v57 = vld [vmem:[#allocation5 + $0x7ac] sm:$0xf0] }
  0xb7   :  { %v227_v14 = vadd.f32 %v226_v4, %v220_v2  ;;  %v3590_v2 = vld [vmem:[#allocation5 + $0x320] sm:$0xf]  ;;  %v4667_v4 = vld [vmem:[#allocation5 + $0x32c] sm:$0xf0]  ;;  %1857 = vmatpush.bf16.msra.mxu2 %v3463_v1  ;;  %v4167_v59 = vor.u32 %v4811_v57, %v4166_v56 }
  0xb8   :  { %v4711_v3 = vld [vmem:[#allocation5 + $0x48c] sm:$0xf0]  ;;  %v4022_v1 = vld [vmem:[#allocation5 + $0x680] sm:$0xf] }
  0xb9   :  { %v228_v16 = vadd.f32 %v227_v14, %v221_v13  ;;  %1842 = vmatpush.bf16.msra.mxu1 %v3367_v38  ;;  %v3591_v13 = vor.u32 %v4667_v4, %v3590_v2  ;;  %v3190_v14 = vld [vmem:[#allocation5] sm:$0xf]  ;;  %v4775_v2 = vld [vmem:[#allocation5 + $0x68c] sm:$0xf0] }
  0xba   :  { %v3926_v38 = vld [vmem:[#allocation5 + $0x5c0] sm:$0xf]  ;;  %v4771_v21 = vld [vmem:[#allocation5 + $0x66c] sm:$0xf0] }
  0xbb   :  { %v229_v17 = vadd.f32 %v228_v16, %v222_v15  ;;  %v4567_v15 = vld [vmem:[#allocation5 + $0xc] sm:$0xf0]  ;;  %v3318_v16 = vld [vmem:[#allocation5 + $0x100] sm:$0xf]  ;;  %1870 = vmatpush.bf16.msra.mxu3 %v3591_v13  ;;  %v3927_v41 = vor.u32 %v4751_v39, %v3926_v38  ;;  %v3767_v13 = vor.u32 %v4711_v3, %v3766_v58  ;;  %v3863_v38 = vor.u32 %v4735_v31, %v3862_v30  ;;  %v3304_v30 = vld [vmem:[#allocation5 + $0xf0] sm:$0xf0] }
  0xbc   :  { %v4150_v4 = vld [vmem:[#allocation5 + $0x780] sm:$0xf]  ;;  %v4727_v57 = vld [vmem:[#allocation5 + $0x50c] sm:$0xf0] }
  0xbd   :  { %v230_v10 = vadd.f32 %v229_v17, %v223_v8  ;;  %1843 = vmatpush.bf16.msra.mxu1 %v3351_v50  ;;  %v3191_v8 = vor.u32 %v4567_v15, %v3190_v14  ;;  %v4599_v17 = vld [vmem:[#allocation5 + $0x10c] sm:$0xf0]  ;;  %v3783_v50 = vor.u32 %v4715_v48, %v3782_v47  ;;  %v3718_v39 = vld [vmem:[#allocation5 + $0x420] sm:$0xf] }
  0xbe   :  { %v4807_v15 = vld [vmem:[#allocation5 + $0x78c] sm:$0xf0]  ;;  %v4102_v47 = vld [vmem:[#allocation5 + $0x720] sm:$0xf] }
  0xbf   :  { %v231_v19 = vadd.f32 %v230_v10, %v224_v18  ;;  %v3446_v18 = vld [vmem:[#allocation5 + $0x200] sm:$0xf]  ;;  %v4631_v10 = vld [vmem:[#allocation5 + $0x20c] sm:$0xf0]  ;;  %1832 = vmatpush.bf16.msra.mxu0 %v3191_v8  ;;  %1871 = vmatpush.bf16.msra.mxu3 %v3575_v12  ;;  %v4023_v8 = vor.u32 %v4775_v2, %v4022_v1 }
  0xc0   :  { %v3447_v20 = vor.u32 %v4631_v10, %v3446_v18  ;;  %v3878_v18 = vld [vmem:[#allocation5 + $0x560] sm:$0xf]  ;;  %v4739_v10 = vld [vmem:[#allocation5 + $0x56c] sm:$0xf0] }
  0xc1   :  { %232 = vadd.xlane.f32.xlu0 %v231_v19  ;;  %1844 = vmatpush.bf16.msra.mxu1 %v3335_v0  ;;  %v3319_v19 = vor.u32 %v4599_v17, %v3318_v16  ;;  %v4743_v0 = vld [vmem:[#allocation5 + $0x58c] sm:$0xf0]  ;;  %v3750_v16 = vld [vmem:[#allocation5 + $0x460] sm:$0xf]  ;;  %v3879_v26 = vor.u32 %v4739_v10, %v3878_v18 }
  0xc2   :  { %1858 = vmatpush.bf16.msra.mxu2 %v3447_v20  ;;  %v3895_v14 = vor.u32 %v4743_v0, %v3894_v5  ;;  %v4707_v17 = vld [vmem:[#allocation5 + $0x46c] sm:$0xf0]  ;;  %v4006_v20 = vld [vmem:[#allocation5 + $0x660] sm:$0xf] }
  0xc3   :  { %1877 = vmatpush.bf16.msrb.mxu0 %v3815_v27  ;;  %1916 = vmatpush.bf16.msrb.mxu3 %v4199_v36  ;;  %v4803_v12 = vld [vmem:[#allocation5 + $0x76c] sm:$0xf0]  ;;  %v3751_v25 = vor.u32 %v4707_v17, %v3750_v16  ;;  %v3734_v27 = vld [vmem:[#allocation5 + $0x440] sm:$0xf] }
  0xc4   :  { %v4799_v36 = vld [vmem:[#allocation5 + $0x74c] sm:$0xf0]  ;;  %v3830_v56 = vld [vmem:[#allocation5 + $0x500] sm:$0xf] }
  0xc5   :  { %1845 = vmatpush.bf16.msra.mxu1 %v3319_v19  ;;  %v4151_v19 = vor.u32 %v4807_v15, %v4150_v4  ;;  %v4119_v44 = vor.u32 %v4799_v36, %v4118_v35  ;;  %v4795_v48 = vld [vmem:[#allocation5 + $0x72c] sm:$0xf0]  ;;  %v4086_v0 = vld [vmem:[#allocation5 + $0x700] sm:$0xf]  ;;  %v3831_v4 = vor.u32 %v4727_v57, %v3830_v56  ;;  %v4585_v56 = vld [vmem:[#allocation5 + $0xa4] sm:$0xf] }
  0xc6   :  { %1903 = vmatpush.bf16.msrb.mxu2 %v4071_v32  ;;  %v4135_v32 = vor.u32 %v4803_v12, %v4134_v23  ;;  %v4103_v58 = vor.u32 %v4795_v48, %v4102_v47  ;;  %v4759_v3 = vld [vmem:[#allocation5 + $0x60c] sm:$0xf0]  ;;  %v3288_v47 = vld [vmem:[#allocation5 + $0xd0] sm:$0xf0] }
  0xc7   :  { %1878 = vmatpush.bf16.msrb.mxu0 %v3799_v37  ;;  %1917 = vmatpush.bf16.msrb.mxu3 %v4183_v46  ;;  %v3735_v37 = vor.u32 %v4703_v29, %v3734_v27  ;;  %v4763_v46 = vld [vmem:[#allocation5 + $0x62c] sm:$0xf0]  ;;  %v4593_v29 = vld [vmem:[#allocation5 + $0xe4] sm:$0xf]  ;;  %v3272_v57 = vld [vmem:[#allocation5 + $0xb0] sm:$0xf0] }
  0xc8   :  { %v4791_v1 = vld [vmem:[#allocation5 + $0x70c] sm:$0xf0]  ;;  %v3307_v42 = vor.u32 %v4593_v29, %v3304_v30  ;;  %v3240_v29 = vld [vmem:[#allocation5 + $0x70] sm:$0xf0]  ;;  %v4609_v30 = vld [vmem:[#allocation5 + $0x164] sm:$0xf] }
  0xc9   :  { %1890 = vmatpush.bf16.msrb.mxu1 %v3943_v28  ;;  %v4007_v28 = vor.u32 %v4771_v21, %v4006_v20  ;;  %v4087_v15 = vor.u32 %v4791_v1, %v4086_v0  ;;  %v4649_v0 = vld [vmem:[#allocation5 + $0x2a4] sm:$0xf]  ;;  %v3528_v1 = vld [vmem:[#allocation5 + $0x2b0] sm:$0xf0] }
  0xca   :  { %1904 = vmatpush.bf16.msrb.mxu2 %v4055_v45  ;;  %v3974_v45 = vld [vmem:[#allocation5 + $0x620] sm:$0xf] }
  0xcb   :  { %1879 = vmatpush.bf16.msrb.mxu0 %v3783_v50  ;;  %1918 = vmatpush.bf16.msrb.mxu3 %v4167_v59  ;;  %v3958_v59 = vld [vmem:[#allocation5 + $0x600] sm:$0xf] }
  0xcd   :  { %1891 = vmatpush.bf16.msrb.mxu1 %v3927_v41  ;;  %v4699_v41 = vld [vmem:[#allocation5 + $0x42c] sm:$0xf0] }
  0xce   :  { %1905 = vmatpush.bf16.msrb.mxu2 %v4039_v55  ;;  %v3719_v50 = vor.u32 %v4699_v41, %v3718_v39  ;;  %v4695_v55 = vld [vmem:[#allocation5 + $0x40c] sm:$0xf0]  ;;  %v3560_v39 = vld [vmem:[#allocation5 + $0x2f0] sm:$0xf0] }
  0xcf   :  { %1880 = vmatpush.bf16.msrb.mxu0 %v3767_v13  ;;  %1919 = vmatpush.bf16.msrb.mxu3 %v4151_v19  ;;  %v3703_v2 = vor.u32 %v4695_v55, %v3702_v52  ;;  %v3688_v41 = vld [vmem:[#allocation5 + $0x3f0] sm:$0xf0]  ;;  %v3563_v48 = vor.u32 %v4657_v34, %v3560_v39  ;;  %v4685_v52 = vld [vmem:[#allocation5 + $0x3c4] sm:$0xf] }
  0xd1   :  { %1892 = vmatpush.bf16.msrb.mxu1 %v3911_v54  ;;  %v3975_v54 = vor.u32 %v4763_v46, %v3974_v45 }
  0xd2   :  { %1906 = vmatpush.bf16.msrb.mxu2 %v4023_v8 }
  0xd3   :  { %1881 = vmatpush.bf16.msrb.mxu0 %v3751_v25  ;;  %1920 = vmatpush.bf16.msrb.mxu3 %v4135_v32  ;;  %v4625_v32 = vld [vmem:[#allocation5 + $0x1e4] sm:$0xf] }
  0xd5   :  { %1893 = vmatpush.bf16.msrb.mxu1 %v3895_v14  ;;  %v3959_v14 = vor.u32 %v4759_v3, %v3958_v59  ;;  %v4617_v3 = vld [vmem:[#allocation5 + $0x1a4] sm:$0xf] }
  0xd6   :  { %1907 = vmatpush.bf16.msrb.mxu2 %v4007_v28 }
  0xd7   :  { %1882 = vmatpush.bf16.msrb.mxu0 %v3735_v37  ;;  %1921 = vmatpush.bf16.msrb.mxu3 %v4119_v44 }
  0xd9   :  { %1894 = vmatpush.bf16.msrb.mxu1 %v3879_v26 }
  0xda   :  { %1908 = vmatpush.bf16.msrb.mxu2 %v3991_v40  ;;  %v4689_v40 = vld [vmem:[#allocation5 + $0x3e4] sm:$0xf] }
  0xdb   :  { %1883 = vmatpush.bf16.msrb.mxu0 %v3719_v50  ;;  %1922 = vmatpush.bf16.msrb.mxu3 %v4103_v58  ;;  %v3416_v50 = vld [vmem:[#allocation5 + $0x1d0] sm:$0xf0] }
  0xdd   :  { %1895 = vmatpush.bf16.msrb.mxu1 %v3863_v38 }
  0xde   :  { %1909 = vmatpush.bf16.msrb.mxu2 %v3975_v54 }
  0xdf   :  { %1884 = vmatpush.bf16.msrb.mxu0 %v3703_v2  ;;  %1923 = vmatpush.bf16.msrb.mxu3 %v4087_v15  ;;  %v4681_v2 = vld [vmem:[#allocation5 + $0x3a4] sm:$0xf] }
  0xe1   :  { %1896 = vmatpush.bf16.msrb.mxu1 %v3847_v51  ;;  %v3544_v51 = vld [vmem:[#allocation5 + $0x2d0] sm:$0xf0] }
  0xe2   :  { %1910 = vmatpush.bf16.msrb.mxu2 %v3959_v14  ;;  %v3275_v14 = vor.u32 %v4585_v56, %v3272_v57  ;;  %v4601_v56 = vld [vmem:[#allocation5 + $0x124] sm:$0xf]  ;;  %v3336_v57 = vld [vmem:[#allocation5 + $0x130] sm:$0xf0] }
  0xe5   :  { %1897 = vmatpush.bf16.msrb.mxu1 %v3831_v4  ;;  %v3656_v4 = vld [vmem:[#allocation5 + $0x3b0] sm:$0xf0] }
 0x134   :  { %v233_v22 = vpop.xlane.xlu0 %232 }
 0x135   :  { %v5409_v24 = vmul.f32 0.0009775171, %v233_v22 }
 0x137   :  { %4935 = vrsqrt.f32 %v5409_v24  ;;  %vm242_vm1 = vcmp.eq.f32.partialorder %v5409_v24, inf  ;;  %v245_v18 = vand.u32 2147483648, %v5409_v24  ;;  %vm244_vm2 = vcmp.eq.f32.partialorder %v5409_v24, 0.0 }
 0x13d   :  { %v4936_v49 = vpop.eup %4935 }
 0x13e   :  { %v236_v53 = vmul.f32 %v4936_v49, %v5409_v24 }
 0x140   :  { %v237_v5 = vmul.f32 %v4936_v49, %v236_v53  ;;  %v3672_v53 = vld [vmem:[#allocation5 + $0x3d0] sm:$0xf0] }
 0x141   :  { %v3675_v59 = vor.u32 %v4685_v52, %v3672_v53  ;;  %v4569_v52 = vld [vmem:[#allocation5 + $0x24] sm:$0xf]  ;;  %v3208_v53 = vld [vmem:[#allocation5 + $0x30] sm:$0xf0] }
 0x142   :  { %v238_v13 = vmul.f32 0.5, %v237_v5  ;;  %v3400_v5 = vld [vmem:[#allocation5 + $0x1b0] sm:$0xf0] }
 0x143   :  { %v3403_v15 = vor.u32 %v4617_v3, %v3400_v5  ;;  %v4665_v3 = vld [vmem:[#allocation5 + $0x324] sm:$0xf]  ;;  %v3592_v5 = vld [vmem:[#allocation5 + $0x330] sm:$0xf0] }
 0x144   :  { %v239_v16 = vsub.f32 1.5, %v238_v13  ;;  %v4581_v13 = vld [vmem:[#allocation5 + $0x84] sm:$0xf] }
 0x146   :  { %v240_v8 = vmul.f32 %v4936_v49, %v239_v16  ;;  %v4621_v49 = vld [vmem:[#allocation5 + $0x1c4] sm:$0xf]  ;;  %v3256_v16 = vld [vmem:[#allocation5 + $0x90] sm:$0xf0] }
 0x147   :  { %v3419_v55 = vor.u32 %v4621_v49, %v3416_v50  ;;  %v4669_v49 = vld [vmem:[#allocation5 + $0x344] sm:$0xf]  ;;  %v3608_v50 = vld [vmem:[#allocation5 + $0x350] sm:$0xf0] }
 0x148   :  { %v241_v17 = vmul.f32 %v240_v8, %v5409_v24  ;;  %v4613_v8 = vld [vmem:[#allocation5 + $0x184] sm:$0xf] }
 0x14a   :  { %v243_v10 = vsel %vm242_vm1, %v5409_v24, %v241_v17  ;;  %v3432_v24 = vld [vmem:[#allocation5 + $0x1f0] sm:$0xf0] }
 0x14b   :  { %v246_v19 = vsel %vm244_vm2, %v245_v18, %v243_v10  ;;  %v3435_v43 = vor.u32 %v4625_v32, %v3432_v24  ;;  %v3384_v17 = vld [vmem:[#allocation5 + $0x190] sm:$0xf0]  ;;  %v3531_v18 = vor.u32 %v4649_v0, %v3528_v1  ;;  %v3659_v10 = vor.u32 %v4681_v2, %v3656_v4  ;;  %v4565_v0 = vld [vmem:[#allocation5 + $0x4] sm:$0xf] }
 0x14c   :  { %v247_v20 = vadd.f32 1e-08, %v246_v19  ;;  %v4645_v19 = vld [vmem:[#allocation5 + $0x284] sm:$0xf]  ;;  %v3211_v1 = vor.u32 %v4569_v52, %v3208_v53  ;;  %v3339_v2 = vor.u32 %v4601_v56, %v3336_v57  ;;  %v3192_v4 = vld [vmem:[#allocation5 + $0x10] sm:$0xf0] }
 0x14d   :  { %v4809_v52 = vld [vmem:[#allocation5 + $0x7a4] sm:$0xf]  ;;  %v4168_v53 = vld [vmem:[#allocation5 + $0x7b0] sm:$0xf0] }
 0x14e   :  { %4937 = vrcp.f32 %v247_v20  ;;  %v259_v12 = vand.u32 2147483648, %v247_v20  ;;  %v257_v26 = vand.u32 2147483647, %v247_v20  ;;  %vm253_vm4 = vweird.f32 %v247_v20  ;;  %v4709_v56 = vld [vmem:[#allocation5 + $0x484] sm:$0xf] }
 0x14f   :  { %v3768_v57 = vld [vmem:[#allocation5 + $0x490] sm:$0xf0] }
 0x150   :  { %v260_v28 = vor.u32 1.1754944e-38, %v259_v12  ;;  %vm258_vm6 = vcmp.eq.f32.partialorder %v257_v26, 8.507059e+37  ;;  %v3387_v12 = vor.u32 %v4613_v8, %v3384_v17  ;;  %v4629_v8 = vld [vmem:[#allocation5 + $0x204] sm:$0xf]  ;;  %v3448_v17 = vld [vmem:[#allocation5 + $0x210] sm:$0xf0] }
 0x154   :  { %v4938_v21 = vpop.eup %4937 }
 0x155   :  { %v249_v22 = vmul.f32 %v4938_v21, %v247_v20  ;;  %vm254_vm3 = vweird.f32 %v4938_v21  ;;  %v3512_v20 = vld [vmem:[#allocation5 + $0x290] sm:$0xf0] }
 0x156   :  { %vm255_vm5 = vmor %vm253_vm4, %vm254_vm3  ;;  %v3515_v26 = vor.u32 %v4645_v19, %v3512_v20  ;;  %v4721_v19 = vld [vmem:[#allocation5 + $0x4e4] sm:$0xf]  ;;  %v3816_v20 = vld [vmem:[#allocation5 + $0x4f0] sm:$0xf0] }
 0x157   :  { %v250_v23 = vsub.f32 1.0, %v249_v22  ;;  %v3640_v22 = vld [vmem:[#allocation5 + $0x390] sm:$0xf0] }
 0x159   :  { %v251_v25 = vmul.f32 %v4938_v21, %v250_v23  ;;  %v3259_v23 = vor.u32 %v4581_v13, %v3256_v16  ;;  %v4597_v13 = vld [vmem:[#allocation5 + $0x104] sm:$0xf]  ;;  %v3595_v16 = vor.u32 %v4665_v3, %v3592_v5  ;;  %v3896_v5 = vld [vmem:[#allocation5 + $0x590] sm:$0xf0] }
 0x15a   :  { %v4741_v3 = vld [vmem:[#allocation5 + $0x584] sm:$0xf] }
 0x15b   :  { %v252_v27 = vadd.f32 %v4938_v21, %v251_v25  ;;  %v4577_v25 = vld [vmem:[#allocation5 + $0x64] sm:$0xf] }
 0x15d   :  { %v256_v31 = vsel %vm255_vm5, %v4938_v21, %v252_v27  ;;  %v4677_v21 = vld [vmem:[#allocation5 + $0x384] sm:$0xf] }
 0x15e   :  { %v5418_v33 = vsel %vm258_vm6, %v260_v28, %v256_v31  ;;  %v3368_v31 = vld [vmem:[#allocation5 + $0x170] sm:$0xf0]  ;;  %v3643_v32 = vor.u32 %v4677_v21, %v3640_v22  ;;  %v4753_v21 = vld [vmem:[#allocation5 + $0x5e4] sm:$0xf] }
 0x15f   :  { %v263_v35 = vmul.f32 %v5418_v33, %v5370_v60  ;;  %v264_v36 = vmul.f32 %v5418_v33, %v5373_v61  ;;  %v265_v37 = vmul.f32 %v5418_v33, %v5376_v62  ;;  %v266_v38 = vmul.f32 %v5418_v33, %v5379_v63  ;;  %v4589_v61 = vld [vmem:[#allocation5 + $0xc4] sm:$0xf]  ;;  %v3944_v22 = vld [vmem:[#allocation5 + $0x5f0] sm:$0xf0] }
 0x160   :  { %v3691_v62 = vor.u32 %v4689_v40, %v3688_v41  ;;  %v4653_v63 = vld [vmem:[#allocation5 + $0x2c4] sm:$0xf]  ;;  %v3291_v54 = vor.u32 %v4589_v61, %v3288_v47  ;;  %v267_v27 = vmul.f32 %v5418_v33, %v5386_v7  ;;  %v268_v28 = vmul.f32 %v5418_v33, %v5391_v9  ;;  %v3352_v47 = vld [vmem:[#allocation5 + $0x150] sm:$0xf0] }
 0x161   :  { %v5428_v44 = vpack.c.bf16 %v263_v35, %v263_v35  ;;  %v5430_v45 = vpack.c.bf16 %v264_v36, %v264_v36  ;;  %v5432_v46 = vpack.c.bf16 %v265_v37, %v265_v37  ;;  %v5434_v60 = vpack.c.bf16 %v266_v38, %v266_v38  ;;  %v4641_v35 = vld [vmem:[#allocation5 + $0x264] sm:$0xf]  ;;  %v3496_v36 = vld [vmem:[#allocation5 + $0x270] sm:$0xf0] }
 0x162   :  { %v3547_v58 = vor.u32 %v4653_v63, %v3544_v51  ;;  %v269_v24 = vmul.f32 %v5418_v33, %v5396_v11  ;;  %v270_v34 = vmul.f32 %v5418_v33, %v5401_v6  ;;  %v4673_v37 = vld [vmem:[#allocation5 + $0x364] sm:$0xf]  ;;  %v3624_v38 = vld [vmem:[#allocation5 + $0x370] sm:$0xf0]  ;;  %v3243_v7 = vor.u32 %v4577_v25, %v3240_v29 }
 0x163   :  { %1833 = vmatmul.bf16.vlgmr.msra.gmra.mxu0 %v5428_v44  ;;  %1846 = vmatmul.bf16.vlgmr.msra.gmra.mxu1 %v5430_v45  ;;  %v3371_v39 = vor.u32 %v4609_v30, %v3368_v31  ;;  %v5448_v9 = vpack.c.bf16 %v267_v27, %v267_v27  ;;  %v5450_v40 = vpack.c.bf16 %v268_v28, %v268_v28  ;;  %v4605_v61 = vld [vmem:[#allocation5 + $0x144] sm:$0xf]  ;;  %v4200_v28 = vld [vmem:[#allocation5 + $0x7f0] sm:$0xf0] }
 0x164   :  { %1859 = vmatmul.bf16.vlgmr.msra.gmra.mxu2 %v5432_v46  ;;  %1872 = vmatmul.bf16.vlgmr.msra.gmra.mxu3 %v5434_v60  ;;  %v3499_v41 = vor.u32 %v4641_v35, %v3496_v36  ;;  %v5452_v11 = vpack.c.bf16 %v269_v24, %v269_v24  ;;  %v5454_v6 = vpack.c.bf16 %v270_v34, %v270_v34  ;;  %v4817_v27 = vld [vmem:[#allocation5 + $0x7e4] sm:$0xf]  ;;  %v3800_v34 = vld [vmem:[#allocation5 + $0x4d0] sm:$0xf0] }
 0x165   :  { %1929 = vmatpush.bf16.msra.mxu0 %v3307_v42  ;;  %1942 = vmatpush.bf16.msra.mxu1 %v3435_v43  ;;  %v4573_v42 = vld [vmem:[#allocation5 + $0x44] sm:$0xf]  ;;  %v3224_v43 = vld [vmem:[#allocation5 + $0x50] sm:$0xf0]  ;;  %v3627_v33 = vor.u32 %v4673_v37, %v3624_v38  ;;  %v3355_v51 = vor.u32 %v4605_v61, %v3352_v47  ;;  %v3451_v29 = vor.u32 %v4629_v8, %v3448_v17 }
 0x166   :  { %1955 = vmatpush.bf16.msra.mxu2 %v3563_v48  ;;  %1968 = vmatpush.bf16.msra.mxu3 %v3691_v62  ;;  %v4637_v48 = vld [vmem:[#allocation5 + $0x244] sm:$0xf]  ;;  %v3480_v62 = vld [vmem:[#allocation5 + $0x250] sm:$0xf0]  ;;  %v3227_v63 = vor.u32 %v4573_v42, %v3224_v43  ;;  %v3819_v31 = vor.u32 %v4721_v19, %v3816_v20  ;;  %v4203_v36 = vor.u32 %v4817_v27, %v4200_v28 }
 0x167   :  { %v4717_v24 = vld [vmem:[#allocation5 + $0x4c4] sm:$0xf]  ;;  %v3928_v38 = vld [vmem:[#allocation5 + $0x5d0] sm:$0xf0] }
 0x168   :  { %v4749_v37 = vld [vmem:[#allocation5 + $0x5c4] sm:$0xf]  ;;  %v4184_v42 = vld [vmem:[#allocation5 + $0x7d0] sm:$0xf0]  ;;  %v3803_v43 = vor.u32 %v4717_v24, %v3800_v34 }
 0x169   :  { %1930 = vmatpush.bf16.msra.mxu0 %v3291_v54  ;;  %1943 = vmatpush.bf16.msra.mxu1 %v3419_v55  ;;  %v3483_v54 = vor.u32 %v4637_v48, %v3480_v62  ;;  %v3611_v55 = vor.u32 %v4669_v49, %v3608_v50  ;;  %v4713_v61 = vld [vmem:[#allocation5 + $0x4a4] sm:$0xf]  ;;  %v3784_v47 = vld [vmem:[#allocation5 + $0x4b0] sm:$0xf0] }
 0x16a   :  { %1956 = vmatpush.bf16.msra.mxu2 %v3547_v58  ;;  %1969 = vmatpush.bf16.msra.mxu3 %v3675_v59  ;;  %v4633_v58 = vld [vmem:[#allocation5 + $0x224] sm:$0xf]  ;;  %v3464_v59 = vld [vmem:[#allocation5 + $0x230] sm:$0xf0] }
 0x16b   :  { %v4745_v49 = vld [vmem:[#allocation5 + $0x5a4] sm:$0xf]  ;;  %v3912_v50 = vld [vmem:[#allocation5 + $0x5b0] sm:$0xf0] }
 0x16c   :  { %v4769_v19 = vld [vmem:[#allocation5 + $0x664] sm:$0xf]  ;;  %v4008_v20 = vld [vmem:[#allocation5 + $0x670] sm:$0xf0] }
 0x16d   :  { %1931 = vmatpush.bf16.msra.mxu0 %v3275_v14  ;;  %1944 = vmatpush.bf16.msra.mxu1 %v3403_v15  ;;  %v3320_v14 = vld [vmem:[#allocation5 + $0x110] sm:$0xf0]  ;;  %v3467_v15 = vor.u32 %v4633_v58, %v3464_v59  ;;  %v4171_v59 = vor.u32 %v4809_v52, %v4168_v53  ;;  %v4011_v27 = vor.u32 %v4769_v19, %v4008_v20  ;;  %v4797_v24 = vld [vmem:[#allocation5 + $0x744] sm:$0xf] }
 0x16e   :  { %1957 = vmatpush.bf16.msra.mxu2 %v3531_v18  ;;  %1970 = vmatpush.bf16.msra.mxu3 %v3659_v10  ;;  %v4661_v18 = vld [vmem:[#allocation5 + $0x304] sm:$0xf]  ;;  %v3576_v10 = vld [vmem:[#allocation5 + $0x310] sm:$0xf0]  ;;  %v3323_v25 = vor.u32 %v4597_v13, %v3320_v14  ;;  %v3771_v13 = vor.u32 %v4709_v56, %v3768_v57  ;;  %v3899_v14 = vor.u32 %v4741_v3, %v3896_v5  ;;  %v3438_v3 = vld [vmem:[#allocation5 + $0x1e8] sm:$0xf] }
 0x16f   :  { %v3579_v30 = vor.u32 %v4661_v18, %v3576_v10  ;;  %v4737_v18 = vld [vmem:[#allocation5 + $0x564] sm:$0xf]  ;;  %v3880_v10 = vld [vmem:[#allocation5 + $0x570] sm:$0xf0]  ;;  %v4628_v5 = vld [vmem:[#allocation5 + $0x1f4] sm:$0xf0] }
 0x170   :  { %v4120_v34 = vld [vmem:[#allocation5 + $0x750] sm:$0xf0]  ;;  %v4789_v56 = vld [vmem:[#allocation5 + $0x704] sm:$0xf] }
 0x171   :  { %1932 = vmatpush.bf16.msra.mxu0 %v3259_v23  ;;  %1945 = vmatpush.bf16.msra.mxu1 %v3387_v12  ;;  %v4785_v23 = vld [vmem:[#allocation5 + $0x6e4] sm:$0xf]  ;;  %v3195_v12 = vor.u32 %v4565_v0, %v3192_v4  ;;  %v4152_v4 = vld [vmem:[#allocation5 + $0x790] sm:$0xf0] }
 0x172   :  { %1958 = vmatpush.bf16.msra.mxu2 %v3515_v26  ;;  %1971 = vmatpush.bf16.msra.mxu3 %v3643_v32  ;;  %v4072_v26 = vld [vmem:[#allocation5 + $0x6f0] sm:$0xf0]  ;;  %v3947_v32 = vor.u32 %v4753_v21, %v3944_v22  ;;  %v4773_v0 = vld [vmem:[#allocation5 + $0x684] sm:$0xf] }
 0x173   :  { %1885 = vmatmul.bf16.vlgmr.msrb.gmra.mxu0 %v5448_v9  ;;  %1898 = vmatmul.bf16.vlgmr.msrb.gmra.mxu1 %v5450_v40  ;;  %v4075_v35 = vor.u32 %v4785_v23, %v4072_v26  ;;  %v4801_v21 = vld [vmem:[#allocation5 + $0x764] sm:$0xf]  ;;  %v4136_v22 = vld [vmem:[#allocation5 + $0x770] sm:$0xf0] }
 0x174   :  { %1911 = vmatmul.bf16.vlgmr.msrb.gmra.mxu2 %v5452_v11  ;;  %1924 = vmatmul.bf16.vlgmr.msrb.gmra.mxu3 %v5454_v6  ;;  %v3736_v26 = vld [vmem:[#allocation5 + $0x450] sm:$0xf0]  ;;  %v4139_v28 = vor.u32 %v4801_v21, %v4136_v22  ;;  %v3422_v21 = vld [vmem:[#allocation5 + $0x1c8] sm:$0xf]  ;;  %v4624_v22 = vld [vmem:[#allocation5 + $0x1d4] sm:$0xf0] }
 0x175   :  { %1933 = vmatpush.bf16.msra.mxu0 %v3243_v7  ;;  %1946 = vmatpush.bf16.msra.mxu1 %v3371_v39  ;;  %v4781_v7 = vld [vmem:[#allocation5 + $0x6c4] sm:$0xf]  ;;  %v4056_v39 = vld [vmem:[#allocation5 + $0x6d0] sm:$0xf0] }
 0x176   :  { %1959 = vmatpush.bf16.msra.mxu2 %v3499_v41  ;;  %1972 = vmatpush.bf16.msra.mxu3 %v3627_v33  ;;  %v4813_v41 = vld [vmem:[#allocation5 + $0x7c4] sm:$0xf]  ;;  %v3931_v33 = vor.u32 %v4749_v37, %v3928_v38  ;;  %v4059_v48 = vor.u32 %v4781_v7, %v4056_v39  ;;  %v3720_v38 = vld [vmem:[#allocation5 + $0x430] sm:$0xf0]  ;;  %v4123_v39 = vor.u32 %v4797_v24, %v4120_v34  ;;  %v3406_v24 = vld [vmem:[#allocation5 + $0x1a8] sm:$0xf] }
 0x177   :  { %v4187_v62 = vor.u32 %v4813_v41, %v4184_v42  ;;  %v4697_v37 = vld [vmem:[#allocation5 + $0x424] sm:$0xf]  ;;  %v3848_v42 = vld [vmem:[#allocation5 + $0x530] sm:$0xf0]  ;;  %v4620_v34 = vld [vmem:[#allocation5 + $0x1b4] sm:$0xf0] }
 0x178   :  { %v4729_v41 = vld [vmem:[#allocation5 + $0x524] sm:$0xf]  ;;  %v4088_v57 = vld [vmem:[#allocation5 + $0x710] sm:$0xf0] }
 0x179   :  { %1934 = vmatpush.bf16.msra.mxu0 %v3227_v63  ;;  %1947 = vmatpush.bf16.msra.mxu1 %v3355_v51  ;;  %v4777_v63 = vld [vmem:[#allocation5 + $0x6a4] sm:$0xf]  ;;  %v4040_v51 = vld [vmem:[#allocation5 + $0x6b0] sm:$0xf0] }
 0x17a   :  { %1960 = vmatpush.bf16.msra.mxu2 %v3483_v54  ;;  %1973 = vmatpush.bf16.msra.mxu3 %v3611_v55  ;;  %v3787_v54 = vor.u32 %v4713_v61, %v3784_v47  ;;  %v3915_v55 = vor.u32 %v4745_v49, %v3912_v50  ;;  %v4043_v58 = vor.u32 %v4777_v63, %v4040_v51  ;;  %v4793_v61 = vld [vmem:[#allocation5 + $0x724] sm:$0xf]  ;;  %v4104_v47 = vld [vmem:[#allocation5 + $0x730] sm:$0xf0] }
 0x17b   :  { %v3851_v49 = vor.u32 %v4729_v41, %v3848_v42  ;;  %v3704_v50 = vld [vmem:[#allocation5 + $0x410] sm:$0xf0]  ;;  %v4725_v63 = vld [vmem:[#allocation5 + $0x504] sm:$0xf]  ;;  %v4107_v53 = vor.u32 %v4793_v61, %v4104_v47  ;;  %v3262_v41 = vld [vmem:[#allocation5 + $0x88] sm:$0xf] }
 0x17c   :  { %v3832_v51 = vld [vmem:[#allocation5 + $0x510] sm:$0xf0]  ;;  %v4584_v42 = vld [vmem:[#allocation5 + $0x94] sm:$0xf0]  ;;  %v3390_v61 = vld [vmem:[#allocation5 + $0x188] sm:$0xf] }
 0x17d   :  { %1935 = vmatpush.bf16.msra.mxu0 %v3211_v1  ;;  %1948 = vmatpush.bf16.msra.mxu1 %v3339_v2  ;;  %v4024_v1 = vld [vmem:[#allocation5 + $0x690] sm:$0xf0]  ;;  %v4805_v2 = vld [vmem:[#allocation5 + $0x784] sm:$0xf]  ;;  %v4616_v47 = vld [vmem:[#allocation5 + $0x194] sm:$0xf0] }
 0x17e   :  { %1961 = vmatpush.bf16.msra.mxu2 %v3467_v15  ;;  %1974 = vmatpush.bf16.msra.mxu3 %v3595_v16  ;;  %v4705_v15 = vld [vmem:[#allocation5 + $0x464] sm:$0xf]  ;;  %v3752_v16 = vld [vmem:[#allocation5 + $0x470] sm:$0xf0]  ;;  %v4027_v8 = vor.u32 %v4773_v0, %v4024_v1  ;;  %v4155_v17 = vor.u32 %v4805_v2, %v4152_v4  ;;  %v3566_v0 = vld [vmem:[#allocation5 + $0x2e8] sm:$0xf]  ;;  %v3835_v2 = vor.u32 %v4725_v63, %v3832_v51 }
 0x17f   :  { %v3755_v23 = vor.u32 %v4705_v15, %v3752_v16  ;;  %v4660_v4 = vld [vmem:[#allocation5 + $0x2f4] sm:$0xf0]  ;;  %v4091_v16 = vor.u32 %v4789_v56, %v4088_v57  ;;  %v3263_v63 = vor.u32 %v4584_v42, %v3262_v41  ;;  %v3391_v51 = vor.u32 %v4616_v47, %v3390_v61  ;;  %v3374_v56 = vld [vmem:[#allocation5 + $0x168] sm:$0xf] }
 0x180   :  { %v3567_v19 = vor.u32 %v4660_v4, %v3566_v0  ;;  %v4612_v57 = vld [vmem:[#allocation5 + $0x174] sm:$0xf0]  ;;  %v3582_v41 = vld [vmem:[#allocation5 + $0x308] sm:$0xf] }
 0x181   :  { %1936 = vmatpush.bf16.msra.mxu0 %v3195_v12  ;;  %1949 = vmatpush.bf16.msra.mxu1 %v3323_v25  ;;  %v3883_v12 = vor.u32 %v4737_v18, %v3880_v10  ;;  %v4701_v25 = vld [vmem:[#allocation5 + $0x444] sm:$0xf]  ;;  %v3294_v18 = vld [vmem:[#allocation5 + $0xc8] sm:$0xf]  ;;  %v4592_v10 = vld [vmem:[#allocation5 + $0xd4] sm:$0xf0] }
 0x182   :  { %1962 = vmatpush.bf16.msra.mxu2 %v3451_v29  ;;  %1975 = vmatpush.bf16.msra.mxu3 %v3579_v30  ;;  %v4733_v29 = vld [vmem:[#allocation5 + $0x544] sm:$0xf]  ;;  %v3864_v30 = vld [vmem:[#allocation5 + $0x550] sm:$0xf0]  ;;  %v4576_v4 = vld [vmem:[#allocation5 + $0x54] sm:$0xf0] }
 0x183   :  { %v4664_v42 = vld [vmem:[#allocation5 + $0x314] sm:$0xf0]  ;;  %v3950_v61 = vld [vmem:[#allocation5 + $0x5e8] sm:$0xf] }
 0x184   :  { %1937 = vmatmul.bf16.vlgmr.msra.gmra.mxu0 %v5428_v44  ;;  %1950 = vmatmul.bf16.vlgmr.msra.gmra.mxu1 %v5430_v45  ;;  %v4756_v47 = vld [vmem:[#allocation5 + $0x5f4] sm:$0xf0] }
 0x185   :  { %1981 = vmatpush.bf16.msrb.mxu0 %v3819_v31  ;;  %1994 = vmatpush.bf16.msrb.mxu1 %v3947_v32  ;;  %v4765_v31 = vld [vmem:[#allocation5 + $0x644] sm:$0xf]  ;;  %v3992_v32 = vld [vmem:[#allocation5 + $0x650] sm:$0xf0] }
 0x186   :  { %2007 = vmatpush.bf16.msrb.mxu2 %v4075_v35  ;;  %2020 = vmatpush.bf16.msrb.mxu3 %v4203_v36  ;;  %v3739_v35 = vor.u32 %v4701_v25, %v3736_v26  ;;  %v3867_v36 = vor.u32 %v4733_v29, %v3864_v30  ;;  %v3995_v7 = vor.u32 %v4765_v31, %v3992_v32  ;;  %v3678_v25 = vld [vmem:[#allocation5 + $0x3c8] sm:$0xf]  ;;  %v4688_v26 = vld [vmem:[#allocation5 + $0x3d4] sm:$0xf0] }
 0x187   :  { %1963 = vmatmul.bf16.vlgmr.msra.gmra.mxu2 %v5432_v46  ;;  %1976 = vmatmul.bf16.vlgmr.msra.gmra.mxu3 %v5434_v60  ;;  %v3278_v29 = vld [vmem:[#allocation5 + $0xa8] sm:$0xf]  ;;  %v4588_v30 = vld [vmem:[#allocation5 + $0xb4] sm:$0xf0]  ;;  %v3679_v32 = vor.u32 %v4688_v26, %v3678_v25 }
 0x188   :  { %v3342_v25 = vld [vmem:[#allocation5 + $0x128] sm:$0xf]  ;;  %v4604_v26 = vld [vmem:[#allocation5 + $0x134] sm:$0xf0] }
 0x189   :  { %1982 = vmatpush.bf16.msrb.mxu0 %v3803_v43  ;;  %1995 = vmatpush.bf16.msrb.mxu1 %v3931_v33  ;;  %v4761_v43 = vld [vmem:[#allocation5 + $0x624] sm:$0xf]  ;;  %v3976_v33 = vld [vmem:[#allocation5 + $0x630] sm:$0xf0] }
 0x18a   :  { %2008 = vmatpush.bf16.msrb.mxu2 %v4059_v48  ;;  %2021 = vmatpush.bf16.msrb.mxu3 %v4187_v62  ;;  %v4693_v48 = vld [vmem:[#allocation5 + $0x404] sm:$0xf]  ;;  %v3723_v62 = vor.u32 %v4697_v37, %v3720_v38  ;;  %v3979_v52 = vor.u32 %v4761_v43, %v3976_v33  ;;  %v3662_v37 = vld [vmem:[#allocation5 + $0x3a8] sm:$0xf]  ;;  %v4684_v38 = vld [vmem:[#allocation5 + $0x3b4] sm:$0xf0] }
 0x18b   :  { %v3707_v1 = vor.u32 %v4693_v48, %v3704_v50  ;;  %v3663_v33 = vor.u32 %v4684_v38, %v3662_v37  ;;  %v3518_v48 = vld [vmem:[#allocation5 + $0x288] sm:$0xf]  ;;  %v4680_v50 = vld [vmem:[#allocation5 + $0x394] sm:$0xf0] }
 0x18d   :  { %1983 = vmatpush.bf16.msrb.mxu0 %v3787_v54  ;;  %1996 = vmatpush.bf16.msrb.mxu1 %v3915_v55  ;;  %v4757_v54 = vld [vmem:[#allocation5 + $0x604] sm:$0xf]  ;;  %v3960_v55 = vld [vmem:[#allocation5 + $0x610] sm:$0xf0] }
 0x18e   :  { %2009 = vmatpush.bf16.msrb.mxu2 %v4043_v58  ;;  %2022 = vmatpush.bf16.msrb.mxu3 %v4171_v59  ;;  %v3310_v58 = vld [vmem:[#allocation5 + $0xe8] sm:$0xf]  ;;  %v4596_v59 = vld [vmem:[#allocation5 + $0xf4] sm:$0xf0]  ;;  %v3963_v15 = vor.u32 %v4757_v54, %v3960_v55 }
 0x191   :  { %1984 = vmatpush.bf16.msrb.mxu0 %v3771_v13  ;;  %1997 = vmatpush.bf16.msrb.mxu1 %v3899_v14  ;;  %v3694_v13 = vld [vmem:[#allocation5 + $0x3e8] sm:$0xf]  ;;  %v4692_v14 = vld [vmem:[#allocation5 + $0x3f4] sm:$0xf0] }
 0x192   :  { %2010 = vmatpush.bf16.msrb.mxu2 %v4027_v8  ;;  %2023 = vmatpush.bf16.msrb.mxu3 %v4155_v17  ;;  %v3311_v8 = vor.u32 %v4596_v59, %v3310_v58  ;;  %v3439_v17 = vor.u32 %v4628_v5, %v3438_v3  ;;  %v3695_v20 = vor.u32 %v4692_v14, %v3694_v13  ;;  %v3502_v58 = vld [vmem:[#allocation5 + $0x268] sm:$0xf]  ;;  %v4644_v59 = vld [vmem:[#allocation5 + $0x274] sm:$0xf0] }
 0x193   :  { %v3630_v3 = vld [vmem:[#allocation5 + $0x368] sm:$0xf]  ;;  %v4676_v5 = vld [vmem:[#allocation5 + $0x374] sm:$0xf0]  ;;  %v3503_v13 = vor.u32 %v4644_v59, %v3502_v58 }
 0x194   :  { %v3631_v14 = vor.u32 %v4676_v5, %v3630_v3  ;;  %v3934_v3 = vld [vmem:[#allocation5 + $0x5c8] sm:$0xf]  ;;  %v4752_v5 = vld [vmem:[#allocation5 + $0x5d4] sm:$0xf0] }
 0x195   :  { %1985 = vmatpush.bf16.msrb.mxu0 %v3755_v23  ;;  %1998 = vmatpush.bf16.msrb.mxu1 %v3883_v12  ;;  %v3550_v23 = vld [vmem:[#allocation5 + $0x2c8] sm:$0xf]  ;;  %v4656_v12 = vld [vmem:[#allocation5 + $0x2d4] sm:$0xf0] }
 0x196   :  { %2011 = vmatpush.bf16.msrb.mxu2 %v4011_v27  ;;  %2024 = vmatpush.bf16.msrb.mxu3 %v4139_v28  ;;  %v3295_v27 = vor.u32 %v4592_v10, %v3294_v18  ;;  %v3423_v28 = vor.u32 %v4624_v22, %v3422_v21  ;;  %v3551_v31 = vor.u32 %v4656_v12, %v3550_v23  ;;  %v3614_v18 = vld [vmem:[#allocation5 + $0x348] sm:$0xf]  ;;  %v4672_v10 = vld [vmem:[#allocation5 + $0x354] sm:$0xf0] }
 0x197   :  { %v3214_v21 = vld [vmem:[#allocation5 + $0x28] sm:$0xf]  ;;  %v4572_v22 = vld [vmem:[#allocation5 + $0x34] sm:$0xf0]  ;;  %v3615_v12 = vor.u32 %v4672_v10, %v3614_v18 }
 0x198   :  { %v3918_v18 = vld [vmem:[#allocation5 + $0x5a8] sm:$0xf]  ;;  %v4748_v10 = vld [vmem:[#allocation5 + $0x5b4] sm:$0xf0] }
 0x199   :  { %1986 = vmatpush.bf16.msrb.mxu0 %v3739_v35  ;;  %1999 = vmatpush.bf16.msrb.mxu1 %v3867_v36  ;;  %v3534_v35 = vld [vmem:[#allocation5 + $0x2a8] sm:$0xf]  ;;  %v4652_v36 = vld [vmem:[#allocation5 + $0x2b4] sm:$0xf0] }
 0x19a   :  { %2012 = vmatpush.bf16.msrb.mxu2 %v3995_v7  ;;  %2025 = vmatpush.bf16.msrb.mxu3 %v4123_v39  ;;  %v3279_v7 = vor.u32 %v4588_v30, %v3278_v29  ;;  %v3407_v39 = vor.u32 %v4620_v34, %v3406_v24  ;;  %v3535_v43 = vor.u32 %v4652_v36, %v3534_v35  ;;  %v3598_v29 = vld [vmem:[#allocation5 + $0x328] sm:$0xf]  ;;  %v4668_v30 = vld [vmem:[#allocation5 + $0x334] sm:$0xf0] }
 0x19b   :  { %v3343_v24 = vor.u32 %v4604_v26, %v3342_v25  ;;  %v4568_v34 = vld [vmem:[#allocation5 + $0x14] sm:$0xf0]  ;;  %v3326_v35 = vld [vmem:[#allocation5 + $0x108] sm:$0xf]  ;;  %v3599_v38 = vor.u32 %v4668_v30, %v3598_v29 }
 0x19c   :  { %v4600_v36 = vld [vmem:[#allocation5 + $0x114] sm:$0xf0]  ;;  %v3774_v25 = vld [vmem:[#allocation5 + $0x488] sm:$0xf] }
 0x19d   :  { %1987 = vmatpush.bf16.msrb.mxu0 %v3723_v62  ;;  %2000 = vmatpush.bf16.msrb.mxu1 %v3851_v49  ;;  %v4648_v62 = vld [vmem:[#allocation5 + $0x294] sm:$0xf0]  ;;  %v3646_v49 = vld [vmem:[#allocation5 + $0x388] sm:$0xf] }
 0x19e   :  { %2013 = vmatpush.bf16.msrb.mxu2 %v3979_v52  ;;  %2026 = vmatpush.bf16.msrb.mxu3 %v4107_v53  ;;  %v3246_v52 = vld [vmem:[#allocation5 + $0x68] sm:$0xf]  ;;  %v4580_v53 = vld [vmem:[#allocation5 + $0x74] sm:$0xf0]  ;;  %v3519_v54 = vor.u32 %v4648_v62, %v3518_v48  ;;  %v3647_v55 = vor.u32 %v4680_v50, %v3646_v49  ;;  %v3327_v49 = vor.u32 %v4600_v36, %v3326_v35 }
 0x19f   :  { %v3247_v0 = vor.u32 %v4580_v53, %v3246_v52  ;;  %v4078_v48 = vld [vmem:[#allocation5 + $0x6e8] sm:$0xf]  ;;  %v4788_v50 = vld [vmem:[#allocation5 + $0x6f4] sm:$0xf0]  ;;  %v3583_v53 = vor.u32 %v4664_v42, %v3582_v41 }
 0x1a0   :  { %v4079_v58 = vor.u32 %v4788_v50, %v4078_v48  ;;  %v4712_v26 = vld [vmem:[#allocation5 + $0x494] sm:$0xf0]  ;;  %v3902_v29 = vld [vmem:[#allocation5 + $0x588] sm:$0xf] }
 0x1a1   :  { %1988 = vmatpush.bf16.msrb.mxu0 %v3707_v1  ;;  %2001 = vmatpush.bf16.msrb.mxu1 %v3835_v2  ;;  %v3375_v1 = vor.u32 %v4612_v57, %v3374_v56  ;;  %v3230_v2 = vld [vmem:[#allocation5 + $0x48] sm:$0xf]  ;;  %v4720_v57 = vld [vmem:[#allocation5 + $0x4d4] sm:$0xf0]  ;;  %v3775_v35 = vor.u32 %v4712_v26, %v3774_v25 }
 0x1a2   :  { %2014 = vmatpush.bf16.msrb.mxu2 %v3963_v15  ;;  %2027 = vmatpush.bf16.msrb.mxu3 %v4091_v16  ;;  %v3358_v15 = vld [vmem:[#allocation5 + $0x148] sm:$0xf]  ;;  %v4608_v16 = vld [vmem:[#allocation5 + $0x154] sm:$0xf0] }
 0x1a3   :  { %v3806_v56 = vld [vmem:[#allocation5 + $0x4c8] sm:$0xf]  ;;  %v4744_v30 = vld [vmem:[#allocation5 + $0x594] sm:$0xf0] }
 0x1a4   :  { %1989 = vmatmul.bf16.vlgmr.msrb.gmra.mxu0 %v5448_v9  ;;  %2002 = vmatmul.bf16.vlgmr.msrb.gmra.mxu1 %v5450_v40  ;;  %v3903_v36 = vor.u32 %v4744_v30, %v3902_v29  ;;  %v3886_v41 = vld [vmem:[#allocation5 + $0x568] sm:$0xf]  ;;  %v4740_v42 = vld [vmem:[#allocation5 + $0x574] sm:$0xf0]  ;;  %v4626_v29 = vld [vmem:[#allocation5 + $0x1ec] sm:$0xf] }
 0x1a5   :  { %2033 = vmatpush.bf16.msra.mxu0 %v3311_v8  ;;  %2046 = vmatpush.bf16.msra.mxu1 %v3439_v17  ;;  %v3486_v8 = vld [vmem:[#allocation5 + $0x248] sm:$0xf]  ;;  %v4640_v17 = vld [vmem:[#allocation5 + $0x254] sm:$0xf0]  ;;  %v3440_v30 = vld [vmem:[#allocation5 + $0x1f8] sm:$0xf0] }
 0x1a6   :  { %2059 = vmatpush.bf16.msra.mxu2 %v3567_v19  ;;  %2072 = vmatpush.bf16.msra.mxu3 %v3695_v20  ;;  %v3231_v19 = vor.u32 %v4576_v4, %v3230_v2  ;;  %v3359_v20 = vor.u32 %v4608_v16, %v3358_v15  ;;  %v3487_v23 = vor.u32 %v4640_v17, %v3486_v8  ;;  %v4190_v2 = vld [vmem:[#allocation5 + $0x7c8] sm:$0xf]  ;;  %v4816_v4 = vld [vmem:[#allocation5 + $0x7d4] sm:$0xf0] }
 0x1a7   :  { %2015 = vmatmul.bf16.vlgmr.msrb.gmra.mxu2 %v5452_v11  ;;  %2028 = vmatmul.bf16.vlgmr.msrb.gmra.mxu3 %v5454_v6  ;;  %v3790_v15 = vld [vmem:[#allocation5 + $0x4a8] sm:$0xf]  ;;  %v4716_v16 = vld [vmem:[#allocation5 + $0x4b4] sm:$0xf0]  ;;  %v4191_v17 = vor.u32 %v4816_v4, %v4190_v2 }
 0x1a8   :  { %v4704_v50 = vld [vmem:[#allocation5 + $0x454] sm:$0xf0]  ;;  %v3854_v2 = vld [vmem:[#allocation5 + $0x528] sm:$0xf] }
 0x1a9   :  { %2034 = vmatpush.bf16.msra.mxu0 %v3295_v27  ;;  %2047 = vmatpush.bf16.msra.mxu1 %v3423_v28  ;;  %v3470_v27 = vld [vmem:[#allocation5 + $0x228] sm:$0xf]  ;;  %v4636_v28 = vld [vmem:[#allocation5 + $0x234] sm:$0xf0] }
 0x1aa   :  { %2060 = vmatpush.bf16.msra.mxu2 %v3551_v31  ;;  %2073 = vmatpush.bf16.msra.mxu3 %v3679_v32  ;;  %v3198_v31 = vld [vmem:[#allocation5 + $0x8] sm:$0xf]  ;;  %v3215_v32 = vor.u32 %v4572_v22, %v3214_v21  ;;  %v3471_v37 = vor.u32 %v4636_v28, %v3470_v27  ;;  %v4812_v22 = vld [vmem:[#allocation5 + $0x7b4] sm:$0xf0] }
 0x1ab   :  { %v3199_v62 = vor.u32 %v4568_v34, %v3198_v31  ;;  %v4174_v21 = vld [vmem:[#allocation5 + $0x7a8] sm:$0xf]  ;;  %v4808_v34 = vld [vmem:[#allocation5 + $0x794] sm:$0xf0] }
 0x1ac   :  { %v4175_v28 = vor.u32 %v4812_v22, %v4174_v21  ;;  %v4030_v31 = vld [vmem:[#allocation5 + $0x688] sm:$0xf]  ;;  %v4732_v4 = vld [vmem:[#allocation5 + $0x534] sm:$0xf0] }
 0x1ad   :  { %2035 = vmatpush.bf16.msra.mxu0 %v3279_v7  ;;  %2048 = vmatpush.bf16.msra.mxu1 %v3407_v39  ;;  %v3454_v7 = vld [vmem:[#allocation5 + $0x208] sm:$0xf]  ;;  %v4632_v39 = vld [vmem:[#allocation5 + $0x214] sm:$0xf0] }
 0x1ae   :  { %2061 = vmatpush.bf16.msra.mxu2 %v3535_v43  ;;  %2074 = vmatpush.bf16.msra.mxu3 %v3663_v33  ;;  %v3822_v43 = vld [vmem:[#allocation5 + $0x4e8] sm:$0xf]  ;;  %v4724_v33 = vld [vmem:[#allocation5 + $0x4f4] sm:$0xf0]  ;;  %v3455_v52 = vor.u32 %v4632_v39, %v3454_v7 }
 0x1af   :  { %v4094_v25 = vld [vmem:[#allocation5 + $0x708] sm:$0xf]  ;;  %v4792_v26 = vld [vmem:[#allocation5 + $0x714] sm:$0xf0] }
 0x1b1   :  { %2036 = vmatpush.bf16.msra.mxu0 %v3263_v63  ;;  %2049 = vmatpush.bf16.msra.mxu1 %v3391_v51  ;;  %v4206_v63 = vld [vmem:[#allocation5 + $0x7e8] sm:$0xf]  ;;  %v4820_v51 = vld [vmem:[#allocation5 + $0x7f4] sm:$0xf0] }
 0x1b2   :  { %2062 = vmatpush.bf16.msra.mxu2 %v3519_v54  ;;  %2075 = vmatpush.bf16.msra.mxu3 %v3647_v55  ;;  %v3823_v54 = vor.u32 %v4724_v33, %v3822_v43  ;;  %v3951_v55 = vor.u32 %v4756_v47, %v3950_v61  ;;  %v4207_v59 = vor.u32 %v4820_v51, %v4206_v63  ;;  %v4014_v43 = vld [vmem:[#allocation5 + $0x668] sm:$0xf]  ;;  %v4772_v33 = vld [vmem:[#allocation5 + $0x674] sm:$0xf0] }
 0x1b3   :  { %v4142_v61 = vld [vmem:[#allocation5 + $0x768] sm:$0xf]  ;;  %v4804_v47 = vld [vmem:[#allocation5 + $0x774] sm:$0xf0]  ;;  %v4015_v63 = vor.u32 %v4772_v33, %v4014_v43  ;;  %v4622_v43 = vld [vmem:[#allocation5 + $0x1cc] sm:$0xf] }
 0x1b4   :  { %v4143_v51 = vor.u32 %v4804_v47, %v4142_v61  ;;  %v3424_v47 = vld [vmem:[#allocation5 + $0x1d8] sm:$0xf0] }
 0x1b5   :  { %2037 = vmatpush.bf16.msra.mxu0 %v3247_v0  ;;  %2050 = vmatpush.bf16.msra.mxu1 %v3375_v1  ;;  %v4062_v0 = vld [vmem:[#allocation5 + $0x6c8] sm:$0xf]  ;;  %v4784_v1 = vld [vmem:[#allocation5 + $0x6d4] sm:$0xf0] }
 0x1b6   :  { %2063 = vmatpush.bf16.msra.mxu2 %v3503_v13  ;;  %2076 = vmatpush.bf16.msra.mxu3 %v3631_v14  ;;  %v3807_v13 = vor.u32 %v4720_v57, %v3806_v56  ;;  %v3935_v14 = vor.u32 %v4752_v5, %v3934_v3  ;;  %v4063_v8 = vor.u32 %v4784_v1, %v4062_v0  ;;  %v4126_v56 = vld [vmem:[#allocation5 + $0x748] sm:$0xf]  ;;  %v4800_v57 = vld [vmem:[#allocation5 + $0x754] sm:$0xf0] }
 0x1b7   :  { %v3726_v3 = vld [vmem:[#allocation5 + $0x428] sm:$0xf]  ;;  %v4700_v5 = vld [vmem:[#allocation5 + $0x434] sm:$0xf0]  ;;  %v4127_v1 = vor.u32 %v4800_v57, %v4126_v56 }
 0x1b9   :  { %2038 = vmatpush.bf16.msra.mxu0 %v3231_v19  ;;  %2051 = vmatpush.bf16.msra.mxu1 %v3359_v20  ;;  %v4046_v19 = vld [vmem:[#allocation5 + $0x6a8] sm:$0xf]  ;;  %v4780_v20 = vld [vmem:[#allocation5 + $0x6b4] sm:$0xf0] }
 0x1ba   :  { %2064 = vmatpush.bf16.msra.mxu2 %v3487_v23  ;;  %2077 = vmatpush.bf16.msra.mxu3 %v3615_v12  ;;  %v3791_v23 = vor.u32 %v4716_v16, %v3790_v15  ;;  %v3919_v12 = vor.u32 %v4748_v10, %v3918_v18  ;;  %v4047_v27 = vor.u32 %v4780_v20, %v4046_v19  ;;  %v4110_v15 = vld [vmem:[#allocation5 + $0x728] sm:$0xf]  ;;  %v4796_v16 = vld [vmem:[#allocation5 + $0x734] sm:$0xf0] }
 0x1bb   :  { %v3855_v18 = vor.u32 %v4732_v4, %v3854_v2  ;;  %v4696_v10 = vld [vmem:[#allocation5 + $0x414] sm:$0xf0]  ;;  %v3838_v19 = vld [vmem:[#allocation5 + $0x508] sm:$0xf]  ;;  %v4111_v22 = vor.u32 %v4796_v16, %v4110_v15  ;;  %v4582_v16 = vld [vmem:[#allocation5 + $0x8c] sm:$0xf] }
 0x1bc   :  { %v4728_v20 = vld [vmem:[#allocation5 + $0x514] sm:$0xf0] }
 0x1bd   :  { %2039 = vmatpush.bf16.msra.mxu0 %v3215_v32  ;;  %2052 = vmatpush.bf16.msra.mxu1 %v3343_v24  ;;  %v4776_v32 = vld [vmem:[#allocation5 + $0x694] sm:$0xf0]  ;;  %v4158_v24 = vld [vmem:[#allocation5 + $0x788] sm:$0xf] }
 0x1be   :  { %2065 = vmatpush.bf16.msra.mxu2 %v3471_v37  ;;  %2078 = vmatpush.bf16.msra.mxu3 %v3599_v38  ;;  %v3758_v37 = vld [vmem:[#allocation5 + $0x468] sm:$0xf]  ;;  %v4708_v38 = vld [vmem:[#allocation5 + $0x474] sm:$0xf0]  ;;  %v4031_v7 = vor.u32 %v4776_v32, %v4030_v31  ;;  %v4159_v39 = vor.u32 %v4808_v34, %v4158_v24  ;;  %v4658_v31 = vld [vmem:[#allocation5 + $0x2ec] sm:$0xf]  ;;  %v3839_v24 = vor.u32 %v4728_v20, %v3838_v19 }
 0x1bf   :  { %v3759_v48 = vor.u32 %v4708_v38, %v3758_v37  ;;  %v3568_v34 = vld [vmem:[#allocation5 + $0x2f8] sm:$0xf0]  ;;  %v4095_v38 = vor.u32 %v4792_v26, %v4094_v25  ;;  %v4646_v20 = vld [vmem:[#allocation5 + $0x28c] sm:$0xf] }
 0x1c0   :  { %v3571_v33 = vor.u32 %v4658_v31, %v3568_v34  ;;  %v3392_v19 = vld [vmem:[#allocation5 + $0x198] sm:$0xf0]  ;;  %v4610_v31 = vld [vmem:[#allocation5 + $0x16c] sm:$0xf] }
 0x1c1   :  { %2040 = vmatpush.bf16.msra.mxu0 %v3199_v62  ;;  %2053 = vmatpush.bf16.msra.mxu1 %v3327_v49  ;;  %v3887_v62 = vor.u32 %v4740_v42, %v3886_v41  ;;  %v3742_v49 = vld [vmem:[#allocation5 + $0x448] sm:$0xf]  ;;  %v4590_v41 = vld [vmem:[#allocation5 + $0xcc] sm:$0xf]  ;;  %v3296_v42 = vld [vmem:[#allocation5 + $0xd8] sm:$0xf0] }
 0x1c2   :  { %2066 = vmatpush.bf16.msra.mxu2 %v3455_v52  ;;  %2079 = vmatpush.bf16.msra.mxu3 %v3583_v53  ;;  %v3870_v52 = vld [vmem:[#allocation5 + $0x548] sm:$0xf]  ;;  %v4736_v53 = vld [vmem:[#allocation5 + $0x554] sm:$0xf0] }
 0x1c4   :  { %2041 = vmatmul.bf16.vlgmr.msra.gmra.mxu0 %v5428_v44  ;;  %2054 = vmatmul.bf16.vlgmr.msra.gmra.mxu1 %v5430_v45 }
 0x1c5   :  { %2085 = vmatpush.bf16.msrb.mxu0 %v3823_v54  ;;  %2098 = vmatpush.bf16.msrb.mxu1 %v3951_v55  ;;  %v3998_v54 = vld [vmem:[#allocation5 + $0x648] sm:$0xf]  ;;  %v4768_v55 = vld [vmem:[#allocation5 + $0x654] sm:$0xf0] }
 0x1c6   :  { %2111 = vmatpush.bf16.msrb.mxu2 %v4079_v58  ;;  %2124 = vmatpush.bf16.msrb.mxu3 %v4207_v59  ;;  %v3743_v58 = vor.u32 %v4704_v50, %v3742_v49  ;;  %v3871_v59 = vor.u32 %v4736_v53, %v3870_v52  ;;  %v3999_v0 = vor.u32 %v4768_v55, %v3998_v54  ;;  %v3552_v49 = vld [vmem:[#allocation5 + $0x2d8] sm:$0xf0]  ;;  %v4686_v50 = vld [vmem:[#allocation5 + $0x3cc] sm:$0xf] }
 0x1c7   :  { %2067 = vmatmul.bf16.vlgmr.msra.gmra.mxu2 %v5432_v46  ;;  %2080 = vmatmul.bf16.vlgmr.msra.gmra.mxu3 %v5434_v60  ;;  %v3427_v52 = vor.u32 %v4622_v43, %v3424_v47  ;;  %v4586_v53 = vld [vmem:[#allocation5 + $0xac] sm:$0xf]  ;;  %v3280_v54 = vld [vmem:[#allocation5 + $0xb8] sm:$0xf0] }
 0x1c9   :  { %2086 = vmatpush.bf16.msrb.mxu0 %v3807_v13  ;;  %2099 = vmatpush.bf16.msrb.mxu1 %v3935_v14  ;;  %v3982_v13 = vld [vmem:[#allocation5 + $0x628] sm:$0xf]  ;;  %v4764_v14 = vld [vmem:[#allocation5 + $0x634] sm:$0xf0] }
 0x1ca   :  { %2112 = vmatpush.bf16.msrb.mxu2 %v4063_v8  ;;  %2125 = vmatpush.bf16.msrb.mxu3 %v4191_v17  ;;  %v3710_v8 = vld [vmem:[#allocation5 + $0x408] sm:$0xf]  ;;  %v3727_v17 = vor.u32 %v4700_v5, %v3726_v3  ;;  %v3983_v21 = vor.u32 %v4764_v14, %v3982_v13  ;;  %v4650_v3 = vld [vmem:[#allocation5 + $0x2ac] sm:$0xf]  ;;  %v3536_v5 = vld [vmem:[#allocation5 + $0x2b8] sm:$0xf0]  ;;  %v3283_v13 = vor.u32 %v4586_v53, %v3280_v54 }
 0x1cb   :  { %v3711_v32 = vor.u32 %v4696_v10, %v3710_v8  ;;  %v3264_v8 = vld [vmem:[#allocation5 + $0x98] sm:$0xf0]  ;;  %v4614_v10 = vld [vmem:[#allocation5 + $0x18c] sm:$0xf] }
 0x1cc   :  { %v3267_v25 = vor.u32 %v4582_v16, %v3264_v8  ;;  %v3395_v26 = vor.u32 %v4614_v10, %v3392_v19  ;;  %v4670_v53 = vld [vmem:[#allocation5 + $0x34c] sm:$0xf]  ;;  %v3616_v54 = vld [vmem:[#allocation5 + $0x358] sm:$0xf0] }
 0x1cd   :  { %2087 = vmatpush.bf16.msrb.mxu0 %v3791_v23  ;;  %2100 = vmatpush.bf16.msrb.mxu1 %v3919_v12  ;;  %v3966_v23 = vld [vmem:[#allocation5 + $0x608] sm:$0xf]  ;;  %v4760_v12 = vld [vmem:[#allocation5 + $0x614] sm:$0xf0] }
 0x1ce   :  { %2113 = vmatpush.bf16.msrb.mxu2 %v4047_v27  ;;  %2126 = vmatpush.bf16.msrb.mxu3 %v4175_v28  ;;  %v4594_v27 = vld [vmem:[#allocation5 + $0xec] sm:$0xf]  ;;  %v3312_v28 = vld [vmem:[#allocation5 + $0xf8] sm:$0xf0]  ;;  %v3967_v37 = vor.u32 %v4760_v12, %v3966_v23 }
 0x1cf   :  { %v4678_v23 = vld [vmem:[#allocation5 + $0x38c] sm:$0xf]  ;;  %v3648_v12 = vld [vmem:[#allocation5 + $0x398] sm:$0xf0] }
 0x1d1   :  { %2088 = vmatpush.bf16.msrb.mxu0 %v3775_v35  ;;  %2101 = vmatpush.bf16.msrb.mxu1 %v3903_v36  ;;  %v4690_v35 = vld [vmem:[#allocation5 + $0x3ec] sm:$0xf]  ;;  %v3696_v36 = vld [vmem:[#allocation5 + $0x3f8] sm:$0xf0] }
 0x1d2   :  { %2114 = vmatpush.bf16.msrb.mxu2 %v4031_v7  ;;  %2127 = vmatpush.bf16.msrb.mxu3 %v4159_v39  ;;  %v3315_v7 = vor.u32 %v4594_v27, %v3312_v28  ;;  %v3443_v39 = vor.u32 %v4626_v29, %v3440_v30  ;;  %v3699_v61 = vor.u32 %v4690_v35, %v3696_v36  ;;  %v4578_v27 = vld [vmem:[#allocation5 + $0x6c] sm:$0xf]  ;;  %v3248_v28 = vld [vmem:[#allocation5 + $0x78] sm:$0xf0] }
 0x1d3   :  { %v3651_v30 = vor.u32 %v4678_v23, %v3648_v12  ;;  %v3504_v36 = vld [vmem:[#allocation5 + $0x278] sm:$0xf0] }
 0x1d5   :  { %2089 = vmatpush.bf16.msrb.mxu0 %v3759_v48  ;;  %2102 = vmatpush.bf16.msrb.mxu1 %v3887_v62  ;;  %v4654_v48 = vld [vmem:[#allocation5 + $0x2cc] sm:$0xf]  ;;  %v5472_v62 = vld [vmem:[#allocation8] sm:$0xf] }
 0x1d6   :  { %2115 = vmatpush.bf16.msrb.mxu2 %v4015_v63  ;;  %2128 = vmatpush.bf16.msrb.mxu3 %v4143_v51  ;;  %v3680_v63 = vld [vmem:[#allocation5 + $0x3d8] sm:$0xf0]  ;;  %v3299_v51 = vor.u32 %v4590_v41, %v3296_v42  ;;  %v537_v55 = vperm.slane %v5472_v62, 0  ;;  %v3555_v56 = vor.u32 %v4654_v48, %v3552_v49  ;;  %v3251_v42 = vor.u32 %v4578_v27, %v3248_v28  ;;  %v4662_v27 = vld [vmem:[#allocation5 + $0x30c] sm:$0xf] }
 0x1d7   :  { %v3683_v57 = vor.u32 %v4686_v50, %v3680_v63  ;;  %v4606_v50 = vld [vmem:[#allocation5 + $0x14c] sm:$0xf]  ;;  %v3360_v63 = vld [vmem:[#allocation5 + $0x158] sm:$0xf0] }
 0x1d9   :  { %2090 = vmatpush.bf16.msrb.mxu0 %v3743_v58  ;;  %2103 = vmatpush.bf16.msrb.mxu1 %v3871_v59  ;;  %v4618_v58 = vld [vmem:[#allocation5 + $0x1ac] sm:$0xf]  ;;  %v3408_v59 = vld [vmem:[#allocation5 + $0x1b8] sm:$0xf0] }
 0x1da   :  { %2116 = vmatpush.bf16.msrb.mxu2 %v3999_v0  ;;  %2129 = vmatpush.bf16.msrb.mxu3 %v4127_v1  ;;  %v4682_v0 = vld [vmem:[#allocation5 + $0x3ac] sm:$0xf]  ;;  %v3664_v1 = vld [vmem:[#allocation5 + $0x3b8] sm:$0xf0]  ;;  %v3411_v14 = vor.u32 %v4618_v58, %v3408_v59 }
 0x1db   :  { %v3216_v58 = vld [vmem:[#allocation5 + $0x38] sm:$0xf0] }
 0x1dd   :  { %2091 = vmatpush.bf16.msrb.mxu0 %v3727_v17  ;;  %2104 = vmatpush.bf16.msrb.mxu1 %v3855_v18  ;;  %v3539_v17 = vor.u32 %v4650_v3, %v3536_v5  ;;  %v3667_v18 = vor.u32 %v4682_v0, %v3664_v1  ;;  %v3619_v3 = vor.u32 %v4670_v53, %v3616_v54  ;;  %v4602_v5 = vld [vmem:[#allocation5 + $0x12c] sm:$0xf]  ;;  %v3344_v0 = vld [vmem:[#allocation5 + $0x138] sm:$0xf0] }
 0x1de   :  { %2117 = vmatpush.bf16.msrb.mxu2 %v3983_v21  ;;  %2130 = vmatpush.bf16.msrb.mxu3 %v4111_v22  ;;  %v3520_v22 = vld [vmem:[#allocation5 + $0x298] sm:$0xf0]  ;;  %v4634_v1 = vld [vmem:[#allocation5 + $0x22c] sm:$0xf]  ;;  %v3347_v10 = vor.u32 %v4602_v5, %v3344_v0 }
 0x1df   :  { %v3523_v29 = vor.u32 %v4646_v20, %v3520_v22  ;;  %v3200_v20 = vld [vmem:[#allocation5 + $0x18] sm:$0xf0]  ;;  %v4750_v53 = vld [vmem:[#allocation5 + $0x5cc] sm:$0xf] }
 0x1e0   :  { %v1834_v2 = vpop.f32.mrf.mxu0  ;;  %v1847_v4 = vpop.f32.mrf.mxu1  ;;  %v3328_v22 = vld [vmem:[#allocation5 + $0x118] sm:$0xf0]  ;;  %v4714_v0 = vld [vmem:[#allocation5 + $0x4ac] sm:$0xf] }
 0x1e1   :  { %2092 = vmatpush.bf16.msrb.mxu0 %v3711_v32  ;;  %2105 = vmatpush.bf16.msrb.mxu1 %v3839_v24  ;;  %v1835_v15 = vadd.f32 %v1834_v2, %v537_v55  ;;  %v3376_v32 = vld [vmem:[#allocation5 + $0x178] sm:$0xf0]  ;;  %v4642_v24 = vld [vmem:[#allocation5 + $0x26c] sm:$0xf] }
 0x1e2   :  { %2118 = vmatpush.bf16.msrb.mxu2 %v3967_v37  ;;  %2131 = vmatpush.bf16.msrb.mxu3 %v4095_v38  ;;  %v4674_v37 = vld [vmem:[#allocation5 + $0x36c] sm:$0xf]  ;;  %v3632_v38 = vld [vmem:[#allocation5 + $0x378] sm:$0xf0]  ;;  %v3379_v43 = vor.u32 %v4610_v31, %v3376_v32  ;;  %v3507_v48 = vor.u32 %v4642_v24, %v3504_v36 }
 0x1e3   :  { %v1848_v21 = vadd.f32 %v1847_v4, %v1835_v15  ;;  %v3635_v49 = vor.u32 %v4674_v37, %v3632_v38  ;;  %v3600_v15 = vld [vmem:[#allocation5 + $0x338] sm:$0xf0]  ;;  %v4754_v32 = vld [vmem:[#allocation5 + $0x5ec] sm:$0xf] }
 0x1e4   :  { %2093 = vmatmul.bf16.vlgmr.msrb.gmra.mxu0 %v5448_v9  ;;  %2106 = vmatmul.bf16.vlgmr.msrb.gmra.mxu1 %v5450_v40  ;;  %v3824_v31 = vld [vmem:[#allocation5 + $0x4f8] sm:$0xf0]  ;;  %v4818_v38 = vld [vmem:[#allocation5 + $0x7ec] sm:$0xf] }
 0x1e5   :  { %2137 = vmatpush.bf16.msra.mxu0 %v3315_v7  ;;  %2150 = vmatpush.bf16.msra.mxu1 %v3443_v39  ;;  %v3952_v24 = vld [vmem:[#allocation5 + $0x5f8] sm:$0xf0] }
 0x1e6   :  { %2163 = vmatpush.bf16.msra.mxu2 %v3571_v33  ;;  %2176 = vmatpush.bf16.msra.mxu3 %v3699_v61  ;;  %v4574_v33 = vld [vmem:[#allocation5 + $0x4c] sm:$0xf]  ;;  %v3232_v61 = vld [vmem:[#allocation5 + $0x58] sm:$0xf0] }
 0x1e7   :  { %2119 = vmatmul.bf16.vlgmr.msrb.gmra.mxu2 %v5452_v11  ;;  %2132 = vmatmul.bf16.vlgmr.msrb.gmra.mxu3 %v5454_v6  ;;  %v1860_v34 = vpop.f32.mrf.mxu2  ;;  %v1873_v35 = vpop.f32.mrf.mxu3  ;;  %v3235_v55 = vor.u32 %v4574_v33, %v3232_v61  ;;  %v4080_v37 = vld [vmem:[#allocation5 + $0x6f8] sm:$0xf0] }
 0x1e8   :  { %v1861_v7 = vadd.f32 %v1860_v34, %v1848_v21  ;;  %v1836_v39 = vpop.f32.mrf.mxu0  ;;  %v1849_v41 = vpop.f32.mrf.mxu1  ;;  %v4598_v21 = vld [vmem:[#allocation5 + $0x10c] sm:$0xf]  ;;  %v3936_v54 = vld [vmem:[#allocation5 + $0x5d8] sm:$0xf0] }
 0x1e9   :  { %2138 = vmatpush.bf16.msra.mxu0 %v3299_v51  ;;  %2151 = vmatpush.bf16.msra.mxu1 %v3427_v52  ;;  %v4638_v51 = vld [vmem:[#allocation5 + $0x24c] sm:$0xf]  ;;  %v3488_v52 = vld [vmem:[#allocation5 + $0x258] sm:$0xf0]  ;;  %v3331_v36 = vor.u32 %v4598_v21, %v3328_v22  ;;  %v3939_v5 = vor.u32 %v4750_v53, %v3936_v54  ;;  %v538_v21 = vperm.slane %v5472_v62, 1 }
 0x1ea   :  { %2164 = vmatpush.bf16.msra.mxu2 %v3555_v56  ;;  %2177 = vmatpush.bf16.msra.mxu3 %v3683_v57  ;;  %v1874_v47 = vadd.f32 %v1873_v35, %v1861_v7  ;;  %v3363_v56 = vor.u32 %v4606_v50, %v3360_v63  ;;  %v4570_v57 = vld [vmem:[#allocation5 + $0x2c] sm:$0xf]  ;;  %v3491_v59 = vor.u32 %v4638_v51, %v3488_v52  ;;  %v4208_v7 = vld [vmem:[#allocation5 + $0x7f8] sm:$0xf0] }
 0x1eb   :  { %v4786_v34 = vld [vmem:[#allocation5 + $0x6ec] sm:$0xf]  ;;  %v4211_v50 = vor.u32 %v4818_v38, %v4208_v7  ;;  %v3888_v38 = vld [vmem:[#allocation5 + $0x578] sm:$0xf0] }
 0x1ec   :  { %v4710_v22 = vld [vmem:[#allocation5 + $0x48c] sm:$0xf] }
 0x1ed   :  { %2139 = vmatpush.bf16.msra.mxu0 %v3283_v13  ;;  %2152 = vmatpush.bf16.msra.mxu1 %v3411_v14  ;;  %v3472_v13 = vld [vmem:[#allocation5 + $0x238] sm:$0xf0]  ;;  %v4666_v14 = vld [vmem:[#allocation5 + $0x32c] sm:$0xf] }
 0x1ee   :  { %2165 = vmatpush.bf16.msra.mxu2 %v3539_v17  ;;  %2178 = vmatpush.bf16.msra.mxu3 %v3667_v18  ;;  %v4566_v17 = vld [vmem:[#allocation5 + $0xc] sm:$0xf]  ;;  %v3219_v18 = vor.u32 %v4570_v57, %v3216_v58  ;;  %v3475_v23 = vor.u32 %v4634_v1, %v3472_v13  ;;  %v3603_v12 = vor.u32 %v4666_v14, %v3600_v15  ;;  %v4192_v58 = vld [vmem:[#allocation5 + $0x7d8] sm:$0xf0] }
 0x1ef   :  { %v1862_v2 = vpop.f32.mrf.mxu2  ;;  %v1875_v4 = vpop.f32.mrf.mxu3  ;;  %v3203_v35 = vor.u32 %v4566_v17, %v3200_v20  ;;  %v4814_v57 = vld [vmem:[#allocation5 + $0x7cc] sm:$0xf]  ;;  %v3792_v1 = vld [vmem:[#allocation5 + $0x4b8] sm:$0xf0] }
 0x1f0   :  { %v1886_v16 = vpop.f32.mrf.mxu0  ;;  %v1899_v8 = vpop.f32.mrf.mxu1  ;;  %v4195_v4 = vor.u32 %v4814_v57, %v4192_v58  ;;  %v4746_v13 = vld [vmem:[#allocation5 + $0x5ac] sm:$0xf]  ;;  %v3920_v14 = vld [vmem:[#allocation5 + $0x5b8] sm:$0xf0] }
 0x1f1   :  { %2140 = vmatpush.bf16.msra.mxu0 %v3267_v25  ;;  %2153 = vmatpush.bf16.msra.mxu1 %v3395_v26  ;;  %v1887_v19 = vadd.f32 %v1886_v16, %v1874_v47  ;;  %v4630_v25 = vld [vmem:[#allocation5 + $0x20c] sm:$0xf]  ;;  %v3456_v26 = vld [vmem:[#allocation5 + $0x218] sm:$0xf0] }
 0x1f2   :  { %2166 = vmatpush.bf16.msra.mxu2 %v3523_v29  ;;  %2179 = vmatpush.bf16.msra.mxu3 %v3651_v30  ;;  %v3584_v29 = vld [vmem:[#allocation5 + $0x318] sm:$0xf0]  ;;  %v4722_v30 = vld [vmem:[#allocation5 + $0x4ec] sm:$0xf]  ;;  %v3459_v39 = vor.u32 %v4630_v25, %v3456_v26 }
 0x1f3   :  { %v1900_v28 = vadd.f32 %v1899_v8, %v1887_v19  ;;  %v3587_v41 = vor.u32 %v4662_v27, %v3584_v29  ;;  %v4718_v47 = vld [vmem:[#allocation5 + $0x4cc] sm:$0xf]  ;;  %v4048_v16 = vld [vmem:[#allocation5 + $0x6b8] sm:$0xf0] }
 0x1f4   :  { %v4778_v15 = vld [vmem:[#allocation5 + $0x6ac] sm:$0xf]  ;;  %v4176_v17 = vld [vmem:[#allocation5 + $0x7b8] sm:$0xf0] }
 0x1f5   :  { %2141 = vmatpush.bf16.msra.mxu0 %v3251_v42  ;;  %2154 = vmatpush.bf16.msra.mxu1 %v3379_v43  ;;  %v3827_v42 = vor.u32 %v4722_v30, %v3824_v31  ;;  %v3955_v43 = vor.u32 %v4754_v32, %v3952_v24  ;;  %v4810_v8 = vld [vmem:[#allocation5 + $0x7ac] sm:$0xf]  ;;  %v3904_v25 = vld [vmem:[#allocation5 + $0x598] sm:$0xf0] }
 0x1f6   :  { %2167 = vmatpush.bf16.msra.mxu2 %v3507_v48  ;;  %2180 = vmatpush.bf16.msra.mxu3 %v3635_v49  ;;  %v3808_v48 = vld [vmem:[#allocation5 + $0x4d8] sm:$0xf0]  ;;  %v4083_v49 = vor.u32 %v4786_v34, %v4080_v37  ;;  %v4774_v26 = vld [vmem:[#allocation5 + $0x68c] sm:$0xf] }
 0x1f7   :  { %v1912_v33 = vpop.f32.mrf.mxu2  ;;  %v1925_v61 = vpop.f32.mrf.mxu3  ;;  %v4806_v27 = vld [vmem:[#allocation5 + $0x78c] sm:$0xf]  ;;  %v3760_v34 = vld [vmem:[#allocation5 + $0x478] sm:$0xf0] }
 0x1f8   :  { %v1913_v63 = vadd.f32 %v1912_v33, %v1900_v28  ;;  %v1888_v51 = vpop.f32.mrf.mxu0  ;;  %v1901_v52 = vpop.f32.mrf.mxu1  ;;  %v4706_v24 = vld [vmem:[#allocation5 + $0x46c] sm:$0xf]  ;;  %v4128_v57 = vld [vmem:[#allocation5 + $0x758] sm:$0xf0] }
 0x1f9   :  { %2142 = vmatpush.bf16.msra.mxu0 %v3235_v55  ;;  %2155 = vmatpush.bf16.msra.mxu1 %v3363_v56  ;;  %v4782_v55 = vld [vmem:[#allocation5 + $0x6cc] sm:$0xf]  ;;  %v4064_v56 = vld [vmem:[#allocation5 + $0x6d8] sm:$0xf0]  ;;  %v3763_v33 = vor.u32 %v4706_v24, %v3760_v34 }
 0x1fa   :  { %2168 = vmatpush.bf16.msra.mxu2 %v3491_v59  ;;  %2181 = vmatpush.bf16.msra.mxu3 %v3619_v3  ;;  %v5479_v59 = vadd.f32 %v1925_v61, %v1913_v63  ;;  %v3811_v3 = vor.u32 %v4718_v47, %v3808_v48  ;;  %v4067_v2 = vor.u32 %v4782_v55, %v4064_v56  ;;  %v4738_v37 = vld [vmem:[#allocation5 + $0x56c] sm:$0xf]  ;;  %v3744_v48 = vld [vmem:[#allocation5 + $0x458] sm:$0xf0] }
 0x1fb   :  { %v4770_v7 = vld [vmem:[#allocation5 + $0x66c] sm:$0xf]  ;;  %v3891_v61 = vor.u32 %v4738_v37, %v3888_v38  ;;  %v3872_v51 = vld [vmem:[#allocation5 + $0x558] sm:$0xf0] }
 0x1fc   :  { %v4702_v47 = vld [vmem:[#allocation5 + $0x44c] sm:$0xf]  ;;  %v4000_v55 = vld [vmem:[#allocation5 + $0x658] sm:$0xf0] }
 0x1fd   :  { %2143 = vmatpush.bf16.msra.mxu0 %v3219_v18  ;;  %2156 = vmatpush.bf16.msra.mxu1 %v3347_v10  ;;  %v3795_v18 = vor.u32 %v4714_v0, %v3792_v1  ;;  %v3923_v10 = vor.u32 %v4746_v13, %v3920_v14  ;;  %v4734_v63 = vld [vmem:[#allocation5 + $0x54c] sm:$0xf]  ;;  %v3747_v0 = vor.u32 %v4702_v47, %v3744_v48 }
 0x1fe   :  { %2169 = vmatpush.bf16.msra.mxu2 %v3475_v23  ;;  %2182 = vmatpush.bf16.msra.mxu3 %v3603_v12  ;;  %v3776_v23 = vld [vmem:[#allocation5 + $0x498] sm:$0xf0]  ;;  %v4742_v12 = vld [vmem:[#allocation5 + $0x58c] sm:$0xf]  ;;  %v3875_v1 = vor.u32 %v4734_v63, %v3872_v51 }
 0x1ff   :  { %v1914_v19 = vpop.f32.mrf.mxu2  ;;  %v1927_v20 = vpop.f32.mrf.mxu3  ;;  %v3779_v31 = vor.u32 %v4710_v22, %v3776_v23  ;;  %v3907_v32 = vor.u32 %v4742_v12, %v3904_v25  ;;  %v4766_v52 = vld [vmem:[#allocation5 + $0x64c] sm:$0xf]  ;;  %v3712_v23 = vld [vmem:[#allocation5 + $0x418] sm:$0xf0] }
 0x200   :  { %v4798_v56 = vld [vmem:[#allocation5 + $0x74c] sm:$0xf]  ;;  %v4003_v14 = vor.u32 %v4766_v52, %v4000_v55  ;;  %v4112_v19 = vld [vmem:[#allocation5 + $0x738] sm:$0xf0] }
 0x201   :  { %2144 = vmatpush.bf16.msra.mxu0 %v3203_v35  ;;  %2157 = vmatpush.bf16.msra.mxu1 %v3331_v36  ;;  %v1938_v28 = vpop.f32.mrf.mxu0  ;;  %v1951_v29 = vpop.f32.mrf.mxu1  ;;  %v4694_v22 = vld [vmem:[#allocation5 + $0x40c] sm:$0xf]  ;;  %v3840_v25 = vld [vmem:[#allocation5 + $0x518] sm:$0xf0] }
 0x202   :  { %2170 = vmatpush.bf16.msra.mxu2 %v3459_v39  ;;  %2183 = vmatpush.bf16.msra.mxu3 %v3587_v41  ;;  %v1939_v30 = vadd.f32 %v1938_v28, %v538_v21  ;;  %v4016_v41 = vld [vmem:[#allocation5 + $0x678] sm:$0xf0]  ;;  %v4726_v12 = vld [vmem:[#allocation5 + $0x50c] sm:$0xf] }
 0x203   :  { %v4790_v28 = vld [vmem:[#allocation5 + $0x70c] sm:$0xf] }
 0x204   :  { %2145 = vmatmul.bf16.vlgmr.msra.gmra.mxu0 %v5428_v44  ;;  %2158 = vmatmul.bf16.vlgmr.msra.gmra.mxu1 %v5430_v45  ;;  %v4051_v44 = vor.u32 %v4778_v15, %v4048_v16  ;;  %v4179_v45 = vor.u32 %v4810_v8, %v4176_v17  ;;  %v1952_v39 = vadd.f32 %v1951_v29, %v1939_v30  ;;  %v4730_v16 = vld [vmem:[#allocation5 + $0x52c] sm:$0xf]  ;;  %v3856_v8 = vld [vmem:[#allocation5 + $0x538] sm:$0xf0] }
 0x205   :  { %2189 = vmatpush.bf16.msrb.mxu0 %v3827_v42  ;;  %2202 = vmatpush.bf16.msrb.mxu1 %v3955_v43  ;;  %v4802_v42 = vld [vmem:[#allocation5 + $0x76c] sm:$0xf]  ;;  %v4144_v43 = vld [vmem:[#allocation5 + $0x778] sm:$0xf0]  ;;  %v4131_v15 = vor.u32 %v4798_v56, %v4128_v57  ;;  %v3859_v21 = vor.u32 %v4730_v16, %v3856_v8  ;;  %v3715_v30 = vor.u32 %v4694_v22, %v3712_v23  ;;  %v540_v8 = vperm.slane %v5472_v62, 3 }
 0x206   :  { %2215 = vmatpush.bf16.msrb.mxu2 %v4083_v49  ;;  %2228 = vmatpush.bf16.msrb.mxu3 %v4211_v50  ;;  %v4019_v49 = vor.u32 %v4770_v7, %v4016_v41  ;;  %v4147_v50 = vor.u32 %v4802_v42, %v4144_v43  ;;  %v4762_v17 = vld [vmem:[#allocation5 + $0x62c] sm:$0xf]  ;;  %v4096_v29 = vld [vmem:[#allocation5 + $0x718] sm:$0xf0] }
 0x207   :  { %2171 = vmatmul.bf16.vlgmr.msra.gmra.mxu2 %v5432_v46  ;;  %2184 = vmatmul.bf16.vlgmr.msra.gmra.mxu3 %v5434_v60  ;;  %v4032_v46 = vld [vmem:[#allocation5 + $0x698] sm:$0xf0]  ;;  %v4099_v24 = vor.u32 %v4790_v28, %v4096_v29 }
 0x208   :  { %v4160_v60 = vld [vmem:[#allocation5 + $0x798] sm:$0xf0]  ;;  %v4035_v35 = vor.u32 %v4774_v26, %v4032_v46  ;;  %v4758_v26 = vld [vmem:[#allocation5 + $0x60c] sm:$0xf] }
 0x209   :  { %2190 = vmatpush.bf16.msrb.mxu0 %v3811_v3  ;;  %2203 = vmatpush.bf16.msrb.mxu1 %v3939_v5  ;;  %v4163_v36 = vor.u32 %v4806_v27, %v4160_v60  ;;  %v1940_v3 = vpop.f32.mrf.mxu0  ;;  %v1953_v5 = vpop.f32.mrf.mxu1  ;;  %v3968_v60 = vld [vmem:[#allocation5 + $0x618] sm:$0xf0] }
 0x20a   :  { %2216 = vmatpush.bf16.msrb.mxu2 %v4067_v2  ;;  %2229 = vmatpush.bf16.msrb.mxu3 %v4195_v4  ;;  %v1964_v53 = vpop.f32.mrf.mxu2  ;;  %v1977_v54 = vpop.f32.mrf.mxu3  ;;  %v4698_v2 = vld [vmem:[#allocation5 + $0x42c] sm:$0xf]  ;;  %v3728_v4 = vld [vmem:[#allocation5 + $0x438] sm:$0xf0] }
 0x20b   :  { %v1965_v58 = vadd.f32 %v1964_v53, %v1952_v39  ;;  %v3731_v20 = vor.u32 %v4698_v2, %v3728_v4 }
 0x20d   :  { %2191 = vmatpush.bf16.msrb.mxu0 %v3795_v18  ;;  %2204 = vmatpush.bf16.msrb.mxu1 %v3923_v10  ;;  %v1978_v13 = vadd.f32 %v1977_v54, %v1965_v58  ;;  %v3984_v18 = vld [vmem:[#allocation5 + $0x638] sm:$0xf0]  ;;  %v4794_v10 = vld [vmem:[#allocation5 + $0x72c] sm:$0xf] }
 0x20e   :  { %2217 = vmatpush.bf16.msrb.mxu2 %v4051_v44  ;;  %2230 = vmatpush.bf16.msrb.mxu3 %v4179_v45  ;;  %v3987_v44 = vor.u32 %v4762_v17, %v3984_v18  ;;  %v4115_v45 = vor.u32 %v4794_v10, %v4112_v19 }
 0x211   :  { %2192 = vmatpush.bf16.msrb.mxu0 %v3779_v31  ;;  %2205 = vmatpush.bf16.msrb.mxu1 %v3907_v32  ;;  %v3843_v31 = vor.u32 %v4726_v12, %v3840_v25  ;;  %v3971_v32 = vor.u32 %v4758_v26, %v3968_v60 }
 0x212   :  { %2218 = vmatpush.bf16.msrb.mxu2 %v4035_v35  ;;  %2231 = vmatpush.bf16.msrb.mxu3 %v4163_v36  ;;  %v1966_v46 = vpop.f32.mrf.mxu2  ;;  %v1979_v27 = vpop.f32.mrf.mxu3 }
 0x215   :  { %2193 = vmatpush.bf16.msrb.mxu0 %v3763_v33  ;;  %2206 = vmatpush.bf16.msrb.mxu1 %v3891_v61 }
 0x216   :  { %2219 = vmatpush.bf16.msrb.mxu2 %v4019_v49  ;;  %2232 = vmatpush.bf16.msrb.mxu3 %v4147_v50 }
 0x219   :  { %2194 = vmatpush.bf16.msrb.mxu0 %v3747_v0  ;;  %2207 = vmatpush.bf16.msrb.mxu1 %v3875_v1 }
 0x21a   :  { %2220 = vmatpush.bf16.msrb.mxu2 %v4003_v14  ;;  %2233 = vmatpush.bf16.msrb.mxu3 %v4131_v15 }
 0x21d   :  { %2195 = vmatpush.bf16.msrb.mxu0 %v3731_v20  ;;  %2208 = vmatpush.bf16.msrb.mxu1 %v3859_v21 }
 0x21e   :  { %2221 = vmatpush.bf16.msrb.mxu2 %v3987_v44  ;;  %2234 = vmatpush.bf16.msrb.mxu3 %v4115_v45 }
 0x221   :  { %2196 = vmatpush.bf16.msrb.mxu0 %v3715_v30  ;;  %2209 = vmatpush.bf16.msrb.mxu1 %v3843_v31  ;;  %v1990_v34 = vpop.f32.mrf.mxu0  ;;  %v2003_v35 = vpop.f32.mrf.mxu1 }
 0x222   :  { %2222 = vmatpush.bf16.msrb.mxu2 %v3971_v32  ;;  %2235 = vmatpush.bf16.msrb.mxu3 %v4099_v24  ;;  %v1991_v36 = vadd.f32 %v1990_v34, %v1978_v13 }
 0x224   :  { %2197 = vmatmul.bf16.vlgmr.msrb.gmra.mxu0 %v5448_v9  ;;  %2210 = vmatmul.bf16.vlgmr.msrb.gmra.mxu1 %v5450_v40  ;;  %v2004_v37 = vadd.f32 %v2003_v35, %v1991_v36  ;;  %v539_v9 = vperm.slane %v5472_v62, 2  ;;  %v5223_v36 = vmov 512.0  }
 0x225   :  { %2223 = vmatmul.bf16.vlgmr.msrb.gmra.mxu2 %v5452_v11  ;;  %2236 = vmatmul.bf16.vlgmr.msrb.gmra.mxu3 %v5454_v6  ;;  %4939 = vrcp.f32 %v5223_v36 }
 0x229   :  { %v1992_v41 = vpop.f32.mrf.mxu0  ;;  %v2005_v42 = vpop.f32.mrf.mxu1 }
 0x22a   :  { %v2016_v38 = vpop.f32.mrf.mxu2  ;;  %v2029_v7 = vpop.f32.mrf.mxu3  ;;  %v4836_v41 = vld [vmem:[#allocation11 + $0x74] sm:$0xf0]  ;;  %v4334_v42 = vld [vmem:[#allocation11 + $0xf0] sm:$0xf] }
 0x22b   :  { %v2017_v39 = vadd.f32 %v2016_v38, %v2004_v37  ;;  %v4940_v37 = vpop.eup %4939 }
 0x22c   :  { %v2249_v38 = vmul.f32 512.0, %v4940_v37  ;;  %vm2253_vm7 = vweird.f32 %v4940_v37 }
 0x22d   :  { %v5490_v43 = vadd.f32 %v2029_v7, %v2017_v39  ;;  %v4270_v39 = vld [vmem:[#allocation11 + $0x70] sm:$0xf] }
 0x22e   :  { %v2250_v7 = vsub.f32 1.0, %v2249_v38  ;;  %v4878_v38 = vld [vmem:[#allocation11 + $0x1c4] sm:$0xf0] }
 0x22f   :  { %v2243_v62 = vadd.f32 %v5490_v43, %v5479_v59 }
 0x232   :  { %v2018_v33 = vpop.f32.mrf.mxu2  ;;  %v2031_v61 = vpop.f32.mrf.mxu3 }
 0x233   :  { %v4271_v33 = vor.u32 %v4836_v41, %v4270_v39  ;;  %v4852_v61 = vld [vmem:[#allocation11 + $0xf4] sm:$0xf0]  ;;  %v4238_v39 = vld [vmem:[#allocation11 + $0x30] sm:$0xf] }
 0x234   :  { %v4828_v41 = vld [vmem:[#allocation11 + $0x34] sm:$0xf0] }
 0x235   :  { %2709 = vmatpush.bf16.msra.mxu0 %v4271_v33  ;;  %v4239_v33 = vor.u32 %v4828_v41, %v4238_v39  ;;  %v4833_v39 = vld [vmem:[#allocation11 + $0x64] sm:$0xf]  ;;  %v4264_v41 = vld [vmem:[#allocation11 + $0x68] sm:$0xf0] }
 0x241   :  { %v2042_v40 = vpop.f32.mrf.mxu0  ;;  %v2055_v47 = vpop.f32.mrf.mxu1 }
 0x242   :  { %v2043_v11 = vadd.f32 %v2042_v40, %v539_v9  ;;  %v4398_v9 = vld [vmem:[#allocation11 + $0x170] sm:$0xf]  ;;  %v4868_v40 = vld [vmem:[#allocation11 + $0x174] sm:$0xf0] }
 0x244   :  { %v2056_v48 = vadd.f32 %v2055_v47, %v2043_v11  ;;  %v4335_v47 = vor.u32 %v4852_v61, %v4334_v42  ;;  %v4399_v11 = vor.u32 %v4868_v40, %v4398_v9  ;;  %v4302_v42 = vld [vmem:[#allocation11 + $0xb0] sm:$0xf]  ;;  %v4844_v61 = vld [vmem:[#allocation11 + $0xb4] sm:$0xf0] }
 0x245   :  { %v4366_v9 = vld [vmem:[#allocation11 + $0x130] sm:$0xf]  ;;  %v4860_v40 = vld [vmem:[#allocation11 + $0x134] sm:$0xf0] }
 0x246   :  { %2722 = vmatpush.bf16.msra.mxu1 %v4335_v47  ;;  %2735 = vmatpush.bf16.msra.mxu2 %v4399_v11  ;;  %v4303_v47 = vor.u32 %v4844_v61, %v4302_v42  ;;  %v4367_v11 = vor.u32 %v4860_v40, %v4366_v9  ;;  %v4849_v61 = vld [vmem:[#allocation11 + $0xe4] sm:$0xf]  ;;  %v4328_v9 = vld [vmem:[#allocation11 + $0xe8] sm:$0xf0] }
 0x247   :  { %v4865_v40 = vld [vmem:[#allocation11 + $0x164] sm:$0xf] }
 0x249   :  { %v2044_v63 = vpop.f32.mrf.mxu0  ;;  %v2057_v51 = vpop.f32.mrf.mxu1 }
 0x24a   :  { %v2068_v6 = vpop.f32.mrf.mxu2  ;;  %v2081_v49 = vpop.f32.mrf.mxu3  ;;  %v4834_v63 = vld [vmem:[#allocation11 + $0x64] sm:$0xf0]  ;;  %v4326_v51 = vld [vmem:[#allocation11 + $0xe0] sm:$0xf] }
 0x24b   :  { %v2069_v50 = vadd.f32 %v2068_v6, %v2056_v48  ;;  %v4462_v48 = vld [vmem:[#allocation11 + $0x1f0] sm:$0xf]  ;;  %v4884_v6 = vld [vmem:[#allocation11 + $0x1f4] sm:$0xf0] }
 0x24d   :  { %v2082_v52 = vadd.f32 %v2081_v49, %v2069_v50  ;;  %v4262_v49 = vld [vmem:[#allocation11 + $0x60] sm:$0xf]  ;;  %v4463_v50 = vor.u32 %v4884_v6, %v4462_v48  ;;  %v4430_v48 = vld [vmem:[#allocation11 + $0x1b0] sm:$0xf]  ;;  %v4876_v6 = vld [vmem:[#allocation11 + $0x1b4] sm:$0xf0] }
 0x24f   :  { %2748 = vmatpush.bf16.msra.mxu3 %v4463_v50  ;;  %v4230_v50 = vld [vmem:[#allocation11 + $0x20] sm:$0xf] }
 0x252   :  { %v2070_v53 = vpop.f32.mrf.mxu2  ;;  %v2083_v54 = vpop.f32.mrf.mxu3 }
 0x253   :  { %v4263_v53 = vor.u32 %v4834_v63, %v4262_v49  ;;  %v4431_v49 = vor.u32 %v4876_v6, %v4430_v48  ;;  %v4826_v63 = vld [vmem:[#allocation11 + $0x24] sm:$0xf0]  ;;  %v4881_v48 = vld [vmem:[#allocation11 + $0x1e4] sm:$0xf]  ;;  %v4456_v6 = vld [vmem:[#allocation11 + $0x1e8] sm:$0xf0] }
 0x255   :  { %2710 = vmatpush.bf16.msra.mxu0 %v4263_v53  ;;  %v4842_v53 = vld [vmem:[#allocation11 + $0xa4] sm:$0xf0] }
 0x261   :  { %v2094_v55 = vpop.f32.mrf.mxu0  ;;  %v2107_v56 = vpop.f32.mrf.mxu1 }
 0x262   :  { %v2095_v20 = vadd.f32 %v2094_v55, %v2082_v52  ;;  %v4850_v52 = vld [vmem:[#allocation11 + $0xe4] sm:$0xf0]  ;;  %v4390_v55 = vld [vmem:[#allocation11 + $0x160] sm:$0xf] }
 0x263   :  { %v4327_v54 = vor.u32 %v4850_v52, %v4326_v51  ;;  %v4294_v51 = vld [vmem:[#allocation11 + $0xa0] sm:$0xf]  ;;  %v4231_v52 = vor.u32 %v4826_v63, %v4230_v50  ;;  %v4459_v50 = vor.u32 %v4881_v48, %v4456_v6  ;;  %v4831_v63 = vld [vmem:[#allocation11 + $0x54] sm:$0xf]  ;;  %v4352_v48 = vld [vmem:[#allocation11 + $0x118] sm:$0xf0] }
 0x264   :  { %v2108_v22 = vadd.f32 %v2107_v56, %v2095_v20  ;;  %v4866_v56 = vld [vmem:[#allocation11 + $0x164] sm:$0xf0]  ;;  %v4871_v6 = vld [vmem:[#allocation11 + $0x194] sm:$0xf] }
 0x265   :  { %2723 = vmatpush.bf16.msra.mxu1 %v4327_v54  ;;  %v4358_v54 = vld [vmem:[#allocation11 + $0x120] sm:$0xf] }
 0x269   :  { %v2096_v3 = vpop.f32.mrf.mxu0  ;;  %v2109_v5 = vpop.f32.mrf.mxu1 }
 0x26a   :  { %v2120_v57 = vpop.f32.mrf.mxu2  ;;  %v2133_v58 = vpop.f32.mrf.mxu3  ;;  %v4882_v3 = vld [vmem:[#allocation11 + $0x1e4] sm:$0xf0]  ;;  %v4254_v5 = vld [vmem:[#allocation11 + $0x50] sm:$0xf] }
 0x26b   :  { %v2121_v12 = vadd.f32 %v2120_v57, %v2108_v22  ;;  %v4454_v57 = vld [vmem:[#allocation11 + $0x1e0] sm:$0xf] }
 0x26d   :  { %v5494_v26 = vadd.f32 %v2133_v58, %v2121_v12  ;;  %v4391_v58 = vor.u32 %v4866_v56, %v4390_v55  ;;  %v4858_v55 = vld [vmem:[#allocation11 + $0x124] sm:$0xf0]  ;;  %v4295_v56 = vor.u32 %v4842_v53, %v4294_v51  ;;  %v4256_v51 = vld [vmem:[#allocation11 + $0x58] sm:$0xf0] }
 0x26e   :  { %v4320_v53 = vld [vmem:[#allocation11 + $0xd8] sm:$0xf0] }
 0x26f   :  { %v2244_v32 = vadd.f32 %v2243_v62, %v5494_v26  ;;  %2736 = vmatpush.bf16.msra.mxu2 %v4391_v58  ;;  %v4422_v58 = vld [vmem:[#allocation11 + $0x1a0] sm:$0xf] }
 0x272   :  { %v2122_v0 = vpop.f32.mrf.mxu2  ;;  %v2135_v1 = vpop.f32.mrf.mxu3 }
 0x273   :  { %v4832_v0 = vld [vmem:[#allocation11 + $0x54] sm:$0xf0]  ;;  %v4455_v1 = vor.u32 %v4882_v3, %v4454_v57  ;;  %v4359_v57 = vor.u32 %v4858_v55, %v4358_v54  ;;  %v4874_v3 = vld [vmem:[#allocation11 + $0x1a4] sm:$0xf0]  ;;  %v4863_v54 = vld [vmem:[#allocation11 + $0x154] sm:$0xf] }
 0x274   :  { %v4384_v55 = vld [vmem:[#allocation11 + $0x158] sm:$0xf0] }
 0x275   :  { %2749 = vmatpush.bf16.msra.mxu3 %v4455_v1  ;;  %v4824_v1 = vld [vmem:[#allocation11 + $0x14] sm:$0xf0] }
 0x281   :  { %v2146_v2 = vpop.f32.mrf.mxu0  ;;  %v2159_v4 = vpop.f32.mrf.mxu1 }
 0x282   :  { %v2147_v10 = vadd.f32 %v2146_v2, %v540_v8  ;;  %v4318_v2 = vld [vmem:[#allocation11 + $0xd0] sm:$0xf]  ;;  %v4880_v8 = vld [vmem:[#allocation11 + $0x1d4] sm:$0xf0] }
 0x284   :  { %v2160_v19 = vadd.f32 %v2159_v4, %v2147_v10  ;;  %v4848_v4 = vld [vmem:[#allocation11 + $0xd4] sm:$0xf0]  ;;  %v2251_v10 = vmul.f32 %v4940_v37, %v2250_v7 }
 0x286   :  { %v2252_v20 = vadd.f32 %v4940_v37, %v2251_v10 }
 0x289   :  { %v2148_v15 = vpop.f32.mrf.mxu0  ;;  %v2161_v16 = vpop.f32.mrf.mxu1 }
 0x28a   :  { %v2172_v13 = vpop.f32.mrf.mxu2  ;;  %v2185_v14 = vpop.f32.mrf.mxu3  ;;  %v4864_v15 = vld [vmem:[#allocation11 + $0x154] sm:$0xf0]  ;;  %v4446_v16 = vld [vmem:[#allocation11 + $0x1d0] sm:$0xf] }
 0x28b   :  { %v2173_v21 = vadd.f32 %v2172_v13, %v2160_v19  ;;  %v4382_v13 = vld [vmem:[#allocation11 + $0x150] sm:$0xf]  ;;  %v4447_v19 = vor.u32 %v4880_v8, %v4446_v16 }
 0x28d   :  { %v2186_v23 = vadd.f32 %v2185_v14, %v2173_v21  ;;  %v4255_v14 = vor.u32 %v4832_v0, %v4254_v5  ;;  %2750 = vmatpush.bf16.msra.mxu3 %v4447_v19  ;;  %v5502_v21 = vsel %vm2253_vm7, %v4940_v37, %v2252_v20  ;;  %v4438_v37 = vld [vmem:[#allocation11 + $0x1c0] sm:$0xf]  ;;  %v4423_v5 = vor.u32 %v4874_v3, %v4422_v58  ;;  %v4222_v0 = vld [vmem:[#allocation11 + $0x10] sm:$0xf]  ;;  %v4822_v20 = vld [vmem:[#allocation11 + $0x4] sm:$0xf0] }
 0x28e   :  { %v4439_v7 = vor.u32 %v4878_v38, %v4438_v37  ;;  %v4214_v19 = vld [vmem:[#allocation11] sm:$0xf]  ;;  %v4883_v37 = vld [vmem:[#allocation11 + $0x1f4] sm:$0xf]  ;;  %v4448_v3 = vld [vmem:[#allocation11 + $0x1d8] sm:$0xf0] }
 0x28f   :  { %2711 = vmatpush.bf16.msra.mxu0 %v4255_v14  ;;  %v4350_v14 = vld [vmem:[#allocation11 + $0x110] sm:$0xf]  ;;  %v4879_v58 = vld [vmem:[#allocation11 + $0x1d4] sm:$0xf] }
 0x291   :  { %2751 = vmatpush.bf16.msra.mxu3 %v4439_v7  ;;  %v4464_v7 = vld [vmem:[#allocation11 + $0x1f8] sm:$0xf0] }
 0x292   :  { %v2174_v17 = vpop.f32.mrf.mxu2  ;;  %v2187_v18 = vpop.f32.mrf.mxu3  ;;  %v4467_v42 = vor.u32 %v4883_v37, %v4464_v7  ;;  %v4857_v37 = vld [vmem:[#allocation11 + $0x124] sm:$0xf] }
 0x293   :  { %v4319_v17 = vor.u32 %v4848_v4, %v4318_v2  ;;  %v4383_v18 = vor.u32 %v4864_v15, %v4382_v13  ;;  %v4286_v2 = vld [vmem:[#allocation11 + $0x90] sm:$0xf]  ;;  %v4223_v4 = vor.u32 %v4824_v1, %v4222_v0  ;;  %v4840_v13 = vld [vmem:[#allocation11 + $0x94] sm:$0xf0]  ;;  %v4387_v0 = vor.u32 %v4863_v54, %v4384_v55  ;;  %v4248_v1 = vld [vmem:[#allocation11 + $0x48] sm:$0xf0] }
 0x294   :  { %v4856_v15 = vld [vmem:[#allocation11 + $0x114] sm:$0xf0]  ;;  %v4287_v16 = vor.u32 %v4840_v13, %v4286_v2  ;;  %v4845_v2 = vld [vmem:[#allocation11 + $0xc4] sm:$0xf]  ;;  %v4451_v13 = vor.u32 %v4879_v58, %v4448_v3  ;;  %v4280_v55 = vld [vmem:[#allocation11 + $0x88] sm:$0xf0] }
 0x295   :  { %2724 = vmatpush.bf16.msra.mxu1 %v4319_v17  ;;  %2737 = vmatpush.bf16.msra.mxu2 %v4383_v18  ;;  %v4351_v8 = vor.u32 %v4856_v15, %v4350_v14  ;;  %v4414_v17 = vld [vmem:[#allocation11 + $0x190] sm:$0xf]  ;;  %v4872_v18 = vld [vmem:[#allocation11 + $0x194] sm:$0xf0]  ;;  %v4861_v14 = vld [vmem:[#allocation11 + $0x144] sm:$0xf] }
 0x296   :  { %2752 = vmatpush.bf16.msra.mxu3 %v4431_v49  ;;  %v4415_v10 = vor.u32 %v4872_v18, %v4414_v17  ;;  %v4376_v15 = vld [vmem:[#allocation11 + $0x148] sm:$0xf0]  ;;  %v4837_v54 = vld [vmem:[#allocation11 + $0x84] sm:$0xf] }
 0x297   :  { %v4344_v58 = vld [vmem:[#allocation11 + $0x108] sm:$0xf0] }
 0x29a   :  { %2753 = vmatpush.bf16.msra.mxu3 %v4423_v5  ;;  %v4829_v5 = vld [vmem:[#allocation11 + $0x44] sm:$0xf] }
 0x29b   :  { %v4251_v17 = vor.u32 %v4829_v5, %v4248_v1  ;;  %v4869_v5 = vld [vmem:[#allocation11 + $0x184] sm:$0xf] }
 0x29e   :  { %2754 = vmatpush.bf16.msra.mxu3 %v4415_v10  ;;  %v4379_v10 = vor.u32 %v4861_v14, %v4376_v15 }
 0x2a1   :  { %v2198_v44 = vpop.f32.mrf.mxu0  ;;  %v2211_v45 = vpop.f32.mrf.mxu1 }
 0x2a2   :  { %v2199_v25 = vadd.f32 %v2198_v44, %v2186_v23 }
 0x2a4   :  { %v2212_v46 = vadd.f32 %v2211_v45, %v2199_v25 }
 0x2a8   :  { %v2224_v27 = vpop.f32.mrf.mxu2  ;;  %v2237_v60 = vpop.f32.mrf.mxu3 }
 0x2a9   :  { %v2225_v28 = vadd.f32 %v2224_v27, %v2212_v46  ;;  %v2200_v29 = vpop.f32.mrf.mxu0  ;;  %v2213_v30 = vpop.f32.mrf.mxu1 }
 0x2aa   :  { %v4830_v29 = vld [vmem:[#allocation11 + $0x44] sm:$0xf0]  ;;  %v4310_v30 = vld [vmem:[#allocation11 + $0xc0] sm:$0xf] }
 0x2ab   :  { %v5498_v31 = vadd.f32 %v2237_v60, %v2225_v28 }
 0x2ad   :  { %v2245_v24 = vadd.f32 %v2244_v32, %v5498_v31  ;;  %v4846_v32 = vld [vmem:[#allocation11 + $0xc4] sm:$0xf0] }
 0x2af   :  { %2246 = vadd.xlane.f32.xlu1 %v2245_v24  ;;  %v4374_v24 = vld [vmem:[#allocation11 + $0x140] sm:$0xf] }
 0x2b0   :  { %v2226_v34 = vpop.f32.mrf.mxu2  ;;  %v2239_v35 = vpop.f32.mrf.mxu3 }
 0x2b1   :  { %v4862_v34 = vld [vmem:[#allocation11 + $0x144] sm:$0xf0]  ;;  %v4311_v35 = vor.u32 %v4846_v32, %v4310_v30  ;;  %v4272_v30 = vld [vmem:[#allocation11 + $0x78] sm:$0xf0] }
 0x2b2   :  { %v4375_v36 = vor.u32 %v4862_v34, %v4374_v24  ;;  %v4336_v32 = vld [vmem:[#allocation11 + $0xf8] sm:$0xf0] }
 0x2b3   :  { %2725 = vmatpush.bf16.msra.mxu1 %v4311_v35  ;;  %v4867_v35 = vld [vmem:[#allocation11 + $0x174] sm:$0xf] }
 0x2b4   :  { %2738 = vmatpush.bf16.msra.mxu2 %v4375_v36  ;;  %v4400_v36 = vld [vmem:[#allocation11 + $0x178] sm:$0xf0] }
 0x2b5   :  { %v4403_v38 = vor.u32 %v4867_v35, %v4400_v36  ;;  %v4841_v35 = vld [vmem:[#allocation11 + $0xa4] sm:$0xf] }
 0x2b7   :  { %2726 = vmatpush.bf16.msra.mxu1 %v4303_v47  ;;  %v4331_v47 = vor.u32 %v4849_v61, %v4328_v9  ;;  %v4224_v9 = vld [vmem:[#allocation11 + $0x18] sm:$0xf0] }
 0x2b8   :  { %2739 = vmatpush.bf16.msra.mxu2 %v4367_v11  ;;  %v4392_v11 = vld [vmem:[#allocation11 + $0x168] sm:$0xf0] }
 0x2b9   :  { %v4395_v49 = vor.u32 %v4865_v40, %v4392_v11  ;;  %v4839_v40 = vld [vmem:[#allocation11 + $0x94] sm:$0xf] }
 0x2ba   :  { %v4855_v11 = vld [vmem:[#allocation11 + $0x114] sm:$0xf] }
 0x2bb   :  { %2727 = vmatpush.bf16.msra.mxu1 %v4295_v56  ;;  %v4259_v56 = vor.u32 %v4831_v63, %v4256_v51  ;;  %v4416_v63 = vld [vmem:[#allocation11 + $0x198] sm:$0xf0]  ;;  %v4821_v51 = vld [vmem:[#allocation11 + $0x4] sm:$0xf] }
 0x2bc   :  { %2740 = vmatpush.bf16.msra.mxu2 %v4359_v57 }
 0x2bf   :  { %2728 = vmatpush.bf16.msra.mxu1 %v4287_v16  ;;  %v4877_v16 = vld [vmem:[#allocation11 + $0x1c4] sm:$0xf] }
 0x2c0   :  { %2741 = vmatpush.bf16.msra.mxu2 %v4351_v8  ;;  %v4440_v8 = vld [vmem:[#allocation11 + $0x1c8] sm:$0xf0] }
 0x322   :  { %v2247_v22 = vpop.xlane.xlu1 %2246 }
 0x323   :  { %v2255_v23 = vmul.f32 %v5502_v21, %v2247_v22  ;;  %v4278_v22 = vld [vmem:[#allocation11 + $0x80] sm:$0xf] }
 0x325   :  { %v5506_v44 = vsub.f32 %v5479_v59, %v2255_v23  ;;  %v5509_v45 = vsub.f32 %v5490_v43, %v2255_v23  ;;  %v5512_v12 = vsub.f32 %v5494_v26, %v2255_v23  ;;  %v5515_v25 = vsub.f32 %v5498_v31, %v2255_v23  ;;  %v4246_v26 = vld [vmem:[#allocation11 + $0x40] sm:$0xf] }
 0x326   :  { %v4247_v31 = vor.u32 %v4830_v29, %v4246_v26  ;;  %v4215_v23 = vor.u32 %v4822_v20, %v4214_v19  ;;  %v4835_v26 = vld [vmem:[#allocation11 + $0x74] sm:$0xf]  ;;  %v4443_v19 = vor.u32 %v4877_v16, %v4440_v8  ;;  %v2241_v8 = vld [vmem:[#allocation10] sm:$0xf] }
 0x327   :  { %v2260_v46 = vmul.f32 %v5506_v44, %v5506_v44  ;;  %v2261_v27 = vmul.f32 %v5509_v45, %v5509_v45  ;;  %v2262_v60 = vmul.f32 %v5512_v12, %v5512_v12  ;;  %v2263_v43 = vmul.f32 %v5515_v25, %v5515_v25 }
 0x328   :  { %2712 = vmatpush.bf16.msra.mxu0 %v4247_v31  ;;  %v4851_v31 = vld [vmem:[#allocation11 + $0xf4] sm:$0xf]  ;;  %v4275_v24 = vor.u32 %v4835_v26, %v4272_v30  ;;  %v4432_v30 = vld [vmem:[#allocation11 + $0x1b8] sm:$0xf0] }
 0x329   :  { %v2264_v59 = vadd.f32 %v2261_v27, %v2260_v46  ;;  %v4838_v46 = vld [vmem:[#allocation11 + $0x84] sm:$0xf0]  ;;  %v4342_v27 = vld [vmem:[#allocation11 + $0x100] sm:$0xf]  ;;  %v4339_v34 = vor.u32 %v4851_v31, %v4336_v32  ;;  %v4825_v31 = vld [vmem:[#allocation11 + $0x24] sm:$0xf] }
 0x32b   :  { %v2265_v62 = vadd.f32 %v2264_v59, %v2262_v60  ;;  %v4854_v60 = vld [vmem:[#allocation11 + $0x104] sm:$0xf0]  ;;  %v4279_v59 = vor.u32 %v4838_v46, %v4278_v22  ;;  %v4827_v22 = vld [vmem:[#allocation11 + $0x34] sm:$0xf] }
 0x32c   :  { %2713 = vmatpush.bf16.msra.mxu0 %v4239_v33  ;;  %v4267_v33 = vor.u32 %v4833_v39, %v4264_v41  ;;  %v4843_v46 = vld [vmem:[#allocation11 + $0xb4] sm:$0xf]  ;;  %v4873_v41 = vld [vmem:[#allocation11 + $0x1a4] sm:$0xf] }
 0x32d   :  { %v2266_v28 = vadd.f32 %v2265_v62, %v2263_v43  ;;  %v4343_v43 = vor.u32 %v4854_v60, %v4342_v27  ;;  %v4406_v62 = vld [vmem:[#allocation11 + $0x180] sm:$0xf]  ;;  %2729 = vmatpush.bf16.msra.mxu1 %v4279_v59  ;;  %v4304_v59 = vld [vmem:[#allocation11 + $0xb8] sm:$0xf0] }
 0x32f   :  { %2267 = vadd.xlane.f32.xlu1 %v2266_v28  ;;  %v4870_v28 = vld [vmem:[#allocation11 + $0x184] sm:$0xf0]  ;;  %2742 = vmatpush.bf16.msra.mxu2 %v4343_v43  ;;  %v4859_v43 = vld [vmem:[#allocation11 + $0x134] sm:$0xf] }
 0x330   :  { %2714 = vmatpush.bf16.msra.mxu0 %v4231_v52  ;;  %v4407_v29 = vor.u32 %v4870_v28, %v4406_v62  ;;  %v4847_v52 = vld [vmem:[#allocation11 + $0xd4] sm:$0xf]  ;;  %v4368_v62 = vld [vmem:[#allocation11 + $0x138] sm:$0xf0]  ;;  %v4307_v28 = vor.u32 %v4843_v46, %v4304_v59  ;;  %v2289_v46 = vperm.slane %v2241_v8, 3 }
 0x331   :  { %2774 = vmatpush.bf16.msrb.mxu1 %v4339_v34  ;;  %v4323_v57 = vor.u32 %v4847_v52, %v4320_v53  ;;  %v4371_v26 = vor.u32 %v4859_v43, %v4368_v62  ;;  %v4232_v34 = vld [vmem:[#allocation11 + $0x28] sm:$0xf0]  ;;  %v4355_v52 = vor.u32 %v4855_v11, %v4352_v48 }
 0x332   :  { %2755 = vmatpush.bf16.msra.mxu3 %v4407_v29  ;;  %v4875_v29 = vld [vmem:[#allocation11 + $0x1b4] sm:$0xf]  ;;  %v4235_v36 = vor.u32 %v4825_v31, %v4232_v34  ;;  %v4216_v53 = vld [vmem:[#allocation11 + $0x8] sm:$0xf0] }
 0x333   :  { %2787 = vmatpush.bf16.msrb.mxu2 %v4403_v38  ;;  %v4360_v38 = vld [vmem:[#allocation11 + $0x128] sm:$0xf0] }
 0x334   :  { %2715 = vmatpush.bf16.msra.mxu0 %v4223_v4  ;;  %v4312_v4 = vld [vmem:[#allocation11 + $0xc8] sm:$0xf0]  ;;  %v4363_v39 = vor.u32 %v4857_v37, %v4360_v38 }
 0x335   :  { %2775 = vmatpush.bf16.msrb.mxu1 %v4331_v47  ;;  %v4315_v18 = vor.u32 %v4845_v2, %v4312_v4  ;;  %v4288_v47 = vld [vmem:[#allocation11 + $0x98] sm:$0xf0]  ;;  %v4219_v2 = vor.u32 %v4821_v51, %v4216_v53  ;;  %v4283_v4 = vor.u32 %v4837_v54, %v4280_v55 }
 0x336   :  { %2800 = vmatpush.bf16.msrb.mxu3 %v4467_v42  ;;  %v4424_v42 = vld [vmem:[#allocation11 + $0x1a8] sm:$0xf0] }
 0x337   :  { %2788 = vmatpush.bf16.msrb.mxu2 %v4395_v49  ;;  %v4427_v61 = vor.u32 %v4873_v41, %v4424_v42 }
 0x338   :  { %2716 = vmatpush.bf16.msra.mxu0 %v4215_v23  ;;  %v4240_v23 = vld [vmem:[#allocation11 + $0x38] sm:$0xf0] }
 0x339   :  { %2776 = vmatpush.bf16.msrb.mxu1 %v4323_v57  ;;  %v4243_v60 = vor.u32 %v4827_v22, %v4240_v23  ;;  %v4853_v57 = vld [vmem:[#allocation11 + $0x104] sm:$0xf]  ;;  %v2287_v22 = vperm.slane %v2241_v8, 1  ;;  %v2288_v23 = vperm.slane %v2241_v8, 2 }
 0x33a   :  { %2801 = vmatpush.bf16.msrb.mxu3 %v4459_v50  ;;  %v4291_v50 = vor.u32 %v4839_v40, %v4288_v47  ;;  %v2383_v47 = vld [vmem:[%s5566_s7] sm:$0x3] }
 0x33b   :  { %2789 = vmatpush.bf16.msrb.mxu2 %v4387_v0  ;;  %v4408_v0 = vld [vmem:[#allocation11 + $0x188] sm:$0xf0]  ;;  %v2385_v11 = vperm.slane %v2383_v47, 0  ;;  %v2386_v48 = vperm.slane %v2383_v47, 1 }
 0x33c   :  { %2761 = vmatpush.bf16.msrb.mxu0 %v4275_v24  ;;  %v4435_v24 = vor.u32 %v4875_v29, %v4432_v30  ;;  %v4411_v15 = vor.u32 %v4869_v5, %v4408_v0 }
 0x33d   :  { %2777 = vmatpush.bf16.msrb.mxu1 %v4315_v18  ;;  %v2242_v18 = vld [vmem:[%s5564_s5] sm:$0xf] }
 0x33e   :  { %2802 = vmatpush.bf16.msrb.mxu3 %v4451_v13  ;;  %v4347_v13 = vor.u32 %v4853_v57, %v4344_v58  ;;  %v2301_v59 = vperm.slane %v2242_v18, 2  ;;  %v2302_v43 = vperm.slane %v2242_v18, 3 }
 0x33f   :  { %2790 = vmatpush.bf16.msrb.mxu2 %v4379_v10 }
 0x340   :  { %2762 = vmatpush.bf16.msrb.mxu0 %v4267_v33  ;;  %v4823_v33 = vld [vmem:[#allocation11 + $0x14] sm:$0xf] }
 0x341   :  { %2778 = vmatpush.bf16.msrb.mxu1 %v4307_v28  ;;  %v4227_v49 = vor.u32 %v4823_v33, %v4224_v9 }
 0x342   :  { %2803 = vmatpush.bf16.msrb.mxu3 %v4443_v19  ;;  %v2286_v19 = vperm.slane %v2241_v8, 0 }
 0x343   :  { %2791 = vmatpush.bf16.msrb.mxu2 %v4371_v26 }
 0x344   :  { %2763 = vmatpush.bf16.msrb.mxu0 %v4259_v56  ;;  %v4419_v56 = vor.u32 %v4871_v6, %v4416_v63 }
 0x346   :  { %2804 = vmatpush.bf16.msrb.mxu3 %v4435_v24 }
 0x347   :  { %2792 = vmatpush.bf16.msrb.mxu2 %v4363_v39 }
 0x348   :  { %2764 = vmatpush.bf16.msrb.mxu0 %v4251_v17 }
 0x34a   :  { %2805 = vmatpush.bf16.msrb.mxu3 %v4427_v61 }
 0x34b   :  { %2793 = vmatpush.bf16.msrb.mxu2 %v4355_v52 }
 0x34c   :  { %2765 = vmatpush.bf16.msrb.mxu0 %v4243_v60  ;;  %v2300_v60 = vperm.slane %v2242_v18, 1 }
 0x34e   :  { %2806 = vmatpush.bf16.msrb.mxu3 %v4419_v56 }
 0x34f   :  { %2794 = vmatpush.bf16.msrb.mxu2 %v4347_v13 }
 0x350   :  { %2766 = vmatpush.bf16.msrb.mxu0 %v4235_v36 }
 0x352   :  { %2807 = vmatpush.bf16.msrb.mxu3 %v4411_v15 }
 0x354   :  { %2767 = vmatpush.bf16.msrb.mxu0 %v4227_v49 }
 0x358   :  { %2768 = vmatpush.bf16.msrb.mxu0 %v4219_v2 }
 0x3a2   :  { %v2268_v20 = vpop.xlane.xlu1 %2267 }
 0x3a3   :  { %v2269_v27 = vmul.f32 %v2268_v20, %v5502_v21  ;;  %v4296_v21 = vld [vmem:[#allocation11 + $0xa8] sm:$0xf0]  ;;  %v2299_v20 = vperm.slane %v2242_v18, 0 }
 0x3a4   :  { %v4299_v7 = vor.u32 %v4841_v35, %v4296_v21 }
 0x3a5   :  { %v5526_v32 = vadd.f32 1e-05, %v2269_v27 }
 0x3a6   :  { %2779 = vmatpush.bf16.msrb.mxu1 %v4299_v7 }
 0x3a7   :  { %4941 = vrsqrt.f32 %v5526_v32  ;;  %vm2277_vm9 = vweird.f32 %v5526_v32 }
 0x3aa   :  { %2780 = vmatpush.bf16.msrb.mxu1 %v4291_v50 }
 0x3ad   :  { %v4942_v3 = vpop.eup %4941 }
 0x3ae   :  { %v2272_v1 = vmul.f32 %v4942_v3, %v5526_v32  ;;  %2781 = vmatpush.bf16.msrb.mxu1 %v4283_v4  ;;  %vm2278_vm8 = vweird.f32 %v4942_v3 }
 0x3af   :  { %vm2279_vm10 = vmor %vm2277_vm9, %vm2278_vm8 }
 0x3b0   :  { %v2273_v14 = vmul.f32 %v4942_v3, %v2272_v1 }
 0x3b2   :  { %v2274_v16 = vmul.f32 0.5, %v2273_v14  ;;  %v5224_v14 = vmov 256.0  }
 0x3b3   :  { %4943 = vrcp.f32 %v5224_v14 }
 0x3b4   :  { %v2275_v17 = vsub.f32 1.5, %v2274_v16 }
 0x3b6   :  { %v2276_v10 = vmul.f32 %v4942_v3, %v2275_v17 }
 0x3b8   :  { %v2280_v27 = vsel %vm2279_vm10, %v4942_v3, %v2276_v10 }
 0x3b9   :  { %v2281_v62 = vmul.f32 %v2280_v27, %v5506_v44  ;;  %v2282_v28 = vmul.f32 %v2280_v27, %v5509_v45  ;;  %v2283_v26 = vmul.f32 %v2280_v27, %v5512_v12  ;;  %v2284_v29 = vmul.f32 %v2280_v27, %v5515_v25  ;;  %v4944_v15 = vpop.eup %4943 }
 0x3ba   :  { %v2819_v16 = vmul.f32 256.0, %v4944_v15  ;;  %vm2823_vm11 = vweird.f32 %v4944_v15 }
 0x3bb   :  { %v2294_v30 = vmul.f32 %v2286_v19, %v2281_v62  ;;  %v2295_v31 = vmul.f32 %v2287_v22, %v2282_v28  ;;  %v2296_v32 = vmul.f32 %v2288_v23, %v2283_v26  ;;  %v2297_v24 = vmul.f32 %v2289_v46, %v2284_v29  ;;  %v4891_v62 = vld [vmem:[#allocation14 + $0x30] sm:$0xff]  ;;  %v4890_v26 = vld [vmem:[#allocation14 + $0x28] sm:$0xff] }
 0x3bc   :  { %v2820_v8 = vsub.f32 1.0, %v2819_v16  ;;  %v4899_v28 = vld [vmem:[#allocation14 + $0x70] sm:$0xff]  ;;  %v4898_v29 = vld [vmem:[#allocation14 + $0x68] sm:$0xff] }
 0x3bd   :  { %v2307_v34 = vadd.f32 %v2299_v20, %v2294_v30  ;;  %v2308_v35 = vadd.f32 %v2300_v60, %v2295_v31  ;;  %v2309_v36 = vadd.f32 %v2301_v59, %v2296_v32  ;;  %v2310_v21 = vadd.f32 %v2302_v43, %v2297_v24  ;;  %v4892_v59 = vld [vmem:[#allocation14 + $0x38] sm:$0xff]  ;;  %v4889_v30 = vld [vmem:[#allocation14 + $0x20] sm:$0xff] }
 0x3be   :  { %v2821_v17 = vmul.f32 %v4944_v15, %v2820_v8  ;;  %v4900_v43 = vld [vmem:[#allocation14 + $0x78] sm:$0xff]  ;;  %v4897_v31 = vld [vmem:[#allocation14 + $0x60] sm:$0xff] }
 0x3bf   :  { %v2311_v37 = vmax.f32 %v2307_v34, 0.0  ;;  %v2312_v38 = vmax.f32 %v2308_v35, 0.0  ;;  %v2313_v7 = vmax.f32 %v2309_v36, 0.0  ;;  %v2314_v39 = vmax.f32 %v2310_v21, 0.0  ;;  %v4888_v32 = vld [vmem:[#allocation14 + $0x18] sm:$0xff]  ;;  %v4887_v34 = vld [vmem:[#allocation14 + $0x10] sm:$0xff] }
 0x3c0   :  { %v2822_v18 = vadd.f32 %v4944_v15, %v2821_v17  ;;  %v4896_v24 = vld [vmem:[#allocation14 + $0x58] sm:$0xff]  ;;  %v4895_v35 = vld [vmem:[#allocation14 + $0x50] sm:$0xff]  ;;  %v4886_v36 = vld [vmem:[#allocation14 + $0x8] sm:$0xff] }
 0x3c1   :  { %v2315_v41 = vpack.c.bf16 %v2311_v37, %v2311_v37  ;;  %v2316_v44 = vpack.c.bf16 %v2312_v38, %v2312_v38  ;;  %v2317_v42 = vpack.c.bf16 %v2313_v7, %v2313_v7  ;;  %v2318_v45 = vpack.c.bf16 %v2314_v39, %v2314_v39  ;;  %v4894_v21 = vld [vmem:[#allocation14 + $0x48] sm:$0xff]  ;;  %v4885_v37 = vld [vmem:[#allocation14] sm:$0xff] }
 0x3c2   :  { %v2824_v10 = vsel %vm2823_vm11, %v4944_v15, %v2822_v18  ;;  %v4893_v38 = vld [vmem:[#allocation14 + $0x40] sm:$0xff]  ;;  %v3025_v18 = vlaneseq }
 0x3c3   :  { %2717 = vmatmul.bf16.vlgmr.msra.gmra.mxu0 %v2315_v41  ;;  %2730 = vmatmul.bf16.vlgmr.msra.gmra.mxu1 %v2316_v44 }
 0x3c4   :  { %2743 = vmatmul.bf16.vlgmr.msra.gmra.mxu2 %v2317_v42  ;;  %2756 = vmatmul.bf16.vlgmr.msra.gmra.mxu3 %v2318_v45 }
 0x3c5   :  { %2997 = vmatpush.bf16.msra.mxu0 %v4892_v59  ;;  %3010 = vmatpush.bf16.msra.mxu1 %v4900_v43  ;;  %v4907_v59 = vld [vmem:[#allocation16 + $0x30] sm:$0xff]  ;;  %v4906_v43 = vld [vmem:[#allocation16 + $0x28] sm:$0xff] }
 0x3c9   :  { %2998 = vmatpush.bf16.msra.mxu0 %v4891_v62  ;;  %3011 = vmatpush.bf16.msra.mxu1 %v4899_v28  ;;  %v4905_v62 = vld [vmem:[#allocation16 + $0x20] sm:$0xff]  ;;  %v4904_v28 = vld [vmem:[#allocation16 + $0x18] sm:$0xff] }
 0x3cd   :  { %2999 = vmatpush.bf16.msra.mxu0 %v4890_v26  ;;  %3012 = vmatpush.bf16.msra.mxu1 %v4898_v29  ;;  %v4903_v26 = vld [vmem:[#allocation16 + $0x10] sm:$0xff]  ;;  %v4902_v29 = vld [vmem:[#allocation16 + $0x8] sm:$0xff] }
 0x3d1   :  { %3000 = vmatpush.bf16.msra.mxu0 %v4889_v30  ;;  %3013 = vmatpush.bf16.msra.mxu1 %v4897_v31  ;;  %v4901_v30 = vld [vmem:[#allocation16] sm:$0xff] }
 0x3d3   :  { %2769 = vmatmul.bf16.vlgmr.msrb.gmra.mxu0 %v2315_v41  ;;  %2782 = vmatmul.bf16.vlgmr.msrb.gmra.mxu1 %v2316_v44 }
 0x3d4   :  { %2795 = vmatmul.bf16.vlgmr.msrb.gmra.mxu2 %v2317_v42  ;;  %2808 = vmatmul.bf16.vlgmr.msrb.gmra.mxu3 %v2318_v45 }
 0x3d5   :  { %3001 = vmatpush.bf16.msra.mxu0 %v4888_v32  ;;  %3014 = vmatpush.bf16.msra.mxu1 %v4896_v24 }
 0x3d9   :  { %3002 = vmatpush.bf16.msra.mxu0 %v4887_v34  ;;  %3015 = vmatpush.bf16.msra.mxu1 %v4895_v35 }
 0x3dd   :  { %3003 = vmatpush.bf16.msra.mxu0 %v4886_v36  ;;  %3016 = vmatpush.bf16.msra.mxu1 %v4894_v21 }
 0x3e1   :  { %3004 = vmatpush.bf16.msra.mxu0 %v4885_v37  ;;  %3017 = vmatpush.bf16.msra.mxu1 %v4893_v38 }
 0x440   :  { %v2718_v12 = vpop.f32.mrf.mxu0  ;;  %v2731_v25 = vpop.f32.mrf.mxu1 }
 0x441   :  { %v2719_v50 = vadd.f32 %v2718_v12, %v2385_v11 }
 0x443   :  { %v2732_v53 = vadd.f32 %v2731_v25, %v2719_v50 }
 0x447   :  { %v2744_v33 = vpop.f32.mrf.mxu2  ;;  %v2757_v61 = vpop.f32.mrf.mxu3 }
 0x448   :  { %v2720_v9 = vpop.f32.mrf.mxu0  ;;  %v2733_v40 = vpop.f32.mrf.mxu1  ;;  %v2745_v54 = vadd.f32 %v2744_v33, %v2732_v53  ;;  %v2813_v33 = vld [vmem:[#allocation13] sm:$0x3] }
 0x449   :  { %v2814_v9 = vld [vmem:[%s5568_s9] sm:$0x3]  ;;  %v2848_v40 = vperm.slane %v2813_v33, 0  ;;  %v2849_v47 = vperm.slane %v2813_v33, 1 }
 0x44a   :  { %v2758_v0 = vadd.f32 %v2757_v61, %v2745_v54  ;;  %v2856_v50 = vperm.slane %v2814_v9, 1  ;;  %v4932_v33 = vld [vmem:[%s5574_s15] ss:$0 sm:$0xff]  ;;  %s3174_s15 = sshll.u32 %s5575_s16, 4  ;;  %s3175_s15 = int_to_ptr.hbm [resolvable:$true] %s3174_s15 }
 0x44f   :  { %v2746_v6 = vpop.f32.mrf.mxu2  ;;  %v2759_v49 = vpop.f32.mrf.mxu3 }
 0x450   :  { %v2770_v63 = vpop.f32.mrf.mxu0  ;;  %v2783_v51 = vpop.f32.mrf.mxu1  ;;  %v2855_v49 = vperm.slane %v2814_v9, 0 }
 0x451   :  { %v2771_v52 = vadd.f32 %v2770_v63, %v2386_v48 }
 0x453   :  { %v2784_v55 = vadd.f32 %v2783_v51, %v2771_v52 }
 0x457   :  { %v2796_v56 = vpop.f32.mrf.mxu2  ;;  %v2809_v57 = vpop.f32.mrf.mxu3 }
 0x458   :  { %v2797_v58 = vadd.f32 %v2796_v56, %v2784_v55  ;;  %v2772_v3 = vpop.f32.mrf.mxu0  ;;  %v2785_v5 = vpop.f32.mrf.mxu1 }
 0x45a   :  { %v2810_v1 = vadd.f32 %v2809_v57, %v2797_v58  ;;  %v4929_v58 = vld [vmem:[%s5570_s11] ss:$0 sm:$0xff] }
 0x45c   :  { %v2815_v2 = vadd.f32 %v2810_v1, %v2758_v0 }
 0x45e   :  { %2816 = vadd.xlane.f32.xlu2 %v2815_v2 }
 0x45f   :  { %v2798_v4 = vpop.f32.mrf.mxu2  ;;  %v2811_v13 = vpop.f32.mrf.mxu3 }
 0x460   :  { %v5225_v13 = vmov 32.0  }
 0x4d1   :  { %v2817_v19 = vpop.xlane.xlu2 %2816 }
 0x4d2   :  { %v2825_v20 = vmul.f32 %v2824_v10, %v2817_v19  ;;  %v3026_v19 = vand.u32 127, %v3025_v18 }
 0x4d4   :  { %v2826_v22 = vsub.f32 %v2758_v0, %v2825_v20  ;;  %v2827_v23 = vsub.f32 %v2810_v1, %v2825_v20  ;;  %vm3027_vm0 = vcmp.lt.s32.totalorder %v3026_v19, 32 }
 0x4d6   :  { %v2828_v46 = vmul.f32 %v2826_v22, %v2826_v22  ;;  %v2829_v27 = vmul.f32 %v2827_v23, %v2827_v23 }
 0x4d8   :  { %v2830_v60 = vadd.f32 %v2829_v27, %v2828_v46 }
 0x4da   :  { %2831 = vadd.xlane.f32.xlu2 %v2830_v60  ;;  %v4908_v60 = vld [vmem:[#allocation16 + $0x38] sm:$0xff] }
 0x4db   :  { %3134 = vmatpush.bf16.msra.mxu2 %v4908_v60 }
 0x4df   :  { %3135 = vmatpush.bf16.msra.mxu2 %v4907_v59 }
 0x4e3   :  { %3136 = vmatpush.bf16.msra.mxu2 %v4906_v43 }
 0x4e7   :  { %3137 = vmatpush.bf16.msra.mxu2 %v4905_v62 }
 0x4eb   :  { %3138 = vmatpush.bf16.msra.mxu2 %v4904_v28 }
 0x4ef   :  { %3139 = vmatpush.bf16.msra.mxu2 %v4903_v26 }
 0x4f3   :  { %3140 = vmatpush.bf16.msra.mxu2 %v4902_v29 }
 0x4f7   :  { %3141 = vmatpush.bf16.msra.mxu2 %v4901_v30 }
 0x54d   :  { %v2832_v7 = vpop.xlane.xlu2 %2831 }
 0x54e   :  { %v2833_v39 = vmul.f32 %v2832_v7, %v2824_v10  ;;  %v4930_v7 = vld [vmem:[%s5571_s12] ss:$0 sm:$0xff]  ;;  %s5226_s12 = smov [#allocation17]  }
 0x550   :  { %v2834_v41 = vadd.f32 1e-05, %v2833_v39 }
 0x552   :  { %4945 = vrsqrt.f32 %v2834_v41  ;;  %vm2841_vm13 = vweird.f32 %v2834_v41 }
 0x553   :  { %4947 = vrcp.f32 %v5225_v13 }
 0x558   :  { %v4946_v44 = vpop.eup %4945 }
 0x559   :  { %v2836_v42 = vmul.f32 %v4946_v44, %v2834_v41  ;;  %vm2842_vm12 = vweird.f32 %v4946_v44  ;;  %v4948_v14 = vpop.eup %4947 }
 0x55a   :  { %vm2843_vm14 = vmor %vm2841_vm13, %vm2842_vm12  ;;  %v3031_v15 = vmul.f32 32.0, %v4948_v14  ;;  %vm3035_vm15 = vweird.f32 %v4948_v14 }
 0x55b   :  { %v2837_v45 = vmul.f32 %v4946_v44, %v2836_v42 }
 0x55c   :  { %v3032_v16 = vsub.f32 1.0, %v3031_v15 }
 0x55d   :  { %v2838_v12 = vmul.f32 0.5, %v2837_v45 }
 0x55e   :  { %v3033_v8 = vmul.f32 %v4948_v14, %v3032_v16 }
 0x55f   :  { %v2839_v25 = vsub.f32 1.5, %v2838_v12 }
 0x560   :  { %v3034_v17 = vadd.f32 %v4948_v14, %v3033_v8 }
 0x561   :  { %v2840_v61 = vmul.f32 %v4946_v44, %v2839_v25 }
 0x562   :  { %v3036_v10 = vsel %vm3035_vm15, %v4948_v14, %v3034_v17 }
 0x563   :  { %v2844_v11 = vsel %vm2843_vm14, %v4946_v44, %v2840_v61  ;;  %v4931_v44 = vld [vmem:[%s5572_s13] ss:$0 sm:$0xff]  ;;  %s3172_s13 = sshll.u32 %s5226_s12, 4  ;;  %s3173_s13 = int_to_ptr.vmem [resolvable:$true] %s3172_s13 }
 0x564   :  { %v2845_v48 = vmul.f32 %v2844_v11, %v2826_v22  ;;  %v2846_v6 = vmul.f32 %v2844_v11, %v2827_v23 }
 0x566   :  { %v2852_v63 = vmul.f32 %v2848_v40, %v2845_v48  ;;  %v2853_v51 = vmul.f32 %v2849_v47, %v2846_v6 }
 0x568   :  { %v2859_v52 = vadd.f32 %v2855_v49, %v2852_v63  ;;  %v2860_v53 = vadd.f32 %v2856_v50, %v2853_v51 }
 0x56a   :  { %v2861_v54 = vmax.f32 %v2859_v52, 0.0  ;;  %v2862_v55 = vmax.f32 %v2860_v53, 0.0 }
 0x56c   :  { %v2863_v56 = vpack.c.bf16 %v2861_v54, %v2861_v54  ;;  %v2864_v57 = vpack.c.bf16 %v2862_v55, %v2862_v55 }
 0x56e   :  { %3005 = vmatmul.bf16.vlgmr.msra.gmra.mxu0 %v2863_v56  ;;  %3018 = vmatmul.bf16.vlgmr.msra.gmra.mxu1 %v2864_v57 }
 0x5eb   :  { %v3006_v3 = vpop.f32.mrf.mxu0  ;;  %v3019_v5 = vpop.f32.mrf.mxu1 }
 0x5ec   :  { %v3007_v0 = vadd.f32 %v4929_v58, %v3006_v3 }
 0x5ee   :  { %v3020_v1 = vadd.f32 %v3019_v5, %v3007_v0 }
 0x5f0   :  { %3028 = vadd.xlane.f32.xlu0 %v3020_v1 }
 0x5f3   :  { %v3008_v2 = vpop.f32.mrf.mxu0  ;;  %v3021_v4 = vpop.f32.mrf.mxu1 }
 0x663   :  { %v3029_v20 = vpop.xlane.xlu0 %3028 }
 0x664   :  { %v3037_v22 = vmul.f32 %v3036_v10, %v3029_v20 }
 0x666   :  { %v3038_v23 = vsub.f32 %v3020_v1, %v3037_v22 }
 0x668   :  { %v3039_v46 = vsel %vm3027_vm0, %v3038_v23, 0.0 }
 0x669   :  { %v3040_v27 = vmul.f32 %v3039_v46, %v3039_v46 }
 0x66b   :  { %3041 = vadd.xlane.f32.xlu1 %v3040_v27 }
 0x6de   :  { %v3042_v31 = vpop.xlane.xlu1 %3041 }
 0x6df   :  { %v3043_v32 = vmul.f32 %v3042_v31, %v3036_v10 }
 0x6e1   :  { %v3044_v24 = vadd.f32 1e-05, %v3043_v32 }
 0x6e3   :  { %4949 = vrsqrt.f32 %v3044_v24  ;;  %vm3051_vm2 = vweird.f32 %v3044_v24 }
 0x6e9   :  { %v4950_v34 = vpop.eup %4949 }
 0x6ea   :  { %v3046_v35 = vmul.f32 %v4950_v34, %v3044_v24  ;;  %vm3052_vm1 = vweird.f32 %v4950_v34 }
 0x6eb   :  { %vm3053_vm3 = vmor %vm3051_vm2, %vm3052_vm1 }
 0x6ec   :  { %v3047_v36 = vmul.f32 %v4950_v34, %v3046_v35 }
 0x6ee   :  { %v3048_v21 = vmul.f32 0.5, %v3047_v36 }
 0x6f0   :  { %v3049_v37 = vsub.f32 1.5, %v3048_v21 }
 0x6f2   :  { %v3050_v38 = vmul.f32 %v4950_v34, %v3049_v37 }
 0x6f4   :  { %v3054_v39 = vsel %vm3053_vm3, %v4950_v34, %v3050_v38 }
 0x6f5   :  { %v3055_v41 = vmul.f32 %v3054_v39, %v3039_v46 }
 0x6f7   :  { %v3059_v42 = vmul.f32 %v4930_v7, %v3055_v41 }
 0x6f9   :  { %v3063_v45 = vadd.f32 %v4931_v44, %v3059_v42 }
 0x6fb   :  { %v3064_v12 = vmax.f32 %v3063_v45, 0.0 }
 0x6fd   :  { %v3065_v25 = vpack.c.bf16 %v3064_v12, %v3064_v12 }
 0x6ff   :  { %3142 = vmatmul.bf16.vlgmr.msra.gmra.mxu2 %v3065_v25 }
 0x782   :  { %v3143_v61 = vpop.f32.mrf.mxu2 }
 0x783   :  { %v3144_v9 = vadd.f32 %v4932_v33, %v3143_v61 }
 0x785   :  { %v4564_v40 = vmul.f32 -1.442695, %v3144_v9 }
 0x787   :  { %4951 = vpow2.f32 %v4564_v40 }
 0x78a   :  { %v3145_v47 = vpop.f32.mrf.mxu2 }
 0x78d   :  { %v4952_v11 = vpop.eup %4951 }
 0x78e   :  { %v3150_v48 = vadd.f32 1.0, %v4952_v11 }
 0x790   :  { %4953 = vrcp.f32 %v3150_v48  ;;  %v3162_v63 = vand.u32 2147483648, %v3150_v48  ;;  %v3160_v52 = vand.u32 2147483647, %v3150_v48  ;;  %vm3156_vm5 = vweird.f32 %v3150_v48 }
 0x792   :  { %v3163_v54 = vor.u32 1.1754944e-38, %v3162_v63  ;;  %vm3161_vm7 = vcmp.eq.f32.partialorder %v3160_v52, 8.507059e+37 }
 0x796   :  { %v4954_v6 = vpop.eup %4953 }
 0x797   :  { %v3152_v49 = vmul.f32 %v4954_v6, %v3150_v48  ;;  %vm3157_vm4 = vweird.f32 %v4954_v6 }
 0x798   :  { %vm3158_vm6 = vmor %vm3156_vm5, %vm3157_vm4 }
 0x799   :  { %v3153_v50 = vsub.f32 1.0, %v3152_v49 }
 0x79b   :  { %v3154_v51 = vmul.f32 %v4954_v6, %v3153_v50 }
 0x79d   :  { %v3155_v53 = vadd.f32 %v4954_v6, %v3154_v51 }
 0x79f   :  { %v3159_v55 = vsel %vm3158_vm6, %v4954_v6, %v3155_v53 }
 0x7a0   :  { %v3164_v56 = vsel %vm3161_vm7, %v3163_v54, %v3159_v55 }
 0x7a1   :  { %3166 = vst [vmem:[#allocation17] sm:$0xff] %v3164_v56 }
 0x7a2   :  { %3177 = dma.vmem_to_hbm [thread:$0]  %s3173_s13, 128, %s3175_s15, [#allocation4]  }
 0x7a3   :  { %5205 = dma.done.wait [#allocation4], 128  }
 0x7a4   :  { %5206 = vsyncadd [#allocation4], 4294967168 }
 0x7a5   :  { %3182 = vsyncpa [#allocation3], 1 }
 0x7a6   :  { %3183 = vsyncpa [#allocation6], 1 }
 0x7a7   :  { %3184 = vsyncpa [#allocation9], 1 }
 0x7a8   :  { %3185 = vsyncpa [#allocation12], 1 }
 0x7a9   :  { %3186 = vsyncpa [#allocation15], 1 }
 0x7aa   :  { %3187 = vsyncpa [#allocation4], 1 }

</bundles_post_ra>
